<compile_context>
chip_gen: v7x
topology: tpu7x:2x2x1
jax: 0.10.0
libtpu: 0.0.40
codegen_flags: <defaults>
</compile_context>

<pallas_src>
import functools

import jax
import jax.numpy as jnp
from jax.experimental import pallas as pl
from jax.experimental.pallas import tpu as pltpu

LANES = 128          # channel / logit lane width
SUBLANE_BF16 = 16    # bf16 sublane packing granularity


def _round_up(v, m):
    return -(-v // m) * m


def _pad_axis_to(x, axis, target):
    pad = [(0, 0)] * x.ndim
    pad[axis] = (0, target - x.shape[axis])
    return jnp.pad(x, pad)


# ----------------------------------------------------------------------------
# Fused per-batch-block kernel: conv1 -> conv2 -> conv3 -> folded fc, all VMEM.
# ----------------------------------------------------------------------------
def _fused_forward_kernel(x_ref, cw1_ref, cb1_ref, cw2_ref, cb2_ref,
                          cw3_ref, cb3_ref, fcw_ref, fcb_ref,
                          o_ref, a1_ref, a2_ref, a3_ref):
    bn = x_ref.shape[0]

    def conv_block(src_ref, w_ref, b_ref, ho, wo, relu):
        """'VALID', stride-1 conv as one M=(bn*ho*wo) 2D GEMM per kernel tap."""
        kh, kw, cin, cout = w_ref.shape
        m = bn * ho * wo
        acc = jnp.zeros((m, cout), jnp.float32)
        for ki in range(kh):
            for kj in range(kw):
                # Shifted window of the VMEM-resident input == implicit im2col.
                patch = src_ref[:, ki:ki + ho, kj:kj + wo, :]        # (bn,ho,wo,cin) bf16
                patch = patch.reshape(m, cin)                        # 2D GEMM operand
                acc = acc + jnp.dot(patch, w_ref[ki, kj],
                                    preferred_element_type=jnp.float32)
        out = acc + b_ref[...]                                       # (1,cout) f32 bias
        if relu:
            out = jnp.maximum(out, 0.0)
        return out                                                   # (m, cout) f32

    h1, w1 = a1_ref.shape[1], a1_ref.shape[2]
    h2, w2 = a2_ref.shape[1], a2_ref.shape[2]
    h3, w3 = a3_ref.shape[1], a3_ref.shape[2]

    a1_ref[...] = conv_block(x_ref, cw1_ref, cb1_ref, h1, w1, True).reshape(
        bn, h1, w1, -1).astype(a1_ref.dtype)
    a2_ref[...] = conv_block(a1_ref, cw2_ref, cb2_ref, h2, w2, True).reshape(
        bn, h2, w2, -1).astype(a2_ref.dtype)
    a3_ref[...] = conv_block(a2_ref, cw3_ref, cb3_ref, h3, w3, True).reshape(
        bn, h3, w3, -1).astype(a3_ref.dtype)

    # fc1+fc2 folded offline into one (h3, w3, cin, action_pad) "conv" whose
    # output is 1x1; PyTorch's NCHW flatten order is folded into the weight
    # layout at prep time. No activation, matching the reference forward().
    q = conv_block(a3_ref, fcw_ref, fcb_ref, 1, 1, False)            # (bn, LANES) f32
    o_ref[...] = q[None]                                             # lane-dense store


# ----------------------------------------------------------------------------
# Host-side one-time weight re-layout + fc fold (hoisted out of forward path).
# ----------------------------------------------------------------------------
def _space_to_depth_nchw(x_nchw):
    """NCHW -> NHWC 2x2 space-to-depth: (N,C,H,W)->(N,H/2,W/2,4C), chan order (py,px,c)."""
    n, c, h, w = x_nchw.shape
    x = jnp.transpose(x_nchw, (0, 2, 3, 1))                  # NHWC
    x = x.reshape(n, h // 2, 2, w // 2, 2, c)
    x = jnp.transpose(x, (0, 1, 3, 2, 4, 5))                 # (n, H/2, W/2, py, px, c)
    return x.reshape(n, h // 2, w // 2, 4 * c)


def prepare_params(params, h3, w3):
    f32, bf16 = jnp.float32, jnp.bfloat16

    # conv1 (k=4, s=2) folded to k=2, s=1 on the space-to-depth input.
    w = params["conv1_w"]                                    # (32, ci, 4, 4)
    cout1, ci = w.shape[0], w.shape[1]
    cin1 = _round_up(4 * ci, SUBLANE_BF16)                   # real channels, NOT 128
    w = w.reshape(cout1, ci, 2, 2, 2, 2)                     # (co, ci, KI, py, KJ, px)
    w = jnp.transpose(w, (2, 4, 3, 5, 1, 0))                 # (KI, KJ, py, px, ci, co)
    w = w.reshape(2, 2, 4 * ci, cout1)
    cw1 = _pad_axis_to(_pad_axis_to(w, 2, cin1), 3, LANES).astype(bf16)
    cb1 = _pad_axis_to(params["conv1_b"].reshape(1, -1), 1, LANES).astype(f32)

    def conv_taps(w_oihw):                                   # OIHW -> (kh, kw, cin_pad, cout_pad)
        wt = jnp.transpose(w_oihw, (2, 3, 1, 0))
        return _pad_axis_to(_pad_axis_to(wt, 2, LANES), 3, LANES).astype(bf16)

    cw2 = conv_taps(params["conv2_w"])
    cb2 = _pad_axis_to(params["conv2_b"].reshape(1, -1), 1, LANES).astype(f32)
    cw3 = conv_taps(params["conv3_w"])
    cb3 = _pad_axis_to(params["conv3_b"].reshape(1, -1), 1, LANES).astype(f32)

    # fc1 + fc2 fold (no nonlinearity between them):
    #   y = (x @ W1.T + b1) @ W2.T + b2 = x @ (W1.T @ W2.T) + (b1 @ W2.T + b2)
    # Fold PyTorch's NCHW flatten (idx = c*h3*w3 + h*w3 + w) into the layout,
    # exposed to the kernel as an (h3, w3) "conv" with a 1x1 output.
    c3 = params["conv3_w"].shape[0]                          # 64
    wf1 = params["fc1_w"].astype(f32)                        # (256, in_features)
    bf1 = params["fc1_b"].astype(f32)
    wf2 = params["fc2_w"].astype(f32)                        # (A, 256)
    bf2 = params["fc2_b"].astype(f32)
    wc = wf1.T @ wf2.T                                       # (in_features, A)
    bc = bf1 @ wf2.T + bf2                                   # (A,)
    wc = wc.reshape(c3, h3, w3, -1)                          # (c, h, w, A)
    wc = jnp.transpose(wc, (1, 2, 0, 3))                     # (h, w, c, A)
    fcw = _pad_axis_to(_pad_axis_to(wc, 2, LANES), 3, LANES).astype(bf16)
    fcb = _pad_axis_to(bc.reshape(1, -1), 1, LANES).astype(f32)   # padded lanes zero

    return dict(cw1=cw1, cb1=cb1, cw2=cw2, cb2=cb2, cw3=cw3, cb3=cb3,
                fcw=fcw, fcb=fcb)


# ----------------------------------------------------------------------------
# Forward pass (mirrors CNNActionValue.forward), N-tiled over the batch.
# ----------------------------------------------------------------------------
@functools.partial(jax.jit, static_argnames=("action_dim", "block_n"))
def cnn_action_value_forward(x_nchw, prep, *, action_dim, block_n=8):
    n, c, h, w = x_nchw.shape
    assert h % 2 == 0 and w % 2 == 0, "space-to-depth fold of conv1 needs even H, W"
    hs, ws = h // 2, w // 2
    h1, w1 = hs - 1, ws - 1                  # conv1: k=4, s=2 (folded to k=2, s=1)
    h2, w2 = h1 - 2, w1 - 2                  # conv2: k=3, s=1
    h3, w3 = h2 - 2, w2 - 2                  # conv3: k=3, s=1

    cin = _round_up(4 * c, SUBLANE_BF16)     # real input channels (16), not 128
    bn = min(block_n, n)
    n_pad = _round_up(n, bn)
    num_blocks = n_pad // bn

    x = _space_to_depth_nchw(x_nchw)                         # (n, hs, ws, 4c)
    x = _pad_axis_to(x, 3, cin)
    if n_pad != n:
        x = jnp.pad(x, ((0, n_pad - n), (0, 0), (0, 0), (0, 0)))
    x = x.astype(jnp.bfloat16)

    # Per-block VMEM budget (activations + f32 tap accumulator + double-buffered
    # x/out blocks + resident weights), used for an explicit scoped-VMEM limit.
    weight_bytes = sum(int(v.size) * v.dtype.itemsize for v in prep.values())
    act_bytes = bn * LANES * 2 * (h1 * w1 + h2 * w2 + h3 * w3)
    acc_bytes = bn * h1 * w1 * LANES * 4
    x_blk = bn * hs * ws * cin * 2
    o_blk = bn * LANES * 4
    est = 2 * x_blk + 2 * o_blk + weight_bytes + act_bytes + 2 * acc_bytes
    vmem_limit = int(min(max(2 * est, 32 * 1024 * 1024), 64 * 1024 * 1024))

    grid_spec = pltpu.PrefetchScalarGridSpec(
        num_scalar_prefetch=0,
        grid=(num_blocks,),
        in_specs=[
            # batch-tiled input block
            pl.BlockSpec((bn, hs, ws, cin), lambda i: (i, 0, 0, 0)),
            # weights/biases: constant index_map -> DMA'd once, VMEM-resident
            pl.BlockSpec(prep["cw1"].shape, lambda i: (0, 0, 0, 0)),
            pl.BlockSpec(prep["cb1"].shape, lambda i: (0, 0)),
            pl.BlockSpec(prep["cw2"].shape, lambda i: (0, 0, 0, 0)),
            pl.BlockSpec(prep["cb2"].shape, lambda i: (0, 0)),
            pl.BlockSpec(prep["cw3"].shape, lambda i: (0, 0, 0, 0)),
            pl.BlockSpec(prep["cb3"].shape, lambda i: (0, 0)),
            pl.BlockSpec(prep["fcw"].shape, lambda i: (0, 0, 0, 0)),
            pl.BlockSpec(prep["fcb"].shape, lambda i: (0, 0)),
        ],
        out_specs=pl.BlockSpec((1, bn, LANES), lambda i: (i, 0, 0)),
        scratch_shapes=[
            pltpu.VMEM((bn, h1, w1, LANES), jnp.bfloat16),   # conv1 activation
            pltpu.VMEM((bn, h2, w2, LANES), jnp.bfloat16),   # conv2 activation
            pltpu.VMEM((bn, h3, w3, LANES), jnp.bfloat16),   # conv3 activation
        ],
    )

    out = pl.pallas_call(
        _fused_forward_kernel,
        out_shape=jax.ShapeDtypeStruct((num_blocks, bn, LANES), jnp.float32),
        grid_spec=grid_spec,
        compiler_params=pltpu.CompilerParams(
            dimension_semantics=("parallel",),
            vmem_limit_bytes=vmem_limit),
    )(x, prep["cw1"], prep["cb1"], prep["cw2"], prep["cb2"],
      prep["cw3"], prep["cb3"], prep["fcw"], prep["fcb"])

    out = out.reshape(n_pad, LANES)
    return out[:n, :action_dim]


# ----------------------------------------------------------------------------
# Deterministic synthetic parameter init (shapes from the module's __init__)
# ----------------------------------------------------------------------------
def init_params(key, state_dim, action_dim, in_features):
    ks = jax.random.split(key, 10)
    s = 0.05
    return {
        "conv1_w": jax.random.normal(ks[0], (32, state_dim, 4, 4), jnp.float32) * s,
        "conv1_b": jax.random.normal(ks[1], (32,), jnp.float32) * s,
        "conv2_w": jax.random.normal(ks[2], (64, 32, 3, 3), jnp.float32) * s,
        "conv2_b": jax.random.normal(ks[3], (64,), jnp.float32) * s,
        "conv3_w": jax.random.normal(ks[4], (64, 64, 3, 3), jnp.float32) * s,
        "conv3_b": jax.random.normal(ks[5], (64,), jnp.float32) * s,
        "fc1_w": jax.random.normal(ks[6], (256, in_features), jnp.float32) * s,
        "fc1_b": jax.random.normal(ks[7], (256,), jnp.float32) * s,
        "fc2_w": jax.random.normal(ks[8], (action_dim, 256), jnp.float32) * s,
        "fc2_b": jax.random.normal(ks[9], (action_dim,), jnp.float32) * s,
    }


# ----------------------------------------------------------------------------
# Pure-JAX f32 reference (correctness check)
# ----------------------------------------------------------------------------
def reference_forward(x, params):
    def conv(x, w, b, stride):
        y = jax.lax.conv_general_dilated(
            x, w, (stride, stride), "VALID",
            dimension_numbers=("NCHW", "OIHW", "NCHW"))
        return y + b[None, :, None, None]

    x = jax.nn.relu(conv(x, params["conv1_w"], params["conv1_b"], 2))
    x = jax.nn.relu(conv(x, params["conv2_w"], params["conv2_b"], 1))
    x = jax.nn.relu(conv(x, params["conv3_w"], params["conv3_b"], 1))
    x = x.reshape(x.shape[0], -1)
    x = x @ params["fc1_w"].T + params["fc1_b"]
    x = x @ params["fc2_w"].T + params["fc2_b"]
    return x


if __name__ == "__main__":
    batch, state_dim, spatial, action_dim = 4, 4, 16, 5

    # mirror _calculate_in_features, but at our small spatial size
    h1 = (spatial - 4) // 2 + 1   # conv1: k=4, s=2 -> 7
    h2 = h1 - 3 + 1               # conv2: k=3, s=1 -> 5
    h3 = h2 - 3 + 1               # conv3: k=3, s=1 -> 3
    in_features = 64 * h3 * h3    # 576

    key = jax.random.PRNGKey(0)
    kx, kp = jax.random.split(key)
    x = jax.random.normal(kx, (batch, state_dim, spatial, spatial), jnp.float32)
    params = init_params(kp, state_dim, action_dim, in_features)

    prep = prepare_params(params, h3, h3)     # one-time weight re-layout + fc fold

    out = jax.block_until_ready(
        cnn_action_value_forward(x, prep, action_dim=action_dim, block_n=2))
    ref = reference_forward(x, params)

    assert out.shape == (batch, action_dim)
    max_err = float(jnp.max(jnp.abs(out - ref)))
    assert jnp.allclose(out, ref, atol=3e-2, rtol=3e-2), (
        f"mismatch vs reference (max abs err {max_err:.4g})")
    print("KERNEL_OK")
</pallas_src>

<mosaic_0001>
module attributes {stable_mosaic.version = 11 : i64} {
  func.func @_fused_forward_kernel(%arg0: i32, %arg1: memref<2x8x8x16xbf16, #tpu.memory_space<vmem>>, %arg2: memref<2x2x16x128xbf16, #tpu.memory_space<vmem>>, %arg3: memref<1x128xf32, #tpu.memory_space<vmem>>, %arg4: memref<3x3x128x128xbf16, #tpu.memory_space<vmem>>, %arg5: memref<1x128xf32, #tpu.memory_space<vmem>>, %arg6: memref<3x3x128x128xbf16, #tpu.memory_space<vmem>>, %arg7: memref<1x128xf32, #tpu.memory_space<vmem>>, %arg8: memref<3x3x128x128xbf16, #tpu.memory_space<vmem>>, %arg9: memref<1x128xf32, #tpu.memory_space<vmem>>, %arg10: memref<1x2x128xf32, #tpu.memory_space<vmem>>, %arg11: memref<2x7x7x128xbf16, #tpu.memory_space<vmem>>, %arg12: memref<2x5x5x128xbf16, #tpu.memory_space<vmem>>, %arg13: memref<2x3x3x128xbf16, #tpu.memory_space<vmem>>) attributes {dimension_semantics = [#tpu.dimension_semantics<parallel>], iteration_bounds = array<i64: 2>, scalar_prefetch = 0 : i64, scratch_operands = 3 : i64, tpu.core_type = #tpu.core_type<tc>, window_params = [{transform_indices = @transform_0, window_bounds = array<i64: 2, 8, 8, 16>}, {pipeline_mode = #tpu.pipeline_mode<synchronous>, transform_indices = @transform_1, window_bounds = array<i64: 2, 2, 16, 128>}, {pipeline_mode = #tpu.pipeline_mode<synchronous>, transform_indices = @transform_2, window_bounds = array<i64: 1, 128>}, {pipeline_mode = #tpu.pipeline_mode<synchronous>, transform_indices = @transform_3, window_bounds = array<i64: 3, 3, 128, 128>}, {pipeline_mode = #tpu.pipeline_mode<synchronous>, transform_indices = @transform_4, window_bounds = array<i64: 1, 128>}, {pipeline_mode = #tpu.pipeline_mode<synchronous>, transform_indices = @transform_5, window_bounds = array<i64: 3, 3, 128, 128>}, {pipeline_mode = #tpu.pipeline_mode<synchronous>, transform_indices = @transform_6, window_bounds = array<i64: 1, 128>}, {pipeline_mode = #tpu.pipeline_mode<synchronous>, transform_indices = @transform_7, window_bounds = array<i64: 3, 3, 128, 128>}, {pipeline_mode = #tpu.pipeline_mode<synchronous>, transform_indices = @transform_8, window_bounds = array<i64: 1, 128>}, {transform_indices = @transform_9, window_bounds = array<i64: 1, 2, 128>}]} {
    %cst = arith.constant 0.000000e+00 : f32
    %0 = vector.broadcast %cst : f32 to vector<98x128xf32>
    %c0 = arith.constant 0 : index
    %c0_0 = arith.constant 0 : index
    %c0_1 = arith.constant 0 : index
    %c0_2 = arith.constant 0 : index
    %1 = vector.load %arg1[%c0, %c0_0, %c0_1, %c0_2] : memref<2x8x8x16xbf16, #tpu.memory_space<vmem>>, vector<2x7x7x16xbf16>
    %2 = vector.shape_cast %1 : vector<2x7x7x16xbf16> to vector<98x16xbf16>
    %c0_3 = arith.constant 0 : index
    %c0_4 = arith.constant 0 : index
    %c0_5 = arith.constant 0 : index
    %c0_6 = arith.constant 0 : index
    %3 = vector.load %arg2[%c0_3, %c0_4, %c0_5, %c0_6] : memref<2x2x16x128xbf16, #tpu.memory_space<vmem>>, vector<1x1x16x128xbf16>
    %4 = vector.shape_cast %3 : vector<1x1x16x128xbf16> to vector<16x128xbf16>
    %cst_7 = arith.constant dense<0.000000e+00> : vector<98x128xf32>
    %5 = tpu.matmul %2, %4, %cst_7 {dimension_numbers = #tpu.dot_dimension_numbers<[1], [0], [0], [1], [0, 0, 1, 1], [], []>} : vector<98x16xbf16>, vector<16x128xbf16>, vector<98x128xf32> -> vector<98x128xf32>
    %6 = arith.addf %0, %5 : vector<98x128xf32>
    %c0_8 = arith.constant 0 : index
    %c0_9 = arith.constant 0 : index
    %c1 = arith.constant 1 : index
    %c0_10 = arith.constant 0 : index
    %7 = vector.load %arg1[%c0_8, %c0_9, %c1, %c0_10] : memref<2x8x8x16xbf16, #tpu.memory_space<vmem>>, vector<2x7x7x16xbf16>
    %8 = vector.shape_cast %7 : vector<2x7x7x16xbf16> to vector<98x16xbf16>
    %c0_11 = arith.constant 0 : index
    %c1_12 = arith.constant 1 : index
    %c0_13 = arith.constant 0 : index
    %c0_14 = arith.constant 0 : index
    %9 = vector.load %arg2[%c0_11, %c1_12, %c0_13, %c0_14] : memref<2x2x16x128xbf16, #tpu.memory_space<vmem>>, vector<1x1x16x128xbf16>
    %10 = vector.shape_cast %9 : vector<1x1x16x128xbf16> to vector<16x128xbf16>
    %cst_15 = arith.constant dense<0.000000e+00> : vector<98x128xf32>
    %11 = tpu.matmul %8, %10, %cst_15 {dimension_numbers = #tpu.dot_dimension_numbers<[1], [0], [0], [1], [0, 0, 1, 1], [], []>} : vector<98x16xbf16>, vector<16x128xbf16>, vector<98x128xf32> -> vector<98x128xf32>
    %12 = arith.addf %6, %11 : vector<98x128xf32>
    %c0_16 = arith.constant 0 : index
    %c1_17 = arith.constant 1 : index
    %c0_18 = arith.constant 0 : index
    %c0_19 = arith.constant 0 : index
    %13 = vector.load %arg1[%c0_16, %c1_17, %c0_18, %c0_19] : memref<2x8x8x16xbf16, #tpu.memory_space<vmem>>, vector<2x7x7x16xbf16>
    %14 = vector.shape_cast %13 : vector<2x7x7x16xbf16> to vector<98x16xbf16>
    %c1_20 = arith.constant 1 : index
    %c0_21 = arith.constant 0 : index
    %c0_22 = arith.constant 0 : index
    %c0_23 = arith.constant 0 : index
    %15 = vector.load %arg2[%c1_20, %c0_21, %c0_22, %c0_23] : memref<2x2x16x128xbf16, #tpu.memory_space<vmem>>, vector<1x1x16x128xbf16>
    %16 = vector.shape_cast %15 : vector<1x1x16x128xbf16> to vector<16x128xbf16>
    %cst_24 = arith.constant dense<0.000000e+00> : vector<98x128xf32>
    %17 = tpu.matmul %14, %16, %cst_24 {dimension_numbers = #tpu.dot_dimension_numbers<[1], [0], [0], [1], [0, 0, 1, 1], [], []>} : vector<98x16xbf16>, vector<16x128xbf16>, vector<98x128xf32> -> vector<98x128xf32>
    %18 = arith.addf %12, %17 : vector<98x128xf32>
    %c0_25 = arith.constant 0 : index
    %c1_26 = arith.constant 1 : index
    %c1_27 = arith.constant 1 : index
    %c0_28 = arith.constant 0 : index
    %19 = vector.load %arg1[%c0_25, %c1_26, %c1_27, %c0_28] : memref<2x8x8x16xbf16, #tpu.memory_space<vmem>>, vector<2x7x7x16xbf16>
    %20 = vector.shape_cast %19 : vector<2x7x7x16xbf16> to vector<98x16xbf16>
    %c1_29 = arith.constant 1 : index
    %c1_30 = arith.constant 1 : index
    %c0_31 = arith.constant 0 : index
    %c0_32 = arith.constant 0 : index
    %21 = vector.load %arg2[%c1_29, %c1_30, %c0_31, %c0_32] : memref<2x2x16x128xbf16, #tpu.memory_space<vmem>>, vector<1x1x16x128xbf16>
    %22 = vector.shape_cast %21 : vector<1x1x16x128xbf16> to vector<16x128xbf16>
    %cst_33 = arith.constant dense<0.000000e+00> : vector<98x128xf32>
    %23 = tpu.matmul %20, %22, %cst_33 {dimension_numbers = #tpu.dot_dimension_numbers<[1], [0], [0], [1], [0, 0, 1, 1], [], []>} : vector<98x16xbf16>, vector<16x128xbf16>, vector<98x128xf32> -> vector<98x128xf32>
    %24 = arith.addf %18, %23 : vector<98x128xf32>
    %c0_34 = arith.constant 0 : index
    %c0_35 = arith.constant 0 : index
    %25 = vector.load %arg3[%c0_34, %c0_35] : memref<1x128xf32, #tpu.memory_space<vmem>>, vector<1x128xf32>
    %26 = vector.broadcast %25 : vector<1x128xf32> to vector<98x128xf32>
    %27 = arith.addf %24, %26 : vector<98x128xf32>
    %cst_36 = arith.constant 0.000000e+00 : f32
    %28 = vector.broadcast %cst_36 : f32 to vector<98x128xf32>
    %29 = arith.maximumf %27, %28 : vector<98x128xf32>
    %30 = vector.shape_cast %29 : vector<98x128xf32> to vector<2x7x7x128xf32>
    %31 = arith.truncf %30 : vector<2x7x7x128xf32> to vector<2x7x7x128xbf16>
    %c0_37 = arith.constant 0 : index
    %c0_38 = arith.constant 0 : index
    %c0_39 = arith.constant 0 : index
    %c0_40 = arith.constant 0 : index
    %32 = vector.load %arg11[%c0_37, %c0_38, %c0_39, %c0_40] : memref<2x7x7x128xbf16, #tpu.memory_space<vmem>>, vector<2x7x7x128xbf16>
    tpu.vector_store %arg11[%c0_37, %c0_38, %c0_39, %c0_40], %31 {strides = array<i32>} : memref<2x7x7x128xbf16, #tpu.memory_space<vmem>>, vector<2x7x7x128xbf16>,
    %cst_41 = arith.constant 0.000000e+00 : f32
    %33 = vector.broadcast %cst_41 : f32 to vector<50x128xf32>
    %c0_42 = arith.constant 0 : index
    %c0_43 = arith.constant 0 : index
    %c0_44 = arith.constant 0 : index
    %c0_45 = arith.constant 0 : index
    %34 = vector.load %arg11[%c0_42, %c0_43, %c0_44, %c0_45] : memref<2x7x7x128xbf16, #tpu.memory_space<vmem>>, vector<2x5x5x128xbf16>
    %35 = vector.shape_cast %34 : vector<2x5x5x128xbf16> to vector<50x128xbf16>
    %c0_46 = arith.constant 0 : index
    %c0_47 = arith.constant 0 : index
    %c0_48 = arith.constant 0 : index
    %c0_49 = arith.constant 0 : index
    %36 = vector.load %arg4[%c0_46, %c0_47, %c0_48, %c0_49] : memref<3x3x128x128xbf16, #tpu.memory_space<vmem>>, vector<1x1x128x128xbf16>
    %37 = vector.shape_cast %36 : vector<1x1x128x128xbf16> to vector<128x128xbf16>
    %cst_50 = arith.constant dense<0.000000e+00> : vector<50x128xf32>
    %38 = tpu.matmul %35, %37, %cst_50 {dimension_numbers = #tpu.dot_dimension_numbers<[1], [0], [0], [1], [0, 0, 1, 1], [], []>} : vector<50x128xbf16>, vector<128x128xbf16>, vector<50x128xf32> -> vector<50x128xf32>
    %39 = arith.addf %33, %38 : vector<50x128xf32>
    %c0_51 = arith.constant 0 : index
    %c0_52 = arith.constant 0 : index
    %c1_53 = arith.constant 1 : index
    %c0_54 = arith.constant 0 : index
    %40 = vector.load %arg11[%c0_51, %c0_52, %c1_53, %c0_54] : memref<2x7x7x128xbf16, #tpu.memory_space<vmem>>, vector<2x5x5x128xbf16>
    %41 = vector.shape_cast %40 : vector<2x5x5x128xbf16> to vector<50x128xbf16>
    %c0_55 = arith.constant 0 : index
    %c1_56 = arith.constant 1 : index
    %c0_57 = arith.constant 0 : index
    %c0_58 = arith.constant 0 : index
    %42 = vector.load %arg4[%c0_55, %c1_56, %c0_57, %c0_58] : memref<3x3x128x128xbf16, #tpu.memory_space<vmem>>, vector<1x1x128x128xbf16>
    %43 = vector.shape_cast %42 : vector<1x1x128x128xbf16> to vector<128x128xbf16>
    %cst_59 = arith.constant dense<0.000000e+00> : vector<50x128xf32>
    %44 = tpu.matmul %41, %43, %cst_59 {dimension_numbers = #tpu.dot_dimension_numbers<[1], [0], [0], [1], [0, 0, 1, 1], [], []>} : vector<50x128xbf16>, vector<128x128xbf16>, vector<50x128xf32> -> vector<50x128xf32>
    %45 = arith.addf %39, %44 : vector<50x128xf32>
    %c0_60 = arith.constant 0 : index
    %c0_61 = arith.constant 0 : index
    %c2 = arith.constant 2 : index
    %c0_62 = arith.constant 0 : index
    %46 = vector.load %arg11[%c0_60, %c0_61, %c2, %c0_62] : memref<2x7x7x128xbf16, #tpu.memory_space<vmem>>, vector<2x5x5x128xbf16>
    %47 = vector.shape_cast %46 : vector<2x5x5x128xbf16> to vector<50x128xbf16>
    %c0_63 = arith.constant 0 : index
    %c2_64 = arith.constant 2 : index
    %c0_65 = arith.constant 0 : index
    %c0_66 = arith.constant 0 : index
    %48 = vector.load %arg4[%c0_63, %c2_64, %c0_65, %c0_66] : memref<3x3x128x128xbf16, #tpu.memory_space<vmem>>, vector<1x1x128x128xbf16>
    %49 = vector.shape_cast %48 : vector<1x1x128x128xbf16> to vector<128x128xbf16>
    %cst_67 = arith.constant dense<0.000000e+00> : vector<50x128xf32>
    %50 = tpu.matmul %47, %49, %cst_67 {dimension_numbers = #tpu.dot_dimension_numbers<[1], [0], [0], [1], [0, 0, 1, 1], [], []>} : vector<50x128xbf16>, vector<128x128xbf16>, vector<50x128xf32> -> vector<50x128xf32>
    %51 = arith.addf %45, %50 : vector<50x128xf32>
    %c0_68 = arith.constant 0 : index
    %c1_69 = arith.constant 1 : index
    %c0_70 = arith.constant 0 : index
    %c0_71 = arith.constant 0 : index
    %52 = vector.load %arg11[%c0_68, %c1_69, %c0_70, %c0_71] : memref<2x7x7x128xbf16, #tpu.memory_space<vmem>>, vector<2x5x5x128xbf16>
    %53 = vector.shape_cast %52 : vector<2x5x5x128xbf16> to vector<50x128xbf16>
    %c1_72 = arith.constant 1 : index
    %c0_73 = arith.constant 0 : index
    %c0_74 = arith.constant 0 : index
    %c0_75 = arith.constant 0 : index
    %54 = vector.load %arg4[%c1_72, %c0_73, %c0_74, %c0_75] : memref<3x3x128x128xbf16, #tpu.memory_space<vmem>>, vector<1x1x128x128xbf16>
    %55 = vector.shape_cast %54 : vector<1x1x128x128xbf16> to vector<128x128xbf16>
    %cst_76 = arith.constant dense<0.000000e+00> : vector<50x128xf32>
    %56 = tpu.matmul %53, %55, %cst_76 {dimension_numbers = #tpu.dot_dimension_numbers<[1], [0], [0], [1], [0, 0, 1, 1], [], []>} : vector<50x128xbf16>, vector<128x128xbf16>, vector<50x128xf32> -> vector<50x128xf32>
    %57 = arith.addf %51, %56 : vector<50x128xf32>
    %c0_77 = arith.constant 0 : index
    %c1_78 = arith.constant 1 : index
    %c1_79 = arith.constant 1 : index
    %c0_80 = arith.constant 0 : index
    %58 = vector.load %arg11[%c0_77, %c1_78, %c1_79, %c0_80] : memref<2x7x7x128xbf16, #tpu.memory_space<vmem>>, vector<2x5x5x128xbf16>
    %59 = vector.shape_cast %58 : vector<2x5x5x128xbf16> to vector<50x128xbf16>
    %c1_81 = arith.constant 1 : index
    %c1_82 = arith.constant 1 : index
    %c0_83 = arith.constant 0 : index
    %c0_84 = arith.constant 0 : index
    %60 = vector.load %arg4[%c1_81, %c1_82, %c0_83, %c0_84] : memref<3x3x128x128xbf16, #tpu.memory_space<vmem>>, vector<1x1x128x128xbf16>
    %61 = vector.shape_cast %60 : vector<1x1x128x128xbf16> to vector<128x128xbf16>
    %cst_85 = arith.constant dense<0.000000e+00> : vector<50x128xf32>
    %62 = tpu.matmul %59, %61, %cst_85 {dimension_numbers = #tpu.dot_dimension_numbers<[1], [0], [0], [1], [0, 0, 1, 1], [], []>} : vector<50x128xbf16>, vector<128x128xbf16>, vector<50x128xf32> -> vector<50x128xf32>
    %63 = arith.addf %57, %62 : vector<50x128xf32>
    %c0_86 = arith.constant 0 : index
    %c1_87 = arith.constant 1 : index
    %c2_88 = arith.constant 2 : index
    %c0_89 = arith.constant 0 : index
    %64 = vector.load %arg11[%c0_86, %c1_87, %c2_88, %c0_89] : memref<2x7x7x128xbf16, #tpu.memory_space<vmem>>, vector<2x5x5x128xbf16>
    %65 = vector.shape_cast %64 : vector<2x5x5x128xbf16> to vector<50x128xbf16>
    %c1_90 = arith.constant 1 : index
    %c2_91 = arith.constant 2 : index
    %c0_92 = arith.constant 0 : index
    %c0_93 = arith.constant 0 : index
    %66 = vector.load %arg4[%c1_90, %c2_91, %c0_92, %c0_93] : memref<3x3x128x128xbf16, #tpu.memory_space<vmem>>, vector<1x1x128x128xbf16>
    %67 = vector.shape_cast %66 : vector<1x1x128x128xbf16> to vector<128x128xbf16>
    %cst_94 = arith.constant dense<0.000000e+00> : vector<50x128xf32>
    %68 = tpu.matmul %65, %67, %cst_94 {dimension_numbers = #tpu.dot_dimension_numbers<[1], [0], [0], [1], [0, 0, 1, 1], [], []>} : vector<50x128xbf16>, vector<128x128xbf16>, vector<50x128xf32> -> vector<50x128xf32>
    %69 = arith.addf %63, %68 : vector<50x128xf32>
    %c0_95 = arith.constant 0 : index
    %c2_96 = arith.constant 2 : index
    %c0_97 = arith.constant 0 : index
    %c0_98 = arith.constant 0 : index
    %70 = vector.load %arg11[%c0_95, %c2_96, %c0_97, %c0_98] : memref<2x7x7x128xbf16, #tpu.memory_space<vmem>>, vector<2x5x5x128xbf16>
    %71 = vector.shape_cast %70 : vector<2x5x5x128xbf16> to vector<50x128xbf16>
    %c2_99 = arith.constant 2 : index
    %c0_100 = arith.constant 0 : index
    %c0_101 = arith.constant 0 : index
    %c0_102 = arith.constant 0 : index
    %72 = vector.load %arg4[%c2_99, %c0_100, %c0_101, %c0_102] : memref<3x3x128x128xbf16, #tpu.memory_space<vmem>>, vector<1x1x128x128xbf16>
    %73 = vector.shape_cast %72 : vector<1x1x128x128xbf16> to vector<128x128xbf16>
    %cst_103 = arith.constant dense<0.000000e+00> : vector<50x128xf32>
    %74 = tpu.matmul %71, %73, %cst_103 {dimension_numbers = #tpu.dot_dimension_numbers<[1], [0], [0], [1], [0, 0, 1, 1], [], []>} : vector<50x128xbf16>, vector<128x128xbf16>, vector<50x128xf32> -> vector<50x128xf32>
    %75 = arith.addf %69, %74 : vector<50x128xf32>
    %c0_104 = arith.constant 0 : index
    %c2_105 = arith.constant 2 : index
    %c1_106 = arith.constant 1 : index
    %c0_107 = arith.constant 0 : index
    %76 = vector.load %arg11[%c0_104, %c2_105, %c1_106, %c0_107] : memref<2x7x7x128xbf16, #tpu.memory_space<vmem>>, vector<2x5x5x128xbf16>
    %77 = vector.shape_cast %76 : vector<2x5x5x128xbf16> to vector<50x128xbf16>
    %c2_108 = arith.constant 2 : index
    %c1_109 = arith.constant 1 : index
    %c0_110 = arith.constant 0 : index
    %c0_111 = arith.constant 0 : index
    %78 = vector.load %arg4[%c2_108, %c1_109, %c0_110, %c0_111] : memref<3x3x128x128xbf16, #tpu.memory_space<vmem>>, vector<1x1x128x128xbf16>
    %79 = vector.shape_cast %78 : vector<1x1x128x128xbf16> to vector<128x128xbf16>
    %cst_112 = arith.constant dense<0.000000e+00> : vector<50x128xf32>
    %80 = tpu.matmul %77, %79, %cst_112 {dimension_numbers = #tpu.dot_dimension_numbers<[1], [0], [0], [1], [0, 0, 1, 1], [], []>} : vector<50x128xbf16>, vector<128x128xbf16>, vector<50x128xf32> -> vector<50x128xf32>
    %81 = arith.addf %75, %80 : vector<50x128xf32>
    %c0_113 = arith.constant 0 : index
    %c2_114 = arith.constant 2 : index
    %c2_115 = arith.constant 2 : index
    %c0_116 = arith.constant 0 : index
    %82 = vector.load %arg11[%c0_113, %c2_114, %c2_115, %c0_116] : memref<2x7x7x128xbf16, #tpu.memory_space<vmem>>, vector<2x5x5x128xbf16>
    %83 = vector.shape_cast %82 : vector<2x5x5x128xbf16> to vector<50x128xbf16>
    %c2_117 = arith.constant 2 : index
    %c2_118 = arith.constant 2 : index
    %c0_119 = arith.constant 0 : index
    %c0_120 = arith.constant 0 : index
    %84 = vector.load %arg4[%c2_117, %c2_118, %c0_119, %c0_120] : memref<3x3x128x128xbf16, #tpu.memory_space<vmem>>, vector<1x1x128x128xbf16>
    %85 = vector.shape_cast %84 : vector<1x1x128x128xbf16> to vector<128x128xbf16>
    %cst_121 = arith.constant dense<0.000000e+00> : vector<50x128xf32>
    %86 = tpu.matmul %83, %85, %cst_121 {dimension_numbers = #tpu.dot_dimension_numbers<[1], [0], [0], [1], [0, 0, 1, 1], [], []>} : vector<50x128xbf16>, vector<128x128xbf16>, vector<50x128xf32> -> vector<50x128xf32>
    %87 = arith.addf %81, %86 : vector<50x128xf32>
    %c0_122 = arith.constant 0 : index
    %c0_123 = arith.constant 0 : index
    %88 = vector.load %arg5[%c0_122, %c0_123] : memref<1x128xf32, #tpu.memory_space<vmem>>, vector<1x128xf32>
    %89 = vector.broadcast %88 : vector<1x128xf32> to vector<50x128xf32>
    %90 = arith.addf %87, %89 : vector<50x128xf32>
    %cst_124 = arith.constant 0.000000e+00 : f32
    %91 = vector.broadcast %cst_124 : f32 to vector<50x128xf32>
    %92 = arith.maximumf %90, %91 : vector<50x128xf32>
    %93 = vector.shape_cast %92 : vector<50x128xf32> to vector<2x5x5x128xf32>
    %94 = arith.truncf %93 : vector<2x5x5x128xf32> to vector<2x5x5x128xbf16>
    %c0_125 = arith.constant 0 : index
    %c0_126 = arith.constant 0 : index
    %c0_127 = arith.constant 0 : index
    %c0_128 = arith.constant 0 : index
    %95 = vector.load %arg12[%c0_125, %c0_126, %c0_127, %c0_128] : memref<2x5x5x128xbf16, #tpu.memory_space<vmem>>, vector<2x5x5x128xbf16>
    tpu.vector_store %arg12[%c0_125, %c0_126, %c0_127, %c0_128], %94 {strides = array<i32>} : memref<2x5x5x128xbf16, #tpu.memory_space<vmem>>, vector<2x5x5x128xbf16>,
    %cst_129 = arith.constant 0.000000e+00 : f32
    %96 = vector.broadcast %cst_129 : f32 to vector<18x128xf32>
    %c0_130 = arith.constant 0 : index
    %c0_131 = arith.constant 0 : index
    %c0_132 = arith.constant 0 : index
    %c0_133 = arith.constant 0 : index
    %97 = vector.load %arg12[%c0_130, %c0_131, %c0_132, %c0_133] : memref<2x5x5x128xbf16, #tpu.memory_space<vmem>>, vector<2x3x3x128xbf16>
    %98 = vector.shape_cast %97 : vector<2x3x3x128xbf16> to vector<18x128xbf16>
    %c0_134 = arith.constant 0 : index
    %c0_135 = arith.constant 0 : index
    %c0_136 = arith.constant 0 : index
    %c0_137 = arith.constant 0 : index
    %99 = vector.load %arg6[%c0_134, %c0_135, %c0_136, %c0_137] : memref<3x3x128x128xbf16, #tpu.memory_space<vmem>>, vector<1x1x128x128xbf16>
    %100 = vector.shape_cast %99 : vector<1x1x128x128xbf16> to vector<128x128xbf16>
    %cst_138 = arith.constant dense<0.000000e+00> : vector<18x128xf32>
    %101 = tpu.matmul %98, %100, %cst_138 {dimension_numbers = #tpu.dot_dimension_numbers<[1], [0], [0], [1], [0, 0, 1, 1], [], []>} : vector<18x128xbf16>, vector<128x128xbf16>, vector<18x128xf32> -> vector<18x128xf32>
    %102 = arith.addf %96, %101 : vector<18x128xf32>
    %c0_139 = arith.constant 0 : index
    %c0_140 = arith.constant 0 : index
    %c1_141 = arith.constant 1 : index
    %c0_142 = arith.constant 0 : index
    %103 = vector.load %arg12[%c0_139, %c0_140, %c1_141, %c0_142] : memref<2x5x5x128xbf16, #tpu.memory_space<vmem>>, vector<2x3x3x128xbf16>
    %104 = vector.shape_cast %103 : vector<2x3x3x128xbf16> to vector<18x128xbf16>
    %c0_143 = arith.constant 0 : index
    %c1_144 = arith.constant 1 : index
    %c0_145 = arith.constant 0 : index
    %c0_146 = arith.constant 0 : index
    %105 = vector.load %arg6[%c0_143, %c1_144, %c0_145, %c0_146] : memref<3x3x128x128xbf16, #tpu.memory_space<vmem>>, vector<1x1x128x128xbf16>
    %106 = vector.shape_cast %105 : vector<1x1x128x128xbf16> to vector<128x128xbf16>
    %cst_147 = arith.constant dense<0.000000e+00> : vector<18x128xf32>
    %107 = tpu.matmul %104, %106, %cst_147 {dimension_numbers = #tpu.dot_dimension_numbers<[1], [0], [0], [1], [0, 0, 1, 1], [], []>} : vector<18x128xbf16>, vector<128x128xbf16>, vector<18x128xf32> -> vector<18x128xf32>
    %108 = arith.addf %102, %107 : vector<18x128xf32>
    %c0_148 = arith.constant 0 : index
    %c0_149 = arith.constant 0 : index
    %c2_150 = arith.constant 2 : index
    %c0_151 = arith.constant 0 : index
    %109 = vector.load %arg12[%c0_148, %c0_149, %c2_150, %c0_151] : memref<2x5x5x128xbf16, #tpu.memory_space<vmem>>, vector<2x3x3x128xbf16>
    %110 = vector.shape_cast %109 : vector<2x3x3x128xbf16> to vector<18x128xbf16>
    %c0_152 = arith.constant 0 : index
    %c2_153 = arith.constant 2 : index
    %c0_154 = arith.constant 0 : index
    %c0_155 = arith.constant 0 : index
    %111 = vector.load %arg6[%c0_152, %c2_153, %c0_154, %c0_155] : memref<3x3x128x128xbf16, #tpu.memory_space<vmem>>, vector<1x1x128x128xbf16>
    %112 = vector.shape_cast %111 : vector<1x1x128x128xbf16> to vector<128x128xbf16>
    %cst_156 = arith.constant dense<0.000000e+00> : vector<18x128xf32>
    %113 = tpu.matmul %110, %112, %cst_156 {dimension_numbers = #tpu.dot_dimension_numbers<[1], [0], [0], [1], [0, 0, 1, 1], [], []>} : vector<18x128xbf16>, vector<128x128xbf16>, vector<18x128xf32> -> vector<18x128xf32>
    %114 = arith.addf %108, %113 : vector<18x128xf32>
    %c0_157 = arith.constant 0 : index
    %c1_158 = arith.constant 1 : index
    %c0_159 = arith.constant 0 : index
    %c0_160 = arith.constant 0 : index
    %115 = vector.load %arg12[%c0_157, %c1_158, %c0_159, %c0_160] : memref<2x5x5x128xbf16, #tpu.memory_space<vmem>>, vector<2x3x3x128xbf16>
    %116 = vector.shape_cast %115 : vector<2x3x3x128xbf16> to vector<18x128xbf16>
    %c1_161 = arith.constant 1 : index
    %c0_162 = arith.constant 0 : index
    %c0_163 = arith.constant 0 : index
    %c0_164 = arith.constant 0 : index
    %117 = vector.load %arg6[%c1_161, %c0_162, %c0_163, %c0_164] : memref<3x3x128x128xbf16, #tpu.memory_space<vmem>>, vector<1x1x128x128xbf16>
    %118 = vector.shape_cast %117 : vector<1x1x128x128xbf16> to vector<128x128xbf16>
    %cst_165 = arith.constant dense<0.000000e+00> : vector<18x128xf32>
    %119 = tpu.matmul %116, %118, %cst_165 {dimension_numbers = #tpu.dot_dimension_numbers<[1], [0], [0], [1], [0, 0, 1, 1], [], []>} : vector<18x128xbf16>, vector<128x128xbf16>, vector<18x128xf32> -> vector<18x128xf32>
    %120 = arith.addf %114, %119 : vector<18x128xf32>
    %c0_166 = arith.constant 0 : index
    %c1_167 = arith.constant 1 : index
    %c1_168 = arith.constant 1 : index
    %c0_169 = arith.constant 0 : index
    %121 = vector.load %arg12[%c0_166, %c1_167, %c1_168, %c0_169] : memref<2x5x5x128xbf16, #tpu.memory_space<vmem>>, vector<2x3x3x128xbf16>
    %122 = vector.shape_cast %121 : vector<2x3x3x128xbf16> to vector<18x128xbf16>
    %c1_170 = arith.constant 1 : index
    %c1_171 = arith.constant 1 : index
    %c0_172 = arith.constant 0 : index
    %c0_173 = arith.constant 0 : index
    %123 = vector.load %arg6[%c1_170, %c1_171, %c0_172, %c0_173] : memref<3x3x128x128xbf16, #tpu.memory_space<vmem>>, vector<1x1x128x128xbf16>
    %124 = vector.shape_cast %123 : vector<1x1x128x128xbf16> to vector<128x128xbf16>
    %cst_174 = arith.constant dense<0.000000e+00> : vector<18x128xf32>
    %125 = tpu.matmul %122, %124, %cst_174 {dimension_numbers = #tpu.dot_dimension_numbers<[1], [0], [0], [1], [0, 0, 1, 1], [], []>} : vector<18x128xbf16>, vector<128x128xbf16>, vector<18x128xf32> -> vector<18x128xf32>
    %126 = arith.addf %120, %125 : vector<18x128xf32>
    %c0_175 = arith.constant 0 : index
    %c1_176 = arith.constant 1 : index
    %c2_177 = arith.constant 2 : index
    %c0_178 = arith.constant 0 : index
    %127 = vector.load %arg12[%c0_175, %c1_176, %c2_177, %c0_178] : memref<2x5x5x128xbf16, #tpu.memory_space<vmem>>, vector<2x3x3x128xbf16>
    %128 = vector.shape_cast %127 : vector<2x3x3x128xbf16> to vector<18x128xbf16>
    %c1_179 = arith.constant 1 : index
    %c2_180 = arith.constant 2 : index
    %c0_181 = arith.constant 0 : index
    %c0_182 = arith.constant 0 : index
    %129 = vector.load %arg6[%c1_179, %c2_180, %c0_181, %c0_182] : memref<3x3x128x128xbf16, #tpu.memory_space<vmem>>, vector<1x1x128x128xbf16>
    %130 = vector.shape_cast %129 : vector<1x1x128x128xbf16> to vector<128x128xbf16>
    %cst_183 = arith.constant dense<0.000000e+00> : vector<18x128xf32>
    %131 = tpu.matmul %128, %130, %cst_183 {dimension_numbers = #tpu.dot_dimension_numbers<[1], [0], [0], [1], [0, 0, 1, 1], [], []>} : vector<18x128xbf16>, vector<128x128xbf16>, vector<18x128xf32> -> vector<18x128xf32>
    %132 = arith.addf %126, %131 : vector<18x128xf32>
    %c0_184 = arith.constant 0 : index
    %c2_185 = arith.constant 2 : index
    %c0_186 = arith.constant 0 : index
    %c0_187 = arith.constant 0 : index
    %133 = vector.load %arg12[%c0_184, %c2_185, %c0_186, %c0_187] : memref<2x5x5x128xbf16, #tpu.memory_space<vmem>>, vector<2x3x3x128xbf16>
    %134 = vector.shape_cast %133 : vector<2x3x3x128xbf16> to vector<18x128xbf16>
    %c2_188 = arith.constant 2 : index
    %c0_189 = arith.constant 0 : index
    %c0_190 = arith.constant 0 : index
    %c0_191 = arith.constant 0 : index
    %135 = vector.load %arg6[%c2_188, %c0_189, %c0_190, %c0_191] : memref<3x3x128x128xbf16, #tpu.memory_space<vmem>>, vector<1x1x128x128xbf16>
    %136 = vector.shape_cast %135 : vector<1x1x128x128xbf16> to vector<128x128xbf16>
    %cst_192 = arith.constant dense<0.000000e+00> : vector<18x128xf32>
    %137 = tpu.matmul %134, %136, %cst_192 {dimension_numbers = #tpu.dot_dimension_numbers<[1], [0], [0], [1], [0, 0, 1, 1], [], []>} : vector<18x128xbf16>, vector<128x128xbf16>, vector<18x128xf32> -> vector<18x128xf32>
    %138 = arith.addf %132, %137 : vector<18x128xf32>
    %c0_193 = arith.constant 0 : index
    %c2_194 = arith.constant 2 : index
    %c1_195 = arith.constant 1 : index
    %c0_196 = arith.constant 0 : index
    %139 = vector.load %arg12[%c0_193, %c2_194, %c1_195, %c0_196] : memref<2x5x5x128xbf16, #tpu.memory_space<vmem>>, vector<2x3x3x128xbf16>
    %140 = vector.shape_cast %139 : vector<2x3x3x128xbf16> to vector<18x128xbf16>
    %c2_197 = arith.constant 2 : index
    %c1_198 = arith.constant 1 : index
    %c0_199 = arith.constant 0 : index
    %c0_200 = arith.constant 0 : index
    %141 = vector.load %arg6[%c2_197, %c1_198, %c0_199, %c0_200] : memref<3x3x128x128xbf16, #tpu.memory_space<vmem>>, vector<1x1x128x128xbf16>
    %142 = vector.shape_cast %141 : vector<1x1x128x128xbf16> to vector<128x128xbf16>
    %cst_201 = arith.constant dense<0.000000e+00> : vector<18x128xf32>
    %143 = tpu.matmul %140, %142, %cst_201 {dimension_numbers = #tpu.dot_dimension_numbers<[1], [0], [0], [1], [0, 0, 1, 1], [], []>} : vector<18x128xbf16>, vector<128x128xbf16>, vector<18x128xf32> -> vector<18x128xf32>
    %144 = arith.addf %138, %143 : vector<18x128xf32>
    %c0_202 = arith.constant 0 : index
    %c2_203 = arith.constant 2 : index
    %c2_204 = arith.constant 2 : index
    %c0_205 = arith.constant 0 : index
    %145 = vector.load %arg12[%c0_202, %c2_203, %c2_204, %c0_205] : memref<2x5x5x128xbf16, #tpu.memory_space<vmem>>, vector<2x3x3x128xbf16>
    %146 = vector.shape_cast %145 : vector<2x3x3x128xbf16> to vector<18x128xbf16>
    %c2_206 = arith.constant 2 : index
    %c2_207 = arith.constant 2 : index
    %c0_208 = arith.constant 0 : index
    %c0_209 = arith.constant 0 : index
    %147 = vector.load %arg6[%c2_206, %c2_207, %c0_208, %c0_209] : memref<3x3x128x128xbf16, #tpu.memory_space<vmem>>, vector<1x1x128x128xbf16>
    %148 = vector.shape_cast %147 : vector<1x1x128x128xbf16> to vector<128x128xbf16>
    %cst_210 = arith.constant dense<0.000000e+00> : vector<18x128xf32>
    %149 = tpu.matmul %146, %148, %cst_210 {dimension_numbers = #tpu.dot_dimension_numbers<[1], [0], [0], [1], [0, 0, 1, 1], [], []>} : vector<18x128xbf16>, vector<128x128xbf16>, vector<18x128xf32> -> vector<18x128xf32>
    %150 = arith.addf %144, %149 : vector<18x128xf32>
    %c0_211 = arith.constant 0 : index
    %c0_212 = arith.constant 0 : index
    %151 = vector.load %arg7[%c0_211, %c0_212] : memref<1x128xf32, #tpu.memory_space<vmem>>, vector<1x128xf32>
    %152 = vector.broadcast %151 : vector<1x128xf32> to vector<18x128xf32>
    %153 = arith.addf %150, %152 : vector<18x128xf32>
    %cst_213 = arith.constant 0.000000e+00 : f32
    %154 = vector.broadcast %cst_213 : f32 to vector<18x128xf32>
    %155 = arith.maximumf %153, %154 : vector<18x128xf32>
    %156 = vector.shape_cast %155 : vector<18x128xf32> to vector<2x3x3x128xf32>
    %157 = arith.truncf %156 : vector<2x3x3x128xf32> to vector<2x3x3x128xbf16>
    %c0_214 = arith.constant 0 : index
    %c0_215 = arith.constant 0 : index
    %c0_216 = arith.constant 0 : index
    %c0_217 = arith.constant 0 : index
    %158 = vector.load %arg13[%c0_214, %c0_215, %c0_216, %c0_217] : memref<2x3x3x128xbf16, #tpu.memory_space<vmem>>, vector<2x3x3x128xbf16>
    tpu.vector_store %arg13[%c0_214, %c0_215, %c0_216, %c0_217], %157 {strides = array<i32>} : memref<2x3x3x128xbf16, #tpu.memory_space<vmem>>, vector<2x3x3x128xbf16>,
    %cst_218 = arith.constant 0.000000e+00 : f32
    %159 = vector.broadcast %cst_218 : f32 to vector<2x128xf32>
    %c0_219 = arith.constant 0 : index
    %c0_220 = arith.constant 0 : index
    %c0_221 = arith.constant 0 : index
    %c0_222 = arith.constant 0 : index
    %160 = vector.load %arg13[%c0_219, %c0_220, %c0_221, %c0_222] : memref<2x3x3x128xbf16, #tpu.memory_space<vmem>>, vector<2x1x1x128xbf16>
    %161 = vector.shape_cast %160 : vector<2x1x1x128xbf16> to vector<2x128xbf16>
    %c0_223 = arith.constant 0 : index
    %c0_224 = arith.constant 0 : index
    %c0_225 = arith.constant 0 : index
    %c0_226 = arith.constant 0 : index
    %162 = vector.load %arg8[%c0_223, %c0_224, %c0_225, %c0_226] : memref<3x3x128x128xbf16, #tpu.memory_space<vmem>>, vector<1x1x128x128xbf16>
    %163 = vector.shape_cast %162 : vector<1x1x128x128xbf16> to vector<128x128xbf16>
    %cst_227 = arith.constant dense<0.000000e+00> : vector<2x128xf32>
    %164 = tpu.matmul %161, %163, %cst_227 {dimension_numbers = #tpu.dot_dimension_numbers<[1], [0], [0], [1], [0, 0, 1, 1], [], []>} : vector<2x128xbf16>, vector<128x128xbf16>, vector<2x128xf32> -> vector<2x128xf32>
    %165 = arith.addf %159, %164 : vector<2x128xf32>
    %c0_228 = arith.constant 0 : index
    %c0_229 = arith.constant 0 : index
    %c1_230 = arith.constant 1 : index
    %c0_231 = arith.constant 0 : index
    %166 = vector.load %arg13[%c0_228, %c0_229, %c1_230, %c0_231] : memref<2x3x3x128xbf16, #tpu.memory_space<vmem>>, vector<2x1x1x128xbf16>
    %167 = vector.shape_cast %166 : vector<2x1x1x128xbf16> to vector<2x128xbf16>
    %c0_232 = arith.constant 0 : index
    %c1_233 = arith.constant 1 : index
    %c0_234 = arith.constant 0 : index
    %c0_235 = arith.constant 0 : index
    %168 = vector.load %arg8[%c0_232, %c1_233, %c0_234, %c0_235] : memref<3x3x128x128xbf16, #tpu.memory_space<vmem>>, vector<1x1x128x128xbf16>
    %169 = vector.shape_cast %168 : vector<1x1x128x128xbf16> to vector<128x128xbf16>
    %cst_236 = arith.constant dense<0.000000e+00> : vector<2x128xf32>
    %170 = tpu.matmul %167, %169, %cst_236 {dimension_numbers = #tpu.dot_dimension_numbers<[1], [0], [0], [1], [0, 0, 1, 1], [], []>} : vector<2x128xbf16>, vector<128x128xbf16>, vector<2x128xf32> -> vector<2x128xf32>
    %171 = arith.addf %165, %170 : vector<2x128xf32>
    %c0_237 = arith.constant 0 : index
    %c0_238 = arith.constant 0 : index
    %c2_239 = arith.constant 2 : index
    %c0_240 = arith.constant 0 : index
    %172 = vector.load %arg13[%c0_237, %c0_238, %c2_239, %c0_240] : memref<2x3x3x128xbf16, #tpu.memory_space<vmem>>, vector<2x1x1x128xbf16>
    %173 = vector.shape_cast %172 : vector<2x1x1x128xbf16> to vector<2x128xbf16>
    %c0_241 = arith.constant 0 : index
    %c2_242 = arith.constant 2 : index
    %c0_243 = arith.constant 0 : index
    %c0_244 = arith.constant 0 : index
    %174 = vector.load %arg8[%c0_241, %c2_242, %c0_243, %c0_244] : memref<3x3x128x128xbf16, #tpu.memory_space<vmem>>, vector<1x1x128x128xbf16>
    %175 = vector.shape_cast %174 : vector<1x1x128x128xbf16> to vector<128x128xbf16>
    %cst_245 = arith.constant dense<0.000000e+00> : vector<2x128xf32>
    %176 = tpu.matmul %173, %175, %cst_245 {dimension_numbers = #tpu.dot_dimension_numbers<[1], [0], [0], [1], [0, 0, 1, 1], [], []>} : vector<2x128xbf16>, vector<128x128xbf16>, vector<2x128xf32> -> vector<2x128xf32>
    %177 = arith.addf %171, %176 : vector<2x128xf32>
    %c0_246 = arith.constant 0 : index
    %c1_247 = arith.constant 1 : index
    %c0_248 = arith.constant 0 : index
    %c0_249 = arith.constant 0 : index
    %178 = vector.load %arg13[%c0_246, %c1_247, %c0_248, %c0_249] : memref<2x3x3x128xbf16, #tpu.memory_space<vmem>>, vector<2x1x1x128xbf16>
    %179 = vector.shape_cast %178 : vector<2x1x1x128xbf16> to vector<2x128xbf16>
    %c1_250 = arith.constant 1 : index
    %c0_251 = arith.constant 0 : index
    %c0_252 = arith.constant 0 : index
    %c0_253 = arith.constant 0 : index
    %180 = vector.load %arg8[%c1_250, %c0_251, %c0_252, %c0_253] : memref<3x3x128x128xbf16, #tpu.memory_space<vmem>>, vector<1x1x128x128xbf16>
    %181 = vector.shape_cast %180 : vector<1x1x128x128xbf16> to vector<128x128xbf16>
    %cst_254 = arith.constant dense<0.000000e+00> : vector<2x128xf32>
    %182 = tpu.matmul %179, %181, %cst_254 {dimension_numbers = #tpu.dot_dimension_numbers<[1], [0], [0], [1], [0, 0, 1, 1], [], []>} : vector<2x128xbf16>, vector<128x128xbf16>, vector<2x128xf32> -> vector<2x128xf32>
    %183 = arith.addf %177, %182 : vector<2x128xf32>
    %c0_255 = arith.constant 0 : index
    %c1_256 = arith.constant 1 : index
    %c1_257 = arith.constant 1 : index
    %c0_258 = arith.constant 0 : index
    %184 = vector.load %arg13[%c0_255, %c1_256, %c1_257, %c0_258] : memref<2x3x3x128xbf16, #tpu.memory_space<vmem>>, vector<2x1x1x128xbf16>
    %185 = vector.shape_cast %184 : vector<2x1x1x128xbf16> to vector<2x128xbf16>
    %c1_259 = arith.constant 1 : index
    %c1_260 = arith.constant 1 : index
    %c0_261 = arith.constant 0 : index
    %c0_262 = arith.constant 0 : index
    %186 = vector.load %arg8[%c1_259, %c1_260, %c0_261, %c0_262] : memref<3x3x128x128xbf16, #tpu.memory_space<vmem>>, vector<1x1x128x128xbf16>
    %187 = vector.shape_cast %186 : vector<1x1x128x128xbf16> to vector<128x128xbf16>
    %cst_263 = arith.constant dense<0.000000e+00> : vector<2x128xf32>
    %188 = tpu.matmul %185, %187, %cst_263 {dimension_numbers = #tpu.dot_dimension_numbers<[1], [0], [0], [1], [0, 0, 1, 1], [], []>} : vector<2x128xbf16>, vector<128x128xbf16>, vector<2x128xf32> -> vector<2x128xf32>
    %189 = arith.addf %183, %188 : vector<2x128xf32>
    %c0_264 = arith.constant 0 : index
    %c1_265 = arith.constant 1 : index
    %c2_266 = arith.constant 2 : index
    %c0_267 = arith.constant 0 : index
    %190 = vector.load %arg13[%c0_264, %c1_265, %c2_266, %c0_267] : memref<2x3x3x128xbf16, #tpu.memory_space<vmem>>, vector<2x1x1x128xbf16>
    %191 = vector.shape_cast %190 : vector<2x1x1x128xbf16> to vector<2x128xbf16>
    %c1_268 = arith.constant 1 : index
    %c2_269 = arith.constant 2 : index
    %c0_270 = arith.constant 0 : index
    %c0_271 = arith.constant 0 : index
    %192 = vector.load %arg8[%c1_268, %c2_269, %c0_270, %c0_271] : memref<3x3x128x128xbf16, #tpu.memory_space<vmem>>, vector<1x1x128x128xbf16>
    %193 = vector.shape_cast %192 : vector<1x1x128x128xbf16> to vector<128x128xbf16>
    %cst_272 = arith.constant dense<0.000000e+00> : vector<2x128xf32>
    %194 = tpu.matmul %191, %193, %cst_272 {dimension_numbers = #tpu.dot_dimension_numbers<[1], [0], [0], [1], [0, 0, 1, 1], [], []>} : vector<2x128xbf16>, vector<128x128xbf16>, vector<2x128xf32> -> vector<2x128xf32>
    %195 = arith.addf %189, %194 : vector<2x128xf32>
    %c0_273 = arith.constant 0 : index
    %c2_274 = arith.constant 2 : index
    %c0_275 = arith.constant 0 : index
    %c0_276 = arith.constant 0 : index
    %196 = vector.load %arg13[%c0_273, %c2_274, %c0_275, %c0_276] : memref<2x3x3x128xbf16, #tpu.memory_space<vmem>>, vector<2x1x1x128xbf16>
    %197 = vector.shape_cast %196 : vector<2x1x1x128xbf16> to vector<2x128xbf16>
    %c2_277 = arith.constant 2 : index
    %c0_278 = arith.constant 0 : index
    %c0_279 = arith.constant 0 : index
    %c0_280 = arith.constant 0 : index
    %198 = vector.load %arg8[%c2_277, %c0_278, %c0_279, %c0_280] : memref<3x3x128x128xbf16, #tpu.memory_space<vmem>>, vector<1x1x128x128xbf16>
    %199 = vector.shape_cast %198 : vector<1x1x128x128xbf16> to vector<128x128xbf16>
    %cst_281 = arith.constant dense<0.000000e+00> : vector<2x128xf32>
    %200 = tpu.matmul %197, %199, %cst_281 {dimension_numbers = #tpu.dot_dimension_numbers<[1], [0], [0], [1], [0, 0, 1, 1], [], []>} : vector<2x128xbf16>, vector<128x128xbf16>, vector<2x128xf32> -> vector<2x128xf32>
    %201 = arith.addf %195, %200 : vector<2x128xf32>
    %c0_282 = arith.constant 0 : index
    %c2_283 = arith.constant 2 : index
    %c1_284 = arith.constant 1 : index
    %c0_285 = arith.constant 0 : index
    %202 = vector.load %arg13[%c0_282, %c2_283, %c1_284, %c0_285] : memref<2x3x3x128xbf16, #tpu.memory_space<vmem>>, vector<2x1x1x128xbf16>
    %203 = vector.shape_cast %202 : vector<2x1x1x128xbf16> to vector<2x128xbf16>
    %c2_286 = arith.constant 2 : index
    %c1_287 = arith.constant 1 : index
    %c0_288 = arith.constant 0 : index
    %c0_289 = arith.constant 0 : index
    %204 = vector.load %arg8[%c2_286, %c1_287, %c0_288, %c0_289] : memref<3x3x128x128xbf16, #tpu.memory_space<vmem>>, vector<1x1x128x128xbf16>
    %205 = vector.shape_cast %204 : vector<1x1x128x128xbf16> to vector<128x128xbf16>
    %cst_290 = arith.constant dense<0.000000e+00> : vector<2x128xf32>
    %206 = tpu.matmul %203, %205, %cst_290 {dimension_numbers = #tpu.dot_dimension_numbers<[1], [0], [0], [1], [0, 0, 1, 1], [], []>} : vector<2x128xbf16>, vector<128x128xbf16>, vector<2x128xf32> -> vector<2x128xf32>
    %207 = arith.addf %201, %206 : vector<2x128xf32>
    %c0_291 = arith.constant 0 : index
    %c2_292 = arith.constant 2 : index
    %c2_293 = arith.constant 2 : index
    %c0_294 = arith.constant 0 : index
    %208 = vector.load %arg13[%c0_291, %c2_292, %c2_293, %c0_294] : memref<2x3x3x128xbf16, #tpu.memory_space<vmem>>, vector<2x1x1x128xbf16>
    %209 = vector.shape_cast %208 : vector<2x1x1x128xbf16> to vector<2x128xbf16>
    %c2_295 = arith.constant 2 : index
    %c2_296 = arith.constant 2 : index
    %c0_297 = arith.constant 0 : index
    %c0_298 = arith.constant 0 : index
    %210 = vector.load %arg8[%c2_295, %c2_296, %c0_297, %c0_298] : memref<3x3x128x128xbf16, #tpu.memory_space<vmem>>, vector<1x1x128x128xbf16>
    %211 = vector.shape_cast %210 : vector<1x1x128x128xbf16> to vector<128x128xbf16>
    %cst_299 = arith.constant dense<0.000000e+00> : vector<2x128xf32>
    %212 = tpu.matmul %209, %211, %cst_299 {dimension_numbers = #tpu.dot_dimension_numbers<[1], [0], [0], [1], [0, 0, 1, 1], [], []>} : vector<2x128xbf16>, vector<128x128xbf16>, vector<2x128xf32> -> vector<2x128xf32>
    %213 = arith.addf %207, %212 : vector<2x128xf32>
    %c0_300 = arith.constant 0 : index
    %c0_301 = arith.constant 0 : index
    %214 = vector.load %arg9[%c0_300, %c0_301] : memref<1x128xf32, #tpu.memory_space<vmem>>, vector<1x128xf32>
    %215 = vector.broadcast %214 : vector<1x128xf32> to vector<2x128xf32>
    %216 = arith.addf %213, %215 : vector<2x128xf32>
    %217 = vector.shape_cast %216 : vector<2x128xf32> to vector<1x2x128xf32>
    %c0_302 = arith.constant 0 : index
    %c0_303 = arith.constant 0 : index
    %c0_304 = arith.constant 0 : index
    %218 = vector.load %arg10[%c0_302, %c0_303, %c0_304] : memref<1x2x128xf32, #tpu.memory_space<vmem>>, vector<1x2x128xf32>
    tpu.vector_store %arg10[%c0_302, %c0_303, %c0_304], %217 {strides = array<i32>} : memref<1x2x128xf32, #tpu.memory_space<vmem>>, vector<1x2x128xf32>,
    return
  }
  func.func @transform_0(%arg0: i32) -> (i32, i32, i32, i32) {
    %c0_i32 = arith.constant 0 : i32
    %c0_i32_0 = arith.constant 0 : i32
    %c0_i32_1 = arith.constant 0 : i32
    %c0_i32_2 = arith.constant 0 : i32
    return %arg0, %c0_i32, %c0_i32_0, %c0_i32_1 : i32, i32, i32, i32
  }
  func.func @transform_1(%arg0: i32) -> (i32, i32, i32, i32) {
    %c0_i32 = arith.constant 0 : i32
    %c0_i32_0 = arith.constant 0 : i32
    %c0_i32_1 = arith.constant 0 : i32
    %c0_i32_2 = arith.constant 0 : i32
    %c0_i32_3 = arith.constant 0 : i32
    return %c0_i32, %c0_i32_0, %c0_i32_1, %c0_i32_2 : i32, i32, i32, i32
  }
  func.func @transform_2(%arg0: i32) -> (i32, i32) {
    %c0_i32 = arith.constant 0 : i32
    %c0_i32_0 = arith.constant 0 : i32
    %c0_i32_1 = arith.constant 0 : i32
    return %c0_i32, %c0_i32_0 : i32, i32
  }
  func.func @transform_3(%arg0: i32) -> (i32, i32, i32, i32) {
    %c0_i32 = arith.constant 0 : i32
    %c0_i32_0 = arith.constant 0 : i32
    %c0_i32_1 = arith.constant 0 : i32
    %c0_i32_2 = arith.constant 0 : i32
    %c0_i32_3 = arith.constant 0 : i32
    return %c0_i32, %c0_i32_0, %c0_i32_1, %c0_i32_2 : i32, i32, i32, i32
  }
  func.func @transform_4(%arg0: i32) -> (i32, i32) {
    %c0_i32 = arith.constant 0 : i32
    %c0_i32_0 = arith.constant 0 : i32
    %c0_i32_1 = arith.constant 0 : i32
    return %c0_i32, %c0_i32_0 : i32, i32
  }
  func.func @transform_5(%arg0: i32) -> (i32, i32, i32, i32) {
    %c0_i32 = arith.constant 0 : i32
    %c0_i32_0 = arith.constant 0 : i32
    %c0_i32_1 = arith.constant 0 : i32
    %c0_i32_2 = arith.constant 0 : i32
    %c0_i32_3 = arith.constant 0 : i32
    return %c0_i32, %c0_i32_0, %c0_i32_1, %c0_i32_2 : i32, i32, i32, i32
  }
  func.func @transform_6(%arg0: i32) -> (i32, i32) {
    %c0_i32 = arith.constant 0 : i32
    %c0_i32_0 = arith.constant 0 : i32
    %c0_i32_1 = arith.constant 0 : i32
    return %c0_i32, %c0_i32_0 : i32, i32
  }
  func.func @transform_7(%arg0: i32) -> (i32, i32, i32, i32) {
    %c0_i32 = arith.constant 0 : i32
    %c0_i32_0 = arith.constant 0 : i32
    %c0_i32_1 = arith.constant 0 : i32
    %c0_i32_2 = arith.constant 0 : i32
    %c0_i32_3 = arith.constant 0 : i32
    return %c0_i32, %c0_i32_0, %c0_i32_1, %c0_i32_2 : i32, i32, i32, i32
  }
  func.func @transform_8(%arg0: i32) -> (i32, i32) {
    %c0_i32 = arith.constant 0 : i32
    %c0_i32_0 = arith.constant 0 : i32
    %c0_i32_1 = arith.constant 0 : i32
    return %c0_i32, %c0_i32_0 : i32, i32
  }
  func.func @transform_9(%arg0: i32) -> (i32, i32, i32) {
    %c0_i32 = arith.constant 0 : i32
    %c0_i32_0 = arith.constant 0 : i32
    %c0_i32_1 = arith.constant 0 : i32
    return %arg0, %c0_i32, %c0_i32_0 : i32, i32, i32
  }
}

</mosaic_0001>

<bundles_post_ra>
// kernel: cnn_action_value_forward.1
= control target key start
LH: loop header
LB: loop body
LE: loop exit
PB: predicated region body
PF: predicated region fallthrough
CT: control target
= control target key end

     0   :  { %14 = vsyncpa [#allocation6], 0  ;;  %s21970_s0 = inlined_call_operand.vmem [shape: bf16[4,8,8,16], index: 0, kind: input, shape index: {}]   ;;  %s21971_s1 = inlined_call_operand.vmem [shape: bf16[2,2,16,128], index: 1, kind: input, shape index: {}]   ;;  %s21972_s2 = inlined_call_operand.vmem [shape: f32[1,128], index: 2, kind: input, shape index: {}]   ;;  %s21973_s3 = inlined_call_operand.vmem [shape: bf16[3,3,128,128], index: 3, kind: input, shape index: {}]   ;;  %s21974_s4 = inlined_call_operand.vmem [shape: f32[1,128], index: 4, kind: input, shape index: {}]   ;;  %s21975_s5 = inlined_call_operand.vmem [shape: bf16[3,3,128,128], index: 5, kind: input, shape index: {}]   ;;  %s21976_s6 = inlined_call_operand.vmem [shape: f32[1,128], index: 6, kind: input, shape index: {}]   ;;  %s21977_s7 = inlined_call_operand.vmem [shape: bf16[3,3,128,128], index: 7, kind: input, shape index: {}]   ;;  %s21978_s8 = inlined_call_operand.vmem [shape: f32[1,128], index: 8, kind: input, shape index: {}]   ;;  %s21979_s9 = inlined_call_operand.hbm [shape: f32[2,2,128], index: 9, kind: output, shape index: {}]  }
   0x1   :  { %16 = vsyncpa [#allocation6 + $0x1], 0  ;;  %s18356_s30 = smov 0   ;;  %s18358_s10 = smov 0  }
   0x2   :  { %s18360_s11 = smov 0   ;;  %s18362_s12 = smov 0  }
   0x3 LB: > { %s18377_s13 = sadd.s32 4294967295, %s18300_s12   ;;  %s15780_s14 = sadd.s32 4294967294, %s18300_s12   ;;  %s18300_s12 = sphi %s18362_s12, %s22127_s12   ;;  %s18296_s11 = sphi %s18360_s11, %s22126_s11   ;;  %s18292_s10 = sphi %s18358_s10, %s22125_s10   ;;  %s18288_s30 = sphi %s18356_s30, %s22124_s30  }
   0x4   : > { %s18381_s15 = sadd.s32 1, %s18300_s12   ;;  %s223_s16 = sadd.s32 1, %s18296_s11 }
   0x5   : > { %s220_s17 = ssub.s32 %s18300_s12, %s18381_s15  ;;  %p233_p0 = scmp.ne.s32.totalorder %s18296_s11, %s18292_s10 }
   0x6   : > { %p221_p1 = scmp.eq.s32.totalorder %s220_s17, 0  ;;  %p234_p2 = scmp.eq.s32.totalorder %s18377_s13, 1 }
   0x7   : > { %p239_p3 = scmp.ne.s32.totalorder %s18292_s10, %s18288_s30  ;;  %p240_p4 = scmp.eq.s32.totalorder %s15780_s14, 1 }
   0x8   : > { %s18392_s18 = scalar_select %p221_p1, %s18296_s11, %s223_s16  }
   0x9   : > { %p18394_p5 = por %p234_p2, %p233_p0  ;;  %p18398_p6 = por %p240_p4, %p239_p3 }
   0xa   : > { %p15783_p7 = scmp.ge.s32.totalorder %s18300_s12, 1  ;;  %p292_p8 = scmp.lt.s32.totalorder %s18300_s12, 3 }
   0xc   : > { %p293_p9 = pnand %p15783_p7, %p292_p8 }
   0xe   : > { %296 = sbr.rel (%p293_p9) target bundleno = 1908 (0x774), region = 56 }
  0x15   : > { %v18017_v0 = vld [vmem:[%s21971_s1 + $0x8] sm:$0xff]   ;;  %v376_v1 = vlaneseq  ;;  %v21982_v2 = vmov 0.0   ;;  %s15785_s23 = sshll.u32 %s18377_s13, 1  ;;  %v18303_v3 = vmov 1966171168   ;;  %vm18304_vm0 = vmmov 0  }
  0x16   : > { %17941 = vmatprep.subr.bf16.mxu1 %v21982_v2  ;;  %17245 = vmatprep.subr.bf16.mxu0 %v21982_v2  ;;  %p330_p10 = scmp.lt.s32.totalorder %s15785_s23, 3  ;;  %v374_v4 = vunpack.c.l.s4 %v18303_v3  ;;  %vm1181_vm1 = vcmask 130048   ;;  %vm5020_vm2 = vcmask 1043456   ;;  %vm5021_vm3 = vsmask.f32 3328  ;;  %s326_s14 = sand.u32 1, %s18292_s10  }
  0x17   : > { %17942 = vmatpush3.bf16.msra.mxu1 %v18017_v0  ;;  %17246 = vmatpush3.bf16.msra.mxu0 %v18017_v0  ;;  %v377_v5 = vshrl.u32 %v376_v1, 7  ;;  %vm19387_vm4 = vmand %vm5020_vm2, %vm5021_vm3  ;;  %vm11180_vm5 = vcmask 1042432   ;;  %vm11181_vm6 = vsmask.f32 2304  ;;  %vm14524_vm8 = vcmask 1041408   ;;  %s15784_s16 = sshll.u32 %s326_s14, 1 }
  0x18   : > { %17247 = vmatprep.mubr.msk.bf16.mxu0 %vm18304_vm0, %v21982_v2  ;;  %17267 = vmatprep.mubr.msk.bf16.mxu1 %vm18304_vm0, %v21982_v2  ;;  %s22129_s23 = smov (!%p330_p10, %s15785_s23), 3  ;;  %v375_v6 = vunpack.c.0.s8 %v374_v4  ;;  %vm20899_vm7 = vmand %vm11180_vm5, %vm11181_vm6  ;;  %vm14525_vm9 = vsmask.f32 1280  ;;  %vm14599_vm11 = vcmask 1041409   ;;  %s16930_s22 = sshll.u32 %s18377_s13, 5 }
  0x19   : > { %17275 = vmatprep.subr.bf16.mxu1 %v21982_v2  ;;  %17305 = vmatprep.subr.bf16.mxu0 %v21982_v2  ;;  %s16933_s24 = sshll.u32 %s22129_s23, 5  ;;  %vm21643_vm10 = vmand %vm14524_vm8, %vm14525_vm9  ;;  %s328_s23 = scalar_lea.vmem [#allocation5], %s15784_s16 }
  0x1a   : > { %v18416_v7 = vsub.s32 %v375_v6, %v377_v5  ;;  %s18421_s27 = scalar_lea.vmem %s21970_s0, %s16933_s24  ;;  %s15721_s24 = sshll.u32 %s328_s23, 4  ;;  %s21930_s24 = int_to_ptr.vmem [resolvable:$true] %s15721_s24 }
  0x1b   : > { %v15788_v8 = vld.sshfl [vmem:[%s18421_s27] sm:$0x33 pattern:$0x75316420]  ;;  %s15708_s28 = scalar_lea.sflag [#allocation6], %s326_s14  ;;  %s18238_s13 = scalar_lea.vmem %s21930_s24, 32 }
  0x1c   : > { %v15789_v9 = vld.sshfl [vmem:[%s18421_s27 + $0x4] sm:$0x33 pattern:$0x75316420]  ;;  %v372_v10 = vcombine.high %v15788_v8, %v15788_v8  ;;  %v18426_v11 = vrot.slane %v15788_v8, %v18416_v7  ;;  %p18239_p11 = scmp.ne.s32.totalorder %s21930_s24, %s18238_s13  ;;  %s18305_s29 = smov [#allocation5]  }
  0x1d   : > { %v15790_v12 = vld.sshfl [vmem:[%s18421_s27 + $0x8] sm:$0x33 pattern:$0x75316420]  ;;  %v396_v13 = vcombine.high %v15789_v9, %v15789_v9  ;;  %v18430_v14 = vrot.slane %v15789_v9, %v18416_v7  ;;  %s18242_s16 = sshll.u32 %s18305_s29, 4  ;;  %s18243_s16 = int_to_ptr.vmem [resolvable:$false] %s18242_s16 }
  0x1e   : > { %v18433_v15 = vrot.slane %v372_v10, %v18416_v7  ;;  %v18437_v16 = vcombine.high %v18426_v11, %v18426_v11  ;;  %v420_v17 = vcombine.high %v15790_v12, %v15790_v12  ;;  %v18440_v18 = vrot.slane %v15790_v12, %v18416_v7  ;;  %v15799_v35 = vld.sshfl [vmem:[%s18421_s27 + $0x30] sm:$0x33 pattern:$0x75316420]  ;;  %p18240_p12 = pnand %p18239_p11, %p18394_p5  ;;  %s18244_s17 = scalar_lea.vmem %s18243_s16, 64 }
  0x1f   : > { %v18443_v19 = vrot.slane %v396_v13, %v18416_v7  ;;  %v18447_v20 = vcombine.high %v18430_v14, %v18430_v14  ;;  %v702_v21 = vunpack.i.h.s16 %v18426_v11  ;;  %v709_v22 = vunpack.i.h.s16 %v18430_v14  ;;  %v15800_v44 = vld.sshfl [vmem:[%s18421_s27 + $0x34] sm:$0x33 pattern:$0x75316420]  ;;  %p18245_p0 = scmp.lt.s32.totalorder %s21930_s24, %s18243_s16  ;;  %p18246_p1 = scmp.lt.s32.totalorder %s18244_s17, %s18238_s13 }
  0x20   : > { %v18453_v23 = vcombine.high %v18433_v15, %v18433_v15  ;;  %v18456_v24 = vrot.slane %v420_v17, %v18416_v7  ;;  %v704_v25 = vunpack.i.h.s16 %v18433_v15  ;;  %v706_v26 = vunpack.i.h.s16 %v18437_v16  ;;  %v15801_v47 = vld.sshfl [vmem:[%s18421_s27 + $0x38] sm:$0x33 pattern:$0x75316420]  ;;  %p18241_p13 = pneg %p18240_p12 }
  0x21   : > { %v18462_v27 = vcombine.high %v18443_v19, %v18443_v19  ;;  %v711_v28 = vunpack.i.h.s16 %v18443_v19  ;;  %v713_v29 = vunpack.i.h.s16 %v18447_v20  ;;  %v716_v30 = vunpack.i.h.s16 %v18440_v18  ;;  %v15791_v13 = vld.sshfl [vmem:[%s18421_s27 + $0xc] sm:$0x33 pattern:$0x75316420]  ;;  %p18247_p2 = por %p18246_p1, %p18245_p0 }
  0x22   : > { %v801_v31 = vunpack.i.h.s16 %v18453_v23  ;;  %v15804_v32 = vpack.i.b16 %v18433_v15, %v702_v21  ;;  %v15805_v33 = vpack.i.b16 %v18437_v16, %v704_v25  ;;  %v15806_v34 = vpack.i.b16 %v18453_v23, %v706_v26  ;;  %v15792_v26 = vld.sshfl [vmem:[%s18421_s27 + $0x10] sm:$0x33 pattern:$0x75316420] }
  0x23   : > { %v18473_v36 = vpack.i.b16 %v18456_v24, %v716_v30  ;;  %v869_v37 = vcombine.low %v18443_v19, %v18447_v20  ;;  %v18480_v39 = vpack.i.b16 %v18443_v19, %v709_v22  ;;  %v18483_v42 = vpack.i.b16 %v18447_v20, %v711_v28  ;;  %p18248_p3 = pnand %p18247_p2, %p18241_p13 }
  0x24   : > { %v821_v40 = vpack.i.b16 %v709_v22, %v801_v31  ;;  %v867_v41 = vcombine.low %v15804_v32, %v15805_v33  ;;  %v18486_v43 = vpack.i.b16 %v18462_v27, %v713_v29  ;;  %v636_v48 = vcombine.high %v15799_v35, %v15799_v35  ;;  %v18020_v32 = vld [vmem:[%s21971_s1 + $0x10] sm:$0xff]  }
  0x25   : > { %v870_v45 = vcombine.low %v18462_v27, %v18473_v36  ;;  %v891_v46 = vrot.slane %v869_v37, %v18416_v7  ;;  %v18494_v49 = vrot.slane %v15799_v35, %v18416_v7  ;;  %v660_v56 = vcombine.high %v15800_v44, %v15800_v44 }
  0x26   : > { %v868_v50 = vcombine.low %v15806_v34, %v821_v40  ;;  %v877_v51 = vrot.slane %v867_v41, %v18416_v7  ;;  %v18503_v55 = vrot.slane %v636_v48, %v18416_v7  ;;  %v18506_v57 = vrot.slane %v15800_v44, %v18416_v7 }
  0x27   : > { %v898_v54 = vrot.slane %v870_v45, %v18416_v7  ;;  %v684_v59 = vcombine.high %v15801_v47, %v15801_v47  ;;  %v18510_v60 = vrot.slane %v15801_v47, %v18416_v7  ;;  %v18514_v61 = vcombine.high %v18440_v18, %v18440_v18 }
  0x28   : > { %22030 = vst [vmem:[#allocation8_spill] sm:$0xff] %v18506_v57  ;;  %v884_v58 = vrot.slane %v868_v50, %v18416_v7  ;;  %v18517_v63 = vrot.slane %v660_v56, %v18416_v7  ;;  %v18521_v0 = vcombine.high %v18506_v57, %v18506_v57  ;;  %v786_v1 = vunpack.i.h.s16 %v18506_v57 }
  0x29   : > { %22031 = vst [vmem:[#allocation9_spill] sm:$0xff] %v18510_v60  ;;  %v900_v62 = vcombine.low %v891_v46, %v898_v54  ;;  %v18525_v4 = vrot.slane %v684_v59, %v18416_v7  ;;  %v18529_v5 = vcombine.high %v18510_v60, %v18510_v60  ;;  %v21980_v6 = vunpack.i.h.s16 %v18510_v60 }
  0x2a   : > { %22032 = vst [vmem:[#allocation10_spill] sm:$0xff] %v18517_v63  ;;  %22033 = vst [vmem:[#allocation11_spill] sm:$0xff] %v18521_v0  ;;  %v899_v3 = vcombine.low %v877_v51, %v884_v58  ;;  %v18535_v9 = vcombine.high %v18517_v63, %v18517_v63  ;;  %v788_v10 = vunpack.i.h.s16 %v18517_v63  ;;  %v790_v12 = vunpack.i.h.s16 %v18521_v0 }
  0x2b   : > { %22034 = vst [vmem:[#allocation12_spill] sm:$0xff] %v18529_v5  ;;  %v914_v8 = vrot.slane %v900_v62, %v18416_v7  ;;  %v18542_v21 = vpack.i.b16 %v18517_v63, %v786_v1  ;;  %v15827_v22 = vcombine.high %v18494_v49, %v18503_v55  ;;  %v1115_v25 = vcombine.low %v18525_v4, %v18529_v5 }
  0x2c   : > { %v907_v17 = vrot.slane %v899_v3, %v18416_v7  ;;  %v813_v28 = vunpack.i.h.s16 %v18535_v9  ;;  %v18551_v29 = vpack.i.b16 %v18521_v0, %v788_v10  ;;  %v18554_v30 = vpack.i.b16 %v18535_v9, %v790_v12 }
  0x2d   : > { %22035 = vst [vmem:[#allocation13_spill] sm:$0xff] %v18542_v21  ;;  %v18558_v31 = vcombine.high %v18456_v24, %v18456_v24  ;;  %v1122_v34 = vrot.slane %v15827_v22, %v18416_v7  ;;  %v1143_v35 = vrot.slane %v1115_v25, %v18416_v7  ;;  %v444_v37 = vcombine.high %v15791_v13, %v15791_v13 }
  0x2e   : > { %22036 = vst [vmem:[#allocation14_spill] sm:$0xff] %v18551_v29  ;;  %22037 = vst [vmem:[#allocation15_spill] sm:$0xff] %v18554_v30  ;;  %v915_v33 = vcombine.low %v907_v17, %v914_v8  ;;  %v863_v40 = vpack.i.b16 %v21980_v6, %v813_v28  ;;  %v1113_v41 = vcombine.low %v18542_v21, %v18551_v29  ;;  %v718_v48 = vunpack.i.h.s16 %v18456_v24  ;;  %v15793_v17 = vld.sshfl [vmem:[%s18421_s27 + $0x14] sm:$0x33 pattern:$0x75316420] }
  0x2f   : > { %v18570_v44 = vrot.slane %v15791_v13, %v18416_v7  ;;  %v468_v45 = vcombine.high %v15792_v26, %v15792_v26  ;;  %v18574_v46 = vrot.slane %v444_v37, %v18416_v7  ;;  %v18577_v47 = vrot.slane %v15792_v26, %v18416_v7 }
  0x30   : > { %17248 = vmatmul.mubr.msk.bf16.vlgmr.msra.gmra.mrb[0].mxu0 %vm1181_vm1, %v915_v33  ;;  %v720_v50 = vunpack.i.h.s16 %v18514_v61  ;;  %v1114_v51 = vcombine.low %v18554_v30, %v863_v40  ;;  %v1129_v54 = vrot.slane %v1113_v41, %v18416_v7  ;;  %v803_v1 = vunpack.i.h.s16 %v18558_v31  ;;  %v18018_v41 = vld [vmem:[%s21971_s1] sm:$0xff]  }
  0x31   : > { %17251 = vmatprep.mubr.msk.bf16.mxu0 %vm18304_vm0, %v21982_v2  ;;  %v18586_v56 = vrot.slane %v468_v45, %v18416_v7  ;;  %v21981_v58 = vunpack.i.h.s16 %v18570_v44  ;;  %17306 = vmatpush3.bf16.msra.mxu0 %v18020_v32  ;;  %v18591_v59 = vcombine.high %v18577_v47, %v18577_v47  ;;  %v730_v62 = vunpack.i.h.s16 %v18577_v47  ;;  %v15794_v32 = vld.sshfl [vmem:[%s18421_s27 + $0x18] sm:$0x33 pattern:$0x75316420] }
  0x32   : > { %v18596_v3 = vpack.i.b16 %v18514_v61, %v718_v48  ;;  %v1136_v8 = vrot.slane %v1114_v51, %v18416_v7  ;;  %v1144_v10 = vcombine.low %v1122_v34, %v1129_v54  ;;  %v18601_v13 = vpack.i.b16 %v18558_v31, %v720_v50 }
  0x33   : > { %v732_v12 = vunpack.i.h.s16 %v18586_v56  ;;  %v828_v22 = vpack.i.b16 %v21981_v58, %v803_v1  ;;  %v18607_v25 = vpack.i.b16 %v18586_v56, %v730_v62  ;;  %v15825_v26 = vcombine.high %v18570_v44, %v18574_v46 }
  0x34   : > { %v18613_v28 = vcombine.high %v18525_v4, %v18525_v4  ;;  %v1145_v33 = vcombine.low %v1136_v8, %v1143_v35  ;;  %v1152_v34 = vrot.slane %v1144_v10, %v18416_v7  ;;  %v916_v40 = vcombine.low %v18596_v3, %v18601_v13 }
  0x35   : > { %v18618_v37 = vpack.i.b16 %v18591_v59, %v732_v12  ;;  %v917_v45 = vcombine.low %v828_v22, %v18574_v46  ;;  %v940_v48 = vrot.slane %v15825_v26, %v18416_v7  ;;  %v18631_v35 = vcombine.high %v18586_v56, %v18586_v56 }
  0x36   : > { %22038 = vst [vmem:[#allocation16_spill] sm:$0xff] %v18613_v28  ;;  %v1167_v50 = vrot.slane %v18613_v28, %v18416_v7  ;;  %v1159_v51 = vrot.slane %v1145_v33, %v18416_v7  ;;  %v926_v62 = vrot.slane %v916_v40, %v18416_v7  ;;  %v492_v1 = vcombine.high %v15793_v17, %v15793_v17 }
  0x37   : > { %v919_v54 = vcombine.low %v18607_v25, %v18618_v37  ;;  %v933_v8 = vrot.slane %v917_v45, %v18416_v7  ;;  %v18640_v12 = vrot.slane %v15793_v17, %v18416_v7  ;;  %v516_v22 = vcombine.high %v15794_v32, %v15794_v32 }
  0x38   : > { %v1174_v10 = vrot.slane %v1167_v50, %v18416_v7  ;;  %v1160_v26 = vcombine.low %v1152_v34, %v1159_v51  ;;  %v18644_v58 = vrot.slane %v492_v1, %v18416_v7  ;;  %v18647_v33 = vrot.slane %v15794_v32, %v18416_v7 }
  0x39   : > { %v947_v6 = vrot.slane %v919_v54, %v18416_v7  ;;  %v948_v53 = vcombine.low %v926_v62, %v933_v8  ;;  %v18651_v40 = vcombine.high %v18640_v12, %v18640_v12  ;;  %v18654_v45 = vrot.slane %v516_v22, %v18416_v7 }
  0x3a   : > { %v734_v17 = vunpack.i.h.s16 %v18591_v59  ;;  %17268 = vmatmul.mubr.msk.bf16.vlgmr.msra.gmra.mrb[0].mxu1 %vm1181_vm1, %v1160_v26  ;;  %v18660_v50 = vcombine.high %v18644_v58, %v18644_v58  ;;  %v18664_v32 = vcombine.high %v18647_v33, %v18647_v33  ;;  %v805_v8 = vunpack.i.h.s16 %v18631_v35  ;;  %v15796_v26 = vld.sshfl [vmem:[%s18421_s27 + $0x24] sm:$0x33 pattern:$0x75316420] }
  0x3b   : > { %22039 = vst [vmem:[#allocation17_spill] sm:$0xff] %v18651_v40  ;;  %v949_v34 = vcombine.low %v940_v48, %v947_v6  ;;  %17276 = vmatpush3.bf16.msra.mxu1 %v18018_v41  ;;  %17271 = vmatprep.mubr.msk.bf16.mxu1 %vm18304_vm0, %v21982_v2  ;;  %v956_v54 = vrot.slane %v948_v53, %v18416_v7  ;;  %v744_v48 = vunpack.i.h.s16 %v18647_v33  ;;  %v746_v62 = vunpack.i.h.s16 %v18654_v45  ;;  %v15795_v53 = vld.sshfl [vmem:[%s18421_s27 + $0x20] sm:$0x33 pattern:$0x75316420] }
  0x3c   : > { %v18672_v6 = vcombine.high %v18654_v45, %v18654_v45  ;;  %17335 = vmatprep.subr.bf16.mxu1 %v21982_v2  ;;  %v748_v41 = vunpack.i.h.s16 %v18664_v32  ;;  %v18681_v22 = vpack.i.b16 %v18631_v35, %v734_v17  ;;  %v1340_v2 = vcombine.low %v18426_v11, %v18433_v15 }
  0x3d   : > { %v963_v1 = vrot.slane %v949_v34, %v18416_v7  ;;  %v18686_v52 = vpack.i.b16 %v18654_v45, %v744_v48  ;;  %v18689_v38 = vpack.i.b16 %v18664_v32, %v746_v62  ;;  %v966_v34 = vcombine.low %v18644_v58, %v18651_v40  ;;  %v18705_v62 = vld.sshfl [vmem:[%s18421_s27 + $0x28] sm:$0x33 pattern:$0x75316420] }
  0x3e   : > { %v22042_v29 = vunpack.i.h.s16 %v18640_v12  ;;  %v18698_v17 = vpack.i.b16 %v18672_v6, %v748_v41  ;;  %v22044_v48 = vpack.i.b16 %v18430_v14, %v18453_v23  ;;  %v1350_v11 = vrot.slane %v1340_v2, %v18416_v7 }
  0x3f   : > { %22040 = vst [vmem:[#allocation18_spill] sm:$0xff] %v18686_v52  ;;  %22041 = vst [vmem:[#allocation19_spill] sm:$0xff] %v18689_v38  ;;  %v964_v51 = vcombine.low %v956_v54, %v963_v1  ;;  %v967_v28 = vcombine.low %v18660_v50, %v18686_v52  ;;  %v982_v0 = vrot.slane %v966_v34, %v18416_v7  ;;  %v22047_v2 = vmov 0.0  }
  0x40   : > { %v835_v30 = vpack.i.b16 %v22042_v29, %v805_v8  ;;  %22043 = vst [vmem:[#allocation20_spill] sm:$0xff] %v18698_v17  ;;  %v1341_v21 = vcombine.low %v18437_v16, %v22044_v48  ;;  %v22045_v15 = vcombine.low %v18480_v39, %v18483_v42  ;;  %v968_v16 = vcombine.low %v18689_v38, %v18698_v17 }
  0x41   : > { %17252 = vmatmul.mubr.msk.bf16.gmra.mrb[4].mxu0 %vm1181_vm1, %v964_v51  ;;  %v22046_v1 = vcombine.low %v18486_v43, %v18440_v18  ;;  %v989_v39 = vrot.slane %v967_v28, %v18416_v7  ;;  %v540_v42 = vcombine.high %v15795_v53, %v15795_v53  ;;  %v18728_v51 = vrot.slane %v15795_v53, %v18416_v7 }
  0x42   : > { %v1364_v29 = vrot.slane %v22045_v15, %v18416_v7  ;;  %v965_v23 = vcombine.low %v18681_v22, %v835_v30  ;;  %v1357_v54 = vrot.slane %v1341_v21, %v18416_v7  ;;  %17255 = vmatprep.mubr.msk.bf16.mxu0 %vm18304_vm0, %v22047_v2  ;;  %v564_v30 = vcombine.high %v15796_v26, %v15796_v26 }
  0x43   : > { %v1371_v41 = vrot.slane %v22046_v1, %v18416_v7  ;;  %17272 = vmatmul.mubr.msk.bf16.gmra.mrb[4].mxu1 %vm1181_vm1, %v1174_v10  ;;  %v996_v21 = vrot.slane %v968_v16, %v18416_v7  ;;  %v18736_v43 = vrot.slane %v540_v42, %v18416_v7  ;;  %v18739_v28 = vrot.slane %v15796_v26, %v18416_v7  ;;  %v18019_v16 = vld [vmem:[%s21971_s1 + $0x18] sm:$0xff]  }
  0x44   : > { %v975_v8 = vrot.slane %v965_v23, %v18416_v7  ;;  %v1372_v34 = vcombine.low %v1350_v11, %v1357_v54  ;;  %17277 = vmatprep.mubr.msk.bf16.mxu1 %vm18304_vm0, %v22047_v2  ;;  %v18742_v53 = vrot.slane %v564_v30, %v18416_v7  ;;  %v18746_v10 = vrot.slane %v18705_v62, %v18416_v7 }
  0x45   : > { %v1373_v48 = vcombine.low %v1364_v29, %v1371_v41  ;;  %v998_v23 = vcombine.low %v989_v39, %v996_v21  ;;  %v18755_v26 = vcombine.high %v18739_v28, %v18739_v28  ;;  %v22059_v5 = vunpack.i.h.s16 %v18494_v49 }
  0x46   : > { %v997_v15 = vcombine.low %v975_v8, %v982_v0  ;;  %v1380_v11 = vrot.slane %v1372_v34, %v18416_v7  ;;  %v18759_v54 = vcombine.high %v18742_v53, %v18742_v53  ;;  %v758_v0 = vunpack.i.h.s16 %v18739_v28 }
  0x47   : > { %v1387_v29 = vrot.slane %v1373_v48, %v18416_v7  ;;  %v1012_v39 = vrot.slane %v998_v23, %v18416_v7  ;;  %v760_v30 = vunpack.i.h.s16 %v18742_v53  ;;  %v762_v8 = vunpack.i.h.s16 %v18755_v26 }
  0x48   : > { %v1005_v41 = vrot.slane %v997_v15, %v18416_v7  ;;  %v21992_v21 = vunpack.i.h.s16 %v18746_v10  ;;  %v807_v34 = vunpack.i.h.s16 %v18672_v6  ;;  %v809_v48 = vunpack.i.h.s16 %v18759_v54 }
  0x49   : > { %v1388_v42 = vcombine.low %v1380_v11, %v1387_v29  ;;  %v18771_v1 = vpack.i.b16 %v18742_v53, %v758_v0  ;;  %v18774_v52 = vpack.i.b16 %v18755_v26, %v760_v30  ;;  %v15826_v15 = vcombine.high %v18728_v51, %v18736_v43 }
  0x4a   : > { %v1013_v17 = vcombine.low %v1005_v41, %v1012_v39  ;;  %v22050_v23 = vunpack.i.h.s16 %v18728_v51  ;;  %v18781_v29 = vpack.i.b16 %v18759_v54, %v762_v8  ;;  %v849_v38 = vpack.i.b16 %v21992_v21, %v809_v48 }
  0x4b   : > { %22048 = vst [vmem:[#allocation21_spill] sm:$0xff] %v18771_v1  ;;  %22049 = vst [vmem:[#allocation22_spill] sm:$0xff] %v18774_v52  ;;  %v18787_v0 = vcombine.high %v18570_v44, %v18570_v44  ;;  %17278 = vmatmul.mubr.msk.bf16.vlgmr.msra.gmra.mrb[8].mxu1 %vm1181_vm1, %v1388_v42  ;;  %v1016_v41 = vcombine.low %v18771_v1, %v18774_v52  ;;  %v1031_v39 = vrot.slane %v15826_v15, %v18416_v7  ;;  %v15798_v15 = vld.sshfl [vmem:[%s18421_s27 + $0x2c] sm:$0x33 pattern:$0x75316420] }
  0x4c   : > { %v842_v11 = vpack.i.b16 %v22050_v23, %v807_v34  ;;  %22051 = vst [vmem:[#allocation23_spill] sm:$0xff] %v18781_v29  ;;  %17256 = vmatmul.mubr.msk.bf16.gmra.mrb[8].mxu0 %vm1181_vm1, %v1013_v17  ;;  %v18796_v30 = vcombine.high %v18574_v46, %v18574_v46  ;;  %v725_v8 = vunpack.i.h.s16 %v18574_v46  ;;  %17336 = vmatpush3.bf16.msra.mxu1 %v18019_v16  ;;  %v22052_v16 = vunpack.i.h.s16 %v18570_v44 }
  0x4d   : > { %17259 = vmatprep.mubr.msk.bf16.mxu0 %vm18304_vm0, %v22047_v2  ;;  %v1017_v17 = vcombine.low %v18781_v29, %v849_v38  ;;  %v727_v42 = vunpack.i.h.s16 %v18787_v0  ;;  %v15840_v48 = vpack.i.b16 %v18570_v44, %v18558_v31  ;;  %17281 = vmatprep.mubr.msk.bf16.mxu1 %vm18304_vm0, %v22047_v2  ;;  %v1038_v23 = vrot.slane %v1016_v41, %v18416_v7 }
  0x4e   : > { %v1014_v34 = vcombine.low %v842_v11, %v18736_v43  ;;  %v18813_v21 = vpack.i.b16 %v18574_v46, %v22052_v16  ;;  %v15842_v11 = vpack.i.b16 %v18787_v0, %v725_v8  ;;  %v1389_v38 = vcombine.low %v18456_v24, %v18514_v61 }
  0x4f   : > { %v1045_v31 = vrot.slane %v1017_v17, %v18416_v7  ;;  %v15843_v29 = vpack.i.b16 %v18796_v30, %v727_v42  ;;  %v1392_v1 = vcombine.low %v18577_v47, %v18586_v56  ;;  %v588_v16 = vcombine.high %v18705_v62, %v18705_v62 }
  0x50   : > { %22053 = vst [vmem:[#allocation24_spill] sm:$0xff] %v18813_v21  ;;  %v1024_v52 = vrot.slane %v1014_v34, %v18416_v7  ;;  %v1390_v41 = vcombine.low %v15840_v48, %v18813_v21  ;;  %v1399_v57 = vrot.slane %v1389_v38, %v18416_v7  ;;  %v18829_v8 = vcombine.high %v18746_v10, %v18746_v10 }
  0x51   : > { %v1047_v61 = vcombine.low %v1038_v23, %v1045_v31  ;;  %v1391_v34 = vcombine.low %v15842_v11, %v15843_v29  ;;  %v1420_v17 = vrot.slane %v1392_v1, %v18416_v7  ;;  %v18834_v56 = vrot.slane %v588_v16, %v18416_v7 }
  0x52   : > { %v1046_v24 = vcombine.low %v1024_v52, %v1031_v39  ;;  %v1406_v42 = vrot.slane %v1390_v41, %v18416_v7  ;;  %v612_v48 = vcombine.high %v15798_v15, %v15798_v15  ;;  %v18837_v38 = vrot.slane %v15798_v15, %v18416_v7 }
  0x53   : > { %v1061_v21 = vrot.slane %v1047_v61, %v18416_v7  ;;  %v18842_v63 = vrot.slane %v1391_v34, %v18416_v7  ;;  %v18847_v1 = vcombine.high %v18834_v56, %v18834_v56  ;;  %v1063_v41 = vcombine.low %v18834_v56, %v18829_v8 }
  0x54   : > { %v1054_v62 = vrot.slane %v1046_v24, %v18416_v7  ;;  %v1421_v29 = vcombine.low %v1399_v57, %v1406_v42  ;;  %v18850_v39 = vrot.slane %v612_v48, %v18416_v7  ;;  %v18854_v15 = vcombine.high %v18837_v38, %v18837_v38 }
  0x55   : > { %22054 = vst [vmem:[#allocation25_spill] sm:$0xff] %v18842_v63  ;;  %v1422_v11 = vcombine.low %v18842_v63, %v1420_v17  ;;  %v22000_v31 = vunpack.i.h.s16 %v18837_v38  ;;  %v1073_v17 = vrot.slane %v1063_v41, %v18416_v7  ;;  %v739_v42 = vunpack.i.h.s16 %v18644_v58 }
  0x56   : > { %v1062_v23 = vcombine.low %v1054_v62, %v1061_v21  ;;  %v1429_v57 = vrot.slane %v1421_v29, %v18416_v7  ;;  %v18863_v16 = vcombine.high %v18850_v39, %v18850_v39  ;;  %v774_v24 = vunpack.i.h.s16 %v18850_v39 }
  0x57   : > { %v776_v61 = vunpack.i.h.s16 %v18854_v15  ;;  %v1436_v21 = vrot.slane %v1422_v11, %v18416_v7  ;;  %v18872_v34 = vpack.i.b16 %v18850_v39, %v22000_v31  ;;  %v15844_v41 = vpack.i.b16 %v18640_v12, %v18631_v35 }
  0x58   : > { %17260 = vmatmul.mubr.msk.bf16.gmra.mrb[12].mxu0 %vm1181_vm1, %v1062_v23  ;;  %v811_v48 = vunpack.i.h.s16 %v18863_v16  ;;  %v18880_v62 = vpack.i.b16 %v18854_v15, %v774_v24  ;;  %v741_v23 = vunpack.i.h.s16 %v18651_v40  ;;  %v22058_v52 = vunpack.i.h.s16 %v18640_v12 }
  0x59   : > { %22055 = vst [vmem:[#allocation26_spill] sm:$0xff] %v18872_v34  ;;  %17263 = vmatprep.mubr.msk.bf16.mxu0 %vm18304_vm0, %v22047_v2  ;;  %v18883_v29 = vpack.i.b16 %v18863_v16, %v776_v61  ;;  %v1437_v11 = vcombine.low %v1429_v57, %v1436_v21  ;;  %v1064_v31 = vcombine.low %v18847_v1, %v18872_v34 }
  0x5a   : > { %22056 = vst [vmem:[#allocation27_spill] sm:$0xff] %v18880_v62  ;;  %v15845_v63 = vpack.i.b16 %v18644_v58, %v22058_v52  ;;  %v856_v24 = vpack.i.b16 %v22059_v5, %v811_v48  ;;  %v15846_v60 = vpack.i.b16 %v18651_v40, %v739_v42  ;;  %v15847_v57 = vpack.i.b16 %v18660_v50, %v741_v23 }
  0x5b   : > { %22057 = vst [vmem:[#allocation28_spill] sm:$0xff] %v18883_v29  ;;  %v1065_v61 = vcombine.low %v18880_v62, %v18883_v29  ;;  %17282 = vmatmul.mubr.msk.bf16.gmra.mrb[12].mxu1 %vm1181_vm1, %v1437_v11  ;;  %v1080_v21 = vrot.slane %v1064_v31, %v18416_v7  ;;  %v1438_v35 = vcombine.low %v18591_v59, %v15844_v41 }
  0x5c   : > { %v1441_v34 = vcombine.low %v18654_v45, %v18664_v32  ;;  %v555_v52 = vcombine.high %v18728_v51, %v18728_v51  ;;  %17285 = vmatprep.mubr.msk.bf16.mxu1 %vm18304_vm0, %v22047_v2  ;;  %v1066_v5 = vcombine.low %v856_v24, %v18503_v55  ;;  %v1439_v48 = vcombine.low %v15845_v63, %v15846_v60 }
  0x5d   : > { %v1087_v42 = vrot.slane %v1065_v61, %v18416_v7  ;;  %v1440_v23 = vcombine.low %v15847_v57, %v18647_v33  ;;  %v1095_v11 = vcombine.low %v1073_v17, %v1080_v21  ;;  %v1448_v31 = vrot.slane %v1438_v35, %v18416_v7 }
  0x5e   : > { %v1469_v59 = vrot.slane %v1441_v34, %v18416_v7  ;;  %v556_v45 = vcombine.high %v18736_v43, %v18736_v43  ;;  %v1094_v32 = vrot.slane %v1066_v5, %v18416_v7  ;;  %v1455_v41 = vrot.slane %v1439_v48, %v18416_v7 }
  0x5f   : > { %v1462_v29 = vrot.slane %v1440_v23, %v18416_v7  ;;  %v753_v24 = vunpack.i.h.s16 %v18736_v43  ;;  %v1103_v60 = vrot.slane %v1095_v11, %v18416_v7  ;;  %v755_v63 = vunpack.i.h.s16 %v555_v52 }
  0x60   : > { %v15848_v17 = vpack.i.b16 %v18728_v51, %v18672_v6  ;;  %v22060_v61 = vunpack.i.h.s16 %v18728_v51  ;;  %v1096_v57 = vcombine.low %v1087_v42, %v1094_v32  ;;  %v1470_v21 = vcombine.low %v1448_v31, %v1455_v41 }
  0x61   : > { %v1471_v35 = vcombine.low %v1462_v29, %v1469_v59  ;;  %v15850_v5 = vpack.i.b16 %v555_v52, %v753_v24  ;;  %v15851_v62 = vpack.i.b16 %v556_v45, %v755_v63  ;;  %v15852_v48 = vpack.i.b16 %v18746_v10, %v18759_v54 }
  0x62   : > { %v15849_v34 = vpack.i.b16 %v18736_v43, %v22060_v61  ;;  %v1489_v11 = vcombine.low %v18739_v28, %v18742_v53  ;;  %v1110_v40 = vrot.slane %v1096_v57, %v18416_v7  ;;  %v1478_v6 = vrot.slane %v1470_v21, %v18416_v7 }
  0x63   : > { %v1485_v51 = vrot.slane %v1471_v35, %v18416_v7  ;;  %v15902_v43 = vpack.i.b16 %v18440_v18, %v18462_v27  ;;  %v1488_v42 = vcombine.low %v15850_v5, %v15851_v62  ;;  %v1490_v29 = vcombine.low %v18755_v26, %v15852_v48 }
  0x64   : > { %v1487_v23 = vcombine.low %v15848_v17, %v15849_v34  ;;  %v1511_v54 = vrot.slane %v1489_v11, %v18416_v7  ;;  %v1111_v31 = vcombine.low %v1103_v60, %v1110_v40  ;;  %v2278_v53 = vcombine.low %v18430_v14, %v18443_v19 }
  0x65   : > { %v1486_v59 = vcombine.low %v1478_v6, %v1485_v51  ;;  %v2279_v45 = vcombine.low %v18447_v20, %v15902_v43  ;;  %v1504_v32 = vrot.slane %v1488_v42, %v18416_v7  ;;  %v1518_v41 = vrot.slane %v1490_v29, %v18416_v7 }
  0x66   : > { %v1497_v52 = vrot.slane %v1487_v23, %v18416_v7  ;;  %v2280_v18 = vcombine.low %v18473_v36, %v18596_v3  ;;  %v2281_v27 = vcombine.low %v18601_v13, %v18570_v44  ;;  %17264 = vmatmul.mubr.msk.bf16.gmra.mrb[16].mxu0 %vm1181_vm1, %v1111_v31  ;;  %v2288_v40 = vrot.slane %v2278_v53, %v18416_v7 }
  0x67   : > { %17286 = vmatmul.mubr.msk.bf16.gmra.mrb[16].mxu1 %vm1181_vm1, %v1486_v59  ;;  %v2295_v14 = vrot.slane %v2279_v45, %v18416_v7  ;;  %v767_v19 = vunpack.i.h.s16 %v18834_v56  ;;  %v769_v20 = vunpack.i.h.s16 %v18829_v8  ;;  %17307 = vmatprep.mubr.msk.bf16.mxu0 %vm18304_vm0, %v22047_v2  ;;  %v1520_v44 = vcombine.low %v1511_v54, %v1518_v41 }
  0x68   : > { %17289 = vmatprep.mubr.msk.bf16.mxu1 %vm18304_vm0, %v22047_v2  ;;  %v1519_v36 = vcombine.low %v1497_v52, %v1504_v32  ;;  %v2302_v3 = vrot.slane %v2280_v18, %v18416_v7  ;;  %v781_v13 = vunpack.i.h.s16 %v18503_v55  ;;  %v2309_v26 = vrot.slane %v2281_v27, %v18416_v7 }
  0x69   : > { %v2310_v62 = vcombine.low %v2288_v40, %v2295_v14  ;;  %v22061_v24 = vunpack.i.h.s16 %v18746_v10  ;;  %v15854_v63 = vpack.i.b16 %v18829_v8, %v767_v19  ;;  %v1534_v61 = vrot.slane %v1520_v44, %v18416_v7  ;;  %v22063_v44 = vld [vmem:[#allocation9_spill] sm:$0xff] }
  0x6a   : > { %v1527_v17 = vrot.slane %v1519_v36, %v18416_v7  ;;  %v15855_v34 = vpack.i.b16 %v18847_v1, %v769_v20  ;;  %v15856_v57 = vpack.i.b16 %v18494_v49, %v18863_v16  ;;  %v2311_v21 = vcombine.low %v2302_v3, %v2309_v26 }
  0x6b   : > { %v15853_v60 = vpack.i.b16 %v18834_v56, %v22061_v24  ;;  %v2318_v35 = vrot.slane %v2310_v62, %v18416_v7  ;;  %v22062_v5 = vunpack.i.h.s16 %v18494_v49  ;;  %v1538_v51 = vcombine.low %v18850_v39, %v18854_v15 }
  0x6c   : > { %v1535_v11 = vcombine.low %v1527_v17, %v1534_v61  ;;  %v1537_v6 = vcombine.low %v15855_v34, %v18837_v38  ;;  %v15906_v43 = vpack.i.b16 %v18577_v47, %v18796_v30  ;;  %v2325_v42 = vrot.slane %v2311_v21, %v18416_v7  ;;  %v22066_v61 = vld [vmem:[#allocation10_spill] sm:$0xff]  ;;  %v22067_v34 = vld [vmem:[#allocation8_spill] sm:$0xff] }
  0x6d   : > { %v15857_v48 = vpack.i.b16 %v18503_v55, %v22062_v5  ;;  %v1536_v23 = vcombine.low %v15853_v60, %v15854_v63  ;;  %v2327_v54 = vcombine.low %v18574_v46, %v18787_v0  ;;  %v18983_v59 = vrot.slane %v1538_v51, %v18416_v7  ;;  %v22065_v63 = vld [vmem:[#allocation12_spill] sm:$0xff] }
  0x6e   : > { %v1553_v31 = vrot.slane %v1537_v6, %v18416_v7  ;;  %v2328_v53 = vcombine.low %v15906_v43, %v18607_v25  ;;  %v2329_v39 = vcombine.low %v18618_v37, %v18681_v22  ;;  %v2326_v47 = vcombine.low %v2318_v35, %v2325_v42  ;;  %v15892_v22 = vld.sshfl [vmem:[%s18421_s27 + $0x1c] sm:$0x33 pattern:$0x75316420]  ;;  %v22068_v35 = vld [vmem:[#allocation11_spill] sm:$0xff] }
  0x6f   : > { %v1539_v29 = vcombine.low %v15856_v57, %v15857_v48  ;;  %v1546_v52 = vrot.slane %v1536_v23, %v18416_v7  ;;  %17290 = vmatmul.mubr.msk.bf16.gmra.mrb[20].mxu1 %vm1181_vm1, %v1535_v11  ;;  %v2330_v45 = vcombine.low %v18640_v12, %v18644_v58  ;;  %v2337_v46 = vrot.slane %v2327_v54, %v18416_v7 }
  0x70   : > { %17293 = vmatprep.mubr.msk.bf16.mxu1 %vm18304_vm0, %v22047_v2  ;;  %v2344_v32 = vrot.slane %v2328_v53, %v18416_v7  ;;  %v2351_v25 = vrot.slane %v2329_v39, %v18416_v7  ;;  %v18999_v37 = vcombine.high %v18494_v49, %v18494_v49  ;;  %17308 = vmatmul.mubr.msk.bf16.vlgmr.msra.gmra.mrb[20].mxu0 %vm1181_vm1, %v2326_v47  ;;  %v795_v18 = vunpack.i.h.s16 %v18525_v4  ;;  %v22070_v53 = vld [vmem:[#allocation18_spill] sm:$0xff]  ;;  %v22071_v47 = vld [vmem:[#allocation17_spill] sm:$0xff] }
  0x71   : > { %v1567_v15 = vrot.slane %v1539_v29, %v18416_v7  ;;  %v1568_v0 = vcombine.low %v1546_v52, %v1553_v31  ;;  %v2358_v58 = vrot.slane %v2330_v45, %v18416_v7  ;;  %v19007_v12 = vcombine.high %v18503_v55, %v18503_v55  ;;  %17311 = vmatprep.mubr.msk.bf16.mxu0 %vm18304_vm0, %v22047_v2  ;;  %v22069_v31 = vld [vmem:[#allocation19_spill] sm:$0xff] }
  0x72   : > { %v2359_v40 = vcombine.low %v2337_v46, %v2344_v32  ;;  %v783_v14 = vunpack.i.h.s16 %v18999_v37  ;;  %v15858_v19 = vpack.i.b16 %v18999_v37, %v781_v13  ;;  %v15860_v3 = vpack.i.b16 %v22063_v44, %v18535_v9 }
  0x73   : > { %v1569_v41 = vcombine.low %v18983_v59, %v1567_v15  ;;  %v1576_v27 = vrot.slane %v1568_v0, %v18416_v7  ;;  %v2360_v36 = vcombine.low %v2351_v25, %v2358_v58  ;;  %v22064_v26 = vunpack.i.h.s16 %v22063_v44 }
  0x74   : > { %v2367_v24 = vrot.slane %v2359_v40, %v18416_v7  ;;  %v15859_v60 = vpack.i.b16 %v19007_v12, %v783_v14  ;;  %v15862_v17 = vpack.i.b16 %v22065_v63, %v795_v18  ;;  %v1586_v57 = vcombine.low %v22067_v34, %v22066_v61  ;;  %v22073_v18 = vld [vmem:[#allocation16_spill] sm:$0xff] }
  0x75   : > { %v1583_v20 = vrot.slane %v1569_v41, %v18416_v7  ;;  %v15861_v62 = vpack.i.b16 %v18525_v4, %v22064_v26  ;;  %v2374_v21 = vrot.slane %v2360_v36, %v18416_v7  ;;  %v1587_v5 = vcombine.low %v22068_v35, %v15860_v3  ;;  %v22074_v26 = vld [vmem:[#allocation21_spill] sm:$0xff] }
  0x76   : > { %v1943_v48 = vcombine.high %v15892_v22, %v15892_v22  ;;  %v1585_v9 = vcombine.low %v15858_v19, %v15859_v60  ;;  %v1602_v11 = vrot.slane %v1586_v57, %v18416_v7  ;;  %v19030_v4 = vrot.slane %v15892_v22, %v18416_v7  ;;  %v22076_v60 = vld [vmem:[#allocation22_spill] sm:$0xff] }
  0x77   : > { %v1584_v13 = vcombine.low %v1576_v27, %v1583_v20  ;;  %v1588_v23 = vcombine.low %v15861_v62, %v15862_v17  ;;  %v2375_v6 = vcombine.low %v2367_v24, %v2374_v21  ;;  %v1609_v51 = vrot.slane %v1587_v5, %v18416_v7  ;;  %v22075_v24 = vld [vmem:[#allocation23_spill] sm:$0xff]  ;;  %v15952_v17 = vld.sshfl [vmem:[%s18421_s27 + $0x4] sm:$0x33 pattern:$0x75316420] }
  0x78   : > { %v19035_v43 = vrot.slane %v1943_v48, %v18416_v7  ;;  %v15910_v42 = vpack.i.b16 %v18647_v33, %v18660_v50  ;;  %v1595_v29 = vrot.slane %v1585_v9, %v18416_v7  ;;  %v19045_v54 = vcombine.high %v19030_v4, %v19030_v4  ;;  %v22072_v33 = vld [vmem:[#allocation20_spill] sm:$0xff] }
  0x79   : > { %17294 = vmatmul.mubr.msk.bf16.gmra.mrb[24].mxu1 %vm1181_vm1, %v1584_v13  ;;  %v1616_v52 = vrot.slane %v1588_v23, %v18416_v7  ;;  %v2377_v39 = vcombine.low %v22070_v53, %v22069_v31  ;;  %17312 = vmatmul.mubr.msk.bf16.gmra.mrb[24].mxu0 %vm1181_vm1, %v2375_v6  ;;  %v2378_v50 = vcombine.low %v22072_v33, %v19030_v4  ;;  %v797_v45 = vunpack.i.h.s16 %v22065_v63  ;;  %v22078_v6 = vld [vmem:[#allocation26_spill] sm:$0xff] }
  0x7a   : > { %17297 = vmatprep.mubr.msk.bf16.mxu1 %vm18304_vm0, %v22047_v2  ;;  %v2376_v15 = vcombine.low %v22071_v47, %v15910_v42  ;;  %v19056_v46 = vcombine.high %v19035_v43, %v19035_v43  ;;  %17315 = vmatprep.mubr.msk.bf16.mxu0 %vm18304_vm0, %v22047_v2  ;;  %v1617_v0 = vcombine.low %v1595_v29, %v1602_v11  ;;  %v22077_v11 = vld [vmem:[#allocation27_spill] sm:$0xff]  ;;  %v22079_v42 = vld [vmem:[#allocation28_spill] sm:$0xff] }
  0x7b   : > { %v1618_v32 = vcombine.low %v1609_v51, %v1616_v52  ;;  %v2379_v25 = vcombine.low %v19035_v43, %v19045_v54  ;;  %v2393_v22 = vrot.slane %v2377_v39, %v18416_v7  ;;  %v2400_v58 = vrot.slane %v2378_v50, %v18416_v7  ;;  %v22080_v39 = vld [vmem:[#allocation13_spill] sm:$0xff] }
  0x7c   : > { %v2386_v41 = vrot.slane %v2376_v15, %v18416_v7  ;;  %v15863_v27 = vpack.i.b16 %v22073_v18, %v797_v45  ;;  %v15914_v40 = vpack.i.b16 %v18739_v28, %v19056_v46  ;;  %v1625_v14 = vrot.slane %v1617_v0, %v18416_v7 }
  0x7d   : > { %v1632_v19 = vrot.slane %v1618_v32, %v18416_v7  ;;  %v2407_v20 = vrot.slane %v2379_v25, %v18416_v7  ;;  %v15918_v36 = vpack.i.b16 %v18837_v38, %v18847_v1  ;;  %v2426_v63 = vcombine.low %v22076_v60, %v22075_v24 }
  0x7e   : > { %v2408_v44 = vcombine.low %v2386_v41, %v2393_v22  ;;  %v1640_v3 = vrot.slane %v15863_v27, %v18416_v7  ;;  %v2425_v62 = vcombine.low %v15914_v40, %v22074_v26  ;;  %v2427_v57 = vcombine.low %v18746_v10, %v18834_v56  ;;  %v15898_v27 = vld.sshfl [vmem:[%s18421_s27 + $0x38] sm:$0x33 pattern:$0x75316420] }
  0x7f   : > { %v1633_v28 = vcombine.low %v1625_v14, %v1632_v19  ;;  %v2409_v61 = vcombine.low %v2400_v58, %v2407_v20  ;;  %v2428_v13 = vcombine.low %v18829_v8, %v15918_v36  ;;  %v2442_v5 = vrot.slane %v2426_v63, %v18416_v7  ;;  %v15953_v8 = vld.sshfl [vmem:[%s18421_s27 + $0x8] sm:$0x33 pattern:$0x75316420] }
  0x80   : > { %v2416_v21 = vrot.slane %v2408_v44, %v18416_v7  ;;  %v1647_v1 = vrot.slane %v1640_v3, %v18416_v7  ;;  %v2435_v35 = vrot.slane %v2425_v62, %v18416_v7  ;;  %v2449_v9 = vrot.slane %v2427_v57, %v18416_v7  ;;  %v15899_v36 = vld.sshfl [vmem:[%s18421_s27 + $0x3c] sm:$0x33 pattern:$0x75316420] }
  0x81   : > { %17298 = vmatmul.mubr.msk.bf16.gmra.mrb[28].mxu1 %vm1181_vm1, %v1633_v28  ;;  %v2423_v48 = vrot.slane %v2409_v61, %v18416_v7  ;;  %v2456_v23 = vrot.slane %v2428_v13, %v18416_v7  ;;  %v15922_v10 = vpack.i.b16 %v22067_v34, %v19007_v12  ;;  %v2474_v51 = vcombine.low %v22078_v6, %v22077_v11 }
  0x82   : > { %17301 = vmatprep.mubr.msk.bf16.mxu1 %vm18304_vm0, %v22047_v2  ;;  %v2457_v56 = vcombine.low %v2435_v35, %v2442_v5  ;;  %v2475_v29 = vcombine.low %v22079_v42, %v18494_v49  ;;  %v2476_v52 = vcombine.low %v18503_v55, %v18999_v37  ;;  %v2749_v15 = vcombine.high %v15952_v17, %v15952_v17 }
  0x83   : > { %v2424_v31 = vcombine.low %v2416_v21, %v2423_v48  ;;  %v2458_v53 = vcombine.low %v2449_v9, %v2456_v23  ;;  %v2477_v47 = vcombine.low %v15922_v10, %v22080_v39  ;;  %v2484_v34 = vrot.slane %v2474_v51, %v18416_v7  ;;  %v22081_v21 = vld [vmem:[#allocation24_spill] sm:$0xff] }
  0x84   : > { %v2465_v12 = vrot.slane %v2457_v56, %v18416_v7  ;;  %v2491_v33 = vrot.slane %v2475_v29, %v18416_v7  ;;  %v2498_v50 = vrot.slane %v2476_v52, %v18416_v7  ;;  %v2756_v37 = vrot.slane %v15952_v17, %v18416_v7  ;;  %v15955_v52 = vld.sshfl [vmem:[%s18421_s27 + $0x10] sm:$0x33 pattern:$0x75316420] }
  0x85   : > { %17316 = vmatmul.mubr.msk.bf16.gmra.mrb[28].mxu0 %vm1181_vm1, %v2424_v31  ;;  %v2472_v49 = vrot.slane %v2458_v53, %v18416_v7  ;;  %v2505_v55 = vrot.slane %v2477_v47, %v18416_v7  ;;  %v2763_v45 = vrot.slane %v2749_v15, %v18416_v7  ;;  %v2773_v32 = vcombine.high %v15953_v8, %v15953_v8  ;;  %v15956_v47 = vld.sshfl [vmem:[%s18421_s27 + $0x14] sm:$0x33 pattern:$0x75316420] }
  0x86   : > { %17319 = vmatprep.mubr.msk.bf16.mxu0 %vm18304_vm0, %v22047_v2  ;;  %v2506_v0 = vcombine.low %v2484_v34, %v2491_v33  ;;  %v2780_v25 = vrot.slane %v15953_v8, %v18416_v7  ;;  %v2764_v58 = vcombine.high %v2756_v37, %v2756_v37  ;;  %v3078_v20 = vunpack.i.h.s16 %v2756_v37 }
  0x87   : > { %v2473_v22 = vcombine.low %v2465_v12, %v2472_v49  ;;  %v2507_v41 = vcombine.low %v2498_v50, %v2505_v55  ;;  %v2765_v18 = vcombine.high %v2763_v45, %v2763_v45  ;;  %v2787_v14 = vrot.slane %v2773_v32, %v18416_v7 }
  0x88   : > { %v2514_v40 = vrot.slane %v2506_v0, %v18416_v7  ;;  %v2788_v19 = vcombine.high %v2780_v25, %v2780_v25  ;;  %v3080_v3 = vunpack.i.h.s16 %v2763_v45  ;;  %v3082_v26 = vunpack.i.h.s16 %v2764_v58 }
  0x89   : > { %17302 = vmatmul.mubr.msk.bf16.gmra.mrb[32].mxu1 %vm1181_vm1, %v1647_v1  ;;  %v2521_v44 = vrot.slane %v2507_v41, %v18416_v7  ;;  %v3084_v62 = vunpack.i.h.s16 %v2765_v18  ;;  %v2789_v24 = vcombine.high %v2787_v14, %v2787_v14  ;;  %v3085_v60 = vunpack.i.h.s16 %v2780_v25  ;;  %v22082_v25 = vld [vmem:[#allocation15_spill] sm:$0xff] }
  0x8a   : > { %17337 = vmatprep.mubr.msk.bf16.mxu1 %vm18304_vm0, %v22047_v2  ;;  %v15968_v63 = vpack.i.b16 %v2763_v45, %v3078_v20  ;;  %v3230_v17 = vcombine.low %v2787_v14, %v2788_v19  ;;  %v15969_v61 = vpack.i.b16 %v2764_v58, %v3080_v3  ;;  %v15970_v57 = vpack.i.b16 %v2765_v18, %v3082_v26 }
  0x8b   : > { %v2522_v28 = vcombine.low %v2514_v40, %v2521_v44  ;;  %v3182_v13 = vpack.i.b16 %v3085_v60, %v3084_v62  ;;  %v3231_v35 = vcombine.low %v2789_v24, %v22081_v21  ;;  %v2087_v5 = vcombine.high %v15898_v27, %v15898_v27 }
  0x8c   : > { %v3252_v1 = vrot.slane %v3230_v17, %v18416_v7  ;;  %v3228_v48 = vcombine.low %v15968_v63, %v15969_v61  ;;  %v19125_v9 = vrot.slane %v15898_v27, %v18416_v7  ;;  %v2111_v23 = vcombine.high %v15899_v36, %v15899_v36  ;;  %v15957_v63 = vld.sshfl [vmem:[%s18421_s27 + $0x18] sm:$0x33 pattern:$0x75316420] }
  0x8d   : > { %17320 = vmatmul.mubr.msk.bf16.gmra.mrb[32].mxu0 %vm1181_vm1, %v2473_v22  ;;  %v19128_v10 = vrot.slane %v15899_v36, %v18416_v7  ;;  %v3229_v8 = vcombine.low %v15970_v57, %v3182_v13  ;;  %v3259_v56 = vrot.slane %v3231_v35, %v18416_v7  ;;  %v19134_v11 = vrot.slane %v2087_v5, %v18416_v7  ;;  %v22083_v22 = vld [vmem:[#allocation14_spill] sm:$0xff] }
  0x8e   : > { %17323 = vmatprep.mubr.msk.bf16.mxu0 %vm18304_vm0, %v22047_v2  ;;  %v3238_v6 = vrot.slane %v3228_v48, %v18416_v7  ;;  %v19139_v51 = vcombine.high %v19125_v9, %v19125_v9  ;;  %v19142_v42 = vrot.slane %v2111_v23, %v18416_v7  ;;  %v2821_v0 = vcombine.high %v15955_v52, %v15955_v52 }
  0x8f   : > { %v19146_v29 = vcombine.high %v19128_v10, %v19128_v10  ;;  %v3245_v31 = vrot.slane %v3229_v8, %v18416_v7  ;;  %v3261_v53 = vcombine.low %v3252_v1, %v3259_v56  ;;  %v19152_v39 = vcombine.high %v19134_v11, %v19134_v11 }
  0x90   : > { %v2220_v15 = vunpack.i.h.s16 %v19128_v10  ;;  %v2222_v12 = vunpack.i.h.s16 %v19142_v42  ;;  %v2524_v34 = vcombine.low %v19125_v9, %v19134_v11  ;;  %v2523_v41 = vcombine.low %v22083_v22, %v22082_v25  ;;  %v15960_v25 = vld.sshfl [vmem:[%s18421_s27 + $0x28] sm:$0x33 pattern:$0x75316420] }
  0x91   : > { %v3260_v33 = vcombine.low %v3238_v6, %v3245_v31  ;;  %v3275_v50 = vrot.slane %v3261_v53, %v18416_v7  ;;  %v15926_v49 = vpack.i.b16 %v19128_v10, %v19152_v39  ;;  %v2828_v18 = vrot.slane %v15955_v52, %v18416_v7 }
  0x92   : > { %v15927_v55 = vpack.i.b16 %v19142_v42, %v2220_v15  ;;  %v15928_v37 = vpack.i.b16 %v19146_v29, %v2222_v12  ;;  %v2540_v45 = vrot.slane %v2524_v34, %v18416_v7  ;;  %v2835_v40 = vrot.slane %v2821_v0, %v18416_v7 }
  0x93   : > { %v3268_v32 = vrot.slane %v3260_v33, %v18416_v7  ;;  %v2525_v58 = vcombine.low %v19139_v51, %v15926_v49  ;;  %v2845_v14 = vcombine.high %v15956_v47, %v15956_v47  ;;  %v2852_v19 = vrot.slane %v15956_v47, %v18416_v7 }
  0x94   : > { %v2526_v27 = vcombine.low %v15927_v55, %v15928_v37  ;;  %v2533_v36 = vrot.slane %v2523_v41, %v18416_v7  ;;  %v3098_v3 = vunpack.i.h.s16 %v18796_v30  ;;  %v3099_v60 = vunpack.i.h.s16 %v2828_v18  ;;  %v22084_v41 = vld [vmem:[#allocation25_spill] sm:$0xff] }
  0x95   : > { %17324 = vmatmul.mubr.msk.bf16.gmra.mrb[36].mxu0 %vm1181_vm1, %v2522_v28  ;;  %v3276_v20 = vcombine.low %v3268_v32, %v3275_v50  ;;  %v2547_v44 = vrot.slane %v2525_v58, %v18416_v7  ;;  %v2859_v62 = vrot.slane %v2845_v14, %v18416_v7  ;;  %v2860_v24 = vcombine.high %v2852_v19, %v2852_v19  ;;  %v15959_v32 = vld.sshfl [vmem:[%s18421_s27 + $0x24] sm:$0x33 pattern:$0x75316420] }
  0x96   : > { %17327 = vmatprep.mubr.msk.bf16.mxu0 %vm18304_vm0, %v22047_v2  ;;  %v2554_v26 = vrot.slane %v2526_v27, %v18416_v7  ;;  %v2555_v17 = vcombine.low %v2533_v36, %v2540_v45  ;;  %v3106_v28 = vunpack.i.h.s16 %v2852_v19  ;;  %v15989_v61 = vcombine.high %v2828_v18, %v2835_v40 }
  0x97   : > { %17338 = vmatmul.mubr.msk.bf16.vlgmr.msra.gmra.mrb[36].mxu1 %vm1181_vm1, %v3276_v20  ;;  %v19186_v57 = vcombine.high %v19142_v42, %v19142_v42  ;;  %v3108_v13 = vunpack.i.h.s16 %v2859_v62  ;;  %v3189_v21 = vpack.i.b16 %v3099_v60, %v3098_v3  ;;  %v2224_v35 = vunpack.i.h.s16 %v19146_v29 }
  0x98   : > { %17341 = vmatprep.mubr.msk.bf16.mxu1 %vm18304_vm0, %v22047_v2  ;;  %v2556_v30 = vcombine.low %v2547_v44, %v2554_v26  ;;  %v2563_v1 = vrot.slane %v2555_v17, %v18416_v7  ;;  %v15974_v5 = vpack.i.b16 %v2859_v62, %v3106_v28  ;;  %v3301_v48 = vrot.slane %v15989_v61, %v18416_v7 }
  0x99   : > { %v2861_v23 = vcombine.high %v2859_v62, %v2859_v62  ;;  %v15975_v56 = vpack.i.b16 %v2860_v24, %v3108_v13  ;;  %v3278_v6 = vcombine.low %v3189_v21, %v2835_v40  ;;  %v15929_v52 = vpack.i.b16 %v19186_v57, %v2224_v35 }
  0x9a   : > { %v2570_v8 = vrot.slane %v2556_v30, %v18416_v7  ;;  %v2869_v31 = vcombine.high %v15957_v63, %v15957_v63  ;;  %v2876_v53 = vrot.slane %v15957_v63, %v18416_v7  ;;  %v3110_v47 = vunpack.i.h.s16 %v2860_v24 }
  0x9b   : > { %v3112_v12 = vunpack.i.h.s16 %v2861_v23  ;;  %v3280_v33 = vcombine.low %v15974_v5, %v15975_v56  ;;  %v3294_v50 = vrot.slane %v3278_v6, %v18416_v7  ;;  %v2578_v49 = vrot.slane %v15929_v52, %v18416_v7 }
  0x9c   : > { %v2571_v34 = vcombine.low %v2563_v1, %v2570_v8  ;;  %v2883_v55 = vrot.slane %v2869_v31, %v18416_v7  ;;  %v2884_v37 = vcombine.high %v2876_v53, %v2876_v53  ;;  %v3113_v45 = vunpack.i.h.s16 %v2876_v53 }
  0x9d   : > { %v3120_v0 = vunpack.i.h.s16 %v19030_v4  ;;  %v3308_v22 = vrot.slane %v3280_v33, %v18416_v7  ;;  %v3309_v58 = vcombine.low %v22084_v41, %v3294_v50  ;;  %v2585_v18 = vrot.slane %v2578_v49, %v18416_v7  ;;  %v15963_v49 = vld.sshfl [vmem:[%s18421_s27 + $0x34] sm:$0x33 pattern:$0x75316420] }
  0x9e   : > { %17328 = vmatmul.mubr.msk.bf16.gmra.mrb[40].mxu0 %vm1181_vm1, %v2571_v34  ;;  %v3122_v27 = vunpack.i.h.s16 %v19035_v43  ;;  %v2885_v40 = vcombine.high %v2883_v55, %v2883_v55  ;;  %v3124_v14 = vunpack.i.h.s16 %v19045_v54  ;;  %v15976_v19 = vpack.i.b16 %v2861_v23, %v3110_v47 }
  0x9f   : > { %17331 = vmatprep.mubr.msk.bf16.mxu0 %vm18304_vm0, %v22047_v2  ;;  %v3196_v4 = vpack.i.b16 %v3113_v45, %v3112_v12  ;;  %v3310_v20 = vcombine.low %v3301_v48, %v3308_v22  ;;  %v3317_v36 = vrot.slane %v3309_v58, %v18416_v7  ;;  %v15977_v44 = vpack.i.b16 %v19035_v43, %v3120_v0  ;;  %v15962_v48 = vld.sshfl [vmem:[%s18421_s27 + $0x30] sm:$0x33 pattern:$0x75316420]  ;;  %s21928_s27 = scalar_lea.hbm %s21979_s9, %s16930_s22 }
  0xa0   : > { %v15978_v3 = vpack.i.b16 %v19045_v54, %v3122_v27  ;;  %v15979_v26 = vpack.i.b16 %v19056_v46, %v3124_v14  ;;  %v3327_v24 = vcombine.low %v2883_v55, %v2884_v37  ;;  %v2917_v60 = vcombine.high %v15959_v32, %v15959_v32 }
  0xa1   : > { %v3326_v62 = vcombine.low %v15976_v19, %v3196_v4  ;;  %v3324_v63 = vrot.slane %v3310_v20, %v18416_v7  ;;  %v3328_v17 = vcombine.low %v2885_v40, %v15977_v44  ;;  %v2924_v28 = vrot.slane %v15959_v32, %v18416_v7 }
  0xa2   : > { %v2941_v61 = vcombine.high %v15960_v25, %v15960_v25  ;;  %v3329_v30 = vcombine.low %v15978_v3, %v15979_v26  ;;  %v3343_v21 = vrot.slane %v3327_v24, %v18416_v7  ;;  %v2931_v43 = vrot.slane %v2917_v60, %v18416_v7 }
  0xa3   : > { %v3336_v13 = vrot.slane %v3326_v62, %v18416_v7  ;;  %v3325_v54 = vcombine.low %v3317_v36, %v3324_v63  ;;  %v3350_v35 = vrot.slane %v3328_v17, %v18416_v7  ;;  %v2948_v1 = vrot.slane %v15960_v25, %v18416_v7 }
  0xa4   : > { %v2955_v5 = vrot.slane %v2941_v61, %v18416_v7  ;;  %v3357_v23 = vrot.slane %v3329_v30, %v18416_v7  ;;  %v3126_v56 = vunpack.i.h.s16 %v19056_v46  ;;  %v3127_v6 = vunpack.i.h.s16 %v2924_v28 }
  0xa5   : > { %v3358_v8 = vcombine.low %v3336_v13, %v3343_v21  ;;  %17342 = vmatmul.mubr.msk.bf16.gmra.mrb[40].mxu1 %vm1181_vm1, %v3325_v54  ;;  %v2956_v52 = vcombine.high %v2948_v1, %v2948_v1  ;;  %v3134_v53 = vunpack.i.h.s16 %v2948_v1  ;;  %v15990_v50 = vcombine.high %v2924_v28, %v2931_v43 }
  0xa6   : > { %17332 = vmatmul.mubr.msk.bf16.gmra.mrb[44].mxu0 %vm1181_vm1, %v2585_v18  ;;  %v2957_v31 = vcombine.high %v2955_v5, %v2955_v5  ;;  %v3136_v47 = vunpack.i.h.s16 %v2955_v5  ;;  %17345 = vmatprep.mubr.msk.bf16.mxu1 %vm18304_vm0, %v22047_v2  ;;  %v3359_v12 = vcombine.low %v3350_v35, %v3357_v23  ;;  %v3203_v33 = vpack.i.b16 %v3127_v6, %v3126_v56 }
  0xa7   : > { %v3366_v34 = vrot.slane %v3358_v8, %v18416_v7  ;;  %v3138_v55 = vunpack.i.h.s16 %v2956_v52  ;;  %v15980_v37 = vpack.i.b16 %v2955_v5, %v3134_v53  ;;  %v3392_v25 = vrot.slane %v15990_v50, %v18416_v7 }
  0xa8   : > { %v3140_v46 = vunpack.i.h.s16 %v2957_v31  ;;  %v15981_v45 = vpack.i.b16 %v2956_v52, %v3136_v47  ;;  %v3373_v0 = vrot.slane %v3359_v12, %v18416_v7  ;;  %v3375_v32 = vcombine.low %v3203_v33, %v2931_v43 }
  0xa9   : > { %v2989_v22 = vcombine.high %v15962_v48, %v15962_v48  ;;  %v15982_v41 = vpack.i.b16 %v2957_v31, %v3138_v55  ;;  %v22085_v58 = vunpack.i.h.s16 %v18837_v38  ;;  %v2996_v40 = vrot.slane %v15962_v48, %v18416_v7 }
  0xaa   : > { %v3377_v27 = vcombine.low %v15980_v37, %v15981_v45  ;;  %v3374_v14 = vcombine.low %v3366_v34, %v3373_v0  ;;  %v3385_v19 = vrot.slane %v3375_v32, %v18416_v7  ;;  %v3013_v20 = vcombine.high %v15963_v49, %v15963_v49 }
  0xab   : > { %v3210_v18 = vpack.i.b16 %v22085_v58, %v3140_v46  ;;  %v3003_v4 = vrot.slane %v2989_v22, %v18416_v7  ;;  %v3004_v3 = vcombine.high %v2996_v40, %v2996_v40  ;;  %v3020_v26 = vrot.slane %v15963_v49, %v18416_v7 }
  0xac   : > { %v3399_v44 = vrot.slane %v3377_v27, %v18416_v7  ;;  %v3407_v62 = vcombine.low %v3385_v19, %v3392_v25  ;;  %v3027_v38 = vrot.slane %v3013_v20, %v18416_v7  ;;  %v3148_v60 = vunpack.i.h.s16 %v2996_v40 }
  0xad   : > { %v3378_v36 = vcombine.low %v15982_v41, %v3210_v18  ;;  %v3005_v24 = vcombine.high %v3003_v4, %v3003_v4  ;;  %17346 = vmatmul.mubr.msk.bf16.gmra.mrb[44].mxu1 %vm1181_vm1, %v3374_v14  ;;  %v3150_v17 = vunpack.i.h.s16 %v3003_v4  ;;  %v3152_v28 = vunpack.i.h.s16 %v3004_v3 }
  0xae   : > { %v3155_v61 = vunpack.i.h.s16 %v3020_v26  ;;  %17349 = vmatprep.mubr.msk.bf16.mxu1 %vm18304_vm0, %v22047_v2  ;;  %v3415_v30 = vrot.slane %v3407_v62, %v18416_v7  ;;  %v15983_v21 = vpack.i.b16 %v3003_v4, %v3148_v60  ;;  %v3162_v43 = vunpack.i.h.s16 %v19125_v9 }
  0xaf   : > { %v3406_v63 = vrot.slane %v3378_v36, %v18416_v7  ;;  %v3154_v13 = vunpack.i.h.s16 %v3005_v24  ;;  %v15984_v35 = vpack.i.b16 %v3004_v3, %v3150_v17  ;;  %v15985_v1 = vpack.i.b16 %v3005_v24, %v3152_v28 }
  0xb0   : > { %v3164_v5 = vunpack.i.h.s16 %v19134_v11  ;;  %v3425_v23 = vcombine.low %v18863_v16, %v15983_v21  ;;  %v3166_v8 = vunpack.i.h.s16 %v19139_v51  ;;  %v3168_v56 = vunpack.i.h.s16 %v19152_v39 }
  0xb1   : > { %v3408_v54 = vcombine.low %v3399_v44, %v3406_v63  ;;  %v3217_v48 = vpack.i.b16 %v3155_v61, %v3154_v13  ;;  %v3426_v52 = vcombine.low %v15984_v35, %v15985_v1  ;;  %v15986_v31 = vpack.i.b16 %v19134_v11, %v3162_v43 }
  0xb2   : > { %v15987_v53 = vpack.i.b16 %v19139_v51, %v3164_v5  ;;  %v3441_v47 = vrot.slane %v3425_v23, %v18416_v7  ;;  %v15988_v12 = vpack.i.b16 %v19152_v39, %v3166_v8  ;;  %v3224_v34 = vpack.i.b16 %v2220_v15, %v3168_v56  ;;  %v18021_v5 = vld [vmem:[%s21973_s3 + $0x40] sm:$0xff]  }
  0xb3   : > { %v3422_v6 = vrot.slane %v3408_v54, %v18416_v7  ;;  %v3427_v9 = vcombine.low %v3217_v48, %v3027_v38  ;;  %v3448_v33 = vrot.slane %v3426_v52, %v18416_v7  ;;  %v15991_v50 = vcombine.high %v3020_v26, %v3027_v38  ;;  %17365 = vmatprep.subr.bf16.mxu0 %v18021_v5 }
  0xb4   : > { %v3474_v49 = vcombine.low %v15986_v31, %v15987_v53  ;;  %v3456_v46 = vcombine.low %v18983_v59, %v3441_v47  ;;  %v3475_v11 = vcombine.low %v15988_v12, %v3224_v34  ;;  %v3476_v51 = vcombine.low %v19142_v42, %v19146_v29  ;;  %17366 = vmatpush3.bf16.msra.mxu0 %v18021_v5  ;;  %v18022_v12 = vld [vmem:[%s21973_s3 + $0x48] sm:$0xff]  }
  0xb5   : > { %v3423_v16 = vcombine.low %v3415_v30, %v3422_v6  ;;  %v3455_v55 = vrot.slane %v3427_v9, %v18416_v7  ;;  %v3483_v39 = vrot.slane %v15991_v50, %v18416_v7  ;;  %v3528_v58 = vrot.slane %v19186_v57, %v18416_v7  ;;  %17367 = vmatprep.subr.bf16.mxu0 %v18022_v12 }
  0xb6   : > { %v3490_v10 = vrot.slane %v3474_v49, %v18416_v7  ;;  %v3464_v37 = vrot.slane %v3456_v46, %v18416_v7  ;;  %v3497_v45 = vrot.slane %v3475_v11, %v18416_v7  ;;  %v3504_v59 = vrot.slane %v3476_v51, %v18416_v7 }
  0xb7   : > { %17350 = vmatmul.mubr.msk.bf16.gmra.mrb[48].mxu1 %vm1181_vm1, %v3423_v16  ;;  %v3457_v15 = vcombine.low %v3448_v33, %v3455_v55  ;;  %v3535_v18 = vrot.slane %v3528_v58, %v18416_v7 }
  0xb8   : > { %17353 = vmatprep.mubr.msk.bf16.mxu1 %vm18304_vm0, %v22047_v2  ;;  %v3505_v32 = vcombine.low %v3483_v39, %v3490_v10  ;;  %v3506_v42 = vcombine.low %v3497_v45, %v3504_v59  ;;  %17368 = vmatpush3.bf16.msra.mxu0 %v18022_v12  ;;  %v18023_v10 = vld [vmem:[%s21973_s3 + $0x50] sm:$0xff]  }
  0xb9   : > { %v3471_v0 = vrot.slane %v3457_v15, %v18416_v7  ;;  %17369 = vmatprep.subr.bf16.mxu0 %v18023_v10 }
  0xba   : > { %v3513_v25 = vrot.slane %v3505_v32, %v18416_v7  ;;  %v3520_v22 = vrot.slane %v3506_v42, %v18416_v7 }
  0xbb   : > { %v3472_v29 = vcombine.low %v3464_v37, %v3471_v0 }
  0xbc   : > { %v3521_v41 = vcombine.low %v3513_v25, %v3520_v22  ;;  %17370 = vmatpush3.bf16.msra.mxu0 %v18023_v10 }
  0xbf   : > { %17354 = vmatmul.mubr.msk.bf16.gmra.mrb[52].mxu1 %vm1181_vm1, %v3472_v29 }
  0xc0   : > { %17357 = vmatprep.mubr.msk.bf16.mxu1 %vm18304_vm0, %v22047_v2 }
  0xc7   : > { %17358 = vmatmul.mubr.msk.bf16.gmra.mrb[56].mxu1 %vm1181_vm1, %v3521_v41 }
  0xc8   : > { %17361 = vmatprep.mubr.msk.bf16.mxu1 %vm18304_vm0, %v22047_v2 }
  0xcf   : > { %17362 = vmatmul.mubr.msk.bf16.gmra.mrb[60].mxu1 %vm1181_vm1, %v3535_v18 }
 0x103   : > { %v1237_v27 = vpop.f32.mrb[0].mxu0 }
 0x104   : > { %v17249_v40 = vpop.f32.mrb[1].mxu0 }
 0x105   : > { %v1240_v14 = vpop.f32.mrb[2].mxu0 }
 0x106   : > { %v17250_v19 = vpop.f32.mrb[3].mxu0 }
 0x10d   : > { %v19284_v4 = vpop.f32.mrb[0].mxu1 }
 0x10e   : > { %v17269_v20 = vpop.f32.mrb[1].mxu1 }
 0x10f   : > { %v19286_v36 = vpop.f32.mrb[2].mxu1 }
 0x110   : > { %v17270_v44 = vpop.f32.mrb[3].mxu1 }
 0x114   : > { %v1245_v3 = vpop.f32.mrb[4].mxu0 }
 0x115   : > { %v17253_v26 = vpop.f32.mrb[5].mxu0 }
 0x116   : > { %v19288_v57 = vpop.f32.mrb[4].mxu1  ;;  %v1248_v62 = vpop.f32.mrb[6].mxu0 }
 0x117   : > { %v17273_v24 = vpop.f32.mrb[5].mxu1  ;;  %v17254_v38 = vpop.f32.mrb[7].mxu0 }
 0x118   : > { %v1288_v60 = vpop.f32.mrb[6].mxu1  ;;  %v18025_v38 = vld [vmem:[%s21973_s3 + $0x60] sm:$0xff]  }
 0x119   : > { %v17274_v63 = vpop.f32.mrb[7].mxu1 }
 0x11e   : > { %v1709_v17 = vpop.f32.mrb[8].mxu1 }
 0x11f   : > { %v1253_v28 = vpop.f32.mrb[8].mxu0  ;;  %v1710_v61 = vadd.f32 %v1709_v17, %v1237_v27  ;;  %v17279_v30 = vpop.f32.mrb[9].mxu1  ;;  %v18024_v27 = vld [vmem:[%s21973_s3 + $0x58] sm:$0xff]   ;;  %v18026_v17 = vld [vmem:[%s21973_s3 + $0x68] sm:$0xff]  }
 0x120   : > { %v17257_v13 = vpop.f32.mrb[9].mxu0  ;;  %v1712_v21 = vpop.f32.mrb[10].mxu1  ;;  %17371 = vmatprep.subr.bf16.mxu0 %v18024_v27 }
 0x121   : > { %v1256_v43 = vpop.f32.mrb[10].mxu0  ;;  %v1713_v54 = vadd.f32 %v1712_v21, %v1240_v14  ;;  %v17280_v35 = vpop.f32.mrb[11].mxu1  ;;  %17372 = vmatpush3.bf16.msra.mxu0 %v18024_v27 }
 0x122   : > { %v17258_v1 = vpop.f32.mrb[11].mxu0  ;;  %17373 = vmatprep.subr.bf16.mxu0 %v18025_v38 }
 0x125   : > { %17374 = vmatpush3.bf16.msra.mxu0 %v18025_v38 }
 0x126   : > { %17375 = vmatprep.subr.bf16.mxu0 %v18026_v17 }
 0x129   : > { %17376 = vmatpush3.bf16.msra.mxu0 %v18026_v17 }
 0x12b   : > { %v1261_v48 = vpop.f32.mrb[12].mxu0 }
 0x12c   : > { %v17261_v23 = vpop.f32.mrb[13].mxu0 }
 0x12d   : > { %v1264_v8 = vpop.f32.mrb[14].mxu0 }
 0x12e   : > { %v17262_v56 = vpop.f32.mrb[15].mxu0  ;;  %v1717_v6 = vpop.f32.mrb[12].mxu1 }
 0x12f   : > { %v1718_v52 = vadd.f32 %v1717_v6, %v1245_v3  ;;  %v17283_v31 = vpop.f32.mrb[13].mxu1 }
 0x130   : > { %v1720_v53 = vpop.f32.mrb[14].mxu1 }
 0x131   : > { %v1721_v9 = vadd.f32 %v1720_v53, %v1248_v62  ;;  %v17284_v47 = vpop.f32.mrb[15].mxu1 }
 0x139   : > { %v1269_v16 = vpop.f32.mrb[16].mxu0 }
 0x13a   : > { %v1725_v34 = vpop.f32.mrb[16].mxu1  ;;  %v17265_v49 = vpop.f32.mrb[17].mxu0 }
 0x13b   : > { %v1726_v33 = vadd.f32 %v1725_v34, %v1253_v28  ;;  %v17287_v50 = vpop.f32.mrb[17].mxu1  ;;  %v1272_v46 = vpop.f32.mrb[18].mxu0  ;;  %v18027_v34 = vld [vmem:[%s21973_s3 + $0x70] sm:$0xff]   ;;  %v18029_v49 = vld [vmem:[%s21973_s3] sm:$0xff]  }
 0x13c   : > { %v1728_v55 = vpop.f32.mrb[18].mxu1  ;;  %v17266_v39 = vpop.f32.mrb[19].mxu0  ;;  %17377 = vmatprep.subr.bf16.mxu0 %v18027_v34 }
 0x13d   : > { %v1729_v11 = vadd.f32 %v1728_v55, %v1256_v43  ;;  %v17288_v51 = vpop.f32.mrb[19].mxu1  ;;  %17378 = vmatpush3.bf16.msra.mxu0 %v18027_v34 }
 0x142   : > { %v1733_v15 = vpop.f32.mrb[20].mxu1 }
 0x143   : > { %v1734_v37 = vadd.f32 %v1733_v15, %v1261_v48  ;;  %v17291_v45 = vpop.f32.mrb[21].mxu1  ;;  %v2647_v59 = vpop.f32.mrb[20].mxu0 }
 0x144   : > { %v1736_v0 = vpop.f32.mrb[22].mxu1  ;;  %v19299_v32 = vadd.f32 %v2647_v59, %v1710_v61  ;;  %v17309_v42 = vpop.f32.mrb[21].mxu0 }
 0x145   : > { %v1737_v29 = vadd.f32 %v1736_v0, %v1264_v8  ;;  %v17292_v25 = vpop.f32.mrb[23].mxu1  ;;  %v2650_v22 = vpop.f32.mrb[22].mxu0 }
 0x146   : > { %v19301_v41 = vadd.f32 %v2650_v22, %v1713_v54  ;;  %v17310_v58 = vpop.f32.mrb[23].mxu0 }
 0x14c   : > { %v1741_v18 = vpop.f32.mrb[24].mxu1  ;;  %v2655_v19 = vpop.f32.mrb[24].mxu0 }
 0x14d   : > { %v1742_v40 = vadd.f32 %v1741_v18, %v1269_v16  ;;  %v17295_v14 = vpop.f32.mrb[25].mxu1  ;;  %v19306_v44 = vadd.f32 %v2655_v19, %v1718_v52  ;;  %v17313_v3 = vpop.f32.mrb[25].mxu0 }
 0x14e   : > { %v1744_v20 = vpop.f32.mrb[26].mxu1  ;;  %v2658_v24 = vpop.f32.mrb[26].mxu0 }
 0x14f   : > { %v1745_v26 = vadd.f32 %v1744_v20, %v1272_v46  ;;  %v17296_v62 = vpop.f32.mrb[27].mxu1  ;;  %v19311_v60 = vadd.f32 %v2658_v24, %v1721_v9  ;;  %v17314_v63 = vpop.f32.mrb[27].mxu0 }
 0x154   : > { %v1749_v28 = vpop.f32.mrb[28].mxu1 }
 0x155   : > { %v1750_v61 = vadd.f32 %v1749_v28, %v19284_v4  ;;  %v17299_v30 = vpop.f32.mrb[29].mxu1 }
 0x156   : > { %v1752_v13 = vpop.f32.mrb[30].mxu1 }
 0x157   : > { %v1753_v21 = vadd.f32 %v1752_v13, %v19286_v36  ;;  %v17300_v43 = vpop.f32.mrb[31].mxu1 }
 0x158   : > { %v2663_v54 = vpop.f32.mrb[28].mxu0 }
 0x159   : > { %v19318_v35 = vadd.f32 %v2663_v54, %v1726_v33  ;;  %v17317_v1 = vpop.f32.mrb[29].mxu0 }
 0x15a   : > { %v2666_v5 = vpop.f32.mrb[30].mxu0 }
 0x15b   : > { %v19320_v48 = vadd.f32 %v2666_v5, %v1729_v11  ;;  %v17318_v23 = vpop.f32.mrb[31].mxu0  ;;  %v19343_v11 = vld [vmem:[%s21972_s2] ss:$0 sm:$0xff] }
 0x15c   : > { %v1757_v8 = vpop.f32.mrb[32].mxu1 }
 0x15d   : > { %v19323_v56 = vadd.f32 %v1757_v8, %v19288_v57  ;;  %v17303_v4 = vpop.f32.mrb[33].mxu1  ;;  %v18028_v57 = vld [vmem:[%s21973_s3 + $0x78] sm:$0xff]  }
 0x15e   : > { %v1760_v6 = vpop.f32.mrb[34].mxu1  ;;  %17379 = vmatprep.subr.bf16.mxu0 %v18028_v57 }
 0x15f   : > { %v17304_v52 = vpop.f32.mrb[35].mxu1  ;;  %17380 = vmatpush3.bf16.msra.mxu0 %v18028_v57 }
 0x160   : > { %v2671_v31 = vpop.f32.mrb[32].mxu0  ;;  %17389 = vmatprep.subr.bf16.mxu0 %v18029_v49 }
 0x161   : > { %v19325_v53 = vadd.f32 %v2671_v31, %v1734_v37  ;;  %v17321_v36 = vpop.f32.mrb[33].mxu0 }
 0x162   : > { %v2674_v9 = vpop.f32.mrb[34].mxu0 }
 0x163   : > { %v19327_v47 = vadd.f32 %v2674_v9, %v1737_v29  ;;  %v17322_v12 = vpop.f32.mrb[35].mxu0 }
 0x168   : > { %v2679_v16 = vpop.f32.mrb[36].mxu0 }
 0x169   : > { %v19335_v33 = vadd.f32 %v2679_v16, %v1742_v40  ;;  %v17325_v50 = vpop.f32.mrb[37].mxu0 }
 0x16a   : > { %v2682_v55 = vpop.f32.mrb[38].mxu0  ;;  %v3597_v46 = vpop.f32.mrb[36].mxu1 }
 0x16b   : > { %v19345_v51 = vadd.f32 %v2682_v55, %v1745_v26  ;;  %v17326_v39 = vpop.f32.mrb[39].mxu0  ;;  %v3651_v10 = vadd.f32 %v3597_v46, %v19299_v32  ;;  %v17339_v15 = vpop.f32.mrb[37].mxu1 }
 0x16c   : > { %v3600_v37 = vpop.f32.mrb[38].mxu1 }
 0x16d   : > { %v3671_v45 = vadd.f32 %v19343_v11, %v3651_v10  ;;  %v3652_v59 = vadd.f32 %v3600_v37, %v19301_v41  ;;  %v17340_v0 = vpop.f32.mrb[39].mxu1 }
 0x16f   : > { %v3684_v42 = vmax.f32 %v3671_v45, 0.0  ;;  %v3672_v29 = vadd.f32 %v19343_v11, %v3652_v59 }
 0x171   : > { %v3710_v25 = vcombine.high %v3684_v42, %v3684_v42  ;;  %v3717_v22 = vrot.slane %v3684_v42, %v18416_v7  ;;  %v3685_v58 = vmax.f32 %v3672_v29, 0.0  ;;  %v2687_v18 = vpop.f32.mrb[40].mxu0 }
 0x172   : > { %v19352_v27 = vadd.f32 %v2687_v18, %v1750_v61  ;;  %v17329_v32 = vpop.f32.mrb[41].mxu0 }
 0x173   : > { %v3724_v40 = vrot.slane %v3710_v25, %v18416_v7  ;;  %v3725_v14 = vcombine.high %v3717_v22, %v3717_v22  ;;  %v3759_v19 = vcombine.high %v3685_v58, %v3685_v58  ;;  %v2690_v20 = vpop.f32.mrb[42].mxu0  ;;  %v3733_v3 = vrot.slane %v3717_v22, %v18416_v7 }
 0x174   : > { %v3766_v41 = vrot.slane %v3685_v58, %v18416_v7  ;;  %v19357_v26 = vadd.f32 %v2690_v20, %v1753_v21  ;;  %v17330_v62 = vpop.f32.mrb[43].mxu0 }
 0x175   : > { %v3726_v24 = vcombine.high %v3724_v40, %v3724_v40  ;;  %v3740_v38 = vrot.slane %v3724_v40, %v18416_v7  ;;  %v3747_v63 = vrot.slane %v3725_v14, %v18416_v7  ;;  %v3773_v17 = vrot.slane %v3759_v19, %v18416_v7 }
 0x176   : > { %v3774_v28 = vcombine.high %v3766_v41, %v3766_v41  ;;  %v3782_v61 = vrot.slane %v3766_v41, %v18416_v7 }
 0x177   : > { %v3754_v30 = vrot.slane %v3726_v24, %v18416_v7  ;;  %v3756_v13 = vcombine.high %v3740_v38, %v3740_v38  ;;  %v4320_v43 = vcombine.low %v3733_v3, %v3747_v63  ;;  %v16001_v54 = vcombine.high %v3733_v3, %v3747_v63 }
 0x178   : > { %v3775_v1 = vcombine.high %v3773_v17, %v3773_v17  ;;  %v3789_v21 = vrot.slane %v3773_v17, %v18416_v7  ;;  %v3796_v5 = vrot.slane %v3774_v28, %v18416_v7  ;;  %v3804_v23 = vcombine.high %v3782_v61, %v3782_v61  ;;  %v3605_v31 = vpop.f32.mrb[40].mxu1  ;;  %v5023_v17 = vld [vmem:[#allocation2] sm:$0xf] }
 0x179   : > { %v4322_v8 = vcombine.low %v3740_v38, %v3754_v30  ;;  %v4329_v4 = vrot.slane %v4320_v43, %v18416_v7  ;;  %v4336_v6 = vrot.slane %v16001_v54, %v18416_v7  ;;  %v4350_v52 = vrot.slane %v3756_v13, %v18416_v7  ;;  %v2695_v36 = vpop.f32.mrb[44].mxu0  ;;  %v17343_v16 = vpop.f32.mrb[41].mxu1 }
 0x17a   : > { %v3758_v9 = vcombine.high %v3754_v30, %v3754_v30  ;;  %v3803_v12 = vrot.slane %v3775_v1, %v18416_v7  ;;  %v3806_v34 = vcombine.high %v3796_v5, %v3796_v5  ;;  %v4369_v57 = vcombine.low %v3796_v5, %v3804_v23  ;;  %v17333_v50 = vpop.f32.mrb[45].mxu0  ;;  %v3608_v39 = vpop.f32.mrb[42].mxu1 }
 0x17b   : > { %v4343_v49 = vrot.slane %v4322_v8, %v18416_v7  ;;  %v4351_v55 = vcombine.low %v4329_v4, %v4336_v6  ;;  %v3653_v46 = vadd.f32 %v3605_v31, %v19306_v44  ;;  %v19373_v10 = vadd.f32 %v2695_v36, %v19323_v56  ;;  %v2698_v15 = vpop.f32.mrb[46].mxu0  ;;  %v17344_v59 = vpop.f32.mrb[43].mxu1 }
 0x17c   : > { %v4368_v37 = vcombine.low %v3758_v9, %v3782_v61  ;;  %v4370_v45 = vcombine.low %v3806_v34, %v3789_v21  ;;  %v17334_v0 = vpop.f32.mrb[47].mxu0  ;;  %v4384_v29 = vrot.slane %v4369_v57, %v18416_v7  ;;  %v16002_v25 = vcombine.high %v3789_v21, %v3803_v12  ;;  %v5026_v9 = vld [vmem:[#allocation2 + $0x4] sm:$0xf] }
 0x17d   : > { %v4352_v42 = vcombine.low %v4343_v49, %v4350_v52  ;;  %v3673_v22 = vadd.f32 %v19343_v11, %v3653_v46  ;;  %v4398_v18 = vrot.slane %v3803_v12, %v18416_v7  ;;  %v3654_v56 = vadd.f32 %v3608_v39, %v19311_v60 }
 0x17e   : > { %v4377_v58 = vrot.slane %v4368_v37, %v18416_v7  ;;  %v4391_v44 = vrot.slane %v4370_v45, %v18416_v7  ;;  %v4359_v32 = vrot.slane %v4351_v55, %v18416_v7  ;;  %v4425_v62 = vrot.slane %v16002_v25, %v18416_v7 }
 0x17f   : > { %v4366_v40 = vrot.slane %v4352_v42, %v18416_v7  ;;  %v3686_v14 = vmax.f32 %v3673_v22, 0.0  ;;  %v3674_v3 = vadd.f32 %v19343_v11, %v3654_v56 }
 0x180   : > { %v4399_v19 = vcombine.low %v4377_v58, %v4384_v29  ;;  %v4400_v20 = vcombine.low %v4391_v44, %v4398_v18  ;;  %v3613_v63 = vpop.f32.mrb[44].mxu1 }
 0x181   : > { %v4367_v41 = vcombine.low %v4359_v32, %v4366_v40  ;;  %v3808_v24 = vcombine.high %v3686_v14, %v3686_v14  ;;  %v3815_v38 = vrot.slane %v3686_v14, %v18416_v7  ;;  %v3687_v30 = vmax.f32 %v3674_v3, 0.0  ;;  %v17347_v43 = vpop.f32.mrb[45].mxu1 }
 0x182   : > { %v4407_v28 = vrot.slane %v4399_v19, %v18416_v7  ;;  %v4414_v61 = vrot.slane %v4400_v20, %v18416_v7  ;;  %v3655_v13 = vadd.f32 %v3613_v63, %v19318_v35  ;;  %v3616_v23 = vpop.f32.mrb[46].mxu1 }
 0x183   : > { %v5006_v54 = vpack.c.bf16 %v4367_v41, %v4367_v41  ;;  %v3822_v1 = vrot.slane %v3808_v24, %v18416_v7  ;;  %v3823_v21 = vcombine.high %v3815_v38, %v3815_v38  ;;  %v3831_v5 = vrot.slane %v3815_v38, %v18416_v7  ;;  %v17348_v31 = vpop.f32.mrb[47].mxu1 }
 0x184   : > { %v4415_v8 = vcombine.low %v4407_v28, %v4414_v61  ;;  %v3857_v4 = vcombine.high %v3687_v30, %v3687_v30  ;;  %v3864_v6 = vrot.slane %v3687_v30, %v18416_v7  ;;  %v3675_v52 = vadd.f32 %v19343_v11, %v3655_v13 }
 0x185   : > { %v5024_v36 = vsel %vm19387_vm4, %v5006_v54, %v5023_v17  ;;  %v3824_v35 = vcombine.high %v3822_v1, %v3822_v1  ;;  %v3838_v12 = vrot.slane %v3822_v1, %v18416_v7  ;;  %v3845_v34 = vrot.slane %v3823_v21, %v18416_v7 }
 0x186   : > { %5025 = vst [vmem:[#allocation2] sm:$0xf] %v5024_v36  ;;  %v5007_v57 = vpack.c.bf16 %v4415_v8, %v4415_v8  ;;  %v3871_v16 = vrot.slane %v3857_v4, %v18416_v7  ;;  %v3872_v50 = vcombine.high %v3864_v6, %v3864_v6  ;;  %v3880_v49 = vrot.slane %v3864_v6, %v18416_v7 }
 0x187   : > { %v3852_v55 = vrot.slane %v3824_v35, %v18416_v7  ;;  %v3854_v46 = vcombine.high %v3838_v12, %v3838_v12  ;;  %v4417_v39 = vcombine.low %v3831_v5, %v3845_v34  ;;  %v16003_v15 = vcombine.high %v3831_v5, %v3845_v34 }
 0x188   : > { %v5027_v37 = vsel %vm19387_vm4, %v5007_v57, %v5026_v9  ;;  %v4446_v45 = vrot.slane %v3838_v12, %v18416_v7  ;;  %v3873_v59 = vcombine.high %v3871_v16, %v3871_v16  ;;  %v3887_v0 = vrot.slane %v3871_v16, %v18416_v7 }
 0x189   : > { %5028 = vst [vmem:[#allocation2 + $0x4] sm:$0xf] %v5027_v37  ;;  %v4432_v42 = vrot.slane %v4417_v39, %v18416_v7  ;;  %v4439_v29 = vrot.slane %v16003_v15, %v18416_v7  ;;  %v4464_v25 = vcombine.low %v3852_v55, %v3854_v46  ;;  %v3856_v22 = vcombine.high %v3852_v55, %v3852_v55 }
 0x18a   : > { %v3621_v58 = vpop.f32.mrb[48].mxu1  ;;  %v3894_v44 = vrot.slane %v3872_v50, %v18416_v7  ;;  %v3901_v18 = vrot.slane %v3873_v59, %v18416_v7  ;;  %v3902_v56 = vcombine.high %v3880_v49, %v3880_v49  ;;  %v3688_v32 = vmax.f32 %v3675_v52, 0.0  ;;  %v5029_v52 = vld [vmem:[#allocation2 + $0x8] sm:$0xf] }
 0x18b   : > { %v17351_v40 = vpop.f32.mrb[49].mxu1  ;;  %v4447_v14 = vcombine.low %v4425_v62, %v4432_v42  ;;  %v4448_v19 = vcombine.low %v4439_v29, %v4446_v45  ;;  %v4465_v20 = vcombine.low %v3856_v22, %v3880_v49  ;;  %v4473_v3 = vrot.slane %v4464_v25, %v18416_v7  ;;  %v5032_v22 = vld [vmem:[#allocation2 + $0xc] sm:$0xf] }
 0x18c   : > { %v19414_v41 = vpop.f32.mrb[50].mxu1  ;;  %v3904_v24 = vcombine.high %v3894_v44, %v3894_v44  ;;  %v4466_v38 = vcombine.low %v3894_v44, %v3902_v56  ;;  %v4512_v63 = vcombine.low %v3887_v0, %v3901_v18  ;;  %v16004_v17 = vcombine.high %v3887_v0, %v3901_v18 }
 0x18d   : > { %v17352_v28 = vpop.f32.mrb[51].mxu1  ;;  %v4455_v61 = vrot.slane %v4447_v14, %v18416_v7  ;;  %v4462_v30 = vrot.slane %v4448_v19, %v18416_v7  ;;  %v4480_v13 = vrot.slane %v4465_v20, %v18416_v7  ;;  %v3906_v43 = vcombine.high %v3688_v32, %v3688_v32 }
 0x18e   : > { %v4487_v62 = vrot.slane %v4466_v38, %v18416_v7  ;;  %v4494_v54 = vrot.slane %v3904_v24, %v18416_v7  ;;  %v4521_v1 = vrot.slane %v4512_v63, %v18416_v7  ;;  %v4528_v21 = vrot.slane %v16004_v17, %v18416_v7 }
 0x18f   : > { %v4463_v5 = vcombine.low %v4455_v61, %v4462_v30  ;;  %v4495_v8 = vcombine.low %v4473_v3, %v4480_v13  ;;  %v3913_v4 = vrot.slane %v3688_v32, %v18416_v7  ;;  %v3920_v6 = vrot.slane %v3906_v43, %v18416_v7 }
 0x190   : > { %v4496_v31 = vcombine.low %v4487_v62, %v4494_v54  ;;  %v4543_v36 = vcombine.low %v4521_v1, %v4528_v21  ;;  %v3656_v9 = vadd.f32 %v3616_v23, %v19320_v48  ;;  %v3657_v35 = vadd.f32 %v3621_v58, %v19325_v53 }
 0x191   : > { %v5008_v12 = vpack.c.bf16 %v4463_v5, %v4463_v5  ;;  %v4503_v34 = vrot.slane %v4495_v8, %v18416_v7  ;;  %v3921_v57 = vcombine.high %v3913_v4, %v3913_v4  ;;  %v3922_v16 = vcombine.high %v3920_v6, %v3920_v6 }
 0x192   : > { %v19428_v50 = vpop.f32.mrb[52].mxu1  ;;  %v4510_v49 = vrot.slane %v4496_v31, %v18416_v7  ;;  %v4551_v55 = vrot.slane %v4543_v36, %v18416_v7  ;;  %v3929_v46 = vrot.slane %v3913_v4, %v18416_v7  ;;  %v3936_v39 = vrot.slane %v3920_v6, %v18416_v7 }
 0x193   : > { %v17355_v15 = vpop.f32.mrb[53].mxu1  ;;  %v5030_v48 = vsel %vm19387_vm4, %v5008_v12, %v5029_v52  ;;  %v3943_v53 = vrot.slane %v3921_v57, %v18416_v7  ;;  %v3950_v23 = vrot.slane %v3922_v16, %v18416_v7  ;;  %v3676_v37 = vadd.f32 %v19343_v11, %v3656_v9 }
 0x194   : > { %v19439_v45 = vpop.f32.mrb[54].mxu1  ;;  %5031 = vst [vmem:[#allocation2 + $0x8] sm:$0xf] %v5030_v48  ;;  %v4511_v59 = vcombine.low %v4503_v34, %v4510_v49  ;;  %v3951_v0 = vcombine.high %v3929_v46, %v3929_v46  ;;  %v3952_v42 = vcombine.high %v3936_v39, %v3936_v39  ;;  %v3677_v29 = vadd.f32 %v19343_v11, %v3657_v35  ;;  %v5035_v48 = vld [vmem:[#allocation2 + $0x10] sm:$0xf] }
 0x195   : > { %v17356_v25 = vpop.f32.mrb[55].mxu1  ;;  %v3953_v58 = vcombine.high %v3943_v53, %v3943_v53  ;;  %v4514_v44 = vcombine.low %v3929_v46, %v3943_v53  ;;  %v3689_v18 = vmax.f32 %v3676_v37, 0.0  ;;  %v3954_v56 = vcombine.high %v3950_v23, %v3950_v23 }
 0x196   : > { %v5009_v32 = vpack.c.bf16 %v4511_v59, %v4511_v59  ;;  %v4542_v40 = vrot.slane %v3951_v0, %v18416_v7  ;;  %v4561_v14 = vcombine.low %v3950_v23, %v3952_v42  ;;  %v3690_v19 = vmax.f32 %v3677_v29, 0.0 }
 0x197   : > { %v4535_v20 = vrot.slane %v4514_v44, %v18416_v7  ;;  %v4560_v3 = vcombine.low %v3953_v58, %v3936_v39  ;;  %v3955_v24 = vcombine.high %v3689_v18, %v3689_v18  ;;  %v3962_v38 = vrot.slane %v3689_v18, %v18416_v7 }
 0x198   : > { %v5033_v63 = vsel %vm19387_vm4, %v5009_v32, %v5032_v22  ;;  %v4576_v17 = vrot.slane %v4561_v14, %v18416_v7  ;;  %v4004_v28 = vcombine.high %v3690_v19, %v3690_v19  ;;  %v4011_v61 = vrot.slane %v3690_v19, %v18416_v7 }
 0x199   : > { %5034 = vst [vmem:[#allocation2 + $0xc] sm:$0xf] %v5033_v63  ;;  %v4544_v30 = vcombine.low %v4535_v20, %v4542_v40  ;;  %v4569_v13 = vrot.slane %v4560_v3, %v18416_v7  ;;  %v3969_v43 = vrot.slane %v3955_v24, %v18416_v7  ;;  %v3970_v62 = vcombine.high %v3962_v38, %v3962_v38 }
 0x19a   : > { %v19451_v54 = vpop.f32.mrb[56].mxu1  ;;  %v3978_v1 = vrot.slane %v3962_v38, %v18416_v7  ;;  %v4018_v21 = vrot.slane %v4004_v28, %v18416_v7  ;;  %v4019_v5 = vcombine.high %v4011_v61, %v4011_v61  ;;  %v4027_v8 = vrot.slane %v4011_v61, %v18416_v7 }
 0x19b   : > { %v17359_v4 = vpop.f32.mrb[57].mxu1  ;;  %v4558_v6 = vrot.slane %v4544_v30, %v18416_v7  ;;  %v4591_v52 = vcombine.low %v4569_v13, %v4576_v17  ;;  %v3971_v31 = vcombine.high %v3969_v43, %v3969_v43  ;;  %v3985_v36 = vrot.slane %v3969_v43, %v18416_v7 }
 0x19c   : > { %v19458_v9 = vpop.f32.mrb[58].mxu1  ;;  %v3992_v35 = vrot.slane %v3970_v62, %v18416_v7  ;;  %v4562_v12 = vcombine.low %v3954_v56, %v3978_v1  ;;  %v4020_v34 = vcombine.high %v4018_v21, %v4018_v21  ;;  %v4034_v57 = vrot.slane %v4018_v21, %v18416_v7 }
 0x19d   : > { %v17360_v16 = vpop.f32.mrb[59].mxu1  ;;  %v4559_v49 = vcombine.low %v4551_v55, %v4558_v6  ;;  %v4599_v46 = vrot.slane %v4591_v52, %v18416_v7  ;;  %v3999_v39 = vrot.slane %v3971_v31, %v18416_v7  ;;  %v4041_v15 = vrot.slane %v4019_v5, %v18416_v7 }
 0x19e   : > { %v4583_v53 = vrot.slane %v4562_v12, %v18416_v7  ;;  %v4590_v23 = vrot.slane %v3992_v35, %v18416_v7  ;;  %v16005_v37 = vcombine.high %v3978_v1, %v3992_v35  ;;  %v4048_v59 = vrot.slane %v4020_v34, %v18416_v7 }
 0x19f   : > { %v5010_v0 = vpack.c.bf16 %v4559_v49, %v4559_v49  ;;  %v4609_v42 = vcombine.low %v3985_v36, %v3999_v39  ;;  %v16006_v29 = vcombine.high %v3985_v36, %v3999_v39  ;;  %v4049_v25 = vcombine.high %v4027_v8, %v4027_v8  ;;  %v5041_v39 = vld [vmem:[#allocation2 + $0x18] sm:$0xf] }
 0x1a0   : > { %v4592_v22 = vcombine.low %v4583_v53, %v4590_v23  ;;  %v4617_v55 = vrot.slane %v16005_v37, %v18416_v7  ;;  %v4050_v58 = vcombine.high %v4034_v57, %v4034_v57  ;;  %v4051_v44 = vcombine.high %v4041_v15, %v4041_v15 }
 0x1a1   : > { %v5036_v18 = vsel %vm19387_vm4, %v5010_v0, %v5035_v48  ;;  %v4624_v56 = vrot.slane %v4609_v42, %v18416_v7  ;;  %v4052_v32 = vcombine.high %v4048_v59, %v4048_v59  ;;  %v4631_v40 = vrot.slane %v16006_v29, %v18416_v7  ;;  %v5044_v29 = vld [vmem:[#allocation2 + $0x1c] sm:$0xf] }
 0x1a2   : > { %v19473_v14 = vpop.f32.mrb[60].mxu1  ;;  %5037 = vst [vmem:[#allocation2 + $0x10] sm:$0xf] %v5036_v18  ;;  %v4606_v19 = vrot.slane %v4592_v22, %v18416_v7  ;;  %v4638_v20 = vrot.slane %v4027_v8, %v18416_v7  ;;  %v4656_v3 = vcombine.low %v4041_v15, %v4049_v25  ;;  %v4657_v24 = vcombine.low %v4051_v44, %v4034_v57  ;;  %v5038_v8 = vld [vmem:[#allocation2 + $0x14] sm:$0xf] }
 0x1a3   : > { %v17363_v38 = vpop.f32.mrb[61].mxu1  ;;  %v4639_v63 = vcombine.low %v4617_v55, %v4624_v56  ;;  %v4658_v17 = vcombine.low %v4048_v59, %v4050_v58  ;;  %v4686_v28 = vrot.slane %v4052_v32, %v18416_v7  ;;  %v3658_v61 = vadd.f32 %v19414_v41, %v19327_v47 }
 0x1a4   : > { %v3648_v30 = vpop.f32.mrb[62].mxu1  ;;  %v4607_v13 = vcombine.low %v4599_v46, %v4606_v19  ;;  %v4640_v43 = vcombine.low %v4631_v40, %v4638_v20  ;;  %v4665_v62 = vrot.slane %v4656_v3, %v18416_v7  ;;  %v4672_v1 = vrot.slane %v4657_v24, %v18416_v7 }
 0x1a5   : > { %v17364_v21 = vpop.f32.mrb[63].mxu1  ;;  %v4647_v5 = vrot.slane %v4639_v63, %v18416_v7  ;;  %v4679_v4 = vrot.slane %v4658_v17, %v18416_v7  ;;  %v3678_v6 = vadd.f32 %v19343_v11, %v3658_v61  ;;  %v3659_v52 = vadd.f32 %v19428_v50, %v19335_v33 }
 0x1a6   : > { %v5011_v31 = vpack.c.bf16 %v4607_v13, %v4607_v13  ;;  %v4654_v47 = vrot.slane %v4640_v43, %v18416_v7  ;;  %v4687_v41 = vcombine.low %v4665_v62, %v4672_v1  ;;  %v3660_v36 = vadd.f32 %v19439_v45, %v19345_v51 }
 0x1a7   : > { %v4688_v35 = vcombine.low %v4679_v4, %v4686_v28  ;;  %v3691_v12 = vmax.f32 %v3678_v6, 0.0  ;;  %v3679_v34 = vadd.f32 %v19343_v11, %v3659_v52  ;;  %v3661_v57 = vadd.f32 %v19451_v54, %v19352_v27 }
 0x1a8   : > { %v5039_v16 = vsel %vm19387_vm4, %v5011_v31, %v5038_v8  ;;  %v4655_v49 = vcombine.low %v4647_v5, %v4654_v47  ;;  %v4695_v33 = vrot.slane %v4687_v41, %v18416_v7  ;;  %v3680_v50 = vadd.f32 %v19343_v11, %v3660_v36 }
 0x1a9   : > { %5040 = vst [vmem:[#allocation2 + $0x14] sm:$0xf] %v5039_v16  ;;  %v4702_v46 = vrot.slane %v4688_v35, %v18416_v7  ;;  %v4053_v51 = vcombine.high %v3691_v12, %v3691_v12  ;;  %v4060_v45 = vrot.slane %v3691_v12, %v18416_v7  ;;  %v3692_v15 = vmax.f32 %v3679_v34, 0.0 }
 0x1aa   : > { %v5012_v48 = vpack.c.bf16 %v4655_v49, %v4655_v49  ;;  %v3693_v53 = vmax.f32 %v3680_v50, 0.0  ;;  %v3681_v27 = vadd.f32 %v19343_v11, %v3661_v57  ;;  %v19502_v54 = vadd.f32 %v19458_v9, %v19357_v26 }
 0x1ab   : > { %v4703_v23 = vcombine.low %v4695_v33, %v4702_v46  ;;  %v4067_v37 = vrot.slane %v4053_v51, %v18416_v7  ;;  %v4068_v59 = vcombine.high %v4060_v45, %v4060_v45  ;;  %v4076_v0 = vrot.slane %v4060_v45, %v18416_v7 }
 0x1ac   : > { %v5042_v42 = vsel %vm19387_vm4, %v5012_v48, %v5041_v39  ;;  %v4102_v25 = vcombine.high %v3692_v15, %v3692_v15  ;;  %v4109_v22 = vrot.slane %v3692_v15, %v18416_v7  ;;  %v4151_v55 = vcombine.high %v3693_v53, %v3693_v53 }
 0x1ad   : > { %v5013_v58 = vpack.c.bf16 %v4703_v23, %v4703_v23  ;;  %5043 = vst [vmem:[#allocation2 + $0x18] sm:$0xf] %v5042_v42  ;;  %v4069_v44 = vcombine.high %v4067_v37, %v4067_v37  ;;  %v4083_v26 = vrot.slane %v4067_v37, %v18416_v7  ;;  %v4090_v9 = vrot.slane %v4068_v59, %v18416_v7 }
 0x1ae   : > { %v4116_v18 = vrot.slane %v4102_v25, %v18416_v7  ;;  %v4117_v56 = vcombine.high %v4109_v22, %v4109_v22  ;;  %v4125_v32 = vrot.slane %v4109_v22, %v18416_v7  ;;  %v4158_v40 = vrot.slane %v3693_v53, %v18416_v7 }
 0x1af   : > { %v5045_v19 = vsel %vm19387_vm4, %v5013_v58, %v5044_v29  ;;  %v4097_v20 = vrot.slane %v4069_v44, %v18416_v7  ;;  %v4099_v3 = vcombine.high %v4083_v26, %v4083_v26  ;;  %v4704_v24 = vcombine.low %v4076_v0, %v4090_v9  ;;  %v5047_v29 = vld [vmem:[#allocation2 + $0x20] sm:$0xf] }
 0x1b0   : > { %5046 = vst [vmem:[#allocation2 + $0x1c] sm:$0xf] %v5045_v19  ;;  %v16007_v38 = vcombine.high %v4076_v0, %v4090_v9  ;;  %v4118_v63 = vcombine.high %v4116_v18, %v4116_v18  ;;  %v4132_v17 = vrot.slane %v4116_v18, %v18416_v7  ;;  %v4139_v28 = vrot.slane %v4117_v56, %v18416_v7 }
 0x1b1   : > { %v4706_v61 = vcombine.low %v4083_v26, %v4097_v20  ;;  %v4713_v30 = vrot.slane %v4704_v24, %v18416_v7  ;;  %v4734_v13 = vrot.slane %v4099_v3, %v18416_v7  ;;  %v4101_v43 = vcombine.high %v4097_v20, %v4097_v20  ;;  %v5050_v20 = vld [vmem:[#allocation2 + $0x24] sm:$0xf] }
 0x1b2   : > { %v4720_v62 = vrot.slane %v16007_v38, %v18416_v7  ;;  %v4146_v1 = vrot.slane %v4118_v63, %v18416_v7  ;;  %v4147_v21 = vcombine.high %v4125_v32, %v4125_v32  ;;  %v4149_v5 = vcombine.high %v4139_v28, %v4139_v28 }
 0x1b3   : > { %v4727_v8 = vrot.slane %v4706_v61, %v18416_v7  ;;  %v4752_v4 = vcombine.low %v4101_v43, %v4125_v32  ;;  %v4165_v6 = vrot.slane %v4151_v55, %v18416_v7  ;;  %v4166_v52 = vcombine.high %v4158_v40, %v4158_v40 }
 0x1b4   : > { %v4735_v31 = vcombine.low %v4713_v30, %v4720_v62  ;;  %v4753_v47 = vcombine.low %v4139_v28, %v4147_v21  ;;  %v4754_v41 = vcombine.low %v4149_v5, %v4132_v17  ;;  %v4782_v36 = vrot.slane %v4146_v1, %v18416_v7 }
 0x1b5   : > { %v4736_v35 = vcombine.low %v4727_v8, %v4734_v13  ;;  %v4761_v12 = vrot.slane %v4752_v4, %v18416_v7  ;;  %v16008_v34 = vcombine.high %v4132_v17, %v4146_v1  ;;  %v4167_v57 = vcombine.high %v4165_v6, %v4165_v6 }
 0x1b6   : > { %v4743_v16 = vrot.slane %v4735_v31, %v18416_v7  ;;  %v4768_v49 = vrot.slane %v4753_v47, %v18416_v7  ;;  %v4775_v33 = vrot.slane %v4754_v41, %v18416_v7  ;;  %v4174_v50 = vrot.slane %v4158_v40, %v18416_v7  ;;  %v5053_v31 = vld [vmem:[#allocation2 + $0x28] sm:$0xf] }
 0x1b7   : > { %v4750_v46 = vrot.slane %v4736_v35, %v18416_v7  ;;  %v4809_v39 = vrot.slane %v16008_v34, %v18416_v7  ;;  %v4181_v51 = vrot.slane %v4165_v6, %v18416_v7  ;;  %v4188_v45 = vrot.slane %v4166_v52, %v18416_v7 }
 0x1b8   : > { %v4783_v15 = vcombine.low %v4761_v12, %v4768_v49  ;;  %v4784_v48 = vcombine.low %v4775_v33, %v4782_v36  ;;  %v4195_v53 = vrot.slane %v4167_v57, %v18416_v7  ;;  %v3694_v23 = vmax.f32 %v3681_v27, 0.0 }
 0x1b9   : > { %v4751_v37 = vcombine.low %v4743_v16, %v4750_v46  ;;  %v4197_v59 = vcombine.high %v4181_v51, %v4181_v51  ;;  %v4801_v0 = vcombine.low %v4174_v50, %v4188_v45  ;;  %v16009_v42 = vcombine.high %v4174_v50, %v4188_v45 }
 0x1ba   : > { %v4791_v25 = vrot.slane %v4783_v15, %v18416_v7  ;;  %v4798_v22 = vrot.slane %v4784_v48, %v18416_v7  ;;  %v4830_v55 = vrot.slane %v4181_v51, %v18416_v7  ;;  %v4199_v58 = vcombine.high %v4195_v53, %v4195_v53 }
 0x1bb   : > { %v5014_v44 = vpack.c.bf16 %v4751_v37, %v4751_v37  ;;  %v4816_v26 = vrot.slane %v4801_v0, %v18416_v7  ;;  %v4823_v9 = vrot.slane %v16009_v42, %v18416_v7  ;;  %v4848_v18 = vcombine.low %v4195_v53, %v4197_v59 }
 0x1bc   : > { %v4799_v56 = vcombine.low %v4791_v25, %v4798_v22  ;;  %v4200_v27 = vcombine.high %v3694_v23, %v3694_v23  ;;  %v4207_v32 = vrot.slane %v3694_v23, %v18416_v7  ;;  %v3682_v40 = vadd.f32 %v19343_v11, %v19502_v54  ;;  %v16011_v22 = vld.sshfl [vmem:[#allocation2] sm:$0x13 pattern:$0x75316420] }
 0x1bd   : > { %v5048_v19 = vsel %vm19387_vm4, %v5014_v44, %v5047_v29  ;;  %v4831_v3 = vcombine.low %v4809_v39, %v4816_v26  ;;  %v4832_v24 = vcombine.low %v4823_v9, %v4830_v55  ;;  %v4857_v38 = vrot.slane %v4848_v18, %v18416_v7 }
 0x1be   : > { %5049 = vst [vmem:[#allocation2 + $0x20] sm:$0xf] %v5048_v19  ;;  %v5015_v63 = vpack.c.bf16 %v4799_v56, %v4799_v56  ;;  %v4214_v17 = vrot.slane %v4200_v27, %v18416_v7  ;;  %v4215_v28 = vcombine.high %v4207_v32, %v4207_v32  ;;  %v4223_v61 = vrot.slane %v4207_v32, %v18416_v7 }
 0x1bf   : > { %v4839_v30 = vrot.slane %v4831_v3, %v18416_v7  ;;  %v4846_v13 = vrot.slane %v4832_v24, %v18416_v7  ;;  %v3695_v54 = vmax.f32 %v3682_v40, 0.0  ;;  %v3663_v43 = vadd.f32 %v19473_v14, %v19373_v10  ;;  %v5056_v24 = vld [vmem:[#allocation2 + $0x2c] sm:$0xf] }
 0x1c0   : > { %v5051_v62 = vsel %vm19387_vm4, %v5015_v63, %v5050_v20  ;;  %v4216_v1 = vcombine.high %v4214_v17, %v4214_v17  ;;  %v4230_v21 = vrot.slane %v4214_v17, %v18416_v7  ;;  %v4237_v5 = vrot.slane %v4215_v28, %v18416_v7  ;;  %v16012_v20 = vld.sshfl [vmem:[#allocation2 + $0x4] sm:$0x13 pattern:$0x75316420] }
 0x1c1   : > { %5052 = vst [vmem:[#allocation2 + $0x24] sm:$0xf] %v5051_v62  ;;  %v4847_v8 = vcombine.low %v4839_v30, %v4846_v13  ;;  %v4245_v4 = vcombine.high %v4223_v61, %v4223_v61  ;;  %v4849_v6 = vcombine.low %v4199_v58, %v4223_v61  ;;  %v4249_v52 = vcombine.high %v3695_v54, %v3695_v54 }
 0x1c2   : > { %v4244_v47 = vrot.slane %v4216_v1, %v18416_v7  ;;  %v4247_v41 = vcombine.high %v4237_v5, %v4237_v5  ;;  %v4256_v36 = vrot.slane %v3695_v54, %v18416_v7  ;;  %v3683_v10 = vadd.f32 %v19343_v11, %v3663_v43  ;;  %v16013_v54 = vld.sshfl [vmem:[#allocation2 + $0x8] sm:$0x13 pattern:$0x75316420] }
 0x1c3   : > { %v5016_v14 = vpack.c.bf16 %v4847_v8, %v4847_v8  ;;  %v4850_v35 = vcombine.low %v4237_v5, %v4245_v4  ;;  %v4864_v12 = vrot.slane %v4849_v6, %v18416_v7  ;;  %v4263_v34 = vrot.slane %v4249_v52, %v18416_v7  ;;  %v16014_v52 = vld.sshfl [vmem:[#allocation2 + $0xc] sm:$0x13 pattern:$0x75316420] }
 0x1c4   : > { %v4878_v57 = vrot.slane %v4247_v41, %v18416_v7  ;;  %v4896_v16 = vcombine.low %v4230_v21, %v4244_v47  ;;  %v16010_v49 = vcombine.high %v4230_v21, %v4244_v47  ;;  %v4264_v33 = vcombine.high %v4256_v36, %v4256_v36 }
 0x1c5   : > { %v5054_v50 = vsel %vm19387_vm4, %v5016_v14, %v5053_v31  ;;  %v4871_v46 = vrot.slane %v4850_v35, %v18416_v7  ;;  %v4879_v39 = vcombine.low %v4857_v38, %v4864_v12  ;;  %v4265_v51 = vcombine.high %v4263_v34, %v4263_v34 }
 0x1c6   : > { %5055 = vst [vmem:[#allocation2 + $0x28] sm:$0xf] %v5054_v50  ;;  %v4905_v11 = vrot.slane %v4896_v16, %v18416_v7  ;;  %v4912_v45 = vrot.slane %v16010_v49, %v18416_v7  ;;  %v4272_v15 = vrot.slane %v4256_v36, %v18416_v7  ;;  %v4279_v48 = vrot.slane %v4263_v34, %v18416_v7 }
 0x1c7   : > { %v4880_v53 = vcombine.low %v4871_v46, %v4878_v57  ;;  %v4887_v23 = vrot.slane %v4879_v39, %v18416_v7  ;;  %v4286_v37 = vrot.slane %v4264_v33, %v18416_v7  ;;  %v4293_v59 = vrot.slane %v4265_v51, %v18416_v7  ;;  %v5059_v57 = vld [vmem:[#allocation2 + $0x30] sm:$0xf] }
 0x1c8   : > { %v4927_v0 = vcombine.low %v4905_v11, %v4912_v45  ;;  %v4294_v42 = vcombine.high %v4272_v15, %v4272_v15  ;;  %v4295_v29 = vcombine.high %v4279_v48, %v4279_v48  ;;  %v3696_v25 = vmax.f32 %v3683_v10, 0.0 }
 0x1c9   : > { %v4894_v55 = vrot.slane %v4880_v53, %v18416_v7  ;;  %v4296_v58 = vcombine.high %v4286_v37, %v4286_v37  ;;  %v4898_v44 = vcombine.low %v4272_v15, %v4286_v37  ;;  %v4297_v26 = vcombine.high %v4293_v59, %v4293_v59 }
 0x1ca   : > { %v4935_v9 = vrot.slane %v4927_v0, %v18416_v7  ;;  %v4926_v18 = vrot.slane %v4294_v42, %v18416_v7  ;;  %v4945_v56 = vcombine.low %v4293_v59, %v4295_v29  ;;  %v4304_v27 = vrot.slane %v3696_v25, %v18416_v7 }
 0x1cb   : > { %v4895_v32 = vcombine.low %v4887_v23, %v4894_v55  ;;  %v4919_v40 = vrot.slane %v4898_v44, %v18416_v7  ;;  %v4944_v19 = vcombine.low %v4296_v58, %v4279_v48  ;;  %v5092_v3 = vcombine.high %v16011_v22, %v16011_v22  ;;  %v16015_v55 = vld.sshfl [vmem:[#allocation2 + $0x10] sm:$0x13 pattern:$0x75316420]  ;;  %v5062_v58 = vld [vmem:[#allocation2 + $0x34] sm:$0xf] }
 0x1cc   : > { %v4960_v38 = vrot.slane %v4945_v56, %v18416_v7  ;;  %v4305_v63 = vcombine.high %v4304_v27, %v4304_v27  ;;  %v4312_v17 = vrot.slane %v4304_v27, %v18416_v7  ;;  %v19581_v28 = vrot.slane %v16011_v22, %v18416_v7  ;;  %v16016_v56 = vld.sshfl [vmem:[#allocation2 + $0x1c] sm:$0x13 pattern:$0x75316420] }
 0x1cd   : > { %v5017_v61 = vpack.c.bf16 %v4895_v32, %v4895_v32  ;;  %v4928_v30 = vcombine.low %v4919_v40, %v4926_v18  ;;  %v4953_v13 = vrot.slane %v4944_v19, %v18416_v7  ;;  %v19585_v43 = vrot.slane %v5092_v3, %v18416_v7  ;;  %v16086_v2 = vld.sshfl [vmem:[#allocation2 + $0x28] sm:$0x32 pattern:$0x75316420] }
 0x1ce   : > { %v4319_v62 = vrot.slane %v4305_v63, %v18416_v7  ;;  %v4946_v1 = vcombine.low %v4297_v26, %v4312_v17  ;;  %v19590_v21 = vcombine.high %v19581_v28, %v19581_v28  ;;  %v5115_v5 = vcombine.high %v16012_v20, %v16012_v20 }
 0x1cf   : > { %v5057_v8 = vsel %vm19387_vm4, %v5017_v61, %v5056_v24  ;;  %v4942_v4 = vrot.slane %v4928_v30, %v18416_v7  ;;  %v4975_v6 = vcombine.low %v4953_v13, %v4960_v38  ;;  %v19596_v31 = vrot.slane %v16012_v20, %v18416_v7  ;;  %v16017_v24 = vld.sshfl [vmem:[#allocation2 + $0x20] sm:$0x13 pattern:$0x75316420] }
 0x1d0   : > { %5058 = vst [vmem:[#allocation2 + $0x2c] sm:$0xf] %v5057_v8  ;;  %v4967_v47 = vrot.slane %v4946_v1, %v18416_v7  ;;  %v4974_v41 = vrot.slane %v4319_v62, %v18416_v7  ;;  %v19601_v36 = vrot.slane %v5115_v5, %v18416_v7  ;;  %v5138_v10 = vcombine.high %v16013_v54, %v16013_v54 }
 0x1d1   : > { %v4943_v14 = vcombine.low %v4935_v9, %v4942_v4  ;;  %v4983_v35 = vrot.slane %v4975_v6, %v18416_v7  ;;  %v19606_v12 = vcombine.high %v19596_v31, %v19596_v31  ;;  %v19609_v34 = vrot.slane %v16013_v54, %v18416_v7 }
 0x1d2   : > { %v4976_v16 = vcombine.low %v4967_v47, %v4974_v41  ;;  %v19612_v49 = vrot.slane %v5138_v10, %v18416_v7  ;;  %v5161_v33 = vcombine.high %v16014_v52, %v16014_v52  ;;  %v19615_v50 = vrot.slane %v16014_v52, %v18416_v7 }
 0x1d3   : > { %v5018_v46 = vpack.c.bf16 %v4943_v14, %v4943_v14  ;;  %v19619_v39 = vcombine.high %v19609_v34, %v19609_v34  ;;  %v5316_v51 = vunpack.i.h.s16 %v19581_v28  ;;  %v5318_v11 = vunpack.i.h.s16 %v19585_v43 }
 0x1d4   : > { %v4990_v45 = vrot.slane %v4976_v16, %v18416_v7  ;;  %v19625_v15 = vrot.slane %v5161_v33, %v18416_v7  ;;  %v5321_v48 = vunpack.i.h.s16 %v19596_v31  ;;  %v5326_v53 = vunpack.i.h.s16 %v19609_v34  ;;  %v16018_v33 = vld.sshfl [vmem:[#allocation2 + $0x24] sm:$0x13 pattern:$0x75316420] }
 0x1d5   : > { %v5060_v23 = vsel %vm19387_vm4, %v5018_v46, %v5059_v57  ;;  %v5328_v37 = vunpack.i.h.s16 %v19612_v49  ;;  %v5331_v59 = vunpack.i.h.s16 %v19615_v50  ;;  %v5381_v0 = vunpack.i.h.s16 %v19590_v21 }
 0x1d6   : > { %5061 = vst [vmem:[#allocation2 + $0x30] sm:$0xf] %v5060_v23  ;;  %v4991_v42 = vcombine.low %v4983_v35, %v4990_v45  ;;  %v5383_v29 = vunpack.i.h.s16 %v19619_v39  ;;  %v16037_v25 = vpack.i.b16 %v19585_v43, %v5316_v51  ;;  %v16038_v22 = vpack.i.b16 %v19590_v21, %v5318_v11 }
 0x1d7   : > { %v5410_v44 = vpack.i.b16 %v5321_v48, %v5381_v0  ;;  %v19640_v26 = vpack.i.b16 %v19612_v49, %v5326_v53  ;;  %v19643_v9 = vpack.i.b16 %v19619_v39, %v5328_v37  ;;  %v19646_v18 = vpack.i.b16 %v19625_v15, %v5331_v59  ;;  %v16019_v53 = vld.sshfl [vmem:[#allocation2 + $0x28] sm:$0x13 pattern:$0x75316420] }
 0x1d8   : > { %v5019_v27 = vpack.c.bf16 %v4991_v42, %v4991_v42  ;;  %v5415_v32 = vpack.i.b16 %v5331_v59, %v5383_v29  ;;  %v5433_v40 = vcombine.low %v16037_v25, %v16038_v22  ;;  %v19650_v19 = vcombine.high %v19615_v50, %v19615_v50  ;;  %v16020_v25 = vld.sshfl [vmem:[#allocation2 + $0x2c] sm:$0x13 pattern:$0x75316420] }
 0x1d9   : > { %v5434_v20 = vcombine.low %v5410_v44, %v19601_v36  ;;  %v5435_v3 = vcombine.low %v19606_v12, %v19640_v26  ;;  %v5184_v38 = vcombine.high %v16015_v55, %v16015_v55  ;;  %v19656_v63 = vrot.slane %v16015_v55, %v18416_v7 }
 0x1da   : > { %v5063_v17 = vsel %vm19387_vm4, %v5019_v27, %v5062_v58  ;;  %v5436_v61 = vcombine.low %v19643_v9, %v5415_v32  ;;  %v5443_v30 = vrot.slane %v5433_v40, %v18416_v7  ;;  %v5207_v13 = vcombine.high %v16016_v56, %v16016_v56 }
 0x1db   : > { %5064 = vst [vmem:[#allocation2 + $0x34] sm:$0xf] %v5063_v17  ;;  %v5450_v54 = vrot.slane %v5434_v20, %v18416_v7  ;;  %v5457_v62 = vrot.slane %v5435_v3, %v18416_v7  ;;  %v19665_v1 = vrot.slane %v5184_v38, %v18416_v7  ;;  %v19669_v5 = vcombine.high %v19656_v63, %v19656_v63 }
 0x1dc   : > { %v5464_v60 = vrot.slane %v5436_v61, %v18416_v7  ;;  %v19673_v8 = vrot.slane %v16016_v56, %v18416_v7  ;;  %v19676_v4 = vrot.slane %v5207_v13, %v18416_v7  ;;  %v5230_v6 = vcombine.high %v16017_v24, %v16017_v24 }
 0x1dd   : > { %v5465_v52 = vcombine.low %v5443_v30, %v5450_v54  ;;  %v19679_v47 = vrot.slane %v16017_v24, %v18416_v7  ;;  %v5336_v41 = vunpack.i.h.s16 %v19656_v63  ;;  %v5338_v10 = vunpack.i.h.s16 %v19665_v1 }
 0x1de   : > { %v5466_v14 = vcombine.low %v5457_v62, %v5464_v60  ;;  %v19685_v35 = vcombine.high %v19673_v8, %v19673_v8  ;;  %v19688_v57 = vrot.slane %v5230_v6, %v18416_v7  ;;  %v5341_v16 = vunpack.i.h.s16 %v19673_v8 }
 0x1df   : > { %v5473_v46 = vrot.slane %v5465_v52, %v18416_v7  ;;  %v5346_v51 = vunpack.i.h.s16 %v19679_v47  ;;  %v5385_v11 = vunpack.i.h.s16 %v19669_v5  ;;  %v16041_v45 = vpack.i.b16 %v19665_v1, %v5336_v41 }
 0x1e0   : > { %v5480_v23 = vrot.slane %v5466_v14, %v18416_v7  ;;  %v16042_v37 = vpack.i.b16 %v19669_v5, %v5338_v10  ;;  %v5482_v59 = vcombine.low %v19625_v15, %v19650_v19  ;;  %v19701_v0 = vcombine.high %v19679_v47, %v19679_v47 }
 0x1e1   : > { %v5420_v42 = vpack.i.b16 %v5341_v16, %v5385_v11  ;;  %v19706_v29 = vpack.i.b16 %v19688_v57, %v5346_v51  ;;  %v5253_v22 = vcombine.high %v16018_v33, %v16018_v33  ;;  %v19709_v55 = vrot.slane %v16018_v33, %v18416_v7 }
 0x1e2   : > { %v5481_v58 = vcombine.low %v5473_v46, %v5480_v23  ;;  %v5483_v44 = vcombine.low %v16041_v45, %v16042_v37  ;;  %v5492_v56 = vrot.slane %v5482_v59, %v18416_v7  ;;  %v5276_v27 = vcombine.high %v16019_v53, %v16019_v53 }
 0x1e3   : > { %v5484_v32 = vcombine.low %v5420_v42, %v19676_v4  ;;  %v5485_v40 = vcombine.low %v19685_v35, %v19706_v29  ;;  %v19716_v20 = vrot.slane %v5253_v22, %v18416_v7  ;;  %v19720_v3 = vcombine.high %v19709_v55, %v19709_v55 }
 0x1e4   : > { %17381 = vmatprep.mubr.bf16.mxu0 %v5481_v58  ;;  %v19723_v24 = vrot.slane %v5483_v44, %v18416_v7  ;;  %v19726_v38 = vrot.slane %v16019_v53, %v18416_v7  ;;  %v19729_v17 = vrot.slane %v5276_v27, %v18416_v7  ;;  %v5299_v61 = vcombine.high %v16020_v25, %v16020_v25  ;;  %v18030_v27 = vld [vmem:[%s21973_s3 + $0x8] sm:$0xff]  }
 0x1e5   : > { %v5506_v30 = vrot.slane %v5484_v32, %v18416_v7  ;;  %v5513_v13 = vrot.slane %v5485_v40, %v18416_v7  ;;  %v19734_v54 = vrot.slane %v16020_v25, %v18416_v7  ;;  %v5348_v62 = vunpack.i.h.s16 %v19688_v57 }
 0x1e6   : > { %v5514_v60 = vcombine.low %v5492_v56, %v19723_v24  ;;  %v19740_v6 = vcombine.high %v19726_v38, %v19726_v38  ;;  %v19743_v52 = vrot.slane %v5299_v61, %v18416_v7  ;;  %v5351_v41 = vunpack.i.h.s16 %v19709_v55 }
 0x1e7   : > { %v5515_v10 = vcombine.low %v5506_v30, %v5513_v13  ;;  %v5356_v14 = vunpack.i.h.s16 %v19726_v38  ;;  %v5358_v33 = vunpack.i.h.s16 %v19729_v17  ;;  %v5361_v46 = vunpack.i.h.s16 %v19734_v54 }
 0x1e8   : > { %v5522_v51 = vrot.slane %v5514_v60, %v18416_v7  ;;  %v5387_v11 = vunpack.i.h.s16 %v19701_v0  ;;  %v5389_v45 = vunpack.i.h.s16 %v19740_v6  ;;  %v19753_v53 = vpack.i.b16 %v19701_v0, %v5348_v62 }
 0x1e9   : > { %v5529_v23 = vrot.slane %v5515_v10, %v18416_v7  ;;  %v16045_v37 = vpack.i.b16 %v19729_v17, %v5356_v14  ;;  %v16046_v59 = vpack.i.b16 %v19740_v6, %v5358_v33  ;;  %v5532_v42 = vcombine.low %v19716_v20, %v19720_v3 }
 0x1ea   : > { %v5425_v25 = vpack.i.b16 %v5351_v41, %v5387_v11  ;;  %v5430_v22 = vpack.i.b16 %v5361_v46, %v5389_v45  ;;  %v19766_v58 = vcombine.high %v19734_v54, %v19734_v54  ;;  %v5323_v44 = vunpack.i.h.s16 %v19601_v36 }
 0x1eb   : > { %v5530_v56 = vcombine.low %v5522_v51, %v5529_v23  ;;  %v5533_v32 = vcombine.low %v16045_v37, %v16046_v59  ;;  %v5548_v40 = vrot.slane %v5532_v42, %v18416_v7  ;;  %v16055_v61 = vpack.i.b16 %v19596_v31, %v19590_v21  ;;  %v18237_v51 = vld [vmem:[%s21973_s3] sm:$0xff]  }
 0x1ec   : > { %v5531_v30 = vcombine.low %v19753_v53, %v5425_v25  ;;  %v5534_v13 = vcombine.low %v5430_v22, %v19743_v52  ;;  %v5586_v62 = vrot.slane %v19766_v58, %v18416_v7  ;;  %v16056_v60 = vpack.i.b16 %v19601_v36, %v5321_v48 }
 0x1ed   : > { %17382 = vmatmul.mubr.bf16.vlgmr.msra.gmra.mrb[48].mxu0 %v5530_v56  ;;  %v19783_v10 = vrot.slane %v5533_v32, %v18416_v7  ;;  %v16057_v14 = vpack.i.b16 %v19606_v12, %v5323_v44  ;;  %v16058_v21 = vpack.i.b16 %v19615_v50, %v19619_v39  ;;  %v5735_v33 = vcombine.low %v19581_v28, %v19585_v43  ;;  %v18031_v39 = vld [vmem:[%s21973_s3 + $0x10] sm:$0xff]  }
 0x1ee   : > { %17390 = vmatpush3.bf16.msra.mxu0 %v18237_v51  ;;  %v5541_v11 = vrot.slane %v5531_v30, %v18416_v7  ;;  %v5562_v48 = vrot.slane %v5534_v13, %v18416_v7  ;;  %v5593_v45 = vrot.slane %v5586_v62, %v18416_v7  ;;  %v5736_v23 = vcombine.low %v16055_v61, %v16056_v60  ;;  %v18032_v60 = vld [vmem:[%s21973_s3 + $0x18] sm:$0xff]  }
 0x1ef   : > { %17391 = vmatprep.subr.bf16.mxu0 %v18030_v27  ;;  %v5737_v37 = vcombine.low %v16057_v14, %v19609_v34  ;;  %v5738_v28 = vcombine.low %v19612_v49, %v16058_v21  ;;  %v5745_v43 = vrot.slane %v5735_v33, %v18416_v7  ;;  %v5333_v59 = vunpack.i.h.s16 %v19625_v15 }
 0x1f0   : > { %v5563_v42 = vcombine.low %v5541_v11, %v5548_v40  ;;  %v5564_v25 = vcombine.low %v19783_v10, %v5562_v48  ;;  %v5752_v22 = vrot.slane %v5736_v23, %v18416_v7  ;;  %v5343_v44 = vunpack.i.h.s16 %v19676_v4 }
 0x1f1   : > { %v5759_v56 = vrot.slane %v5737_v37, %v18416_v7  ;;  %v5766_v32 = vrot.slane %v5738_v28, %v18416_v7  ;;  %v16060_v61 = vpack.i.b16 %v19650_v19, %v5333_v59  ;;  %v16061_v49 = vpack.i.b16 %v19673_v8, %v19669_v5  ;;  %v18033_v37 = vld [vmem:[%s21973_s3 + $0x20] sm:$0xff]  }
 0x1f2   : > { %17392 = vmatpush3.bf16.msra.mxu0 %v18030_v27  ;;  %v5571_v30 = vrot.slane %v5563_v42, %v18416_v7  ;;  %v5578_v40 = vrot.slane %v5564_v25, %v18416_v7  ;;  %v5767_v13 = vcombine.low %v5745_v43, %v5752_v22  ;;  %v16062_v62 = vpack.i.b16 %v19676_v4, %v5341_v16 }
 0x1f3   : > { %17393 = vmatprep.subr.bf16.mxu0 %v18031_v39  ;;  %v5768_v14 = vcombine.low %v5759_v56, %v5766_v32  ;;  %v16063_v21 = vpack.i.b16 %v19685_v35, %v5343_v44  ;;  %v5784_v5 = vcombine.low %v19646_v18, %v16060_v61  ;;  %v5785_v27 = vcombine.low %v19656_v63, %v19665_v1  ;;  %v16079_v56 = vld.sshfl [vmem:[#allocation2 + $0x4] sm:$0x32 pattern:$0x75316420] }
 0x1f4   : > { %v5579_v33 = vcombine.low %v5571_v30, %v5578_v40  ;;  %v5775_v51 = vrot.slane %v5767_v13, %v18416_v7  ;;  %v5786_v11 = vcombine.low %v16061_v49, %v16062_v62  ;;  %v5353_v8 = vunpack.i.h.s16 %v19716_v20  ;;  %v16080_v40 = vld.sshfl [vmem:[#allocation2 + $0x8] sm:$0x32 pattern:$0x75316420] }
 0x1f5   : > { %v5782_v4 = vrot.slane %v5768_v14, %v18416_v7  ;;  %v5787_v16 = vcombine.low %v16063_v21, %v19679_v47  ;;  %v5794_v48 = vrot.slane %v5784_v5, %v18416_v7  ;;  %v5801_v23 = vrot.slane %v5785_v27, %v18416_v7 }
 0x1f6   : > { %17394 = vmatpush3.bf16.msra.mxu0 %v18031_v39  ;;  %17385 = vmatprep.mubr.bf16.mxu0 %v5579_v33  ;;  %v5808_v18 = vrot.slane %v5786_v11, %v18416_v7  ;;  %v16064_v1 = vpack.i.b16 %v19709_v55, %v19701_v0  ;;  %v16065_v43 = vpack.i.b16 %v19716_v20, %v5351_v41  ;;  %v16078_v39 = vld.sshfl [vmem:[#allocation2] sm:$0x32 pattern:$0x75316420]  ;;  %v5363_v41 = vunpack.i.h.s16 %v19743_v52 }
 0x1f7   : > { %17395 = vmatprep.subr.bf16.mxu0 %v18032_v60  ;;  %17386 = vmatmul.mubr.bf16.gmra.mrb[52].mxu0 %v5593_v45  ;;  %v5783_v35 = vcombine.low %v5775_v51, %v5782_v4  ;;  %v5815_v28 = vrot.slane %v5787_v16, %v18416_v7  ;;  %v16066_v59 = vpack.i.b16 %v19720_v3, %v5353_v8  ;;  %v18035_v16 = vld [vmem:[%s21973_s3 + $0x30] sm:$0xff]  }
 0x1f8   : > { %v16067_v42 = vpack.i.b16 %v19734_v54, %v19740_v6  ;;  %v16068_v0 = vpack.i.b16 %v19743_v52, %v5361_v46  ;;  %v5833_v45 = vcombine.low %v19688_v57, %v16064_v1  ;;  %v5816_v25 = vcombine.low %v5794_v48, %v5801_v23  ;;  %v18034_v6 = vld [vmem:[%s21973_s3 + $0x28] sm:$0xff]  }
 0x1f9   : > { %17405 = vmatprep.mubr.bf16.mxu0 %v5783_v35  ;;  %v5817_v22 = vcombine.low %v5808_v18, %v5815_v28  ;;  %v5835_v44 = vcombine.low %v19726_v38, %v19729_v17  ;;  %v5834_v32 = vcombine.low %v16065_v43, %v16066_v59  ;;  %v6039_v49 = vcombine.high %v16078_v39, %v16078_v39 }
 0x1fa   : > { %17396 = vmatpush3.bf16.msra.mxu0 %v18032_v60  ;;  %v5836_v61 = vcombine.low %v16067_v42, %v16068_v0  ;;  %v5843_v46 = vrot.slane %v5833_v45, %v18416_v7  ;;  %v6046_v17 = vrot.slane %v16078_v39, %v18416_v7  ;;  %v16081_v60 = vld.sshfl [vmem:[#allocation2 + $0xc] sm:$0x32 pattern:$0x75316420]  ;;  %v6063_v21 = vcombine.high %v16079_v56, %v16079_v56 }
 0x1fb   : > { %17397 = vmatprep.subr.bf16.mxu0 %v18033_v37  ;;  %v5831_v57 = vrot.slane %v5817_v22, %v18416_v7  ;;  %v5857_v30 = vrot.slane %v5835_v44, %v18416_v7  ;;  %v5850_v13 = vrot.slane %v5834_v32, %v18416_v7  ;;  %v6053_v14 = vrot.slane %v6039_v49, %v18416_v7  ;;  %v16082_v45 = vld.sshfl [vmem:[#allocation2 + $0x10] sm:$0x32 pattern:$0x75316420]  ;;  %v18036_v32 = vld [vmem:[%s21973_s3 + $0x38] sm:$0xff]  }
 0x1fc   : > { %v5864_v62 = vrot.slane %v5836_v61, %v18416_v7  ;;  %v5824_v5 = vrot.slane %v5816_v25, %v18416_v7  ;;  %v19861_v27 = vpack.i.b16 %v19766_v58, %v5363_v41  ;;  %v6070_v33 = vrot.slane %v16079_v56, %v18416_v7  ;;  %v16083_v56 = vld.sshfl [vmem:[#allocation2 + $0x1c] sm:$0x32 pattern:$0x75316420] }
 0x1fd   : > { %v19864_v51 = vcombine.low %v5843_v46, %v5850_v13  ;;  %v6055_v8 = vcombine.high %v6053_v14, %v6053_v14  ;;  %v19869_v4 = vrot.slane %v6063_v21, %v18416_v7  ;;  %v6087_v23 = vcombine.high %v16080_v40, %v16080_v40 }
 0x1fe   : > { %17398 = vmatpush3.bf16.msra.mxu0 %v18033_v37  ;;  %v19866_v11 = vcombine.low %v5857_v30, %v5864_v62  ;;  %v19874_v48 = vcombine.high %v6070_v33, %v6070_v33  ;;  %v6094_v18 = vrot.slane %v16080_v40, %v18416_v7  ;;  %v6111_v1 = vcombine.high %v16081_v60, %v16081_v60 }
 0x1ff   : > { %17399 = vmatprep.subr.bf16.mxu0 %v18034_v6  ;;  %v19877_v35 = vcombine.low %v5824_v5, %v5831_v57  ;;  %v6054_v37 = vcombine.high %v6046_v17, %v6046_v17  ;;  %v19881_v28 = vcombine.high %v19869_v4, %v19869_v4  ;;  %v6118_v43 = vrot.slane %v16081_v60, %v18416_v7  ;;  %v16084_v60 = vld.sshfl [vmem:[#allocation2 + $0x20] sm:$0x32 pattern:$0x75316420] }
 0x200   : > { %v5873_v39 = vrot.slane %v19864_v51, %v18416_v7  ;;  %v19887_v59 = vrot.slane %v6087_v23, %v18416_v7  ;;  %v19890_v42 = vrot.slane %v6111_v1, %v18416_v7  ;;  %v6278_v0 = vunpack.i.h.s16 %v19869_v4 }
 0x201   : > { %v5880_v25 = vrot.slane %v19866_v11, %v18416_v7  ;;  %v19895_v22 = vcombine.high %v6094_v18, %v6094_v18  ;;  %v19897_v44 = vcombine.high %v6118_v43, %v6118_v43  ;;  %v6280_v41 = vunpack.i.h.s16 %v19874_v48 }
 0x202   : > { %17400 = vmatpush3.bf16.msra.mxu0 %v18034_v6  ;;  %v19905_v61 = vcombine.high %v19887_v59, %v19887_v59  ;;  %v19909_v49 = vcombine.high %v19890_v42, %v19890_v42  ;;  %v16104_v6 = vpack.i.b16 %v19869_v4, %v6055_v8  ;;  %v16105_v57 = vpack.i.b16 %v19874_v48, %v6278_v0  ;;  %v18037_v8 = vld [vmem:[%s21973_s3 + $0x80] sm:$0xff]  }
 0x203   : > { %22088 = vst [vmem:[#allocation9_spill] sm:$0xff] %v19897_v44  ;;  %17401 = vmatprep.subr.bf16.mxu0 %v18035_v16  ;;  %v16106_v46 = vpack.i.b16 %v19881_v28, %v6280_v41  ;;  %v6364_v30 = vcombine.low %v6053_v14, %v6054_v37  ;;  %v6135_v40 = vcombine.high %v16082_v45, %v16082_v45  ;;  %v6288_v33 = vunpack.i.h.s16 %v19890_v42 }
 0x204   : > { %v6142_v17 = vrot.slane %v16082_v45, %v18416_v7  ;;  %v16107_v13 = vpack.i.b16 %v19890_v42, %v19905_v61  ;;  %v6365_v62 = vcombine.low %v16104_v6, %v16105_v57  ;;  %v6159_v21 = vcombine.high %v16083_v56, %v16083_v56 }
 0x205   : > { %v6166_v5 = vrot.slane %v16083_v56, %v18416_v7  ;;  %v6366_v51 = vcombine.low %v16106_v46, %v19887_v59  ;;  %v6374_v11 = vrot.slane %v6364_v30, %v18416_v7  ;;  %v19922_v14 = vrot.slane %v6135_v40, %v18416_v7 }
 0x206   : > { %17402 = vmatpush3.bf16.msra.mxu0 %v18035_v16  ;;  %v6367_v23 = vcombine.low %v19895_v22, %v16107_v13  ;;  %v6381_v18 = vrot.slane %v6365_v62, %v18416_v7  ;;  %v6173_v16 = vrot.slane %v6159_v21, %v18416_v7  ;;  %v19931_v43 = vcombine.high %v6142_v17, %v6142_v17  ;;  %v16085_v17 = vld.sshfl [vmem:[#allocation2 + $0x24] sm:$0x32 pattern:$0x75316420]  ;;  %v18038_v62 = vld [vmem:[%s21973_s3 + $0x88] sm:$0xff]  }
 0x207   : > { %17403 = vmatprep.subr.bf16.mxu0 %v18036_v32  ;;  %v6174_v1 = vcombine.high %v6166_v5, %v6166_v5  ;;  %v6388_v37 = vrot.slane %v6366_v51, %v18416_v7  ;;  %v6183_v0 = vcombine.high %v16084_v60, %v16084_v60  ;;  %v6290_v45 = vunpack.i.h.s16 %v19897_v44 }
 0x208   : > { %v6395_v41 = vrot.slane %v6367_v23, %v18416_v7  ;;  %v19937_v56 = vcombine.high %v19922_v14, %v19922_v14  ;;  %v6175_v6 = vcombine.high %v6173_v16, %v6173_v16  ;;  %v6298_v57 = vunpack.i.h.s16 %v6173_v16 }
 0x209   : > { %v6396_v46 = vcombine.low %v6374_v11, %v6381_v18  ;;  %v6300_v30 = vunpack.i.h.s16 %v6174_v1  ;;  %v16108_v40 = vpack.i.b16 %v19897_v44, %v6288_v33  ;;  %v16109_v13 = vpack.i.b16 %v19909_v49, %v6290_v45 }
 0x20a   : > { %17404 = vmatpush3.bf16.msra.mxu0 %v18036_v32  ;;  %v6397_v21 = vcombine.low %v6388_v37, %v6395_v41  ;;  %v19945_v5 = vrot.slane %v6183_v0, %v18416_v7  ;;  %v16110_v51 = vpack.i.b16 %v6173_v16, %v19937_v56  ;;  %v16111_v23 = vpack.i.b16 %v6174_v1, %v6298_v57 }
 0x20b   : > { %17413 = vmatprep.subr.bf16.mxu0 %v18037_v8  ;;  %v5881_v32 = vcombine.low %v5873_v39, %v5880_v25  ;;  %v16112_v11 = vpack.i.b16 %v6175_v6, %v6300_v30  ;;  %v6413_v18 = vcombine.low %v16108_v40, %v16109_v13  ;;  %v6414_v33 = vcombine.low %v19922_v14, %v19931_v43  ;;  %v16087_v39 = vld.sshfl [vmem:[#allocation2 + $0x2c] sm:$0x32 pattern:$0x75316420]  ;;  %v18039_v25 = vld [vmem:[%s21973_s3 + $0x90] sm:$0xff]  }
 0x20c   : > { %v6415_v45 = vcombine.low %v16110_v51, %v16111_v23  ;;  %v6207_v44 = vcombine.high %v16085_v17, %v16085_v17  ;;  %v5888_v37 = vrot.slane %v19861_v27, %v18416_v7  ;;  %v6404_v0 = vrot.slane %v6396_v46, %v18416_v7 }
 0x20d   : > { %17406 = vmatmul.mubr.bf16.vlgmr.msra.gmra.mrb[48].mxu0 %v19877_v35  ;;  %v6416_v16 = vcombine.low %v16112_v11, %v19945_v5  ;;  %v6411_v35 = vrot.slane %v6397_v21, %v18416_v7  ;;  %v6190_v1 = vrot.slane %v16084_v60, %v18416_v7  ;;  %v6214_v27 = vrot.slane %v16085_v17, %v18416_v7  ;;  %v18040_v11 = vld [vmem:[%s21973_s3 + $0x98] sm:$0xff]  }
 0x20e   : > { %17409 = vmatprep.mubr.bf16.mxu0 %v5881_v32  ;;  %17414 = vmatpush3.bf16.msra.mxu0 %v18037_v8  ;;  %v19962_v8 = vcombine.high %v19945_v5, %v19945_v5  ;;  %v6423_v41 = vrot.slane %v6413_v18, %v18416_v7  ;;  %v6430_v6 = vrot.slane %v6414_v33, %v18416_v7 }
 0x20f   : > { %17415 = vmatprep.subr.bf16.mxu0 %v18038_v62  ;;  %v19968_v57 = vrot.slane %v6207_v44, %v18416_v7  ;;  %v6231_v46 = vcombine.high %v16086_v2, %v16086_v2  ;;  %v6437_v30 = vrot.slane %v6415_v45, %v18416_v7  ;;  %v19971_v40 = vcombine.high %v6214_v27, %v6214_v27 }
 0x210   : > { %v6255_v13 = vcombine.high %v16087_v39, %v16087_v39  ;;  %v6262_v60 = vrot.slane %v16087_v39, %v18416_v7  ;;  %v6444_v21 = vrot.slane %v6416_v16, %v18416_v7  ;;  %v6238_v51 = vrot.slane %v16086_v2, %v18416_v7 }
 0x211   : > { %v19977_v17 = vcombine.high %v19968_v57, %v19968_v57  ;;  %v19981_v44 = vrot.slane %v6231_v46, %v18416_v7  ;;  %v5895_v23 = vrot.slane %v5888_v37, %v18416_v7  ;;  %v6412_v32 = vcombine.low %v6404_v0, %v6411_v35 }
 0x212   : > { %17416 = vmatpush3.bf16.msra.mxu0 %v18038_v62  ;;  %v19988_v62 = vrot.slane %v6255_v13, %v18416_v7  ;;  %v6308_v18 = vunpack.i.h.s16 %v19968_v57  ;;  %v6445_v33 = vcombine.low %v6423_v41, %v6430_v6  ;;  %v19991_v45 = vcombine.high %v6190_v1, %v6190_v1  ;;  %v18041_v6 = vld [vmem:[%s21973_s3 + $0xa0] sm:$0xff]  }
 0x213   : > { %17417 = vmatprep.subr.bf16.mxu0 %v18039_v25  ;;  %v6310_v2 = vunpack.i.h.s16 %v19971_v40  ;;  %v16113_v16 = vpack.i.b16 %v19968_v57, %v19962_v8  ;;  %v19998_v37 = vcombine.high %v19981_v44, %v19981_v44  ;;  %v20000_v0 = vcombine.high %v6262_v60, %v6262_v60 }
 0x214   : > { %v6318_v39 = vunpack.i.h.s16 %v19988_v62  ;;  %v16114_v35 = vpack.i.b16 %v19971_v40, %v6308_v18  ;;  %v20004_v1 = vcombine.low %v6437_v30, %v6444_v21  ;;  %v20006_v27 = vcombine.high %v6238_v51, %v6238_v51 }
 0x215   : > { %17410 = vmatmul.mubr.bf16.gmra.mrb[56].mxu0 %v5895_v23  ;;  %v16115_v41 = vpack.i.b16 %v19977_v17, %v6310_v2  ;;  %v16116_v46 = vpack.i.b16 %v19988_v62, %v19998_v37  ;;  %v6462_v30 = vcombine.low %v19991_v45, %v16113_v16  ;;  %v16156_v21 = vpack.i.b16 %v19656_v63, %v19650_v19  ;;  %v16131_v23 = vld.sshfl [vmem:[#allocation2 + $0x14] sm:$0x13 pattern:$0x75316420] }
 0x216   : > { %17418 = vmatpush3.bf16.msra.mxu0 %v18039_v25  ;;  %17429 = vmatprep.mubr.bf16.mxu0 %v6412_v32  ;;  %v16117_v13 = vpack.i.b16 %v20000_v0, %v6318_v39  ;;  %v16153_v25 = vpack.i.b16 %v19609_v34, %v19606_v12  ;;  %v6991_v51 = vcombine.low %v19596_v31, %v19601_v36  ;;  %v18042_v36 = vld [vmem:[%s21973_s3 + $0xa8] sm:$0xff]  }
 0x217   : > { %17419 = vmatprep.subr.bf16.mxu0 %v18040_v11  ;;  %v6463_v60 = vcombine.low %v16114_v35, %v16115_v41  ;;  %v6453_v32 = vrot.slane %v6445_v33, %v18416_v7  ;;  %v6993_v39 = vcombine.low %v19643_v9, %v19615_v50  ;;  %v6460_v12 = vrot.slane %v20004_v1, %v18416_v7 }
 0x218   : > { %v6465_v18 = vcombine.low %v16116_v46, %v16117_v13  ;;  %v6992_v2 = vcombine.low %v16153_v25, %v19640_v26  ;;  %v6464_v34 = vcombine.low %v19981_v44, %v20006_v27  ;;  %v20032_v19 = vcombine.high %v19988_v62, %v19988_v62 }
 0x219   : > { %v6994_v31 = vcombine.low %v19625_v15, %v16156_v21  ;;  %v6479_v50 = vrot.slane %v6463_v60, %v18416_v7  ;;  %v7001_v26 = vrot.slane %v6991_v51, %v18416_v7  ;;  %v6768_v63 = vcombine.high %v16131_v23, %v16131_v23  ;;  %v18043_v51 = vld [vmem:[%s21973_s3 + $0xb0] sm:$0xff]  }
 0x21a   : > { %17420 = vmatpush3.bf16.msra.mxu0 %v18040_v11  ;;  %v7008_v9 = vrot.slane %v6992_v2, %v18416_v7  ;;  %v16136_v11 = vld.sshfl [vmem:[#allocation2 + $0x30] sm:$0x13 pattern:$0x75316420]  ;;  %v6472_v33 = vrot.slane %v6462_v30, %v18416_v7  ;;  %v7015_v16 = vrot.slane %v6993_v39, %v18416_v7  ;;  %v20045_v15 = vrot.slane %v16131_v23, %v18416_v7 }
 0x21b   : > { %17421 = vmatprep.subr.bf16.mxu0 %v18041_v6  ;;  %v7022_v35 = vrot.slane %v6994_v31, %v18416_v7  ;;  %v6493_v1 = vrot.slane %v6465_v18, %v18416_v7  ;;  %v20049_v46 = vrot.slane %v6768_v63, %v18416_v7  ;;  %v7043_v13 = vcombine.low %v19753_v53, %v19709_v55  ;;  %v16176_v63 = vld.sshfl [vmem:[#allocation2 + $0x4] sm:$0x13 pattern:$0x75316420] }
 0x21c   : > { %v7023_v41 = vcombine.low %v7001_v26, %v7008_v9  ;;  %v6320_v25 = vunpack.i.h.s16 %v20000_v0  ;;  %v20056_v60 = vcombine.high %v20045_v15, %v20045_v15  ;;  %v6883_v21 = vcombine.high %v16136_v11, %v16136_v11 }
 0x21d   : > { %v7024_v30 = vcombine.low %v7015_v16, %v7022_v35  ;;  %v6486_v23 = vrot.slane %v6464_v34, %v18416_v7  ;;  %v6494_v18 = vcombine.low %v6472_v33, %v6479_v50  ;;  %v7041_v55 = vcombine.low %v20045_v15, %v20049_v46  ;;  %v18044_v35 = vld [vmem:[%s21973_s3 + $0xb8] sm:$0xff]  }
 0x21e   : > { %17422 = vmatpush3.bf16.msra.mxu0 %v18041_v6  ;;  %v7031_v2 = vrot.slane %v7023_v41, %v18416_v7  ;;  %v16159_v6 = vpack.i.b16 %v19679_v47, %v20056_v60  ;;  %v20069_v39 = vrot.slane %v16136_v11, %v18416_v7  ;;  %v20072_v31 = vrot.slane %v6883_v21, %v18416_v7 }
 0x21f   : > { %17423 = vmatprep.subr.bf16.mxu0 %v18042_v36  ;;  %v7038_v53 = vrot.slane %v7024_v30, %v18416_v7  ;;  %v6495_v26 = vcombine.low %v6486_v23, %v6493_v1  ;;  %v7057_v34 = vrot.slane %v7041_v55, %v18416_v7  ;;  %v16162_v50 = vpack.i.b16 %v19726_v38, %v19720_v3 }
 0x220   : > { %22089 = vst [vmem:[#allocation12_spill] sm:$0xff] %v20072_v31  ;;  %v7091_v9 = vcombine.low %v19734_v54, %v19743_v52  ;;  %v7042_v47 = vcombine.low %v16159_v6, %v19706_v29  ;;  %v7071_v11 = vrot.slane %v7043_v13, %v18416_v7  ;;  %v22015_v16 = vunpack.i.h.s16 %v20069_v39  ;;  %v16177_v54 = vld.sshfl [vmem:[#allocation2 + $0x8] sm:$0x13 pattern:$0x75316420] }
 0x221   : > { %v20079_v33 = vcombine.low %v7031_v2, %v7038_v53  ;;  %v6461_v1 = vcombine.low %v6453_v32, %v6460_v12  ;;  %v7072_v3 = vcombine.low %v19723_v24, %v7057_v34  ;;  %v7089_v38 = vcombine.low %v19716_v20, %v16162_v50  ;;  %v16178_v32 = vld.sshfl [vmem:[#allocation2 + $0xc] sm:$0x13 pattern:$0x75316420]  ;;  %v18045_v2 = vld [vmem:[%s21973_s3 + $0xc0] sm:$0xff]  }
 0x222   : > { %17424 = vmatpush3.bf16.msra.mxu0 %v18042_v36  ;;  %v7064_v52 = vrot.slane %v7042_v47, %v18416_v7  ;;  %v16165_v29 = vpack.i.b16 %v20069_v39, %v19766_v58  ;;  %v16166_v36 = vpack.i.b16 %v20072_v31, %v22015_v16  ;;  %v7302_v41 = vcombine.high %v16176_v63, %v16176_v63 }
 0x223   : > { %17425 = vmatprep.subr.bf16.mxu0 %v18043_v51  ;;  %v6509_v13 = vrot.slane %v6495_v26, %v18416_v7  ;;  %v20097_v30 = vpack.i.b16 %v20032_v19, %v6320_v25  ;;  %v7099_v24 = vrot.slane %v7089_v38, %v18416_v7  ;;  %v7309_v20 = vrot.slane %v16176_v63, %v18416_v7  ;;  %v20111_v26 = vld.sshfl [vmem:[#allocation2 + $0x10] sm:$0x13 pattern:$0x75316420] }
 0x224   : > { %v6502_v12 = vrot.slane %v6494_v18, %v18416_v7  ;;  %v7073_v21 = vcombine.low %v7064_v52, %v7071_v11  ;;  %v7092_v58 = vcombine.low %v16165_v29, %v16166_v36  ;;  %v7325_v23 = vcombine.high %v16177_v54, %v16177_v54 }
 0x225   : > { %v7080_v55 = vrot.slane %v7072_v3, %v18416_v7  ;;  %v7113_v25 = vrot.slane %v7091_v9, %v18416_v7  ;;  %v7121_v53 = vcombine.low %v7099_v24, %v19783_v10  ;;  %v7316_v6 = vrot.slane %v7302_v41, %v18416_v7 }
 0x226   : > { %17426 = vmatpush3.bf16.msra.mxu0 %v18043_v51  ;;  %v7087_v51 = vrot.slane %v7073_v21, %v18416_v7  ;;  %v7120_v18 = vrot.slane %v7092_v58, %v18416_v7  ;;  %v20114_v34 = vrot.slane %v16177_v54, %v18416_v7  ;;  %v7348_v50 = vcombine.high %v16178_v32, %v16178_v32  ;;  %v18046_v54 = vld [vmem:[%s21973_s3 + $0xc8] sm:$0xff]  }
 0x227   : > { %17427 = vmatprep.subr.bf16.mxu0 %v18044_v35  ;;  %v6510_v63 = vcombine.low %v6502_v12, %v6509_v13  ;;  %v6517_v47 = vrot.slane %v20097_v30, %v18416_v7  ;;  %v7317_v11 = vcombine.high %v7309_v20, %v7309_v20  ;;  %v20119_v9 = vrot.slane %v16178_v32, %v18416_v7 }
 0x228   : > { %v20121_v10 = vcombine.low %v7080_v55, %v7087_v51  ;;  %v7122_v3 = vcombine.low %v7113_v25, %v7120_v18  ;;  %v20124_v38 = vrot.slane %v7325_v23, %v18416_v7  ;;  %v20127_v52 = vrot.slane %v7348_v50, %v18416_v7  ;;  %v16181_v55 = vld.sshfl [vmem:[#allocation2 + $0x20] sm:$0x13 pattern:$0x75316420] }
 0x229   : > { %v7129_v29 = vrot.slane %v7121_v53, %v18416_v7  ;;  %v20135_v36 = vcombine.high %v20119_v9, %v20119_v9  ;;  %v7527_v41 = vunpack.i.h.s16 %v7316_v6  ;;  %v7525_v30 = vunpack.i.h.s16 %v7309_v20  ;;  %v16182_v51 = vld.sshfl [vmem:[#allocation2 + $0x24] sm:$0x13 pattern:$0x75316420] }
 0x22a   : > { %17428 = vmatpush3.bf16.msra.mxu0 %v18044_v35  ;;  %22090 = vst [vmem:[#allocation10_spill] sm:$0xff] %v20127_v52  ;;  %v20139_v35 = vrot.slane %v20111_v26, %v18416_v7  ;;  %v7136_v13 = vrot.slane %v7122_v3, %v18416_v7  ;;  %v22014_v24 = vunpack.i.h.s16 %v20114_v34  ;;  %v22012_v32 = vunpack.i.h.s16 %v20119_v9 }
 0x22b   : > { %17437 = vmatprep.subr.bf16.mxu0 %v18045_v2  ;;  %22091 = vst [vmem:[#allocation8_spill] sm:$0xff] %v20135_v36  ;;  %v7529_v12 = vunpack.i.h.s16 %v7317_v11  ;;  %v7537_v21 = vunpack.i.h.s16 %v20127_v52  ;;  %v7539_v58 = vunpack.i.h.s16 %v20135_v36  ;;  %v20151_v20 = vcombine.high %v20114_v34, %v20114_v34 }
 0x22c   : > { %22092 = vst [vmem:[#allocation11_spill] sm:$0xff] %v20139_v35  ;;  %v22013_v23 = vunpack.i.h.s16 %v20139_v35  ;;  %v20147_v25 = vcombine.low %v7129_v29, %v7136_v13  ;;  %v16203_v53 = vpack.i.b16 %v7317_v11, %v7527_v41  ;;  %v6947_v11 = vunpack.i.h.s16 %v20072_v31 }
 0x22d   : > { %17430 = vmatmul.mubr.bf16.vlgmr.msra.gmra.mrb[48].mxu0 %v6461_v1  ;;  %v18047_v1 = vld [vmem:[%s21973_s3 + $0xd0] sm:$0xff]   ;;  %v7594_v18 = vpack.i.b16 %v22014_v24, %v7529_v12  ;;  %v20164_v50 = vpack.i.b16 %v20135_v36, %v7537_v21  ;;  %v16202_v3 = vpack.i.b16 %v7316_v6, %v7525_v30  ;;  %v7424_v29 = vrot.slane %v16181_v55, %v18416_v7 }
 0x22e   : > { %17433 = vmatprep.mubr.bf16.mxu0 %v6510_v63  ;;  %17438 = vmatpush3.bf16.msra.mxu0 %v18045_v2  ;;  %v20161_v2 = vpack.i.b16 %v20127_v52, %v22012_v32  ;;  %v7599_v63 = vpack.i.b16 %v22013_v23, %v7539_v58  ;;  %v7440_v32 = vcombine.high %v16182_v51, %v16182_v51 }
 0x22f   : > { %17439 = vmatprep.subr.bf16.mxu0 %v18046_v54  ;;  %22094 = vst [vmem:[#allocation18_spill] sm:$0xff] %v20164_v50  ;;  %v7618_v41 = vcombine.low %v7594_v18, %v20124_v38  ;;  %v20176_v21 = vcombine.high %v20069_v39, %v20069_v39  ;;  %v7371_v58 = vcombine.high %v20111_v26, %v20111_v26  ;;  %v18048_v18 = vld [vmem:[%s21973_s3 + $0xd8] sm:$0xff]   ;;  %v7547_v26 = vunpack.i.h.s16 %v20049_v46 }
 0x230   : > { %22093 = vst [vmem:[#allocation19_spill] sm:$0xff] %v20161_v2  ;;  %v7619_v13 = vcombine.low %v20151_v20, %v20161_v2  ;;  %v7620_v12 = vcombine.low %v20164_v50, %v7599_v63  ;;  %v20181_v6 = vrot.slane %v16182_v51, %v18416_v7  ;;  %v6524_v30 = vrot.slane %v6517_v47, %v18416_v7 }
 0x231   : > { %22095 = vst [vmem:[#allocation17_spill] sm:$0xff] %v20176_v21  ;;  %v7617_v63 = vcombine.low %v16202_v3, %v16203_v53  ;;  %v20189_v23 = vrot.slane %v7440_v32, %v18416_v7  ;;  %v16167_v24 = vpack.i.b16 %v20176_v21, %v6947_v11  ;;  %v7550_v16 = vunpack.i.h.s16 %v7424_v29 }
 0x232   : > { %17440 = vmatpush3.bf16.msra.mxu0 %v18046_v54  ;;  %v7648_v54 = vrot.slane %v7620_v12, %v18416_v7  ;;  %v22023_v51 = vunpack.i.h.s16 %v20181_v6  ;;  %v7634_v47 = vrot.slane %v7618_v41, %v18416_v7  ;;  %v7641_v36 = vrot.slane %v7619_v13, %v18416_v7 }
 0x233   : > { %17441 = vmatprep.subr.bf16.mxu0 %v18047_v1  ;;  %22096 = vst [vmem:[#allocation20_spill] sm:$0xff] %v20189_v23  ;;  %v7417_v52 = vcombine.high %v16181_v55, %v16181_v55  ;;  %v7549_v53 = vunpack.i.h.s16 %v20056_v60  ;;  %v20200_v32 = vcombine.high %v20139_v35, %v20139_v35  ;;  %v20203_v11 = vrot.slane %v7371_v58, %v18416_v7  ;;  %v18049_v55 = vld [vmem:[%s21973_s3 + $0xe0] sm:$0xff]  }
 0x234   : > { %v7545_v3 = vunpack.i.h.s16 %v20045_v15  ;;  %v20209_v41 = vpack.i.b16 %v20189_v23, %v22023_v51  ;;  %v7432_v13 = vcombine.high %v7424_v29, %v7424_v29  ;;  %v16207_v58 = vpack.i.b16 %v20056_v60, %v7547_v26  ;;  %v16183_v51 = vld.sshfl [vmem:[#allocation2 + $0x28] sm:$0x13 pattern:$0x75316420] }
 0x235   : > { %17434 = vmatmul.mubr.bf16.gmra.mrb[60].mxu0 %v6524_v30  ;;  %v7604_v12 = vpack.i.b16 %v7550_v16, %v7549_v53  ;;  %v16184_v30 = vld.sshfl [vmem:[#allocation2 + $0x2c] sm:$0x13 pattern:$0x75316420]  ;;  %v7431_v31 = vrot.slane %v7417_v52, %v18416_v7  ;;  %v7144_v35 = vrot.slane %v16167_v24, %v18416_v7  ;;  %v7463_v24 = vcombine.high %v16183_v51, %v16183_v51 }
 0x236   : > { %17442 = vmatpush3.bf16.msra.mxu0 %v18047_v1  ;;  %17453 = vmatprep.mubr.bf16.mxu0 %v20079_v33  ;;  %v7627_v33 = vrot.slane %v7617_v63, %v18416_v7  ;;  %v7650_v1 = vcombine.low %v7641_v36, %v7648_v54  ;;  %v7669_v50 = vcombine.low %v7432_v13, %v20209_v41  ;;  %v18050_v60 = vld [vmem:[%s21973_s3 + $0xe8] sm:$0xff]  }
 0x237   : > { %17443 = vmatprep.subr.bf16.mxu0 %v18048_v18  ;;  %v16206_v2 = vpack.i.b16 %v20049_v46, %v7545_v3  ;;  %v7666_v63 = vcombine.low %v20203_v11, %v20200_v32  ;;  %v7668_v52 = vcombine.low %v7604_v12, %v7431_v31  ;;  %v7486_v36 = vcombine.high %v16184_v30, %v16184_v30 }
 0x238   : > { %v7649_v21 = vcombine.low %v7627_v33, %v7634_v47  ;;  %v20226_v16 = vrot.slane %v7650_v1, %v18416_v7  ;;  %v20229_v29 = vrot.slane %v16184_v30, %v18416_v7  ;;  %v20232_v46 = vrot.slane %v16183_v51, %v18416_v7 }
 0x239   : > { %v7697_v26 = vrot.slane %v7669_v50, %v18416_v7  ;;  %v20240_v47 = vcombine.high %v20181_v6, %v20181_v6  ;;  %v20243_v31 = vrot.slane %v7144_v35, %v18416_v7  ;;  %v20246_v53 = vrot.slane %v7666_v63, %v18416_v7  ;;  %v18051_v50 = vld [vmem:[%s21973_s3 + $0xf0] sm:$0xff]  }
 0x23a   : > { %17444 = vmatpush3.bf16.msra.mxu0 %v18048_v18  ;;  %v7667_v18 = vcombine.low %v16206_v2, %v16207_v58  ;;  %v20235_v54 = vrot.slane %v7649_v21, %v18416_v7  ;;  %v7557_v2 = vunpack.i.h.s16 %v20189_v23  ;;  %v8167_v51 = vunpack.i.h.s16 %v19887_v59  ;;  %v16224_v58 = vld.sshfl [vmem:[#allocation2 + $0x14] sm:$0x32 pattern:$0x75316420] }
 0x23b   : > { %17445 = vmatprep.subr.bf16.mxu0 %v18049_v55  ;;  %v7690_v3 = vrot.slane %v7668_v52, %v18416_v7  ;;  %v20257_v35 = vrot.slane %v7486_v36, %v18416_v7  ;;  %v20267_v1 = vrot.slane %v7463_v24, %v18416_v7  ;;  %v20271_v13 = vcombine.high %v20232_v46, %v20232_v46 }
 0x23c   : > { %v20264_v33 = vrot.slane %v7667_v18, %v18416_v7  ;;  %v8169_v12 = vunpack.i.h.s16 %v19895_v22  ;;  %v7559_v63 = vunpack.i.h.s16 %v20240_v47  ;;  %v16246_v36 = vpack.i.b16 %v19887_v59, %v19881_v28 }
 0x23d   : > { %v20274_v30 = vcombine.low %v7690_v3, %v7697_v26  ;;  %v16247_v24 = vpack.i.b16 %v19895_v22, %v8167_v51  ;;  %v16249_v23 = vpack.i.b16 %v19922_v14, %v19909_v49  ;;  %v18052_v26 = vld [vmem:[%s21973_s3 + $0xf8] sm:$0xff]   ;;  %v7567_v3 = vunpack.i.h.s16 %v20257_v35 }
 0x23e   : > { %17446 = vmatpush3.bf16.msra.mxu0 %v18049_v55  ;;  %v20261_v55 = vcombine.high %v20229_v29, %v20229_v29  ;;  %v16248_v21 = vpack.i.b16 %v19905_v61, %v8169_v12  ;;  %v8253_v28 = vcombine.low %v19869_v4, %v19874_v48  ;;  %v8024_v59 = vcombine.high %v16224_v58, %v16224_v58  ;;  %v22098_v49 = vld [vmem:[#allocation9_spill] sm:$0xff] }
 0x23f   : > { %17447 = vmatprep.subr.bf16.mxu0 %v18050_v60  ;;  %22097 = vst [vmem:[#allocation16_spill] sm:$0xff] %v20274_v30  ;;  %v20293_v22 = vpack.i.b16 %v20240_v47, %v7557_v2  ;;  %v8254_v61 = vcombine.low %v16246_v36, %v16247_v24  ;;  %v8256_v51 = vcombine.low %v22098_v49, %v16249_v23  ;;  %v8177_v18 = vunpack.i.h.s16 %v19922_v14  ;;  %v18053_v23 = vld [vmem:[%s21973_s3 + $0x100] sm:$0xff]  }
 0x240   : > { %v7716_v12 = vcombine.low %v20267_v1, %v20271_v13  ;;  %v8031_v30 = vrot.slane %v16224_v58, %v18416_v7  ;;  %v20302_v52 = vrot.slane %v8024_v59, %v18416_v7  ;;  %v8263_v4 = vrot.slane %v8253_v28, %v18416_v7 }
 0x241   : > { %v8270_v48 = vrot.slane %v8254_v61, %v18416_v7  ;;  %v22099_v14 = vunpack.i.h.s16 %v20232_v46  ;;  %v8179_v36 = vunpack.i.h.s16 %v19931_v43  ;;  %v8187_v59 = vunpack.i.h.s16 %v19945_v5 }
 0x242   : > { %17448 = vmatpush3.bf16.msra.mxu0 %v18050_v60  ;;  %v8255_v60 = vcombine.low %v16248_v21, %v19890_v42  ;;  %v8284_v42 = vrot.slane %v8256_v51, %v18416_v7  ;;  %v20315_v58 = vcombine.high %v8031_v30, %v8031_v30  ;;  %v8189_v61 = vunpack.i.h.s16 %v19991_v45 }
 0x243   : > { %17449 = vmatprep.subr.bf16.mxu0 %v18051_v50  ;;  %v20313_v21 = vpack.i.b16 %v22099_v14, %v7559_v63  ;;  %v8285_v24 = vcombine.low %v8263_v4, %v8270_v48  ;;  %v22100_v49 = vunpack.i.h.s16 %v20229_v29  ;;  %v16250_v30 = vpack.i.b16 %v19931_v43, %v8177_v18 }
 0x244   : > { %v8277_v2 = vrot.slane %v8255_v60, %v18416_v7  ;;  %v16229_v60 = vld.sshfl [vmem:[#allocation2 + $0x30] sm:$0x32 pattern:$0x75316420]  ;;  %v16251_v51 = vpack.i.b16 %v19937_v56, %v8179_v36  ;;  %v8303_v56 = vcombine.low %v20302_v52, %v20315_v58 }
 0x245   : > { %v20327_v63 = vpack.i.b16 %v20257_v35, %v22100_v49  ;;  %v8293_v4 = vrot.slane %v8285_v24, %v18416_v7  ;;  %v18054_v49 = vld [vmem:[%s21973_s3 + $0x108] sm:$0xff]   ;;  %v8144_v18 = vcombine.high %v16229_v60, %v16229_v60 }
 0x246   : > { %17450 = vmatpush3.bf16.msra.mxu0 %v18051_v50  ;;  %v20319_v50 = vcombine.high %v20302_v52, %v20302_v52  ;;  %v8286_v28 = vcombine.low %v8277_v2, %v8284_v42  ;;  %v16253_v2 = vpack.i.b16 %v19991_v45, %v8187_v59  ;;  %v16254_v42 = vpack.i.b16 %v19962_v8, %v8189_v61 }
 0x247   : > { %17451 = vmatprep.subr.bf16.mxu0 %v18052_v26  ;;  %v8302_v43 = vcombine.low %v16250_v30, %v16251_v51  ;;  %v8197_v45 = vunpack.i.h.s16 %v19981_v44  ;;  %v20349_v8 = vpack.i.b16 %v20261_v55, %v7567_v3  ;;  %v8319_v59 = vrot.slane %v8303_v56, %v18416_v7  ;;  %v18055_v3 = vld [vmem:[%s21973_s3 + $0x110] sm:$0xff]  }
 0x248   : > { %v16252_v14 = vpack.i.b16 %v19945_v5, %v20319_v50  ;;  %v8300_v48 = vrot.slane %v8286_v28, %v18416_v7  ;;  %v8151_v5 = vrot.slane %v16229_v60, %v18416_v7  ;;  %v8305_v24 = vcombine.low %v16254_v42, %v19968_v57 }
 0x249   : > { %v8312_v28 = vrot.slane %v8302_v43, %v18416_v7  ;;  %v20354_v61 = vrot.slane %v8144_v18, %v18416_v7  ;;  %v8199_v30 = vunpack.i.h.s16 %v20006_v27  ;;  %v22102_v42 = vunpack.i.h.s16 %v20069_v39 }
 0x24a   : > { %17452 = vmatpush3.bf16.msra.mxu0 %v18052_v26  ;;  %v20343_v26 = vcombine.low %v8293_v4, %v8300_v48  ;;  %v8304_v36 = vcombine.low %v16252_v14, %v16253_v2  ;;  %v8333_v57 = vrot.slane %v8305_v24, %v18416_v7  ;;  %v20365_v14 = vcombine.high %v8151_v5, %v8151_v5  ;;  %v18056_v5 = vld [vmem:[%s21973_s3 + $0x118] sm:$0xff]  }
 0x24b   : > { %17461 = vmatprep.subr.bf16.mxu0 %v18053_v23  ;;  %v8334_v51 = vcombine.low %v8312_v28, %v8319_v59  ;;  %v16257_v48 = vpack.i.b16 %v19998_v37, %v8199_v30  ;;  %v7715_v56 = vcombine.low %v20293_v22, %v20313_v21  ;;  %v16298_v59 = vpack.i.b16 %v20045_v15, %v20200_v32  ;;  %v22104_v30 = vld [vmem:[#allocation11_spill] sm:$0xff] }
 0x24c   : > { %v8326_v60 = vrot.slane %v8304_v36, %v18416_v7  ;;  %v7717_v36 = vcombine.low %v20327_v63, %v20349_v8  ;;  %v22103_v8 = vld [vmem:[#allocation19_spill] sm:$0xff] }
 0x24d   : > { %17454 = vmatmul.mubr.bf16.vlgmr.msra.gmra.mrb[48].mxu0 %v20121_v10  ;;  %v16255_v10 = vpack.i.b16 %v19981_v44, %v19977_v17  ;;  %v8353_v17 = vcombine.low %v19988_v62, %v20000_v0  ;;  %v22101_v44 = vunpack.i.h.s16 %v20261_v55 }
 0x24e   : > { %17457 = vmatprep.mubr.bf16.mxu0 %v20147_v25  ;;  %17462 = vmatpush3.bf16.msra.mxu0 %v18053_v23  ;;  %v8207_v25 = vunpack.i.h.s16 %v20354_v61  ;;  %v16256_v23 = vpack.i.b16 %v20006_v27, %v8197_v45  ;;  %v8335_v4 = vcombine.low %v8326_v60, %v8333_v57  ;;  %v16258_v27 = vpack.i.b16 %v20354_v61, %v20032_v19 }
 0x24f   : > { %17463 = vmatprep.subr.bf16.mxu0 %v18054_v49  ;;  %v8351_v2 = vcombine.low %v19971_v40, %v16255_v10  ;;  %v20377_v43 = vpack.i.b16 %v22102_v42, %v22101_v44  ;;  %v8342_v40 = vrot.slane %v8334_v51, %v18416_v7  ;;  %v8375_v19 = vrot.slane %v8353_v17, %v18416_v7  ;;  %v22105_v10 = vld [vmem:[#allocation18_spill] sm:$0xff] }
 0x250   : > { %v16259_v18 = vpack.i.b16 %v20365_v14, %v8207_v25  ;;  %v8349_v37 = vrot.slane %v8335_v4, %v18416_v7  ;;  %v8352_v62 = vcombine.low %v16256_v23, %v16257_v48  ;;  %v8880_v60 = vcombine.low %v20114_v34, %v20124_v38  ;;  %v16273_v25 = vld.sshfl [vmem:[#allocation2 + $0x18] sm:$0x13 pattern:$0x75316420]  ;;  %v22107_v4 = vld [vmem:[#allocation12_spill] sm:$0xff] }
 0x251   : > { %v8361_v0 = vrot.slane %v8351_v2, %v18416_v7  ;;  %v8882_v51 = vcombine.low %v22105_v10, %v22104_v30  ;;  %v22106_v23 = vcombine.low %v20235_v54, %v20226_v16  ;;  %v7718_v15 = vcombine.low %v20377_v43, %v22107_v4 }
 0x252   : > { %17464 = vmatpush3.bf16.msra.mxu0 %v18054_v49  ;;  %v8354_v24 = vcombine.low %v16258_v27, %v16259_v18  ;;  %v16295_v49 = vpack.i.b16 %v20119_v9, %v20151_v20  ;;  %v20395_v45 = vcombine.low %v8342_v40, %v8349_v37  ;;  %v8368_v28 = vrot.slane %v8352_v62, %v18416_v7  ;;  %v16278_v18 = vld.sshfl [vmem:[#allocation2 + $0x34] sm:$0x13 pattern:$0x75316420] }
 0x253   : > { %17465 = vmatprep.subr.bf16.mxu0 %v18055_v3  ;;  %v8883_v2 = vcombine.low %v20203_v11, %v16298_v59  ;;  %v8890_v44 = vrot.slane %v8880_v60, %v18416_v7  ;;  %v8904_v42 = vrot.slane %v8882_v51, %v18416_v7  ;;  %v8657_v43 = vcombine.high %v16273_v25, %v16273_v25 }
 0x254   : > { %v8382_v63 = vrot.slane %v8354_v24, %v18416_v7  ;;  %v8881_v57 = vcombine.low %v16295_v49, %v22103_v8  ;;  %v8383_v48 = vcombine.low %v8361_v0, %v8368_v28  ;;  %v20422_v27 = vrot.slane %v16273_v25, %v18416_v7  ;;  %v18058_v49 = vld [vmem:[%s21973_s3 + $0x128] sm:$0xff]  }
 0x255   : > { %17458 = vmatmul.mubr.bf16.gmra.mrb[64].mxu0 %v20243_v31  ;;  %v18057_v31 = vld [vmem:[%s21973_s3 + $0x120] sm:$0xff]   ;;  %v8911_v54 = vrot.slane %v8883_v2, %v18416_v7  ;;  %v20426_v0 = vrot.slane %v8657_v43, %v18416_v7  ;;  %v8772_v59 = vcombine.high %v16278_v18, %v16278_v18  ;;  %v20447_v10 = vrot.slane %v16278_v18, %v18416_v7 }
 0x256   : > { %17466 = vmatpush3.bf16.msra.mxu0 %v18055_v3  ;;  %17477 = vmatprep.mubr.bf16.mxu0 %v22106_v23  ;;  %v8384_v17 = vcombine.low %v8375_v19, %v8382_v63  ;;  %v8897_v3 = vrot.slane %v8881_v57, %v18416_v7  ;;  %v8391_v16 = vrot.slane %v8383_v48, %v18416_v7 }
 0x257   : > { %17467 = vmatprep.subr.bf16.mxu0 %v18056_v5  ;;  %v8913_v62 = vcombine.low %v8904_v42, %v8911_v54  ;;  %v20430_v24 = vcombine.high %v20422_v27, %v20422_v27  ;;  %v8932_v19 = vcombine.low %v20293_v22, %v20232_v46  ;;  %v8930_v8 = vcombine.low %v20422_v27, %v20426_v0 }
 0x258   : > { %v8398_v40 = vrot.slane %v8384_v17, %v18416_v7  ;;  %v8912_v37 = vcombine.low %v8890_v44, %v8897_v3  ;;  %v20450_v51 = vrot.slane %v8772_v59, %v18416_v7  ;;  %v16304_v25 = vpack.i.b16 %v20229_v29, %v20271_v13  ;;  %v20460_v44 = vld.sshfl [vmem:[#allocation2 + $0x14] sm:$0x13 pattern:$0x75316420]  ;;  %v18060_v59 = vld [vmem:[%s21973_s3 + $0x138] sm:$0xff]  }
 0x259   : > { %v8927_v60 = vrot.slane %v8913_v62, %v18416_v7  ;;  %v16301_v63 = vpack.i.b16 %v20181_v6, %v20430_v24  ;;  %v8960_v57 = vrot.slane %v8932_v19, %v18416_v7  ;;  %v8946_v2 = vrot.slane %v8930_v8, %v18416_v7  ;;  %v18059_v3 = vld [vmem:[%s21973_s3 + $0x130] sm:$0xff]  }
 0x25a   : > { %17468 = vmatpush3.bf16.msra.mxu0 %v18056_v5  ;;  %v20437_v28 = vcombine.low %v8391_v16, %v8398_v40  ;;  %v8920_v5 = vrot.slane %v8912_v37, %v18416_v7  ;;  %v8980_v17 = vcombine.low %v20069_v39, %v22107_v4  ;;  %v7739_v42 = vrot.slane %v7717_v36, %v18416_v7  ;;  %v22108_v39 = vld [vmem:[#allocation16_spill] sm:$0xff]  ;;  %v22109_v40 = vld [vmem:[#allocation17_spill] sm:$0xff] }
 0x25b   : > { %17469 = vmatprep.subr.bf16.mxu0 %v18057_v31  ;;  %v8931_v48 = vcombine.low %v16301_v63, %v20209_v41  ;;  %v8834_v16 = vunpack.i.h.s16 %v20447_v10  ;;  %v8978_v41 = vcombine.low %v20267_v1, %v16304_v25  ;;  %v7698_v54 = vcombine.low %v20246_v53, %v20264_v33 }
 0x25c   : > { %v20454_v23 = vcombine.low %v8920_v5, %v8927_v60  ;;  %v7713_v4 = vrot.slane %v22108_v39, %v18416_v7  ;;  %v8961_v18 = vcombine.low %v20264_v33, %v8946_v2  ;;  %v16307_v37 = vpack.i.b16 %v20447_v10, %v22109_v40 }
 0x25d   : > { %v8953_v43 = vrot.slane %v8931_v48, %v18416_v7  ;;  %v16308_v36 = vpack.i.b16 %v20450_v51, %v8834_v16  ;;  %v20483_v62 = vrot.slane %v20460_v44, %v18416_v7  ;;  %v7725_v53 = vrot.slane %v7715_v56, %v18416_v7 }
 0x25e   : > { %17470 = vmatpush3.bf16.msra.mxu0 %v18057_v31  ;;  %v7746_v31 = vrot.slane %v7718_v15, %v18416_v7  ;;  %v8988_v15 = vrot.slane %v8978_v41, %v18416_v7  ;;  %v7732_v33 = vrot.slane %v7716_v12, %v18416_v7  ;;  %v9416_v5 = vunpack.i.h.s16 %v20124_v38 }
 0x25f   : > { %17471 = vmatprep.subr.bf16.mxu0 %v18058_v49  ;;  %v8962_v19 = vcombine.low %v8953_v43, %v8960_v57  ;;  %v9002_v63 = vrot.slane %v8980_v17, %v18416_v7  ;;  %v8969_v22 = vrot.slane %v8961_v18, %v18416_v7  ;;  %v9418_v56 = vunpack.i.h.s16 %v20151_v20  ;;  %v18061_v18 = vld [vmem:[%s21973_s3 + $0x140] sm:$0xff]  }
 0x260   : > { %v7748_v60 = vcombine.low %v7739_v42, %v7746_v31  ;;  %v9010_v8 = vcombine.low %v8988_v15, %v7739_v42  ;;  %v9426_v12 = vunpack.i.h.s16 %v20203_v11  ;;  %v9428_v25 = vunpack.i.h.s16 %v20200_v32 }
 0x261   : > { %v8976_v21 = vrot.slane %v8962_v19, %v18416_v7  ;;  %v9429_v48 = vunpack.i.h.s16 %v20483_v62  ;;  %v22110_v2 = vunpack.i.h.s16 %v20114_v34  ;;  %v7747_v17 = vcombine.low %v7725_v53, %v7732_v33 }
 0x262   : > { %17472 = vmatpush3.bf16.msra.mxu0 %v18058_v49  ;;  %v8981_v49 = vcombine.low %v16307_v37, %v16308_v36  ;;  %v16345_v41 = vpack.i.b16 %v20151_v20, %v9416_v5  ;;  %v22111_v39 = vunpack.i.h.s16 %v20119_v9  ;;  %v22112_v36 = vunpack.i.h.s16 %v22104_v30  ;;  %v22113_v9 = vld [vmem:[#allocation10_spill] sm:$0xff] }
 0x263   : > { %17473 = vmatprep.subr.bf16.mxu0 %v18059_v3  ;;  %v16344_v31 = vpack.i.b16 %v20124_v38, %v22110_v2  ;;  %v20508_v42 = vcombine.low %v8969_v22, %v8976_v21  ;;  %v16347_v38 = vpack.i.b16 %v20200_v32, %v9426_v12  ;;  %v7706_v15 = vrot.slane %v7698_v54, %v18416_v7 }
 0x264   : > { %v9009_v57 = vrot.slane %v8981_v49, %v18416_v7  ;;  %v9483_v43 = vpack.i.b16 %v22111_v39, %v9418_v56  ;;  %v16346_v34 = vpack.i.b16 %v20203_v11, %v22112_v36  ;;  %v7762_v20 = vrot.slane %v7748_v60, %v18416_v7  ;;  %v22114_v49 = vld [vmem:[#allocation8_spill] sm:$0xff] }
 0x265   : > { %v9506_v53 = vcombine.low %v16344_v31, %v16345_v41  ;;  %v9018_v19 = vrot.slane %v9010_v8, %v18416_v7  ;;  %v7755_v11 = vrot.slane %v7747_v17, %v18416_v7  ;;  %v9438_v54 = vunpack.i.h.s16 %v20430_v24  ;;  %v18062_v8 = vld [vmem:[%s21973_s3 + $0x148] sm:$0xff]   ;;  %v22117_v17 = vld [vmem:[#allocation20_spill] sm:$0xff] }
 0x266   : > { %17474 = vmatpush3.bf16.msra.mxu0 %v18059_v3  ;;  %v9011_v37 = vcombine.low %v9002_v63, %v9009_v57  ;;  %v9488_v3 = vpack.i.b16 %v9429_v48, %v9428_v25  ;;  %v9507_v33 = vcombine.low %v9483_v43, %v22113_v9  ;;  %v9508_v63 = vcombine.low %v22114_v49, %v16346_v34 }
 0x267   : > { %17475 = vmatprep.subr.bf16.mxu0 %v18060_v59  ;;  %v9516_v32 = vrot.slane %v9506_v53, %v18416_v7  ;;  %v7714_v60 = vcombine.low %v7706_v15, %v7713_v4  ;;  %v7763_v12 = vcombine.low %v7755_v11, %v7762_v20  ;;  %v22115_v25 = vunpack.i.h.s16 %v20181_v6  ;;  %v18063_v6 = vld [vmem:[%s21973_s3 + $0x150] sm:$0xff]   ;;  %v18064_v53 = vld [vmem:[%s21973_s3 + $0x158] sm:$0xff]  }
 0x268   : > { %v9025_v5 = vrot.slane %v9011_v37, %v18416_v7  ;;  %v9509_v22 = vcombine.low %v16347_v38, %v9488_v3  ;;  %v9523_v30 = vrot.slane %v9507_v33, %v18416_v7  ;;  %v9530_v56 = vrot.slane %v9508_v63, %v18416_v7 }
 0x269   : > { %v9493_v48 = vpack.i.b16 %v22115_v25, %v9438_v54  ;;  %v22116_v2 = vunpack.i.h.s16 %v20232_v46  ;;  %v9446_v43 = vunpack.i.h.s16 %v20267_v1  ;;  %v7770_v37 = vrot.slane %v22109_v40, %v18416_v7 }
 0x26a   : > { %17476 = vmatpush3.bf16.msra.mxu0 %v18060_v59  ;;  %v20533_v21 = vcombine.low %v9018_v19, %v9025_v5  ;;  %v9537_v59 = vrot.slane %v9509_v22, %v18416_v7  ;;  %v9538_v57 = vcombine.low %v9516_v32, %v9523_v30  ;;  %v22118_v3 = vunpack.i.h.s16 %v20229_v29  ;;  %v18065_v19 = vld [vmem:[%s21973_s3 + $0x160] sm:$0xff]   ;;  %v18068_v22 = vld [vmem:[%s21973_s3 + $0x178] sm:$0xff]   ;;  %v16371_v30 = vld.sshfl [vmem:[#allocation2 + $0x34] sm:$0x32 pattern:$0x75316420] }
 0x26b   : > { %17485 = vmatprep.subr.bf16.mxu0 %v18061_v18  ;;  %v16350_v4 = vpack.i.b16 %v20267_v1, %v22116_v2  ;;  %v9557_v41 = vcombine.low %v9493_v48, %v22117_v17  ;;  %v9448_v1 = vunpack.i.h.s16 %v20271_v13  ;;  %v16351_v38 = vpack.i.b16 %v20271_v13, %v9446_v43  ;;  %v18073_v43 = vld [vmem:[%s21973_s3 + $0x1a0] sm:$0xff]  }
 0x26c   : > { %v9539_v31 = vcombine.low %v9530_v56, %v9537_v59  ;;  %v20551_v46 = vrot.slane %v9538_v57, %v18416_v7  ;;  %v7777_v20 = vrot.slane %v7770_v37, %v18416_v7  ;;  %v9605_v9 = vcombine.low %v20257_v35, %v20261_v55  ;;  %v18066_v35 = vld [vmem:[%s21973_s3 + $0x168] sm:$0xff]  }
 0x26d   : > { %17478 = vmatmul.mubr.bf16.vlgmr.msra.gmra.mrb[48].mxu0 %v7714_v60  ;;  %v9558_v39 = vcombine.low %v20240_v47, %v16350_v4  ;;  %v9498_v15 = vpack.i.b16 %v22118_v3, %v9448_v1  ;;  %v10066_v55 = vunpack.i.h.s16 %v20302_v52  ;;  %v10068_v49 = vunpack.i.h.s16 %v20315_v58  ;;  %v18070_v59 = vld [vmem:[%s21973_s3 + $0x188] sm:$0xff]   ;;  %v18077_v1 = vld [vmem:[%s21973_s3 + $0x1c0] sm:$0xff]  }
 0x26e   : > { %17481 = vmatprep.mubr.bf16.mxu0 %v7763_v12  ;;  %17486 = vmatpush3.bf16.msra.mxu0 %v18061_v18  ;;  %v20554_v36 = vrot.slane %v9539_v31, %v18416_v7  ;;  %v20557_v18 = vrot.slane %v9557_v41, %v18416_v7  ;;  %v20581_v29 = vrot.slane %v9605_v9, %v18416_v7  ;;  %v8209_v60 = vunpack.i.h.s16 %v20365_v14  ;;  %v18072_v41 = vld [vmem:[%s21973_s3 + $0x198] sm:$0xff]   ;;  %v18074_v37 = vld [vmem:[%s21973_s3 + $0x1a8] sm:$0xff]  }
 0x26f   : > { %17487 = vmatprep.subr.bf16.mxu0 %v18062_v8  ;;  %v20560_v47 = vrot.slane %v9558_v39, %v18416_v7  ;;  %v9604_v33 = vcombine.low %v16351_v38, %v9498_v15  ;;  %v20597_v63 = vpack.i.b16 %v20315_v58, %v10066_v55  ;;  %v20603_v11 = vpack.i.b16 %v20319_v50, %v10068_v49  ;;  %v18069_v58 = vld [vmem:[%s21973_s3 + $0x180] sm:$0xff]   ;;  %v16326_v15 = vld.sshfl [vmem:[#allocation2 + $0x30] sm:$0x13 pattern:$0x75316420] }
 0x270   : > { %v9554_v40 = vcombine.low %v20551_v46, %v20554_v36  ;;  %v8160_v54 = vcombine.high %v20354_v61, %v20354_v61  ;;  %v10040_v56 = vrot.slane %v16371_v30, %v18416_v7  ;;  %v10242_v57 = vcombine.low %v20354_v61, %v20365_v14  ;;  %v18071_v61 = vld [vmem:[%s21973_s3 + $0x190] sm:$0xff]   ;;  %v16363_v49 = vld.sshfl [vmem:[#allocation2 + $0xc] sm:$0x32 pattern:$0x75316420] }
 0x271   : > { %v9588_v34 = vcombine.low %v20557_v18, %v20560_v47  ;;  %v20578_v13 = vrot.slane %v9604_v33, %v18416_v7  ;;  %v10191_v32 = vcombine.low %v20597_v63, %v20603_v11  ;;  %v8836_v38 = vunpack.i.h.s16 %v20450_v51 }
 0x272   : > { %17488 = vmatpush3.bf16.msra.mxu0 %v18062_v8  ;;  %v10033_v8 = vcombine.high %v16371_v30, %v16371_v30  ;;  %v16260_v12 = vpack.i.b16 %v8160_v54, %v8209_v60  ;;  %v20622_v25 = vcombine.high %v10040_v56, %v10040_v56  ;;  %v10264_v17 = vrot.slane %v10242_v57, %v18416_v7  ;;  %v16362_v60 = vld.sshfl [vmem:[#allocation2 + $0x8] sm:$0x32 pattern:$0x75316420]  ;;  %v18081_v57 = vld [vmem:[%s21973_s3 + $0x1e0] sm:$0xff]  }
 0x273   : > { %17489 = vmatprep.subr.bf16.mxu0 %v18063_v6  ;;  %v9636_v5 = vcombine.low %v20578_v13, %v20581_v29  ;;  %v20660_v3 = vcombine.high %v20447_v10, %v20447_v10  ;;  %v9375_v9 = vcombine.high %v16326_v15, %v16326_v15  ;;  %v9382_v33 = vrot.slane %v16326_v15, %v18416_v7 }
 0x274   : > { %v20615_v50 = vrot.slane %v10033_v8, %v18416_v7  ;;  %v8406_v31 = vrot.slane %v16260_v12, %v18416_v7  ;;  %v9436_v30 = vunpack.i.h.s16 %v20426_v0  ;;  %v9841_v8 = vcombine.high %v16363_v49, %v16363_v49 }
 0x275   : > { %17482 = vmatmul.mubr.bf16.gmra.mrb[68].mxu0 %v7777_v20  ;;  %v18078_v20 = vld [vmem:[%s21973_s3 + $0x1c8] sm:$0xff]   ;;  %v9389_v55 = vrot.slane %v9375_v9, %v18416_v7  ;;  %v9848_v56 = vrot.slane %v16363_v49, %v18416_v7  ;;  %v9260_v12 = vcombine.high %v20460_v44, %v20460_v44  ;;  %v9644_v18 = vrot.slane %v9636_v5, %v18416_v7  ;;  %v16366_v5 = vld.sshfl [vmem:[#allocation2 + $0x18] sm:$0x32 pattern:$0x75316420] }
 0x276   : > { %17490 = vmatpush3.bf16.msra.mxu0 %v18063_v6  ;;  %17501 = vmatprep.mubr.bf16.mxu0 %v20343_v26  ;;  %v18067_v26 = vld [vmem:[%s21973_s3 + $0x170] sm:$0xff]   ;;  %v10096_v48 = vunpack.i.h.s16 %v20615_v50  ;;  %v16400_v2 = vpack.i.b16 %v20615_v50, %v8160_v54  ;;  %v16349_v36 = vpack.i.b16 %v20430_v24, %v9436_v30  ;;  %v10049_v11 = vcombine.high %v20615_v50, %v20615_v50 }
 0x277   : > { %17491 = vmatprep.subr.bf16.mxu0 %v18064_v53  ;;  %v18075_v6 = vld [vmem:[%s21973_s3 + $0x1b0] sm:$0xff]   ;;  %v9274_v10 = vrot.slane %v9260_v12, %v18416_v7  ;;  %v16367_v12 = vld.sshfl [vmem:[#allocation2 + $0x24] sm:$0x32 pattern:$0x75316420] }
 0x278   : > { %v16401_v4 = vpack.i.b16 %v20622_v25, %v10096_v48  ;;  %v9434_v48 = vunpack.i.h.s16 %v20422_v27  ;;  %v18082_v27 = vld [vmem:[%s21973_s3 + $0x1e8] sm:$0xff]  }
 0x27a   : > { %17492 = vmatpush3.bf16.msra.mxu0 %v18064_v53  ;;  %v10243_v14 = vcombine.low %v16400_v2, %v16401_v4  ;;  %v16309_v53 = vpack.i.b16 %v20660_v3, %v8836_v38  ;;  %v9454_v2 = vunpack.i.h.s16 %v9382_v33  ;;  %v9817_v4 = vcombine.high %v16362_v60, %v16362_v60 }
 0x27b   : > { %17493 = vmatprep.subr.bf16.mxu0 %v18065_v19  ;;  %v16348_v24 = vpack.i.b16 %v20426_v0, %v9434_v48 }
 0x27e   : > { %17494 = vmatpush3.bf16.msra.mxu0 %v18065_v19  ;;  %v9033_v19 = vrot.slane %v16309_v53, %v18416_v7 }
 0x27f   : > { %17495 = vmatprep.subr.bf16.mxu0 %v18066_v35 }
 0x282   : > { %17496 = vmatpush3.bf16.msra.mxu0 %v18066_v35  ;;  %v18079_v35 = vld [vmem:[%s21973_s3 + $0x1d0] sm:$0xff]  }
 0x283   : > { %17497 = vmatprep.subr.bf16.mxu0 %v18067_v26 }
 0x286   : > { %17498 = vmatpush3.bf16.msra.mxu0 %v18067_v26  ;;  %v9390_v26 = vcombine.high %v9382_v33, %v9382_v33 }
 0x287   : > { %17499 = vmatprep.subr.bf16.mxu0 %v18068_v22 }
 0x288   : > { %v9458_v54 = vunpack.i.h.s16 %v9390_v26 }
 0x28a   : > { %17500 = vmatpush3.bf16.msra.mxu0 %v18068_v22  ;;  %v16364_v22 = vld.sshfl [vmem:[#allocation2 + $0x10] sm:$0x32 pattern:$0x75316420]  ;;  %v9503_v46 = vpack.i.b16 %v8834_v16, %v9458_v54  ;;  %v16352_v16 = vpack.i.b16 %v9389_v55, %v9454_v2  ;;  %v9602_v54 = vrot.slane %v9588_v34, %v18416_v7 }
 0x28b   : > { %17509 = vmatprep.subr.bf16.mxu0 %v18069_v58 }
 0x28d   : > { %17502 = vmatmul.mubr.bf16.vlgmr.msra.gmra.mrb[48].mxu0 %v20395_v45  ;;  %v10271_v45 = vrot.slane %v10243_v14, %v18416_v7  ;;  %v9275_v14 = vcombine.high %v20483_v62, %v20483_v62 }
 0x28e   : > { %17505 = vmatprep.mubr.bf16.mxu0 %v20437_v28  ;;  %17510 = vmatpush3.bf16.msra.mxu0 %v18069_v58  ;;  %v8413_v28 = vrot.slane %v8406_v31, %v18416_v7  ;;  %v9456_v58 = vunpack.i.h.s16 %v9389_v55  ;;  %v9855_v31 = vrot.slane %v9841_v8, %v18416_v7  ;;  %v18084_v55 = vld [vmem:[%s21973_s3 + $0x1f8] sm:$0xff]  }
 0x28f   : > { %17511 = vmatprep.subr.bf16.mxu0 %v18070_v59  ;;  %v20639_v39 = vcombine.low %v10264_v17, %v10271_v45  ;;  %v9607_v17 = vcombine.low %v9503_v46, %v20450_v51  ;;  %v9556_v45 = vcombine.low %v16348_v24, %v16349_v36  ;;  %v9555_v0 = vcombine.low %v9274_v10, %v9275_v14  ;;  %v18086_v36 = vld [vmem:[%s21973_s3 + $0x208] sm:$0xff]  }
 0x290   : > { %v9857_v62 = vcombine.high %v9855_v31, %v9855_v31  ;;  %v9824_v51 = vrot.slane %v16362_v60, %v18416_v7  ;;  %v18085_v60 = vld [vmem:[%s21973_s3 + $0x200] sm:$0xff]  }
 0x291   : > { %v9635_v38 = vrot.slane %v9607_v17, %v18416_v7  ;;  %v18087_v17 = vld [vmem:[%s21973_s3 + $0x210] sm:$0xff]  }
 0x292   : > { %17512 = vmatpush3.bf16.msra.mxu0 %v18070_v59  ;;  %v9865_v59 = vcombine.high %v16364_v22, %v16364_v22 }
 0x293   : > { %17513 = vmatprep.subr.bf16.mxu0 %v18071_v61 }
 0x294   : > { %v9879_v44 = vrot.slane %v9865_v59, %v18416_v7 }
 0x295   : > { %17506 = vmatmul.mubr.bf16.gmra.mrb[72].mxu0 %v8413_v28 }
 0x296   : > { %17514 = vmatpush3.bf16.msra.mxu0 %v18071_v61  ;;  %17525 = vmatprep.mubr.bf16.mxu0 %v20454_v23  ;;  %v18076_v23 = vld [vmem:[%s21973_s3 + $0x1b8] sm:$0xff]   ;;  %v9856_v61 = vcombine.high %v9848_v56, %v9848_v56 }
 0x297   : > { %17515 = vmatprep.subr.bf16.mxu0 %v18072_v41 }
 0x29a   : > { %17516 = vmatpush3.bf16.msra.mxu0 %v18072_v41  ;;  %v9831_v41 = vrot.slane %v9817_v4, %v18416_v7  ;;  %v9944_v4 = vrot.slane %v16367_v12, %v18416_v7 }
 0x29b   : > { %17517 = vmatprep.subr.bf16.mxu0 %v18073_v43 }
 0x29c   : > { %v9833_v9 = vcombine.high %v9831_v41, %v9831_v41 }
 0x29e   : > { %17518 = vmatpush3.bf16.msra.mxu0 %v18073_v43  ;;  %v9872_v43 = vrot.slane %v16364_v22, %v18416_v7 }
 0x29f   : > { %17519 = vmatprep.subr.bf16.mxu0 %v18074_v37 }
 0x2a0   : > { %v9880_v33 = vcombine.high %v9872_v43, %v9872_v43  ;;  %v9952_v43 = vcombine.high %v9944_v4, %v9944_v4  ;;  %v10201_v4 = vrot.slane %v10191_v32, %v18416_v7  ;;  %v10098_v32 = vunpack.i.h.s16 %v20622_v25 }
 0x2a2   : > { %17520 = vmatpush3.bf16.msra.mxu0 %v18074_v37  ;;  %v9881_v37 = vcombine.high %v9879_v44, %v9879_v44  ;;  %v16402_v50 = vpack.i.b16 %v10049_v11, %v10098_v32 }
 0x2a3   : > { %17521 = vmatprep.subr.bf16.mxu0 %v18075_v6 }
 0x2a4   : > { %v16391_v15 = vpack.i.b16 %v20302_v52, %v9881_v37 }
 0x2a6   : > { %17522 = vmatpush3.bf16.msra.mxu0 %v18075_v6  ;;  %v10056_v6 = vunpack.i.h.s16 %v9855_v31  ;;  %v10145_v52 = vcombine.low %v9880_v33, %v16391_v15 }
 0x2a7   : > { %17523 = vmatprep.subr.bf16.mxu0 %v18076_v23 }
 0x2a8   : > { %v10173_v59 = vrot.slane %v10145_v52, %v18416_v7 }
 0x2aa   : > { %17524 = vmatpush3.bf16.msra.mxu0 %v18076_v23  ;;  %v10058_v23 = vunpack.i.h.s16 %v9856_v61 }
 0x2ab   : > { %17533 = vmatprep.subr.bf16.mxu0 %v18077_v1 }
 0x2ad   : > { %17526 = vmatmul.mubr.bf16.vlgmr.msra.gmra.mrb[48].mxu0 %v20508_v42  ;;  %v9040_v42 = vrot.slane %v9033_v19, %v18416_v7  ;;  %v16389_v19 = vpack.i.b16 %v9856_v61, %v10056_v6 }
 0x2ae   : > { %17529 = vmatprep.mubr.bf16.mxu0 %v20533_v21  ;;  %17534 = vmatpush3.bf16.msra.mxu0 %v18077_v1  ;;  %v18080_v21 = vld [vmem:[%s21973_s3 + $0x1d8] sm:$0xff]   ;;  %v18083_v1 = vld [vmem:[%s21973_s3 + $0x1f0] sm:$0xff]  }
 0x2af   : > { %17535 = vmatprep.subr.bf16.mxu0 %v18078_v20 }
 0x2b2   : > { %17536 = vmatpush3.bf16.msra.mxu0 %v18078_v20  ;;  %v9572_v20 = vrot.slane %v9556_v45, %v18416_v7  ;;  %v16368_v45 = vld.sshfl [vmem:[#allocation2 + $0x28] sm:$0x32 pattern:$0x75316420] }
 0x2b3   : > { %17537 = vmatprep.subr.bf16.mxu0 %v18079_v35  ;;  %v9961_v6 = vcombine.high %v16368_v45, %v16368_v45 }
 0x2b5   : > { %17530 = vmatmul.mubr.bf16.gmra.mrb[76].mxu0 %v9040_v42  ;;  %v9832_v42 = vcombine.high %v9824_v51, %v9824_v51 }
 0x2b6   : > { %17538 = vmatpush3.bf16.msra.mxu0 %v18079_v35  ;;  %17549 = vmatprep.mubr.bf16.mxu0 %v9554_v40  ;;  %v16353_v40 = vpack.i.b16 %v9390_v26, %v9456_v58  ;;  %v16390_v35 = vpack.i.b16 %v9857_v62, %v10058_v23  ;;  %v9565_v26 = vrot.slane %v9555_v0, %v18416_v7  ;;  %v18088_v0 = vld [vmem:[%s21973_s3 + $0x218] sm:$0xff]  }
 0x2b7   : > { %17539 = vmatprep.subr.bf16.mxu0 %v18080_v21  ;;  %v10142_v56 = vcombine.low %v9831_v41, %v9832_v42 }
 0x2b8   : > { %v9606_v28 = vcombine.low %v16352_v16, %v16353_v40  ;;  %v9587_v22 = vcombine.low %v9565_v26, %v9572_v20  ;;  %v10144_v58 = vcombine.low %v16390_v35, %v9879_v44  ;;  %v9937_v40 = vcombine.high %v16367_v12, %v16367_v12 }
 0x2b9   : > { %v10152_v13 = vrot.slane %v10142_v56, %v18416_v7  ;;  %v10078_v20 = vunpack.i.h.s16 %v9952_v43  ;;  %v9920_v26 = vrot.slane %v16366_v5, %v18416_v7 }
 0x2ba   : > { %17540 = vmatpush3.bf16.msra.mxu0 %v18080_v21  ;;  %v9628_v53 = vrot.slane %v9606_v28, %v18416_v7  ;;  %v16388_v21 = vpack.i.b16 %v9855_v31, %v9833_v9  ;;  %v10166_v34 = vrot.slane %v10144_v58, %v18416_v7  ;;  %v16369_v31 = vld.sshfl [vmem:[#allocation2 + $0x2c] sm:$0x32 pattern:$0x75316420]  ;;  %v9913_v28 = vcombine.high %v16366_v5, %v16366_v5 }
 0x2bb   : > { %17541 = vmatprep.subr.bf16.mxu0 %v18081_v57  ;;  %v9985_v24 = vcombine.high %v16369_v31, %v16369_v31  ;;  %v9992_v16 = vrot.slane %v16369_v31, %v18416_v7  ;;  %v9951_v41 = vrot.slane %v9937_v40, %v18416_v7  ;;  %v9975_v9 = vrot.slane %v9961_v6, %v18416_v7 }
 0x2bc   : > { %v9637_v49 = vcombine.low %v9628_v53, %v9635_v38  ;;  %v10143_v30 = vcombine.low %v16388_v21, %v16389_v19  ;;  %v10175_v29 = vcombine.low %v10166_v34, %v10173_v59  ;;  %v9927_v38 = vrot.slane %v9913_v28, %v18416_v7 }
 0x2bd   : > { %v9999_v23 = vrot.slane %v9985_v24, %v18416_v7  ;;  %v9953_v51 = vcombine.high %v9951_v41, %v9951_v41  ;;  %v10076_v15 = vunpack.i.h.s16 %v9951_v41  ;;  %v10287_v24 = vrot.slane %v20639_v39, %v18416_v7 }
 0x2be   : > { %17542 = vmatpush3.bf16.msra.mxu0 %v18081_v57  ;;  %v9651_v8 = vrot.slane %v9637_v49, %v18416_v7  ;;  %v9595_v57 = vrot.slane %v9587_v22, %v18416_v7  ;;  %v10159_v47 = vrot.slane %v10143_v30, %v18416_v7  ;;  %v10189_v62 = vrot.slane %v10175_v29, %v18416_v7 }
 0x2bf   : > { %17543 = vmatprep.subr.bf16.mxu0 %v18082_v27  ;;  %v10001_v33 = vcombine.high %v9999_v23, %v9999_v23  ;;  %v10086_v19 = vunpack.i.h.s16 %v9999_v23  ;;  %v9929_v49 = vcombine.high %v9927_v38, %v9927_v38  ;;  %v16395_v42 = vpack.i.b16 %v9952_v43, %v10076_v15 }
 0x2c0   : > { %v9603_v2 = vcombine.low %v9595_v57, %v9602_v54  ;;  %v9652_v61 = vcombine.low %v9644_v18, %v9651_v8  ;;  %v10174_v10 = vcombine.low %v10152_v13, %v10159_v47  ;;  %v16396_v21 = vpack.i.b16 %v9953_v51, %v10078_v20  ;;  %v18091_v47 = vld [vmem:[%s21973_s3 + $0x230] sm:$0xff]  }
 0x2c1   : > { %v16394_v52 = vpack.i.b16 %v9951_v41, %v9929_v49  ;;  %v9968_v22 = vrot.slane %v16368_v45, %v18416_v7  ;;  %v9977_v30 = vcombine.high %v9975_v9, %v9975_v9  ;;  %v9928_v8 = vcombine.high %v9920_v26, %v9920_v26 }
 0x2c2   : > { %17544 = vmatpush3.bf16.msra.mxu0 %v18082_v27  ;;  %v9659_v27 = vrot.slane %v20660_v3, %v18416_v7  ;;  %v10182_v37 = vrot.slane %v10174_v10, %v18416_v7  ;;  %v10194_v59 = vcombine.low %v16396_v21, %v9975_v9  ;;  %v10295_v39 = vrot.slane %v16402_v50, %v18416_v7 }
 0x2c3   : > { %17545 = vmatprep.subr.bf16.mxu0 %v18083_v1  ;;  %v10193_v56 = vcombine.low %v16394_v52, %v16395_v42  ;;  %v16397_v12 = vpack.i.b16 %v9999_v23, %v9977_v30  ;;  %v9976_v57 = vcombine.high %v9968_v22, %v9968_v22  ;;  %v10192_v34 = vcombine.low %v9927_v38, %v9928_v8 }
 0x2c4   : > { %v9666_v3 = vrot.slane %v9659_v27, %v18416_v7  ;;  %v10190_v53 = vcombine.low %v10182_v37, %v10189_v62  ;;  %v22119_v37 = vmov 0.0  }
 0x2c5   : > { %v10240_v40 = vcombine.low %v9976_v57, %v16397_v12  ;;  %v18094_v57 = vld [vmem:[%s21975_s5 + $0x48] sm:$0xff]  }
 0x2c6   : > { %17546 = vmatpush3.bf16.msra.mxu0 %v18083_v1  ;;  %v10000_v1 = vcombine.high %v9992_v16, %v9992_v16 }
 0x2c7   : > { %17547 = vmatprep.subr.bf16.mxu0 %v18084_v55  ;;  %v10250_v29 = vrot.slane %v10240_v40, %v18416_v7 }
 0x2c8   : > { %v10088_v35 = vunpack.i.h.s16 %v10000_v1  ;;  %v16398_v58 = vpack.i.b16 %v10000_v1, %v10086_v19 }
 0x2ca   : > { %17548 = vmatpush3.bf16.msra.mxu0 %v18084_v55  ;;  %v20726_v48 = vpop.f32.mrb[52].mxu0  ;;  %v18089_v55 = vld [vmem:[%s21973_s3 + $0x220] sm:$0xff]   ;;  %v16399_v54 = vpack.i.b16 %v10001_v33, %v10088_v35 }
 0x2cb   : > { %17557 = vmatprep.subr.bf16.mxu0 %v18085_v60  ;;  %v20734_v46 = vpop.f32.mrb[53].mxu0 }
 0x2cc   : > { %v17388_v44 = vpop.f32.mrb[54].mxu0  ;;  %v10241_v18 = vcombine.low %v16398_v58, %v16399_v54 }
 0x2cd   : > { %17550 = vmatmul.mubr.bf16.vlgmr.msra.gmra.mrb[48].mxu0 %v9603_v2  ;;  %v20741_v14 = vpop.f32.mrb[55].mxu0  ;;  %v10215_v2 = vrot.slane %v10193_v56, %v18416_v7  ;;  %v10208_v44 = vrot.slane %v10192_v34, %v18416_v7  ;;  %v18093_v56 = vld [vmem:[%s21975_s5 + $0x40] sm:$0xff]  }
 0x2ce   : > { %17553 = vmatprep.mubr.bf16.mxu0 %v9652_v61  ;;  %17558 = vmatpush3.bf16.msra.mxu0 %v18085_v60  ;;  %v18090_v60 = vld [vmem:[%s21973_s3 + $0x228] sm:$0xff]   ;;  %v10257_v31 = vrot.slane %v10241_v18, %v18416_v7  ;;  %v18092_v61 = vld [vmem:[%s21973_s3 + $0x238] sm:$0xff]   ;;  %v18095_v18 = vld [vmem:[%s21975_s5 + $0x50] sm:$0xff]  }
 0x2cf   : > { %17559 = vmatprep.subr.bf16.mxu0 %v18086_v36  ;;  %v10223_v5 = vcombine.low %v10201_v4, %v10208_v44  ;;  %17581 = vmatprep.subr.bf16.mxu1 %v18093_v56  ;;  %v18097_v34 = vld [vmem:[%s21975_s5 + $0x60] sm:$0xff]   ;;  %v18098_v4 = vld [vmem:[%s21975_s5 + $0x68] sm:$0xff]  }
 0x2d0   : > { %v10272_v27 = vcombine.low %v10250_v29, %v10257_v31  ;;  %17582 = vmatpush3.bf16.msra.mxu1 %v18093_v56  ;;  %v18099_v29 = vld [vmem:[%s21975_s5 + $0x70] sm:$0xff]  }
 0x2d1   : > { %v10231_v45 = vrot.slane %v10223_v5, %v18416_v7  ;;  %17583 = vmatprep.subr.bf16.mxu1 %v18094_v57  ;;  %v18100_v5 = vld [vmem:[%s21975_s5 + $0x78] sm:$0xff]  }
 0x2d2   : > { %17560 = vmatpush3.bf16.msra.mxu0 %v18086_v36  ;;  %v10222_v36 = vrot.slane %v10194_v59, %v18416_v7  ;;  %v10280_v43 = vrot.slane %v10272_v27, %v18416_v7  ;;  %v20825_v27 = vld [vmem:[%s21975_s5] sm:$0xff]  }
 0x2d3   : > { %17561 = vmatprep.subr.bf16.mxu0 %v18087_v17 }
 0x2d4   : > { %v10224_v13 = vcombine.low %v10215_v2, %v10222_v36  ;;  %v10288_v6 = vcombine.low %v10280_v43, %v10287_v24  ;;  %17584 = vmatpush3.bf16.msra.mxu1 %v18094_v57 }
 0x2d5   : > { %17554 = vmatmul.mubr.bf16.gmra.mrb[80].mxu0 %v9666_v3  ;;  %17585 = vmatprep.subr.bf16.mxu1 %v18095_v18 }
 0x2d6   : > { %17562 = vmatpush3.bf16.msra.mxu0 %v18087_v17  ;;  %17573 = vmatprep.mubr.bf16.mxu0 %v10190_v53  ;;  %v10238_v63 = vrot.slane %v10224_v13, %v18416_v7 }
 0x2d7   : > { %17563 = vmatprep.subr.bf16.mxu0 %v18088_v0 }
 0x2d8   : > { %v10239_v3 = vcombine.low %v10231_v45, %v10238_v63  ;;  %17586 = vmatpush3.bf16.msra.mxu1 %v18095_v18  ;;  %v20837_v45 = vld [vmem:[%s21974_s4] ss:$0 sm:$0xff] }
 0x2da   : > { %17564 = vmatpush3.bf16.msra.mxu0 %v18088_v0 }
 0x2db   : > { %17565 = vmatprep.subr.bf16.mxu0 %v18089_v55 }
 0x2de   : > { %17566 = vmatpush3.bf16.msra.mxu0 %v18089_v55 }
 0x2df   : > { %17567 = vmatprep.subr.bf16.mxu0 %v18090_v60 }
 0x2e2   : > { %17568 = vmatpush3.bf16.msra.mxu0 %v18090_v60 }
 0x2e3   : > { %17569 = vmatprep.subr.bf16.mxu0 %v18091_v47 }
 0x2e6   : > { %17570 = vmatpush3.bf16.msra.mxu0 %v18091_v47  ;;  %v18096_v47 = vld [vmem:[%s21975_s5 + $0x58] sm:$0xff]  }
 0x2e7   : > { %17571 = vmatprep.subr.bf16.mxu0 %v18092_v61  ;;  %17587 = vmatprep.subr.bf16.mxu1 %v18096_v47 }
 0x2e8   : > { %v17411_v10 = vpop.f32.mrb[56].mxu0  ;;  %17588 = vmatpush3.bf16.msra.mxu1 %v18096_v47 }
 0x2e9   : > { %v6007_v16 = vadd.f32 %v17411_v10, %v20726_v48  ;;  %v5998_v17 = vpop.f32.mrb[57].mxu0  ;;  %v10302_v48 = vrot.slane %v10295_v39, %v18416_v7  ;;  %17589 = vmatprep.subr.bf16.mxu1 %v18097_v34 }
 0x2ea   : > { %v5999_v28 = vadd.f32 %v5998_v17, %v20734_v46  ;;  %v17412_v41 = vpop.f32.mrb[58].mxu0  ;;  %17572 = vmatpush3.bf16.msra.mxu0 %v18092_v61 }
 0x2eb   : > { %v6001_v62 = vpop.f32.mrb[59].mxu0  ;;  %17761 = vmatprep.subr.bf16.mxu0 %v22119_v37 }
 0x2ec   : > { %v6002_v25 = vadd.f32 %v6001_v62, %v20741_v14  ;;  %17590 = vmatpush3.bf16.msra.mxu1 %v18097_v34 }
 0x2ed   : > { %17574 = vmatmul.mubr.bf16.vlgmr.msra.gmra.mrb[48].mxu0 %v10239_v3  ;;  %17591 = vmatprep.subr.bf16.mxu1 %v18098_v4 }
 0x2ee   : > { %17577 = vmatprep.mubr.bf16.mxu0 %v10288_v6 }
 0x2f0   : > { %17592 = vmatpush3.bf16.msra.mxu1 %v18098_v4 }
 0x2f1   : > { %17593 = vmatprep.subr.bf16.mxu1 %v18099_v29 }
 0x2f4   : > { %17594 = vmatpush3.bf16.msra.mxu1 %v18099_v29 }
 0x2f5   : > { %17578 = vmatmul.mubr.bf16.gmra.mrb[84].mxu0 %v10302_v48  ;;  %17595 = vmatprep.subr.bf16.mxu1 %v18100_v5 }
 0x2f6   : > { %17777 = vmatprep.mubr.msk.bf16.mxu0 %vm18304_vm0, %v22119_v37 }
 0x2f8   : > { %17596 = vmatpush3.bf16.msra.mxu1 %v18100_v5 }
 0x2f9   : > { %17601 = vmatprep.subr.bf16.mxu1 %v20825_v27 }
 0x308   : > { %v17435_v46 = vpop.f32.mrb[60].mxu0 }
 0x309   : > { %v6647_v23 = vadd.f32 %v17435_v46, %v6007_v16  ;;  %v6627_v1 = vpop.f32.mrb[61].mxu0 }
 0x30a   : > { %v6645_v0 = vadd.f32 %v6627_v1, %v5999_v28  ;;  %v17436_v38 = vpop.f32.mrb[62].mxu0 }
 0x30b   : > { %v6630_v51 = vpop.f32.mrb[63].mxu0 }
 0x30c   : > { %v6646_v15 = vadd.f32 %v6630_v51, %v6002_v25 }
 0x328   : > { %v17459_v20 = vpop.f32.mrb[64].mxu0 }
 0x329   : > { %v7274_v14 = vadd.f32 %v17459_v20, %v6647_v23  ;;  %v7254_v53 = vpop.f32.mrb[65].mxu0 }
 0x32a   : > { %v7272_v9 = vadd.f32 %v7254_v53, %v6645_v0  ;;  %v17460_v33 = vpop.f32.mrb[66].mxu0 }
 0x32b   : > { %v7257_v19 = vpop.f32.mrb[67].mxu0 }
 0x32c   : > { %v7273_v35 = vadd.f32 %v7257_v19, %v6646_v15 }
 0x348   : > { %v17483_v55 = vpop.f32.mrb[68].mxu0 }
 0x349   : > { %v7900_v26 = vadd.f32 %v17483_v55, %v7274_v14  ;;  %v7880_v49 = vpop.f32.mrb[69].mxu0 }
 0x34a   : > { %v7898_v42 = vadd.f32 %v7880_v49, %v7272_v9  ;;  %v17484_v21 = vpop.f32.mrb[70].mxu0 }
 0x34b   : > { %v7883_v52 = vpop.f32.mrb[71].mxu0 }
 0x34c   : > { %v7899_v22 = vadd.f32 %v7883_v52, %v7273_v35 }
 0x368   : > { %v17507_v30 = vpop.f32.mrb[72].mxu0 }
 0x369   : > { %v8536_v58 = vadd.f32 %v17507_v30, %v7900_v26  ;;  %v8516_v54 = vpop.f32.mrb[73].mxu0 }
 0x36a   : > { %v8534_v60 = vadd.f32 %v8516_v54, %v7898_v42  ;;  %v17508_v8 = vpop.f32.mrb[74].mxu0 }
 0x36b   : > { %v8519_v59 = vpop.f32.mrb[75].mxu0 }
 0x36c   : > { %v8535_v12 = vadd.f32 %v8519_v59, %v7899_v22 }
 0x388   : > { %v17531_v2 = vpop.f32.mrb[76].mxu0 }
 0x389   : > { %v9163_v36 = vadd.f32 %v17531_v2, %v8536_v58  ;;  %v9143_v40 = vpop.f32.mrb[77].mxu0 }
 0x38a   : > { %v9161_v31 = vadd.f32 %v9143_v40, %v8534_v60  ;;  %v17532_v61 = vpop.f32.mrb[78].mxu0 }
 0x38b   : > { %v9146_v44 = vpop.f32.mrb[79].mxu0 }
 0x38c   : > { %v9162_v13 = vadd.f32 %v9146_v44, %v8535_v12 }
 0x3a8   : > { %v17555_v63 = vpop.f32.mrb[80].mxu0 }
 0x3a9   : > { %v20828_v11 = vadd.f32 %v17555_v63, %v9163_v36  ;;  %v9769_v32 = vpop.f32.mrb[81].mxu0 }
 0x3aa   : > { %v20830_v10 = vadd.f32 %v9769_v32, %v9161_v31  ;;  %v17556_v24 = vpop.f32.mrb[82].mxu0 }
 0x3ab   : > { %v9772_v16 = vpop.f32.mrb[83].mxu0 }
 0x3ac   : > { %v20832_v17 = vadd.f32 %v9772_v16, %v9162_v13 }
 0x3c0   : > { %v17575_v28 = vpop.f32.mrb[48].mxu0 }
 0x3c1   : > { %v10435_v41 = vadd.f32 %v17575_v28, %v20837_v45  ;;  %v10389_v43 = vpop.f32.mrb[49].mxu0 }
 0x3c2   : > { %v10433_v62 = vadd.f32 %v20837_v45, %v10389_v43  ;;  %v17576_v3 = vpop.f32.mrb[50].mxu0 }
 0x3c3   : > { %v10442_v50 = vmax.f32 %v10435_v41, 0.0  ;;  %v10436_v25 = vadd.f32 %v17576_v3, %v20837_v45  ;;  %v10392_v6 = vpop.f32.mrb[51].mxu0 }
 0x3c4   : > { %v10440_v39 = vmax.f32 %v10433_v62, 0.0  ;;  %v10434_v9 = vadd.f32 %v20837_v45, %v10392_v6 }
 0x3c5   : > { %v10552_v48 = vcombine.high %v10442_v50, %v10442_v50  ;;  %v10559_v46 = vrot.slane %v10442_v50, %v18416_v7  ;;  %v10443_v23 = vmax.f32 %v10436_v25, 0.0 }
 0x3c6   : > { %v10454_v1 = vcombine.high %v10440_v39, %v10440_v39  ;;  %v10461_v0 = vrot.slane %v10440_v39, %v18416_v7  ;;  %v10441_v31 = vmax.f32 %v10434_v9, 0.0 }
 0x3c7   : > { %v10566_v38 = vrot.slane %v10552_v48, %v18416_v7  ;;  %v10567_v51 = vcombine.high %v10559_v46, %v10559_v46  ;;  %v20846_v15 = vrot.slane %v10559_v46, %v18416_v7  ;;  %v10601_v20 = vcombine.high %v10443_v23, %v10443_v23 }
 0x3c8   : > { %v10468_v14 = vrot.slane %v10454_v1, %v18416_v7  ;;  %v10469_v53 = vcombine.high %v10461_v0, %v10461_v0  ;;  %v20850_v33 = vpop.f32.mrb[84].mxu0  ;;  %v10608_v26 = vrot.slane %v10443_v23, %v18416_v7  ;;  %v10477_v21 = vrot.slane %v10461_v0, %v18416_v7 }
 0x3c9   : > { %v10568_v19 = vcombine.high %v10566_v38, %v10566_v38  ;;  %v20853_v35 = vrot.slane %v10567_v51, %v18416_v7  ;;  %v10597_v55 = vcombine.high %v20846_v15, %v20846_v15  ;;  %v20858_v49 = vpop.f32.mrb[85].mxu0  ;;  %v10582_v58 = vrot.slane %v10566_v38, %v18416_v7 }
 0x3ca   : > { %v10470_v42 = vcombine.high %v10468_v14, %v10468_v14  ;;  %v10484_v52 = vrot.slane %v10468_v14, %v18416_v7  ;;  %v10491_v22 = vrot.slane %v10469_v53, %v18416_v7  ;;  %v17580_v30 = vpop.f32.mrb[86].mxu0  ;;  %v10615_v8 = vrot.slane %v10601_v20, %v18416_v7  ;;  %v11183_v20 = vld [vmem:[#allocation3] sm:$0x7] }
 0x3cb   : > { %v10596_v54 = vrot.slane %v10568_v19, %v18416_v7  ;;  %v20866_v60 = vcombine.low %v20853_v35, %v10597_v55  ;;  %v20869_v56 = vpop.f32.mrb[87].mxu0  ;;  %v10616_v2 = vcombine.high %v10608_v26, %v10608_v26  ;;  %v10599_v61 = vcombine.high %v20853_v35, %v20853_v35 }
 0x3cc   : > { %v10498_v59 = vrot.slane %v10470_v42, %v18416_v7  ;;  %v10500_v12 = vcombine.high %v10484_v52, %v10484_v52  ;;  %v10770_v57 = vcombine.low %v10477_v21, %v10491_v22  ;;  %v16412_v18 = vcombine.high %v10477_v21, %v10491_v22 }
 0x3cd   : > { %v10926_v47 = vcombine.low %v10582_v58, %v10596_v54  ;;  %v16414_v34 = vcombine.high %v10582_v58, %v10596_v54  ;;  %v10792_v4 = vrot.slane %v10484_v52, %v18416_v7  ;;  %v10617_v29 = vcombine.high %v10615_v8, %v10615_v8  ;;  %v11195_v52 = vld [vmem:[#allocation3 + $0x10] sm:$0x7] }
 0x3ce   : > { %v10778_v36 = vrot.slane %v10770_v57, %v18416_v7  ;;  %v10785_v40 = vrot.slane %v16412_v18, %v18416_v7  ;;  %v10902_v5 = vrot.slane %v20866_v60, %v18416_v7  ;;  %v10809_v32 = vcombine.low %v10498_v59, %v10500_v12 }
 0x3cf   : > { %v10934_v44 = vrot.slane %v10926_v47, %v18416_v7  ;;  %v10941_v13 = vrot.slane %v16414_v34, %v18416_v7  ;;  %v10624_v24 = vrot.slane %v10608_v26, %v18416_v7  ;;  %v10807_v28 = vrot.slane %v10792_v4, %v18416_v7 }
 0x3d0   : > { %v10793_v63 = vcombine.low %v10778_v36, %v10785_v40  ;;  %v10638_v41 = vrot.slane %v10616_v2, %v18416_v7  ;;  %v20885_v43 = vrot.slane %v10617_v29, %v18416_v7  ;;  %v10503_v25 = vcombine.high %v10441_v31, %v10441_v31 }
 0x3d1   : > { %v10949_v16 = vcombine.low %v10934_v44, %v10941_v13  ;;  %v10646_v3 = vcombine.high %v10624_v24, %v10624_v24  ;;  %v10948_v50 = vrot.slane %v10624_v24, %v18416_v7  ;;  %v20890_v6 = vrot.slane %v10615_v8, %v18416_v7 }
 0x3d2   : > { %v10800_v62 = vrot.slane %v10793_v63, %v18416_v7  ;;  %v10648_v39 = vcombine.high %v10638_v41, %v10638_v41  ;;  %v10987_v46 = vrot.slane %v20885_v43, %v18416_v7  ;;  %v10510_v38 = vrot.slane %v10441_v31, %v18416_v7 }
 0x3d3   : > { %v10956_v48 = vrot.slane %v10949_v16, %v18416_v7  ;;  %v10963_v1 = vrot.slane %v10948_v50, %v18416_v7  ;;  %v10965_v0 = vcombine.low %v10638_v41, %v10646_v3  ;;  %v10502_v9 = vcombine.high %v10498_v59, %v10498_v59 }
 0x3d4   : > { %v10808_v23 = vcombine.low %v10800_v62, %v10807_v28  ;;  %v10966_v14 = vcombine.low %v10648_v39, %v20890_v6  ;;  %v11002_v53 = vrot.slane %v10987_v46, %v18416_v7  ;;  %v10517_v19 = vrot.slane %v10503_v25, %v18416_v7 }
 0x3d5   : > { %v10964_v55 = vcombine.low %v10956_v48, %v10963_v1  ;;  %v10973_v26 = vrot.slane %v10965_v0, %v18416_v7  ;;  %v10518_v42 = vcombine.high %v10510_v38, %v10510_v38  ;;  %v10526_v30 = vrot.slane %v10510_v38, %v18416_v7 }
 0x3d6   : > { %v11170_v35 = vpack.c.bf16 %v10808_v23, %v10808_v23  ;;  %v10980_v21 = vrot.slane %v10966_v14, %v18416_v7  ;;  %v10519_v22 = vcombine.high %v10517_v19, %v10517_v19  ;;  %v10533_v58 = vrot.slane %v10517_v19, %v18416_v7  ;;  %v11186_v14 = vld [vmem:[#allocation3 + $0x4] sm:$0x7] }
 0x3d7   : > { %v11174_v8 = vpack.c.bf16 %v10964_v55, %v10964_v55  ;;  %v10540_v59 = vrot.slane %v10518_v42, %v18416_v7  ;;  %v10817_v12 = vrot.slane %v10809_v32, %v18416_v7  ;;  %v10810_v34 = vcombine.low %v10502_v9, %v10526_v30 }
 0x3d8   : > { %v11184_v54 = vsel %vm20899_vm7, %v11170_v35, %v11183_v20  ;;  %v10988_v57 = vcombine.low %v10973_v26, %v10980_v21  ;;  %v10547_v18 = vrot.slane %v10519_v22, %v18416_v7  ;;  %v10549_v47 = vcombine.high %v10533_v58, %v10533_v58  ;;  %v11189_v26 = vld [vmem:[#allocation3 + $0x8] sm:$0x7] }
 0x3d9   : > { %11185 = vst [vmem:[#allocation3] sm:$0x7] %v11184_v54  ;;  %v11196_v2 = vsel %vm20899_vm7, %v11174_v8, %v11195_v52  ;;  %v10831_v36 = vrot.slane %v10540_v59, %v18416_v7  ;;  %v16413_v40 = vcombine.high %v10526_v30, %v10540_v59  ;;  %v10425_v4 = vadd.f32 %v20850_v33, %v20828_v11  ;;  %v11198_v33 = vld [vmem:[#allocation3 + $0x14] sm:$0x7] }
 0x3da   : > { %v10995_v31 = vrot.slane %v10988_v57, %v18416_v7  ;;  %11197 = vst [vmem:[#allocation3 + $0x10] sm:$0x7] %v11196_v2  ;;  %v10551_v44 = vcombine.high %v10547_v18, %v10547_v18  ;;  %v10824_v13 = vrot.slane %v10810_v34, %v18416_v7  ;;  %v10849_v29 = vcombine.low %v10533_v58, %v10547_v18  ;;  %v11192_v58 = vld [vmem:[#allocation3 + $0xc] sm:$0x7] }
 0x3db   : > { %v10909_v63 = vrot.slane %v10599_v61, %v18416_v7  ;;  %v10856_v32 = vrot.slane %v16413_v40, %v18416_v7  ;;  %v10870_v24 = vrot.slane %v10549_v47, %v18416_v7  ;;  %v10439_v16 = vadd.f32 %v20837_v45, %v10425_v4 }
 0x3dc   : > { %v11003_v28 = vcombine.low %v10995_v31, %v11002_v53  ;;  %v10832_v41 = vcombine.low %v10817_v12, %v10824_v13  ;;  %v10863_v62 = vrot.slane %v10849_v29, %v18416_v7  ;;  %v10887_v11 = vcombine.low %v10551_v44, %v20846_v15 }
 0x3dd   : > { %v10846_v3 = vrot.slane %v10831_v36, %v18416_v7  ;;  %v10446_v50 = vmax.f32 %v10439_v16, 0.0  ;;  %v10423_v25 = vadd.f32 %v20858_v49, %v20830_v10  ;;  %v10424_v61 = vadd.f32 %v20869_v56, %v20832_v17 }
 0x3de   : > { %v11175_v39 = vpack.c.bf16 %v11003_v28, %v11003_v28  ;;  %v10839_v48 = vrot.slane %v10832_v41, %v18416_v7  ;;  %v10871_v46 = vcombine.low %v10856_v32, %v10863_v62  ;;  %v10895_v23 = vrot.slane %v10887_v11, %v18416_v7 }
 0x3df   : > { %v10885_v1 = vrot.slane %v10870_v24, %v18416_v7  ;;  %v20937_v15 = vrot.slane %v10446_v50, %v18416_v7  ;;  %v10437_v0 = vadd.f32 %v20837_v45, %v10423_v25  ;;  %v10438_v38 = vadd.f32 %v20837_v45, %v10424_v61 }
 0x3e0   : > { %v11199_v10 = vsel %vm20899_vm7, %v11175_v39, %v11198_v33  ;;  %v10847_v49 = vcombine.low %v10839_v48, %v10846_v3  ;;  %v10878_v17 = vrot.slane %v10871_v46, %v18416_v7  ;;  %v10910_v56 = vcombine.low %v10895_v23, %v10902_v5 }
 0x3e1   : > { %v16415_v20 = vcombine.high %v20890_v6, %v20885_v43  ;;  %11200 = vst [vmem:[#allocation3 + $0x14] sm:$0x7] %v11199_v10  ;;  %v10444_v53 = vmax.f32 %v10437_v0, 0.0  ;;  %v10445_v9 = vmax.f32 %v10438_v38, 0.0  ;;  %v10924_v19 = vrot.slane %v10909_v63, %v18416_v7 }
 0x3e2   : > { %v10886_v45 = vcombine.low %v10878_v17, %v10885_v1  ;;  %v10917_v35 = vrot.slane %v10910_v56, %v18416_v7  ;;  %v11171_v55 = vpack.c.bf16 %v10847_v49, %v10847_v49  ;;  %v10755_v42 = vcombine.high %v20937_v15, %v20937_v15  ;;  %v16417_v38 = vld.sshfl [vmem:[#allocation3] sm:$0x11 pattern:$0x75316420] }
 0x3e3   : > { %v10650_v21 = vcombine.high %v10444_v53, %v10444_v53  ;;  %v10657_v60 = vrot.slane %v10444_v53, %v18416_v7  ;;  %v10699_v5 = vcombine.high %v10445_v9, %v10445_v9  ;;  %v10706_v22 = vrot.slane %v10445_v9, %v18416_v7 }
 0x3e4   : > { %v10925_v52 = vcombine.low %v10917_v35, %v10924_v19  ;;  %v11172_v43 = vpack.c.bf16 %v10886_v45, %v10886_v45  ;;  %v11187_v6 = vsel %vm20899_vm7, %v11171_v55, %v11186_v14  ;;  %v11012_v30 = vrot.slane %v16415_v20, %v18416_v7 }
 0x3e5   : > { %11188 = vst [vmem:[#allocation3 + $0x4] sm:$0x7] %v11187_v6  ;;  %v10664_v54 = vrot.slane %v10650_v21, %v18416_v7  ;;  %v10665_v8 = vcombine.high %v10657_v60, %v10657_v60  ;;  %v10673_v59 = vrot.slane %v10657_v60, %v18416_v7  ;;  %v10713_v18 = vrot.slane %v10699_v5, %v18416_v7 }
 0x3e6   : > { %v11173_v12 = vpack.c.bf16 %v10925_v52, %v10925_v52  ;;  %v11190_v57 = vsel %vm20899_vm7, %v11172_v43, %v11189_v26  ;;  %v10714_v47 = vcombine.high %v10706_v22, %v10706_v22  ;;  %v10769_v34 = vrot.slane %v10755_v42, %v18416_v7  ;;  %v11201_v43 = vld [vmem:[#allocation3 + $0x18] sm:$0x7] }
 0x3e7   : > { %11191 = vst [vmem:[#allocation3 + $0x8] sm:$0x7] %v11190_v57  ;;  %v10666_v2 = vcombine.high %v10664_v54, %v10664_v54  ;;  %v10680_v36 = vrot.slane %v10664_v54, %v18416_v7  ;;  %v10687_v40 = vrot.slane %v10665_v8, %v18416_v7  ;;  %v10695_v31 = vcombine.high %v10673_v59, %v10673_v59  ;;  %v11204_v57 = vld [vmem:[#allocation3 + $0x1c] sm:$0x7] }
 0x3e8   : > { %v11193_v4 = vsel %vm20899_vm7, %v11173_v12, %v11192_v58  ;;  %v10715_v44 = vcombine.high %v10713_v18, %v10713_v18  ;;  %v10722_v13 = vrot.slane %v10706_v22, %v18416_v7  ;;  %v10729_v28 = vrot.slane %v10713_v18, %v18416_v7 }
 0x3e9   : > { %11194 = vst [vmem:[#allocation3 + $0xc] sm:$0x7] %v11193_v4  ;;  %v10694_v29 = vrot.slane %v10666_v2, %v18416_v7  ;;  %v10696_v63 = vcombine.high %v10680_v36, %v10680_v36  ;;  %v10697_v32 = vcombine.high %v10687_v40, %v10687_v40  ;;  %v11005_v24 = vcombine.low %v10673_v59, %v10687_v40  ;;  %v16420_v59 = vld.sshfl [vmem:[#allocation3 + $0x14] sm:$0x11 pattern:$0x75316420] }
 0x3ea   : > { %v11026_v16 = vrot.slane %v10695_v31, %v18416_v7  ;;  %v10736_v41 = vrot.slane %v10714_v47, %v18416_v7  ;;  %v10743_v62 = vrot.slane %v10715_v44, %v18416_v7  ;;  %v10762_v25 = vrot.slane %v20937_v15, %v18416_v7 }
 0x3eb   : > { %v10698_v11 = vcombine.high %v10694_v29, %v10694_v29  ;;  %v11019_v33 = vrot.slane %v11005_v24, %v18416_v7  ;;  %v11043_v3 = vcombine.low %v10697_v32, %v10680_v36  ;;  %v11044_v50 = vcombine.low %v10694_v29, %v10696_v63 }
 0x3ec   : > { %v10745_v61 = vcombine.high %v10729_v28, %v10729_v28  ;;  %v10747_v39 = vcombine.high %v10743_v62, %v10743_v62  ;;  %v11082_v48 = vcombine.low %v10722_v13, %v10736_v41  ;;  %v11143_v10 = vrot.slane %v10769_v34, %v18416_v7  ;;  %v16418_v20 = vld.sshfl [vmem:[#allocation3 + $0x4] sm:$0x11 pattern:$0x75316420] }
 0x3ed   : > { %v11027_v46 = vcombine.low %v11012_v30, %v11019_v33  ;;  %v11051_v23 = vrot.slane %v11043_v3, %v18416_v7  ;;  %v11058_v1 = vrot.slane %v11044_v50, %v18416_v7  ;;  %v11065_v0 = vrot.slane %v10698_v11, %v18416_v7  ;;  %v11210_v11 = vld [vmem:[#allocation3 + $0x24] sm:$0x7] }
 0x3ee   : > { %v16416_v49 = vcombine.high %v10722_v13, %v10736_v41  ;;  %v11090_v17 = vrot.slane %v11082_v48, %v18416_v7  ;;  %v11121_v56 = vcombine.low %v10743_v62, %v10745_v61  ;;  %v11041_v14 = vrot.slane %v11026_v16, %v18416_v7  ;;  %v16419_v19 = vld.sshfl [vmem:[#allocation3 + $0x8] sm:$0x11 pattern:$0x75316420]  ;;  %v11207_v16 = vld [vmem:[#allocation3 + $0x20] sm:$0x7] }
 0x3ef   : > { %v11034_v15 = vrot.slane %v11027_v46, %v18416_v7  ;;  %v11066_v53 = vcombine.low %v11051_v23, %v11058_v1  ;;  %v11122_v9 = vcombine.low %v10747_v39, %v10762_v25  ;;  %v11080_v45 = vrot.slane %v11065_v0, %v18416_v7 }
 0x3f0   : > { %v11097_v35 = vrot.slane %v16416_v49, %v18416_v7  ;;  %v11104_v55 = vrot.slane %v10729_v28, %v18416_v7  ;;  %v11232_v26 = vcombine.high %v16417_v38, %v16417_v38  ;;  %v11129_v60 = vrot.slane %v11121_v56, %v18416_v7 }
 0x3f1   : > { %v11042_v42 = vcombine.low %v11034_v15, %v11041_v14  ;;  %v11073_v21 = vrot.slane %v11066_v53, %v18416_v7  ;;  %v11136_v5 = vrot.slane %v11122_v9, %v18416_v7  ;;  %v11158_v52 = vrot.slane %v11143_v10, %v18416_v7  ;;  %v16464_v15 = vld.sshfl [vmem:[#allocation3] sm:$0x12 pattern:$0x75316420] }
 0x3f2   : > { %v11105_v6 = vcombine.low %v11090_v17, %v11097_v35  ;;  %v20992_v22 = vrot.slane %v16418_v20, %v18416_v7  ;;  %v11276_v30 = vcombine.high %v16419_v19, %v16419_v19  ;;  %v20995_v12 = vrot.slane %v16419_v19, %v18416_v7 }
 0x3f3   : > { %v11081_v58 = vcombine.low %v11073_v21, %v11080_v45  ;;  %v11176_v54 = vpack.c.bf16 %v11042_v42, %v11042_v42  ;;  %v11144_v8 = vcombine.low %v11129_v60, %v11136_v5  ;;  %v11119_v47 = vrot.slane %v11104_v55, %v18416_v7  ;;  %v16465_v5 = vld.sshfl [vmem:[#allocation3 + $0x4] sm:$0x12 pattern:$0x75316420] }
 0x3f4   : > { %v11112_v18 = vrot.slane %v11105_v6, %v18416_v7  ;;  %v11239_v34 = vrot.slane %v16417_v38, %v18416_v7  ;;  %v11254_v2 = vcombine.high %v16418_v20, %v16418_v20  ;;  %v11246_v31 = vrot.slane %v11232_v26, %v18416_v7 }
 0x3f5   : > { %v11177_v36 = vpack.c.bf16 %v11081_v58, %v11081_v58  ;;  %v11202_v40 = vsel %vm20899_vm7, %v11176_v54, %v11201_v43  ;;  %v11151_v4 = vrot.slane %v11144_v8, %v18416_v7  ;;  %v21005_v13 = vrot.slane %v11276_v30, %v18416_v7 }
 0x3f6   : > { %11203 = vst [vmem:[#allocation3 + $0x18] sm:$0x7] %v11202_v40  ;;  %v11120_v44 = vcombine.low %v11112_v18, %v11119_v47  ;;  %v11298_v29 = vcombine.high %v16420_v59, %v16420_v59  ;;  %v11305_v63 = vrot.slane %v16420_v59, %v18416_v7  ;;  %v11361_v28 = vunpack.i.h.s16 %v20992_v22 }
 0x3f7   : > { %v11205_v32 = vsel %vm20899_vm7, %v11177_v36, %v11204_v57  ;;  %v11159_v24 = vcombine.low %v11151_v4, %v11158_v52  ;;  %v11364_v41 = vunpack.i.h.s16 %v20995_v12  ;;  %v21013_v33 = vrot.slane %v11254_v2, %v18416_v7  ;;  %v16467_v57 = vld.sshfl [vmem:[#allocation3 + $0x14] sm:$0x12 pattern:$0x75316420] }
 0x3f8   : > { %11206 = vst [vmem:[#allocation3 + $0x1c] sm:$0x7] %v11205_v32  ;;  %v11178_v62 = vpack.c.bf16 %v11120_v44, %v11120_v44  ;;  %v11358_v50 = vunpack.i.h.s16 %v11239_v34  ;;  %v11391_v25 = vunpack.i.h.s16 %v11246_v31  ;;  %v11312_v39 = vrot.slane %v11298_v29, %v18416_v7  ;;  %v16466_v29 = vld.sshfl [vmem:[#allocation3 + $0x8] sm:$0x12 pattern:$0x75316420] }
 0x3f9   : > { %v11179_v3 = vpack.c.bf16 %v11159_v24, %v11159_v24  ;;  %v11393_v48 = vunpack.i.h.s16 %v21005_v13  ;;  %v11367_v23 = vunpack.i.h.s16 %v11305_v63  ;;  %v21024_v0 = vpack.i.b16 %v21005_v13, %v11364_v41 }
 0x3fa   : > { %v11208_v61 = vsel %vm20899_vm7, %v11178_v62, %v11207_v16  ;;  %v11415_v1 = vpack.i.b16 %v11361_v28, %v11391_v25  ;;  %v21027_v38 = vpack.i.b16 %v21013_v33, %v11361_v28  ;;  %v16439_v49 = vpack.i.b16 %v11246_v31, %v11358_v50 }
 0x3fb   : > { %11209 = vst [vmem:[#allocation3 + $0x20] sm:$0x7] %v11208_v61  ;;  %v11211_v46 = vsel %vm20899_vm7, %v11179_v3, %v11210_v11  ;;  %v16450_v17 = vpack.i.b16 %v20992_v22, %v11246_v31  ;;  %v11418_v51 = vpack.i.b16 %v11367_v23, %v11393_v48  ;;  %v11424_v9 = vcombine.low %v21013_v33, %v21024_v0 }
 0x3fc   : > { %11212 = vst [vmem:[#allocation3 + $0x24] sm:$0x7] %v11211_v46  ;;  %v11423_v53 = vcombine.low %v16439_v49, %v11415_v1  ;;  %v16452_v19 = vpack.i.b16 %v11305_v63, %v21005_v13  ;;  %v16453_v45 = vpack.i.b16 %v11312_v39, %v11367_v23  ;;  %v11594_v42 = vcombine.low %v21027_v38, %v20995_v12 }
 0x3fd   : > { %v16421_v10 = vld.sshfl [vmem:[#allocation3 + $0x18] sm:$0x11 pattern:$0x75316420]  ;;  %v11593_v60 = vcombine.low %v11239_v34, %v16450_v17  ;;  %v11425_v6 = vcombine.low %v11418_v51, %v11312_v39  ;;  %v11773_v30 = vcombine.high %v16464_v15, %v16464_v15  ;;  %v11440_v54 = vrot.slane %v11424_v9, %v18416_v7 }
 0x3fe   : > { %v11320_v56 = vcombine.high %v16421_v10, %v16421_v10  ;;  %v21031_v20 = vrot.slane %v16421_v10, %v18416_v7  ;;  %v11433_v58 = vrot.slane %v11423_v53, %v18416_v7  ;;  %v11595_v59 = vcombine.low %v16452_v19, %v16453_v45  ;;  %v16468_v62 = vld.sshfl [vmem:[#allocation3 + $0x18] sm:$0x12 pattern:$0x75316420] }
 0x3ff   : > { %v16422_v14 = vld.sshfl [vmem:[#allocation3 + $0x1c] sm:$0x11 pattern:$0x75316420]  ;;  %v11610_v34 = vrot.slane %v11594_v42, %v18416_v7  ;;  %v11796_v2 = vcombine.high %v16465_v5, %v16465_v5  ;;  %v11603_v4 = vrot.slane %v11593_v60, %v18416_v7  ;;  %v11447_v44 = vrot.slane %v11425_v6, %v18416_v7 }
 0x400   : > { %v21037_v35 = vrot.slane %v11320_v56, %v18416_v7  ;;  %v21040_v55 = vrot.slane %v16422_v14, %v18416_v7  ;;  %v11370_v26 = vunpack.i.h.s16 %v21031_v20  ;;  %v11342_v21 = vcombine.high %v16422_v14, %v16422_v14  ;;  %v16469_v25 = vld.sshfl [vmem:[#allocation3 + $0x1c] sm:$0x12 pattern:$0x75316420] }
 0x401   : > { %v11780_v63 = vrot.slane %v16464_v15, %v18416_v7  ;;  %v11842_v32 = vcombine.high %v16467_v57, %v16467_v57  ;;  %v11455_v24 = vcombine.low %v11433_v58, %v11440_v54  ;;  %v11617_v16 = vrot.slane %v11595_v59, %v18416_v7  ;;  %v18102_v59 = vld [vmem:[%s21975_s5 + $0x8] sm:$0xff]  }
 0x402   : > { %v11373_v52 = vunpack.i.h.s16 %v21040_v55  ;;  %v11395_v43 = vunpack.i.h.s16 %v21037_v35  ;;  %v16454_v8 = vpack.i.b16 %v21040_v55, %v21037_v35  ;;  %v21054_v18 = vpack.i.b16 %v21037_v35, %v11370_v26  ;;  %v21097_v6 = vld.sshfl [vmem:[#allocation3 + $0x20] sm:$0x11 pattern:$0x75316420] }
 0x403   : > { %v21058_v36 = vrot.slane %v11342_v21, %v18416_v7  ;;  %v21068_v11 = vrot.slane %v11773_v30, %v18416_v7  ;;  %v11625_v50 = vcombine.low %v11603_v4, %v11610_v34  ;;  %v11803_v61 = vrot.slane %v16465_v5, %v18416_v7  ;;  %v16502_v21 = vld.sshfl [vmem:[#allocation3 + $0xc] sm:$0x11 pattern:$0x75316420] }
 0x404   : > { %v11421_v47 = vpack.i.b16 %v11373_v52, %v11395_v43  ;;  %v11596_v40 = vcombine.low %v21031_v20, %v16454_v8  ;;  %v21073_v39 = vrot.slane %v11796_v2, %v18416_v7  ;;  %v11819_v23 = vcombine.high %v16466_v29, %v16466_v29 }
 0x405   : > { %v11478_v48 = vrot.slane %v21058_v36, %v18416_v7  ;;  %v11826_v1 = vrot.slane %v16466_v29, %v18416_v7  ;;  %v21079_v49 = vpack.i.b16 %v21058_v36, %v11373_v52  ;;  %v11849_v17 = vrot.slane %v16467_v57, %v18416_v7 }
 0x406   : > { %v11426_v31 = vcombine.low %v21054_v18, %v11421_v47  ;;  %v11624_v28 = vrot.slane %v11596_v40, %v18416_v7  ;;  %v11856_v56 = vrot.slane %v11842_v32, %v18416_v7  ;;  %v11463_v51 = vrot.slane %v11455_v24, %v18416_v7 }
 0x407   : > { %v11788_v15 = vcombine.high %v11780_v63, %v11780_v63  ;;  %v11872_v14 = vrot.slane %v16468_v62, %v18416_v7  ;;  %v11888_v53 = vcombine.high %v16469_v25, %v16469_v25  ;;  %v11633_v19 = vrot.slane %v11625_v50, %v18416_v7 }
 0x408   : > { %v11454_v3 = vrot.slane %v11426_v31, %v18416_v7  ;;  %v11626_v46 = vcombine.low %v11617_v16, %v11624_v28  ;;  %v21088_v42 = vcombine.high %v11803_v61, %v11803_v61  ;;  %v11485_v60 = vrot.slane %v11478_v48, %v18416_v7 }
 0x409   : > { %v21092_v5 = vrot.slane %v11819_v23, %v18416_v7  ;;  %v21094_v52 = vcombine.high %v11826_v1, %v11826_v1  ;;  %v11908_v43 = vunpack.i.h.s16 %v21073_v39  ;;  %v11648_v58 = vrot.slane %v21079_v49, %v18416_v7 }
 0x40a   : > { %v11456_v10 = vcombine.low %v11447_v44, %v11454_v3  ;;  %v11640_v45 = vrot.slane %v11626_v46, %v18416_v7  ;;  %v11857_v54 = vcombine.high %v11849_v17, %v11849_v17  ;;  %v11914_v8 = vunpack.i.h.s16 %v11856_v56  ;;  %v18103_v3 = vld [vmem:[%s21975_s5 + $0x10] sm:$0xff]  }
 0x40b   : > { %v11865_v57 = vcombine.high %v16468_v62, %v16468_v62  ;;  %v21104_v47 = vcombine.high %v11872_v14, %v11872_v14  ;;  %v21107_v34 = vrot.slane %v11888_v53, %v18416_v7  ;;  %v12176_v2 = vcombine.high %v16502_v21, %v16502_v21  ;;  %v18104_v14 = vld [vmem:[%s21975_s5 + $0x18] sm:$0xff]  }
 0x40c   : > { %v11470_v9 = vrot.slane %v11456_v10, %v18416_v7  ;;  %v11641_v40 = vcombine.low %v11633_v19, %v11640_v45  ;;  %v16486_v4 = vpack.i.b16 %v21073_v39, %v11788_v15  ;;  %v21111_v31 = vrot.slane %v16502_v21, %v18416_v7 }
 0x40d   : > { %v21115_v44 = vrot.slane %v21097_v6, %v18416_v7  ;;  %v16487_v29 = vpack.i.b16 %v21088_v42, %v11908_v43  ;;  %v16488_v63 = vpack.i.b16 %v11856_v56, %v21094_v52  ;;  %v21120_v32 = vrot.slane %v12176_v2, %v18416_v7 }
 0x40e   : > { %v11471_v30 = vcombine.low %v11463_v51, %v11470_v9  ;;  %v16522_v24 = vpack.i.b16 %v20995_v12, %v21013_v33  ;;  %v16489_v16 = vpack.i.b16 %v11857_v54, %v11914_v8  ;;  %v12302_v62 = vcombine.low %v21024_v0, %v21111_v31  ;;  %v16571_v8 = vld.sshfl [vmem:[#allocation3 + $0xc] sm:$0x12 pattern:$0x75316420] }
 0x40f   : > { %v16526_v28 = vpack.i.b16 %v21115_v44, %v21058_v36  ;;  %v21133_v50 = vrot.slane %v11865_v57, %v18416_v7  ;;  %v11895_v61 = vrot.slane %v16469_v25, %v18416_v7  ;;  %v16490_v46 = vpack.i.b16 %v21107_v34, %v21104_v47  ;;  %v18105_v57 = vld [vmem:[%s21975_s5 + $0x20] sm:$0xff]  }
 0x410   : > { %17597 = vmatprep.mubr.bf16.mxu1 %v11471_v30  ;;  %v12301_v48 = vcombine.low %v20992_v22, %v16522_v24  ;;  %v11948_v0 = vcombine.low %v21068_v11, %v16486_v4  ;;  %v12318_v1 = vrot.slane %v12302_v62, %v18416_v7  ;;  %v11949_v10 = vcombine.low %v16487_v29, %v21092_v5 }
 0x411   : > { %17598 = vmatmul.mubr.bf16.vlgmr.msra.gmra.mrb[64].mxu1 %v11485_v60  ;;  %v12304_v23 = vcombine.low %v21040_v55, %v16526_v28  ;;  %v12611_v56 = vunpack.i.h.s16 %v21013_v33  ;;  %v21148_v51 = vcombine.low %v16488_v63, %v16489_v16  ;;  %v12615_v15 = vunpack.i.h.s16 %v21111_v31 }
 0x412   : > { %17602 = vmatpush3.bf16.msra.mxu1 %v20825_v27  ;;  %17617 = vmatprep.mubr.bf16.mxu1 %v11641_v40  ;;  %v16524_v27 = vpack.i.b16 %v21031_v20, %v21120_v32  ;;  %v12311_v25 = vrot.slane %v12301_v48, %v18416_v7  ;;  %v12617_v11 = vunpack.i.h.s16 %v21120_v32  ;;  %v12273_v9 = vunpack.i.h.s16 %v21115_v44 }
 0x413   : > { %17603 = vmatprep.subr.bf16.mxu1 %v18102_v59  ;;  %v12332_v22 = vrot.slane %v12304_v23, %v18416_v7  ;;  %v12623_v33 = vunpack.i.h.s16 %v21058_v36  ;;  %v11951_v19 = vcombine.low %v21133_v50, %v16490_v46  ;;  %v12645_v45 = vpack.i.b16 %v11364_v41, %v12611_v56  ;;  %v18106_v23 = vld [vmem:[%s21975_s5 + $0x28] sm:$0xff]  }
 0x414   : > { %v12303_v17 = vcombine.low %v16524_v27, %v21054_v18  ;;  %v12333_v53 = vcombine.low %v12311_v25, %v12318_v1  ;;  %v21165_v21 = vpack.i.b16 %v21120_v32, %v12615_v15  ;;  %v12648_v60 = vpack.i.b16 %v11370_v26, %v12617_v11  ;;  %v16607_v56 = vld.sshfl [vmem:[#allocation3 + $0x10] sm:$0x11 pattern:$0x75316420] }
 0x415   : > { %v21170_v43 = vrot.slane %v11948_v0, %v18416_v7  ;;  %v21172_v30 = vcombine.high %v11895_v61, %v11895_v61  ;;  %v12651_v36 = vpack.i.b16 %v12273_v9, %v12623_v33  ;;  %v21177_v41 = vrot.slane %v11949_v10, %v18416_v7  ;;  %v21236_v33 = vld.sshfl [vmem:[#allocation3 + $0x24] sm:$0x11 pattern:$0x75316420] }
 0x416   : > { %17604 = vmatpush3.bf16.msra.mxu1 %v18102_v59  ;;  %v12325_v18 = vrot.slane %v12303_v17, %v18416_v7  ;;  %v12653_v59 = vcombine.low %v21027_v38, %v12645_v45  ;;  %v12654_v20 = vcombine.low %v21005_v13, %v21165_v21  ;;  %v12655_v26 = vcombine.low %v12648_v60, %v21037_v35  ;;  %v21191_v38 = vld.sshfl [vmem:[#allocation3 + $0x20] sm:$0x12 pattern:$0x75316420]  ;;  %v18107_v45 = vld [vmem:[%s21975_s5 + $0x30] sm:$0xff]  }
 0x417   : > { %17605 = vmatprep.subr.bf16.mxu1 %v18103_v3  ;;  %v11972_v2 = vrot.slane %v21148_v51, %v18416_v7  ;;  %v12341_v40 = vrot.slane %v12333_v53, %v18416_v7  ;;  %v12656_v29 = vcombine.low %v21079_v49, %v12651_v36  ;;  %v11979_v63 = vrot.slane %v11951_v19, %v18416_v7 }
 0x418   : > { %v12334_v54 = vcombine.low %v12325_v18, %v12332_v22  ;;  %v12663_v35 = vrot.slane %v12653_v59, %v18416_v7  ;;  %v12670_v24 = vrot.slane %v12654_v20, %v18416_v7  ;;  %v12882_v16 = vcombine.high %v16571_v8, %v16571_v8 }
 0x419   : > { %v12677_v62 = vrot.slane %v12655_v26, %v18416_v7  ;;  %v12889_v61 = vrot.slane %v16571_v8, %v18416_v7  ;;  %v12951_v48 = vcombine.high %v21191_v38, %v21191_v38  ;;  %v12971_v46 = vunpack.i.h.s16 %v21092_v5 }
 0x41a   : > { %17606 = vmatpush3.bf16.msra.mxu1 %v18103_v3  ;;  %v12348_v4 = vrot.slane %v12334_v54, %v18416_v7  ;;  %v12684_v3 = vrot.slane %v12656_v29, %v18416_v7  ;;  %v12685_v27 = vcombine.low %v12663_v35, %v12670_v24  ;;  %v12977_v0 = vunpack.i.h.s16 %v21133_v50  ;;  %v16641_v24 = vld.sshfl [vmem:[#allocation3 + $0x8] sm:$0x11 pattern:$0x75316420] }
 0x41b   : > { %17607 = vmatprep.subr.bf16.mxu1 %v18104_v14  ;;  %v12242_v1 = vcombine.high %v21097_v6, %v21097_v6  ;;  %v21210_v17 = vcombine.high %v12889_v61, %v12889_v61  ;;  %v16591_v25 = vpack.i.b16 %v21092_v5, %v21088_v42  ;;  %v21215_v51 = vrot.slane %v12882_v16, %v18416_v7 }
 0x41c   : > { %v21196_v28 = vcombine.low %v12341_v40, %v12348_v4  ;;  %v12686_v10 = vcombine.low %v12677_v62, %v12684_v3  ;;  %v21218_v22 = vrot.slane %v12951_v48, %v18416_v7  ;;  %v16592_v11 = vpack.i.b16 %v21094_v52, %v12971_v46  ;;  %v18108_v4 = vld [vmem:[%s21975_s5 + $0x38] sm:$0xff]   ;;  %v16644_v48 = vld.sshfl [vmem:[#allocation3 + $0x1c] sm:$0x11 pattern:$0x75316420] }
 0x41d   : > { %v21223_v18 = vrot.slane %v12685_v27, %v18416_v7  ;;  %v16593_v42 = vpack.i.b16 %v21133_v50, %v21210_v17  ;;  %v13011_v5 = vcombine.low %v21073_v39, %v16591_v25  ;;  %v11980_v53 = vcombine.low %v21170_v43, %v21177_v41 }
 0x41e   : > { %17608 = vmatpush3.bf16.msra.mxu1 %v18104_v14  ;;  %v16594_v14 = vpack.i.b16 %v21104_v47, %v12977_v0  ;;  %v21226_v6 = vrot.slane %v12686_v10, %v18416_v7  ;;  %v16595_v52 = vpack.i.b16 %v21218_v22, %v21172_v30  ;;  %v13012_v47 = vcombine.low %v16592_v11, %v21215_v51 }
 0x41f   : > { %17609 = vmatprep.subr.bf16.mxu1 %v18105_v57  ;;  %v13239_v19 = vcombine.high %v16607_v56, %v16607_v56  ;;  %v11981_v50 = vcombine.low %v11972_v2, %v11979_v63  ;;  %v21242_v39 = vrot.slane %v12242_v1, %v18416_v7  ;;  %v13021_v36 = vrot.slane %v13011_v5, %v18416_v7 }
 0x420   : > { %v12701_v60 = vcombine.low %v21223_v18, %v21226_v6  ;;  %v13013_v43 = vcombine.low %v16593_v42, %v16594_v14  ;;  %v13014_v54 = vcombine.low %v21107_v34, %v16595_v52  ;;  %v13028_v8 = vrot.slane %v13012_v47, %v18416_v7  ;;  %v18130_v18 = vld [vmem:[%s21975_s5 + $0x128] sm:$0xff]   ;;  %v18131_v6 = vld [vmem:[%s21975_s5 + $0x130] sm:$0xff]  }
 0x421   : > { %v13253_v41 = vrot.slane %v13239_v19, %v18416_v7  ;;  %v21253_v20 = vrot.slane %v21236_v33, %v18416_v7  ;;  %v16627_v26 = vpack.i.b16 %v21111_v31, %v21005_v13  ;;  %v13246_v29 = vrot.slane %v16607_v56, %v18416_v7 }
 0x422   : > { %17610 = vmatpush3.bf16.msra.mxu1 %v18105_v57  ;;  %v13035_v59 = vrot.slane %v13013_v43, %v18416_v7  ;;  %v13042_v57 = vrot.slane %v13014_v54, %v18416_v7  ;;  %v13043_v2 = vcombine.low %v13021_v36, %v13028_v8  ;;  %v11995_v13 = vrot.slane %v11981_v50, %v18416_v7  ;;  %v18110_v50 = vld [vmem:[%s21975_s5 + $0x88] sm:$0xff]  }
 0x423   : > { %17611 = vmatprep.subr.bf16.mxu1 %v18106_v23  ;;  %v16629_v40 = vpack.i.b16 %v21040_v55, %v13253_v41  ;;  %v16631_v63 = vpack.i.b16 %v21253_v20, %v21242_v39  ;;  %v13364_v35 = vcombine.low %v20995_v12, %v16627_v26  ;;  %v11655_v55 = vrot.slane %v11648_v58, %v18416_v7 }
 0x424   : > { %v13044_v16 = vcombine.low %v13035_v59, %v13042_v57  ;;  %v11988_v3 = vrot.slane %v11980_v53, %v18416_v7  ;;  %v13365_v61 = vcombine.low %v21165_v21, %v13246_v29  ;;  %v13051_v12 = vrot.slane %v13043_v2, %v18416_v7 }
 0x425   : > { %v13366_v62 = vcombine.low %v16629_v40, %v21079_v49  ;;  %v13367_v27 = vcombine.low %v21115_v44, %v16631_v63  ;;  %v13374_v0 = vrot.slane %v13364_v35, %v18416_v7  ;;  %v18109_v49 = vld [vmem:[%s21975_s5 + $0x80] sm:$0xff]   ;;  %v13554_v10 = vrot.slane %v16641_v24, %v18416_v7 }
 0x426   : > { %17612 = vmatpush3.bf16.msra.mxu1 %v18106_v23  ;;  %v13058_v46 = vrot.slane %v13044_v16, %v18416_v7  ;;  %v13547_v23 = vcombine.high %v16641_v24, %v16641_v24  ;;  %v13381_v58 = vrot.slane %v13365_v61, %v18416_v7  ;;  %v11996_v25 = vcombine.low %v11988_v3, %v11995_v13  ;;  %v16674_v40 = vld.sshfl [vmem:[#allocation3 + $0x8] sm:$0x12 pattern:$0x75316420]  ;;  %v18111_v13 = vld [vmem:[%s21975_s5 + $0x90] sm:$0xff]  }
 0x427   : > { %17613 = vmatprep.subr.bf16.mxu1 %v18107_v45  ;;  %v13388_v21 = vrot.slane %v13366_v62, %v18416_v7  ;;  %v13395_v1 = vrot.slane %v13367_v27, %v18416_v7  ;;  %v13620_v14 = vrot.slane %v16644_v48, %v18416_v7  ;;  %v13613_v53 = vcombine.high %v16644_v48, %v16644_v48  ;;  %v16676_v24 = vld.sshfl [vmem:[#allocation3 + $0x10] sm:$0x12 pattern:$0x75316420] }
 0x428   : > { %v21285_v56 = vcombine.low %v13051_v12, %v13058_v46  ;;  %v13561_v11 = vrot.slane %v13547_v23, %v18416_v7  ;;  %v13396_v42 = vcombine.low %v13374_v0, %v13381_v58  ;;  %v13672_v52 = vunpack.i.h.s16 %v13554_v10  ;;  %v16677_v62 = vld.sshfl [vmem:[#allocation3 + $0x1c] sm:$0x12 pattern:$0x75316420] }
 0x429   : > { %v13397_v5 = vcombine.low %v13388_v21, %v13395_v1  ;;  %v13336_v47 = vunpack.i.h.s16 %v21253_v20  ;;  %v13680_v36 = vunpack.i.h.s16 %v13253_v41  ;;  %v13681_v8 = vunpack.i.h.s16 %v13620_v14  ;;  %v21317_v61 = vld.sshfl [vmem:[#allocation3 + $0x24] sm:$0x12 pattern:$0x75316420]  ;;  %v18151_v20 = vld [vmem:[%s21975_s5 + $0x1d0] sm:$0xff]  }
 0x42a   : > { %17614 = vmatpush3.bf16.msra.mxu1 %v18107_v45  ;;  %v13674_v19 = vunpack.i.h.s16 %v13561_v11  ;;  %v13678_v45 = vunpack.i.h.s16 %v13246_v29  ;;  %v13404_v43 = vrot.slane %v13396_v42, %v18416_v7  ;;  %v12958_v59 = vrot.slane %v21191_v38, %v18416_v7  ;;  %v18112_v1 = vld [vmem:[%s21975_s5 + $0x98] sm:$0xff]  }
 0x42b   : > { %17615 = vmatprep.subr.bf16.mxu1 %v18108_v4  ;;  %v13411_v54 = vrot.slane %v13397_v5, %v18416_v7  ;;  %v13686_v26 = vunpack.i.h.s16 %v21242_v39  ;;  %v16663_v57 = vpack.i.b16 %v13561_v11, %v13672_v52  ;;  %v13627_v29 = vrot.slane %v13613_v53, %v18416_v7 }
 0x42c   : > { %v13708_v2 = vpack.i.b16 %v12615_v15, %v13674_v19  ;;  %v16664_v63 = vpack.i.b16 %v13253_v41, %v13678_v45  ;;  %v13711_v35 = vpack.i.b16 %v13681_v8, %v13680_v36  ;;  %v21306_v38 = vpack.i.b16 %v21242_v39, %v12273_v9 }
 0x42d   : > { %v13714_v31 = vpack.i.b16 %v13336_v47, %v13686_v26  ;;  %v13906_v3 = vrot.slane %v16674_v40, %v18416_v7  ;;  %v13945_v27 = vcombine.high %v16676_v24, %v16676_v24  ;;  %v14034_v48 = vunpack.i.h.s16 %v21215_v51 }
 0x42e   : > { %17616 = vmatpush3.bf16.msra.mxu1 %v18108_v4  ;;  %v21300_v4 = vcombine.low %v13404_v43, %v13411_v54  ;;  %v13716_v15 = vcombine.low %v16663_v57, %v13708_v2  ;;  %v13717_v41 = vcombine.low %v21120_v32, %v16664_v63  ;;  %v13718_v16 = vcombine.low %v13711_v35, %v13627_v29 }
 0x42f   : > { %17621 = vmatprep.subr.bf16.mxu1 %v18109_v49  ;;  %v13719_v44 = vcombine.low %v21306_v38, %v13714_v31  ;;  %v21320_v12 = vcombine.high %v12958_v59, %v12958_v59  ;;  %v13914_v0 = vcombine.high %v13906_v3, %v13906_v3  ;;  %v13952_v32 = vrot.slane %v16676_v24, %v18416_v7  ;;  %v18113_v59 = vld [vmem:[%s21975_s5 + $0xa0] sm:$0xff]   ;;  %v18114_v31 = vld [vmem:[%s21975_s5 + $0xa8] sm:$0xff]  }
 0x430   : > { %v13726_v9 = vrot.slane %v13716_v15, %v18416_v7  ;;  %v13733_v46 = vrot.slane %v13717_v41, %v18416_v7  ;;  %v13740_v23 = vrot.slane %v13718_v16, %v18416_v7  ;;  %v13968_v58 = vcombine.high %v16677_v62, %v16677_v62  ;;  %v18115_v16 = vld [vmem:[%s21975_s5 + $0xb0] sm:$0xff]  }
 0x431   : > { %17618 = vmatmul.mubr.bf16.vlgmr.msra.gmra.mrb[68].mxu1 %v11655_v55  ;;  %v13899_v55 = vcombine.high %v16674_v40, %v16674_v40  ;;  %v13975_v21 = vrot.slane %v16677_v62, %v18416_v7  ;;  %v14014_v11 = vcombine.high %v21317_v61, %v21317_v61  ;;  %v16696_v14 = vpack.i.b16 %v21215_v51, %v13914_v0  ;;  %v18118_v0 = vld [vmem:[%s21975_s5 + $0xc8] sm:$0xff]  }
 0x432   : > { %17622 = vmatpush3.bf16.msra.mxu1 %v18109_v49  ;;  %17637 = vmatprep.mubr.bf16.mxu1 %v11996_v25  ;;  %v13747_v49 = vrot.slane %v13719_v44, %v18416_v7  ;;  %v13748_v10 = vcombine.low %v13726_v9, %v13733_v46  ;;  %v13959_v5 = vrot.slane %v13945_v27, %v18416_v7  ;;  %v11920_v62 = vunpack.i.h.s16 %v21107_v34  ;;  %v18116_v9 = vld [vmem:[%s21975_s5 + $0xb8] sm:$0xff]   ;;  %v18117_v34 = vld [vmem:[%s21975_s5 + $0xc0] sm:$0xff]  }
 0x433   : > { %17623 = vmatprep.subr.bf16.mxu1 %v18110_v50  ;;  %v13913_v25 = vrot.slane %v13899_v55, %v18416_v7  ;;  %v13982_v53 = vrot.slane %v13968_v58, %v18416_v7  ;;  %v16697_v52 = vpack.i.b16 %v21210_v17, %v14034_v48  ;;  %v13960_v19 = vcombine.high %v13952_v32, %v13952_v32  ;;  %v18120_v32 = vld [vmem:[%s21975_s5 + $0xd8] sm:$0xff]  }
 0x434   : > { %v13749_v42 = vcombine.low %v13740_v23, %v13747_v49  ;;  %v13983_v45 = vcombine.high %v13975_v21, %v13975_v21  ;;  %v13756_v54 = vrot.slane %v13748_v10, %v18416_v7  ;;  %v16491_v27 = vpack.i.b16 %v21172_v30, %v11920_v62  ;;  %v18119_v30 = vld [vmem:[%s21975_s5 + $0xd0] sm:$0xff]   ;;  %v18121_v23 = vld [vmem:[%s21975_s5 + $0xe0] sm:$0xff]   ;;  %v18124_v58 = vld [vmem:[%s21975_s5 + $0xf8] sm:$0xff]  }
 0x435   : > { %v14074_v43 = vcombine.low %v13913_v25, %v16696_v14  ;;  %v14040_v8 = vunpack.i.h.s16 %v13982_v53  ;;  %v14075_v51 = vcombine.low %v16697_v52, %v13959_v5  ;;  %v16698_v26 = vpack.i.b16 %v13982_v53, %v13960_v19  ;;  %v18123_v49 = vld [vmem:[%s21975_s5 + $0xf0] sm:$0xff]   ;;  %v18126_v25 = vld [vmem:[%s21975_s5 + $0x108] sm:$0xff]   ;;  %v18129_v14 = vld [vmem:[%s21975_s5 + $0x120] sm:$0xff]  }
 0x436   : > { %17624 = vmatpush3.bf16.msra.mxu1 %v18110_v50  ;;  %v21338_v50 = vrot.slane %v14014_v11, %v18416_v7  ;;  %v13763_v36 = vrot.slane %v13749_v42, %v18416_v7  ;;  %v12003_v48 = vrot.slane %v16491_v27, %v18416_v7  ;;  %v12356_v21 = vrot.slane %v21306_v38, %v18416_v7  ;;  %v18127_v38 = vld [vmem:[%s21975_s5 + $0x110] sm:$0xff]   ;;  %v18128_v11 = vld [vmem:[%s21975_s5 + $0x118] sm:$0xff]   ;;  %v18133_v5 = vld [vmem:[%s21975_s5 + $0x140] sm:$0xff]  }
 0x437   : > { %17625 = vmatprep.subr.bf16.mxu1 %v18111_v13  ;;  %v16699_v2 = vpack.i.b16 %v13983_v45, %v14040_v8  ;;  %v14084_v40 = vrot.slane %v14074_v43, %v18416_v7  ;;  %v14091_v29 = vrot.slane %v14075_v51, %v18416_v7  ;;  %v12708_v42 = vrot.slane %v21242_v39, %v18416_v7  ;;  %v18134_v52 = vld [vmem:[%s21975_s5 + $0x148] sm:$0xff]   ;;  %v18135_v39 = vld [vmem:[%s21975_s5 + $0x150] sm:$0xff]   ;;  %v18136_v19 = vld [vmem:[%s21975_s5 + $0x158] sm:$0xff]  }
 0x438   : > { %v16700_v17 = vpack.i.b16 %v21338_v50, %v21320_v12  ;;  %v21347_v57 = vcombine.low %v13756_v54, %v13763_v36  ;;  %v12010_v46 = vrot.slane %v12003_v48, %v18416_v7  ;;  %v12363_v10 = vrot.slane %v12356_v21, %v18416_v7  ;;  %v18137_v45 = vld [vmem:[%s21975_s5 + $0x160] sm:$0xff]   ;;  %v18139_v43 = vld [vmem:[%s21975_s5 + $0x170] sm:$0xff]   ;;  %v18140_v36 = vld [vmem:[%s21975_s5 + $0x178] sm:$0xff]  }
 0x439   : > { %v14076_v35 = vcombine.low %v16698_v26, %v16699_v2  ;;  %v14106_v24 = vcombine.low %v14084_v40, %v14091_v29  ;;  %v12715_v53 = vrot.slane %v12708_v42, %v18416_v7  ;;  %v12983_v54 = vunpack.i.h.s16 %v21218_v22  ;;  %v18145_v2 = vld [vmem:[%s21975_s5 + $0x1a0] sm:$0xff]   ;;  %v18147_v29 = vld [vmem:[%s21975_s5 + $0x1b0] sm:$0xff]   ;;  %v18156_v27 = vld [vmem:[%s21975_s5 + $0x1f8] sm:$0xff]  }
 0x43a   : > { %17626 = vmatpush3.bf16.msra.mxu1 %v18111_v13  ;;  %v14077_v63 = vcombine.low %v21218_v22, %v16700_v17  ;;  %v18142_v22 = vld [vmem:[%s21975_s5 + $0x188] sm:$0xff]   ;;  %v18144_v17 = vld [vmem:[%s21975_s5 + $0x198] sm:$0xff]   ;;  %v13305_v40 = vcombine.high %v21236_v33, %v21236_v33 }
 0x43b   : > { %17627 = vmatprep.subr.bf16.mxu1 %v18112_v1  ;;  %v14098_v13 = vrot.slane %v14076_v35, %v18416_v7  ;;  %v14114_v55 = vrot.slane %v14106_v24, %v18416_v7  ;;  %v16596_v8 = vpack.i.b16 %v21320_v12, %v12983_v54  ;;  %v18143_v12 = vld [vmem:[%s21975_s5 + $0x190] sm:$0xff]   ;;  %v18148_v35 = vld [vmem:[%s21975_s5 + $0x1b8] sm:$0xff]  }
 0x43c   : > { %v14105_v15 = vrot.slane %v14077_v63, %v18416_v7  ;;  %v13319_v63 = vrot.slane %v13305_v40, %v18416_v7 }
 0x43d   : > { %v13066_v51 = vrot.slane %v16596_v8, %v18416_v7 }
 0x43e   : > { %17628 = vmatpush3.bf16.msra.mxu1 %v18112_v1  ;;  %v14107_v41 = vcombine.low %v14098_v13, %v14105_v15  ;;  %v18125_v1 = vld [vmem:[%s21975_s5 + $0x100] sm:$0xff]   ;;  %v16632_v24 = vpack.i.b16 %v13319_v63, %v13336_v47  ;;  %v18150_v13 = vld [vmem:[%s21975_s5 + $0x1c8] sm:$0xff]   ;;  %v18152_v47 = vld [vmem:[%s21975_s5 + $0x1d8] sm:$0xff]   ;;  %v13771_v48 = vrot.slane %v13319_v63, %v18416_v7 }
 0x43f   : > { %17629 = vmatprep.subr.bf16.mxu1 %v18113_v59  ;;  %v13073_v26 = vrot.slane %v13066_v51, %v18416_v7  ;;  %v18165_v63 = vld [vmem:[%s21977_s7 + $0x40] sm:$0xff]  }
 0x440   : > { %v14121_v3 = vrot.slane %v14107_v41, %v18416_v7  ;;  %v13419_v33 = vrot.slane %v16632_v24, %v18416_v7  ;;  %v18153_v41 = vld [vmem:[%s21975_s5 + $0x1e0] sm:$0xff]   ;;  %17762 = vmatpush3.bf16.msra.mxu0 %v18165_v63 }
 0x441   : > { %17763 = vmatprep.subr.bf16.mxu0 %v22119_v37 }
 0x442   : > { %17630 = vmatpush3.bf16.msra.mxu1 %v18113_v59  ;;  %v21363_v44 = vcombine.low %v14114_v55, %v14121_v3  ;;  %v18141_v59 = vld [vmem:[%s21975_s5 + $0x180] sm:$0xff]   ;;  %v13426_v15 = vrot.slane %v13419_v33, %v18416_v7 }
 0x443   : > { %17631 = vmatprep.subr.bf16.mxu1 %v18114_v31 }
 0x446   : > { %17632 = vmatpush3.bf16.msra.mxu1 %v18114_v31  ;;  %v18149_v31 = vld [vmem:[%s21975_s5 + $0x1c0] sm:$0xff]  }
 0x447   : > { %17633 = vmatprep.subr.bf16.mxu1 %v18115_v16 }
 0x44a   : > { %17634 = vmatpush3.bf16.msra.mxu1 %v18115_v16  ;;  %v18155_v16 = vld [vmem:[%s21975_s5 + $0x1f0] sm:$0xff]  }
 0x44b   : > { %17635 = vmatprep.subr.bf16.mxu1 %v18116_v9 }
 0x44e   : > { %17636 = vmatpush3.bf16.msra.mxu1 %v18116_v9 }
 0x44f   : > { %17641 = vmatprep.subr.bf16.mxu1 %v18117_v34 }
 0x451   : > { %17638 = vmatmul.mubr.bf16.vlgmr.msra.gmra.mrb[72].mxu1 %v12010_v46  ;;  %v13778_v46 = vrot.slane %v13771_v48, %v18416_v7  ;;  %v18176_v48 = vld [vmem:[%s21977_s7 + $0x28] sm:$0xff]  }
 0x452   : > { %17642 = vmatpush3.bf16.msra.mxu1 %v18117_v34  ;;  %17657 = vmatprep.mubr.bf16.mxu1 %v21196_v28  ;;  %v18122_v28 = vld [vmem:[%s21975_s5 + $0xe8] sm:$0xff]   ;;  %v18157_v34 = vld [vmem:[%s21975_s5 + $0x200] sm:$0xff]  }
 0x453   : > { %17643 = vmatprep.subr.bf16.mxu1 %v18118_v0 }
 0x456   : > { %17644 = vmatpush3.bf16.msra.mxu1 %v18118_v0  ;;  %v18158_v0 = vld [vmem:[%s21975_s5 + $0x208] sm:$0xff]  }
 0x457   : > { %17645 = vmatprep.subr.bf16.mxu1 %v18119_v30 }
 0x45a   : > { %17646 = vmatpush3.bf16.msra.mxu1 %v18119_v30  ;;  %v18159_v30 = vld [vmem:[%s21975_s5 + $0x210] sm:$0xff]  }
 0x45b   : > { %17647 = vmatprep.subr.bf16.mxu1 %v18120_v32 }
 0x45e   : > { %17648 = vmatpush3.bf16.msra.mxu1 %v18120_v32  ;;  %v18160_v32 = vld [vmem:[%s21975_s5 + $0x218] sm:$0xff]  }
 0x45f   : > { %17649 = vmatprep.subr.bf16.mxu1 %v18121_v23 }
 0x462   : > { %17650 = vmatpush3.bf16.msra.mxu1 %v18121_v23  ;;  %v18161_v23 = vld [vmem:[%s21975_s5 + $0x220] sm:$0xff]  }
 0x463   : > { %17651 = vmatprep.subr.bf16.mxu1 %v18122_v28 }
 0x466   : > { %17652 = vmatpush3.bf16.msra.mxu1 %v18122_v28  ;;  %v14021_v28 = vrot.slane %v21317_v61, %v18416_v7  ;;  %v18164_v61 = vld [vmem:[%s21975_s5 + $0x238] sm:$0xff]  }
 0x467   : > { %17653 = vmatprep.subr.bf16.mxu1 %v18123_v49 }
 0x46a   : > { %17654 = vmatpush3.bf16.msra.mxu1 %v18123_v49  ;;  %v18163_v49 = vld [vmem:[%s21975_s5 + $0x230] sm:$0xff]  }
 0x46b   : > { %17655 = vmatprep.subr.bf16.mxu1 %v18124_v58 }
 0x46e   : > { %17656 = vmatpush3.bf16.msra.mxu1 %v18124_v58  ;;  %v14046_v58 = vunpack.i.h.s16 %v21338_v50 }
 0x46f   : > { %17661 = vmatprep.subr.bf16.mxu1 %v18125_v1 }
 0x471   : > { %17658 = vmatmul.mubr.bf16.vlgmr.msra.gmra.mrb[76].mxu1 %v12363_v10 }
 0x472   : > { %17662 = vmatpush3.bf16.msra.mxu1 %v18125_v1  ;;  %17677 = vmatprep.mubr.bf16.mxu1 %v12701_v60  ;;  %v18132_v60 = vld [vmem:[%s21975_s5 + $0x138] sm:$0xff]  }
 0x473   : > { %17663 = vmatprep.subr.bf16.mxu1 %v18126_v25 }
 0x476   : > { %17664 = vmatpush3.bf16.msra.mxu1 %v18126_v25  ;;  %v14029_v25 = vcombine.high %v14021_v28, %v14021_v28 }
 0x477   : > { %17665 = vmatprep.subr.bf16.mxu1 %v18127_v38 }
 0x47a   : > { %17666 = vmatpush3.bf16.msra.mxu1 %v18127_v38 }
 0x47b   : > { %17667 = vmatprep.subr.bf16.mxu1 %v18128_v11 }
 0x47e   : > { %17668 = vmatpush3.bf16.msra.mxu1 %v18128_v11 }
 0x47f   : > { %17669 = vmatprep.subr.bf16.mxu1 %v18129_v14 }
 0x482   : > { %17670 = vmatpush3.bf16.msra.mxu1 %v18129_v14 }
 0x483   : > { %17671 = vmatprep.subr.bf16.mxu1 %v18130_v18 }
 0x486   : > { %17672 = vmatpush3.bf16.msra.mxu1 %v18130_v18  ;;  %v16701_v18 = vpack.i.b16 %v14029_v25, %v14046_v58 }
 0x487   : > { %17673 = vmatprep.subr.bf16.mxu1 %v18131_v6 }
 0x48a   : > { %17674 = vmatpush3.bf16.msra.mxu1 %v18131_v6 }
 0x48b   : > { %17675 = vmatprep.subr.bf16.mxu1 %v18132_v60 }
 0x48e   : > { %17676 = vmatpush3.bf16.msra.mxu1 %v18132_v60  ;;  %v14129_v60 = vrot.slane %v16701_v18, %v18416_v7 }
 0x48f   : > { %17681 = vmatprep.subr.bf16.mxu1 %v18133_v5 }
 0x490   : > { %v14136_v50 = vrot.slane %v14129_v60, %v18416_v7 }
 0x491   : > { %17678 = vmatmul.mubr.bf16.vlgmr.msra.gmra.mrb[80].mxu1 %v12715_v53 }
 0x492   : > { %17682 = vmatpush3.bf16.msra.mxu1 %v18133_v5  ;;  %17697 = vmatprep.mubr.bf16.mxu1 %v21285_v56  ;;  %v18138_v56 = vld [vmem:[%s21975_s5 + $0x168] sm:$0xff]  }
 0x493   : > { %17683 = vmatprep.subr.bf16.mxu1 %v18134_v52 }
 0x496   : > { %17684 = vmatpush3.bf16.msra.mxu1 %v18134_v52 }
 0x497   : > { %17685 = vmatprep.subr.bf16.mxu1 %v18135_v39 }
 0x49a   : > { %17686 = vmatpush3.bf16.msra.mxu1 %v18135_v39 }
 0x49b   : > { %17687 = vmatprep.subr.bf16.mxu1 %v18136_v19 }
 0x49e   : > { %17688 = vmatpush3.bf16.msra.mxu1 %v18136_v19 }
 0x49f   : > { %17689 = vmatprep.subr.bf16.mxu1 %v18137_v45 }
 0x4a2   : > { %17690 = vmatpush3.bf16.msra.mxu1 %v18137_v45 }
 0x4a3   : > { %17691 = vmatprep.subr.bf16.mxu1 %v18138_v56 }
 0x4a6   : > { %17692 = vmatpush3.bf16.msra.mxu1 %v18138_v56 }
 0x4a7   : > { %17693 = vmatprep.subr.bf16.mxu1 %v18139_v43 }
 0x4aa   : > { %17694 = vmatpush3.bf16.msra.mxu1 %v18139_v43 }
 0x4ab   : > { %17695 = vmatprep.subr.bf16.mxu1 %v18140_v36 }
 0x4ae   : > { %17696 = vmatpush3.bf16.msra.mxu1 %v18140_v36 }
 0x4af   : > { %17701 = vmatprep.subr.bf16.mxu1 %v18141_v59 }
 0x4b1   : > { %17698 = vmatmul.mubr.bf16.vlgmr.msra.gmra.mrb[84].mxu1 %v13073_v26 }
 0x4b2   : > { %17702 = vmatpush3.bf16.msra.mxu1 %v18141_v59  ;;  %17717 = vmatprep.mubr.bf16.mxu1 %v21300_v4  ;;  %v18146_v4 = vld [vmem:[%s21975_s5 + $0x1a8] sm:$0xff]  }
 0x4b3   : > { %17703 = vmatprep.subr.bf16.mxu1 %v18142_v22 }
 0x4b6   : > { %17704 = vmatpush3.bf16.msra.mxu1 %v18142_v22 }
 0x4b7   : > { %17705 = vmatprep.subr.bf16.mxu1 %v18143_v12 }
 0x4ba   : > { %17706 = vmatpush3.bf16.msra.mxu1 %v18143_v12 }
 0x4bb   : > { %17707 = vmatprep.subr.bf16.mxu1 %v18144_v17 }
 0x4be   : > { %17708 = vmatpush3.bf16.msra.mxu1 %v18144_v17 }
 0x4bf   : > { %17709 = vmatprep.subr.bf16.mxu1 %v18145_v2 }
 0x4c2   : > { %17710 = vmatpush3.bf16.msra.mxu1 %v18145_v2 }
 0x4c3   : > { %17711 = vmatprep.subr.bf16.mxu1 %v18146_v4 }
 0x4c6   : > { %17712 = vmatpush3.bf16.msra.mxu1 %v18146_v4 }
 0x4c7   : > { %17713 = vmatprep.subr.bf16.mxu1 %v18147_v29 }
 0x4ca   : > { %17714 = vmatpush3.bf16.msra.mxu1 %v18147_v29 }
 0x4cb   : > { %17715 = vmatprep.subr.bf16.mxu1 %v18148_v35 }
 0x4ce   : > { %17716 = vmatpush3.bf16.msra.mxu1 %v18148_v35  ;;  %v18166_v35 = vld [vmem:[%s21977_s7] sm:$0xff]  }
 0x4cf   : > { %17721 = vmatprep.subr.bf16.mxu1 %v18149_v31 }
 0x4d1   : > { %17718 = vmatmul.mubr.bf16.vlgmr.msra.gmra.mrb[88].mxu1 %v13426_v15 }
 0x4d2   : > { %17722 = vmatpush3.bf16.msra.mxu1 %v18149_v31  ;;  %17737 = vmatprep.mubr.bf16.mxu1 %v21347_v57  ;;  %v18154_v57 = vld [vmem:[%s21975_s5 + $0x1e8] sm:$0xff]  }
 0x4d3   : > { %17723 = vmatprep.subr.bf16.mxu1 %v18150_v13 }
 0x4d6   : > { %17724 = vmatpush3.bf16.msra.mxu1 %v18150_v13  ;;  %v18167_v13 = vld [vmem:[%s21977_s7 + $0x48] sm:$0xff]  }
 0x4d7   : > { %17725 = vmatprep.subr.bf16.mxu1 %v18151_v20  ;;  %17764 = vmatpush3.bf16.msra.mxu0 %v18167_v13 }
 0x4d8   : > { %17765 = vmatprep.subr.bf16.mxu0 %v22119_v37 }
 0x4da   : > { %17726 = vmatpush3.bf16.msra.mxu1 %v18151_v20  ;;  %v18168_v20 = vld [vmem:[%s21977_s7 + $0x8] sm:$0xff]  }
 0x4db   : > { %17727 = vmatprep.subr.bf16.mxu1 %v18152_v47 }
 0x4de   : > { %17728 = vmatpush3.bf16.msra.mxu1 %v18152_v47 }
 0x4df   : > { %17729 = vmatprep.subr.bf16.mxu1 %v18153_v41 }
 0x4e2   : > { %17730 = vmatpush3.bf16.msra.mxu1 %v18153_v41 }
 0x4e3   : > { %17731 = vmatprep.subr.bf16.mxu1 %v18154_v57 }
 0x4e4   : > { %v17599_v62 = vpop.f32.mrb[64].mxu1 }
 0x4e5   : > { %v11570_v55 = vpop.f32.mrb[65].mxu1 }
 0x4e6   : > { %17732 = vmatpush3.bf16.msra.mxu1 %v18154_v57  ;;  %v17600_v3 = vpop.f32.mrb[66].mxu1  ;;  %v18169_v57 = vld [vmem:[%s21977_s7 + $0x50] sm:$0xff]  }
 0x4e7   : > { %v11573_v9 = vpop.f32.mrb[67].mxu1  ;;  %17733 = vmatprep.subr.bf16.mxu1 %v18155_v16  ;;  %17766 = vmatpush3.bf16.msra.mxu0 %v18169_v57  ;;  %v18173_v3 = vld [vmem:[%s21977_s7 + $0x60] sm:$0xff]  }
 0x4e8   : > { %17767 = vmatprep.subr.bf16.mxu0 %v22119_v37 }
 0x4ea   : > { %17734 = vmatpush3.bf16.msra.mxu1 %v18155_v16  ;;  %v18170_v16 = vld [vmem:[%s21977_s7 + $0x10] sm:$0xff]  }
 0x4eb   : > { %17735 = vmatprep.subr.bf16.mxu1 %v18156_v27 }
 0x4ee   : > { %17736 = vmatpush3.bf16.msra.mxu1 %v18156_v27  ;;  %v18175_v27 = vld [vmem:[%s21977_s7 + $0x68] sm:$0xff]  }
 0x4ef   : > { %17741 = vmatprep.subr.bf16.mxu1 %v18157_v34 }
 0x4f1   : > { %17738 = vmatmul.mubr.bf16.vlgmr.msra.gmra.mrb[92].mxu1 %v13778_v46  ;;  %v18178_v46 = vld [vmem:[%s21977_s7 + $0x30] sm:$0xff]  }
 0x4f2   : > { %17742 = vmatpush3.bf16.msra.mxu1 %v18157_v34  ;;  %17757 = vmatprep.mubr.bf16.mxu1 %v21363_v44  ;;  %v18162_v44 = vld [vmem:[%s21975_s5 + $0x228] sm:$0xff]   ;;  %v18177_v34 = vld [vmem:[%s21977_s7 + $0x70] sm:$0xff]  }
 0x4f3   : > { %17743 = vmatprep.subr.bf16.mxu1 %v18158_v0 }
 0x4f6   : > { %17744 = vmatpush3.bf16.msra.mxu1 %v18158_v0  ;;  %v18179_v0 = vld [vmem:[%s21977_s7 + $0x78] sm:$0xff]  }
 0x4f7   : > { %17745 = vmatprep.subr.bf16.mxu1 %v18159_v30 }
 0x4fa   : > { %17746 = vmatpush3.bf16.msra.mxu1 %v18159_v30  ;;  %v18180_v30 = vld [vmem:[%s21977_s7 + $0x38] sm:$0xff]  }
 0x4fb   : > { %17747 = vmatprep.subr.bf16.mxu1 %v18160_v32 }
 0x4fe   : > { %17748 = vmatpush3.bf16.msra.mxu1 %v18160_v32 }
 0x4ff   : > { %17749 = vmatprep.subr.bf16.mxu1 %v18161_v23 }
 0x502   : > { %17750 = vmatpush3.bf16.msra.mxu1 %v18161_v23 }
 0x503   : > { %17751 = vmatprep.subr.bf16.mxu1 %v18162_v44 }
 0x504   : > { %v17619_v21 = vpop.f32.mrb[68].mxu1 }
 0x505   : > { %v11749_v1 = vadd.f32 %v17619_v21, %v17599_v62  ;;  %v11740_v10 = vpop.f32.mrb[69].mxu1  ;;  %v18171_v62 = vld [vmem:[%s21977_s7 + $0x58] sm:$0xff]  }
 0x506   : > { %v11741_v38 = vadd.f32 %v11740_v10, %v11570_v55  ;;  %v17620_v11 = vpop.f32.mrb[70].mxu1  ;;  %17752 = vmatpush3.bf16.msra.mxu1 %v18162_v44  ;;  %v18172_v55 = vld [vmem:[%s21977_s7 + $0x18] sm:$0xff]   ;;  %17768 = vmatpush3.bf16.msra.mxu0 %v18171_v62 }
 0x507   : > { %v11743_v14 = vpop.f32.mrb[71].mxu1  ;;  %17753 = vmatprep.subr.bf16.mxu1 %v18163_v49  ;;  %17769 = vmatprep.subr.bf16.mxu0 %v22119_v37 }
 0x508   : > { %v11744_v6 = vadd.f32 %v11743_v14, %v11573_v9  ;;  %v18174_v9 = vld [vmem:[%s21977_s7 + $0x20] sm:$0xff]  }
 0x50a   : > { %17754 = vmatpush3.bf16.msra.mxu1 %v18163_v49  ;;  %17770 = vmatpush3.bf16.msra.mxu0 %v18173_v3 }
 0x50b   : > { %17755 = vmatprep.subr.bf16.mxu1 %v18164_v61  ;;  %17771 = vmatprep.subr.bf16.mxu0 %v22119_v37 }
 0x50e   : > { %17756 = vmatpush3.bf16.msra.mxu1 %v18164_v61  ;;  %17772 = vmatpush3.bf16.msra.mxu0 %v18175_v27 }
 0x50f   : > { %17781 = vmatprep.subr.bf16.mxu1 %v22119_v37  ;;  %17773 = vmatprep.subr.bf16.mxu0 %v22119_v37 }
 0x511   : > { %17758 = vmatmul.mubr.bf16.vlgmr.msra.gmra.mrb[96].mxu1 %v14136_v50 }
 0x512   : > { %17797 = vmatprep.mubr.msk.bf16.mxu1 %vm18304_vm0, %v22119_v37  ;;  %17782 = vmatpush3.bf16.msra.mxu1 %v18166_v35 }
 0x513   : > { %17783 = vmatprep.subr.bf16.mxu1 %v22119_v37  ;;  %17774 = vmatpush3.bf16.msra.mxu0 %v18177_v34 }
 0x514   : > { %17775 = vmatprep.subr.bf16.mxu0 %v22119_v37 }
 0x516   : > { %17784 = vmatpush3.bf16.msra.mxu1 %v18168_v20 }
 0x517   : > { %17785 = vmatprep.subr.bf16.mxu1 %v22119_v37  ;;  %17776 = vmatpush3.bf16.msra.mxu0 %v18179_v0 }
 0x518   : > { %17801 = vmatprep.subr.bf16.mxu0 %v22119_v37 }
 0x51a   : > { %17786 = vmatpush3.bf16.msra.mxu1 %v18170_v16 }
 0x51b   : > { %17787 = vmatprep.subr.bf16.mxu1 %v22119_v37 }
 0x51e   : > { %17788 = vmatpush3.bf16.msra.mxu1 %v18172_v55 }
 0x51f   : > { %17789 = vmatprep.subr.bf16.mxu1 %v22119_v37 }
 0x522   : > { %17790 = vmatpush3.bf16.msra.mxu1 %v18174_v9 }
 0x523   : > { %17791 = vmatprep.subr.bf16.mxu1 %v22119_v37 }
 0x524   : > { %v17639_v42 = vpop.f32.mrb[72].mxu1 }
 0x525   : > { %v12111_v5 = vadd.f32 %v17639_v42, %v11749_v1  ;;  %v12095_v53 = vpop.f32.mrb[73].mxu1 }
 0x526   : > { %v12109_v52 = vadd.f32 %v12095_v53, %v11741_v38  ;;  %v17640_v39 = vpop.f32.mrb[74].mxu1  ;;  %17792 = vmatpush3.bf16.msra.mxu1 %v18176_v48 }
 0x527   : > { %v12098_v19 = vpop.f32.mrb[75].mxu1  ;;  %17793 = vmatprep.subr.bf16.mxu1 %v22119_v37 }
 0x528   : > { %v12110_v45 = vadd.f32 %v12098_v19, %v11744_v6  ;;  %v16710_v6 = vld [vmem:[%s21976_s6] ss:$0 sm:$0xff] }
 0x52a   : > { %17794 = vmatpush3.bf16.msra.mxu1 %v18178_v46 }
 0x52b   : > { %17795 = vmatprep.subr.bf16.mxu1 %v22119_v37 }
 0x52e   : > { %17796 = vmatpush3.bf16.msra.mxu1 %v18180_v30 }
 0x52f   : > { %17821 = vmatprep.subr.bf16.mxu1 %v22119_v37 }
 0x544   : > { %v17659_v56 = vpop.f32.mrb[76].mxu1 }
 0x545   : > { %v12464_v43 = vadd.f32 %v17659_v56, %v12111_v5  ;;  %v12448_v54 = vpop.f32.mrb[77].mxu1 }
 0x546   : > { %v12462_v36 = vadd.f32 %v12448_v54, %v12109_v52  ;;  %v17660_v8 = vpop.f32.mrb[78].mxu1 }
 0x547   : > { %v12451_v51 = vpop.f32.mrb[79].mxu1 }
 0x548   : > { %v12463_v59 = vadd.f32 %v12451_v51, %v12110_v45 }
 0x564   : > { %v17679_v26 = vpop.f32.mrb[80].mxu1 }
 0x565   : > { %v12816_v22 = vadd.f32 %v17679_v26, %v12464_v43  ;;  %v12800_v12 = vpop.f32.mrb[81].mxu1 }
 0x566   : > { %v12814_v17 = vadd.f32 %v12800_v12, %v12462_v36  ;;  %v17680_v2 = vpop.f32.mrb[82].mxu1 }
 0x567   : > { %v12803_v4 = vpop.f32.mrb[83].mxu1 }
 0x568   : > { %v12815_v40 = vadd.f32 %v12803_v4, %v12463_v59 }
 0x584   : > { %v17699_v29 = vpop.f32.mrb[84].mxu1 }
 0x585   : > { %v13174_v24 = vadd.f32 %v17699_v29, %v12816_v22  ;;  %v13158_v33 = vpop.f32.mrb[85].mxu1 }
 0x586   : > { %v13172_v31 = vadd.f32 %v13158_v33, %v12814_v17  ;;  %v17700_v15 = vpop.f32.mrb[86].mxu1 }
 0x587   : > { %v13161_v47 = vpop.f32.mrb[87].mxu1 }
 0x588   : > { %v13173_v41 = vadd.f32 %v13161_v47, %v12815_v40 }
 0x5a4   : > { %v17719_v32 = vpop.f32.mrb[88].mxu1 }
 0x5a5   : > { %v13527_v23 = vadd.f32 %v17719_v32, %v13174_v24  ;;  %v13511_v44 = vpop.f32.mrb[89].mxu1 }
 0x5a6   : > { %v13525_v28 = vadd.f32 %v13511_v44, %v13172_v31  ;;  %v17720_v49 = vpop.f32.mrb[90].mxu1 }
 0x5a7   : > { %v13514_v58 = vpop.f32.mrb[91].mxu1 }
 0x5a8   : > { %v13526_v21 = vadd.f32 %v13514_v58, %v13173_v41 }
 0x5c4   : > { %v17739_v1 = vpop.f32.mrb[92].mxu1 }
 0x5c5   : > { %v13879_v10 = vadd.f32 %v17739_v1, %v13527_v23  ;;  %v13863_v25 = vpop.f32.mrb[93].mxu1 }
 0x5c6   : > { %v13877_v38 = vadd.f32 %v13863_v25, %v13525_v28  ;;  %v17740_v11 = vpop.f32.mrb[94].mxu1 }
 0x5c7   : > { %v13866_v14 = vpop.f32.mrb[95].mxu1 }
 0x5c8   : > { %v13878_v61 = vadd.f32 %v13866_v14, %v13526_v21  ;;  %v14527_v14 = vld [vmem:[#allocation4] sm:$0x3] }
 0x5e4   : > { %v17759_v18 = vpop.f32.mrb[96].mxu1 }
 0x5e5   : > { %v14237_v60 = vadd.f32 %v17759_v18, %v13879_v10  ;;  %v14221_v50 = vpop.f32.mrb[97].mxu1 }
 0x5e6   : > { %v14235_v42 = vadd.f32 %v14221_v50, %v13877_v38  ;;  %v17760_v5 = vpop.f32.mrb[98].mxu1 }
 0x5e7   : > { %v14247_v53 = vadd.f32 %v16710_v6, %v14237_v60  ;;  %v14224_v52 = vpop.f32.mrb[99].mxu1 }
 0x5e8   : > { %v14245_v39 = vadd.f32 %v16710_v6, %v14235_v42  ;;  %v14236_v19 = vadd.f32 %v14224_v52, %v13878_v61  ;;  %v14530_v52 = vld [vmem:[#allocation4 + $0x2] sm:$0x3] }
 0x5e9   : > { %v14250_v45 = vmax.f32 %v14247_v53, 0.0 }
 0x5ea   : > { %v14248_v56 = vmax.f32 %v14245_v39, 0.0  ;;  %v14246_v43 = vadd.f32 %v16710_v6, %v14236_v19 }
 0x5eb   : > { %v14358_v54 = vrot.slane %v14250_v45, %v18416_v7  ;;  %v14533_v45 = vld [vmem:[#allocation4 + $0x4] sm:$0x3] }
 0x5ec   : > { %v14254_v36 = vcombine.high %v14248_v56, %v14248_v56  ;;  %v14261_v8 = vrot.slane %v14248_v56, %v18416_v7  ;;  %v14249_v51 = vmax.f32 %v14246_v43, 0.0 }
 0x5ed   : > { %v14359_v17 = vcombine.high %v14358_v54, %v14358_v54  ;;  %v14366_v4 = vrot.slane %v14358_v54, %v18416_v7 }
 0x5ee   : > { %v14268_v59 = vrot.slane %v14254_v36, %v18416_v7  ;;  %v14269_v26 = vcombine.high %v14261_v8, %v14261_v8  ;;  %v14277_v22 = vrot.slane %v14261_v8, %v18416_v7  ;;  %v14303_v12 = vcombine.high %v14249_v51, %v14249_v51 }
 0x5ef   : > { %v14310_v2 = vrot.slane %v14249_v51, %v18416_v7  ;;  %v14373_v28 = vrot.slane %v14359_v17, %v18416_v7  ;;  %v14539_v17 = vld [vmem:[#allocation4 + $0x8] sm:$0x3] }
 0x5f0   : > { %v14270_v40 = vcombine.high %v14268_v59, %v14268_v59  ;;  %v14291_v29 = vrot.slane %v14269_v26, %v18416_v7  ;;  %v14299_v63 = vcombine.high %v14277_v22, %v14277_v22  ;;  %v14284_v35 = vrot.slane %v14268_v59, %v18416_v7  ;;  %v14536_v59 = vld [vmem:[#allocation4 + $0x6] sm:$0x3] }
 0x5f1   : > { %v14317_v24 = vrot.slane %v14303_v12, %v18416_v7  ;;  %v14318_v33 = vcombine.high %v14310_v2, %v14310_v2  ;;  %v14326_v31 = vrot.slane %v14310_v2, %v18416_v7  ;;  %v14503_v53 = vrot.slane %v14373_v28, %v18416_v7 }
 0x5f2   : > { %v14298_v15 = vrot.slane %v14270_v40, %v18416_v7  ;;  %v14301_v13 = vcombine.high %v14291_v29, %v14291_v29  ;;  %v14374_v20 = vcombine.low %v14277_v22, %v14291_v29  ;;  %v14388_v47 = vrot.slane %v14299_v63, %v18416_v7  ;;  %v14542_v29 = vld [vmem:[#allocation4 + $0xa] sm:$0x3] }
 0x5f3   : > { %v14319_v41 = vcombine.high %v14317_v24, %v14317_v24  ;;  %v14333_v57 = vrot.slane %v14317_v24, %v18416_v7  ;;  %v14340_v16 = vrot.slane %v14318_v33, %v18416_v7  ;;  %v14348_v62 = vcombine.high %v14326_v31, %v14326_v31 }
 0x5f4   : > { %v14381_v55 = vrot.slane %v14374_v20, %v18416_v7  ;;  %v14397_v3 = vcombine.low %v14301_v13, %v14284_v35  ;;  %v14411_v9 = vrot.slane %v14298_v15, %v18416_v7  ;;  %v16711_v27 = vcombine.high %v14284_v35, %v14298_v15 }
 0x5f5   : > { %v14347_v48 = vrot.slane %v14319_v41, %v18416_v7  ;;  %v14349_v34 = vcombine.high %v14333_v57, %v14333_v57  ;;  %v14350_v46 = vcombine.high %v14340_v16, %v14340_v16  ;;  %v14434_v0 = vrot.slane %v14326_v31, %v18416_v7 }
 0x5f6   : > { %v14389_v30 = vcombine.low %v14381_v55, %v14388_v47  ;;  %v14404_v32 = vrot.slane %v14397_v3, %v18416_v7  ;;  %v14427_v23 = vrot.slane %v16711_v27, %v18416_v7  ;;  %v14443_v44 = vcombine.low %v14340_v16, %v14348_v62  ;;  %v18181_v47 = vld [vmem:[%s21977_s7 + $0x80] sm:$0xff]   ;;  %v18183_v3 = vld [vmem:[%s21977_s7 + $0x88] sm:$0xff]   ;;  %v18185_v27 = vld [vmem:[%s21977_s7 + $0x90] sm:$0xff]  }
 0x5f7   : > { %v14351_v49 = vcombine.high %v14347_v48, %v14347_v48  ;;  %v14457_v58 = vrot.slane %v14350_v46, %v18416_v7  ;;  %v14466_v21 = vcombine.low %v14333_v57, %v14347_v48  ;;  %v14480_v18 = vrot.slane %v14349_v34, %v18416_v7  ;;  %v18182_v62 = vld [vmem:[%s21977_s7 + $0xc0] sm:$0xff]   ;;  %v18186_v48 = vld [vmem:[%s21977_s7 + $0xd0] sm:$0xff]   ;;  %v18187_v34 = vld [vmem:[%s21977_s7 + $0x98] sm:$0xff]  }
 0x5f8   : > { %v14396_v1 = vrot.slane %v14389_v30, %v18416_v7  ;;  %v14412_v10 = vcombine.low %v14404_v32, %v14411_v9  ;;  %v14435_v25 = vcombine.low %v14427_v23, %v14434_v0  ;;  %v14450_v38 = vrot.slane %v14443_v44, %v18416_v7  ;;  %v18184_v9 = vld [vmem:[%s21977_s7 + $0xc8] sm:$0xff]   ;;  %v18188_v46 = vld [vmem:[%s21977_s7 + $0xd8] sm:$0xff]   ;;  %v18189_v0 = vld [vmem:[%s21977_s7 + $0xa0] sm:$0xff]  }
 0x5f9   : > { %v14473_v61 = vrot.slane %v14466_v21, %v18416_v7  ;;  %v14489_v6 = vcombine.low %v14351_v49, %v14366_v4  ;;  %v18190_v30 = vld [vmem:[%s21977_s7 + $0xe0] sm:$0xff]   ;;  %v18191_v23 = vld [vmem:[%s21977_s7 + $0xa8] sm:$0xff]   ;;  %v18193_v21 = vld [vmem:[%s21977_s7 + $0xb0] sm:$0xff]  }
 0x5fa   : > { %v14419_v60 = vrot.slane %v14412_v10, %v18416_v7  ;;  %v14518_v50 = vpack.c.bf16 %v14396_v1, %v14396_v1  ;;  %v14442_v42 = vrot.slane %v14435_v25, %v18416_v7  ;;  %v14458_v5 = vcombine.low %v14450_v38, %v14457_v58  ;;  %v18192_v49 = vld [vmem:[%s21977_s7 + $0xe8] sm:$0xff]   ;;  %v18194_v25 = vld [vmem:[%s21977_s7 + $0xf0] sm:$0xff]  }
 0x5fb   : > { %v14481_v39 = vcombine.low %v14473_v61, %v14480_v18  ;;  %v14496_v19 = vrot.slane %v14489_v6, %v18416_v7  ;;  %v18196_v6 = vld [vmem:[%s21977_s7 + $0xf8] sm:$0xff]  }
 0x5fc   : > { %v14519_v56 = vpack.c.bf16 %v14419_v60, %v14419_v60  ;;  %v14528_v43 = vsel %vm21643_vm10, %v14518_v50, %v14527_v14  ;;  %v14465_v54 = vrot.slane %v14458_v5, %v18416_v7  ;;  %v14520_v36 = vpack.c.bf16 %v14442_v42, %v14442_v42  ;;  %v18195_v14 = vld [vmem:[%s21977_s7 + $0xb8] sm:$0xff]   ;;  %v18197_v42 = vld [vmem:[%s21977_s7 + $0x100] sm:$0xff]  }
 0x5fd   : > { %14529 = vst [vmem:[#allocation4] sm:$0x3] %v14528_v43  ;;  %v14488_v8 = vrot.slane %v14481_v39, %v18416_v7  ;;  %v14504_v51 = vcombine.low %v14496_v19, %v14503_v53  ;;  %v18199_v19 = vld [vmem:[%s21977_s7 + $0x108] sm:$0xff]   ;;  %v18202_v43 = vld [vmem:[%s21977_s7 + $0x150] sm:$0xff]  }
 0x5fe   : > { %v14531_v26 = vsel %vm21643_vm10, %v14519_v56, %v14530_v52  ;;  %v14521_v22 = vpack.c.bf16 %v14465_v54, %v14465_v54  ;;  %v14534_v12 = vsel %vm21643_vm10, %v14520_v36, %v14533_v45  ;;  %v18198_v52 = vld [vmem:[%s21977_s7 + $0x140] sm:$0xff]   ;;  %v18200_v45 = vld [vmem:[%s21977_s7 + $0x148] sm:$0xff]   ;;  %v18201_v56 = vld [vmem:[%s21977_s7 + $0x110] sm:$0xff]  }
 0x5ff   : > { %14532 = vst [vmem:[#allocation4 + $0x2] sm:$0x3] %v14531_v26  ;;  %v14511_v2 = vrot.slane %v14504_v51, %v18416_v7  ;;  %v14522_v4 = vpack.c.bf16 %v14488_v8, %v14488_v8  ;;  %14535 = vst [vmem:[#allocation4 + $0x4] sm:$0x3] %v14534_v12  ;;  %v18203_v54 = vld [vmem:[%s21977_s7 + $0x118] sm:$0xff]   ;;  %v18205_v8 = vld [vmem:[%s21977_s7 + $0x120] sm:$0xff]  }
 0x600   : > { %v14537_v40 = vsel %vm21643_vm10, %v14521_v22, %v14536_v59  ;;  %v18204_v36 = vld [vmem:[%s21977_s7 + $0x158] sm:$0xff]   ;;  %v18206_v51 = vld [vmem:[%s21977_s7 + $0x160] sm:$0xff]   ;;  %v18207_v59 = vld [vmem:[%s21977_s7 + $0x128] sm:$0xff]  }
 0x601   : > { %v14523_v63 = vpack.c.bf16 %v14511_v2, %v14511_v2  ;;  %14538 = vst [vmem:[#allocation4 + $0x6] sm:$0x3] %v14537_v40  ;;  %v14540_v35 = vsel %vm21643_vm10, %v14522_v4, %v14539_v17  ;;  %v18208_v22 = vld [vmem:[%s21977_s7 + $0x168] sm:$0xff]   ;;  %v18209_v17 = vld [vmem:[%s21977_s7 + $0x130] sm:$0xff]  }
 0x602   : > { %14541 = vst [vmem:[#allocation4 + $0x8] sm:$0x3] %v14540_v35  ;;  %v18210_v4 = vld [vmem:[%s21977_s7 + $0x170] sm:$0xff]  }
 0x603   : > { %v14543_v24 = vsel %vm21643_vm10, %v14523_v63, %v14542_v29  ;;  %v18211_v63 = vld [vmem:[%s21977_s7 + $0x138] sm:$0xff]  }
 0x604   : > { %14544 = vst [vmem:[#allocation4 + $0xa] sm:$0x3] %v14543_v24  ;;  %v16728_v33 = vld.sshfl [vmem:[#allocation4] sm:$0x1 pattern:$0x76325410] }
 0x605   : > { %v14596_v31 = vunpack.c.l.b16 %v16728_v33  ;;  %v16762_v44 = vld.sshfl [vmem:[#allocation4] sm:$0x2 pattern:$0x76325410]  ;;  %v18212_v24 = vld [vmem:[%s21977_s7 + $0x178] sm:$0xff]  }
 0x606   : > { %v14818_v1 = vunpack.c.l.b16 %v16762_v44  ;;  %v16788_v11 = vld.sshfl [vmem:[#allocation4 + $0x2] sm:$0x1 pattern:$0x76325410] }
 0x607   : > { %v14598_v15 = vrot.slane %v14596_v31, 1  ;;  %v14950_v50 = vunpack.c.l.b16 %v16788_v11  ;;  %v16840_v12 = vld.sshfl [vmem:[#allocation4 + $0x2] sm:$0x2 pattern:$0x76325410] }
 0x608   : > { %v16729_v7 = vld.sshfl [vmem:[#allocation4 + $0x6] sm:$0x1 pattern:$0x76325410]  ;;  %v14820_v61 = vrot.slane %v14818_v1, 2  ;;  %v15210_v29 = vunpack.c.l.b16 %v16840_v12 }
 0x609   : > { %v14597_v13 = vunpack.c.l.b16 %v16729_v7  ;;  %v16763_v32 = vld.sshfl [vmem:[#allocation4 + $0x6] sm:$0x2 pattern:$0x76325410]  ;;  %v15082_v40 = vrot.slane %v14950_v50, 1 }
 0x60a   : > { %v21716_v28 = vld.sshfl [vmem:[#allocation4 + $0x8] sm:$0x1 pattern:$0x76325410]  ;;  %v14819_v58 = vunpack.c.l.b16 %v16763_v32  ;;  %v18225_v32 = vld [vmem:[%s21977_s7 + $0x1b0] sm:$0xff]  }
 0x60b   : > { %v14600_v20 = vsel %vm14599_vm11, %v14597_v13, %v14598_v15  ;;  %v14691_v41 = vrot.slane %v14597_v13, 7  ;;  %v14951_v10 = vunpack.c.l.b16 %v21716_v28  ;;  %v16841_v26 = vld.sshfl [vmem:[#allocation4 + $0x8] sm:$0x2 pattern:$0x76325410]  ;;  %v18213_v15 = vld [vmem:[%s21977_s7 + $0x180] sm:$0xff]  }
 0x60c   : > { %v14601_v57 = vpack.c.b16 %v14600_v20, %v14600_v20  ;;  %v14821_v38 = vrot.slane %v14819_v58, 1  ;;  %v15211_v2 = vunpack.c.l.b16 %v16841_v26  ;;  %v18214_v20 = vld [vmem:[%s21977_s7 + $0x1c0] sm:$0xff]   ;;  %v18228_v58 = vld [vmem:[%s21977_s7 + $0x1f8] sm:$0xff]  }
 0x60d   : > { %v14692_v16 = vsel %vm14599_vm11, %v14691_v41, %v14596_v31  ;;  %v14952_v18 = vrot.slane %v14951_v10, 7  ;;  %v15083_v33 = vsel %vm14599_vm11, %v14951_v10, %v15082_v40  ;;  %v15212_v31 = vrot.slane %v15210_v29, 2  ;;  %v18215_v41 = vld [vmem:[%s21977_s7 + $0x188] sm:$0xff]   ;;  %v18229_v10 = vld [vmem:[%s21977_s7 + $0x200] sm:$0xff]  }
 0x60e   : > { %17778 = vmatmul.mubr.bf16.vlgmr.msra.gmra.mrb[88].mxu0 %v14601_v57  ;;  %v14693_v55 = vpack.c.b16 %v14692_v16, %v14692_v16  ;;  %v14822_v60 = vsel %vm14599_vm11, %v14821_v38, %v14820_v61  ;;  %v15213_v35 = vrot.slane %v15211_v2, 1  ;;  %v15084_v13 = vpack.c.b16 %v15083_v33, %v15083_v33  ;;  %v18216_v57 = vld [vmem:[%s21977_s7 + $0x1c8] sm:$0xff]   ;;  %v18217_v16 = vld [vmem:[%s21977_s7 + $0x190] sm:$0xff]  }
 0x60f   : > { %17802 = vmatpush3.bf16.msra.mxu0 %v18181_v47  ;;  %17817 = vmatprep.mubr.msk.bf16.mxu0 %vm18304_vm0, %v22119_v37  ;;  %v14953_v5 = vsel %vm14599_vm11, %v14952_v18, %v14950_v50  ;;  %v14823_v53 = vpack.c.b16 %v14822_v60, %v14822_v60  ;;  %v18231_v61 = vld [vmem:[%s21977_s7 + $0x210] sm:$0xff]   ;;  %v18232_v18 = vld [vmem:[%s21977_s7 + $0x218] sm:$0xff]   ;;  %v16919_v60 = vld.sshfl [vmem:[#allocation4 + $0xa] sm:$0x2 pattern:$0x76325410] }
 0x610   : > { %17798 = vmatmul.mubr.bf16.vlgmr.msra.gmra.mrb[100].mxu1 %v14693_v55  ;;  %17803 = vmatprep.subr.bf16.mxu0 %v22119_v37  ;;  %v14954_v39 = vpack.c.b16 %v14953_v5, %v14953_v5  ;;  %v15214_v7 = vsel %vm14599_vm11, %v15213_v35, %v15212_v31  ;;  %v18219_v55 = vld [vmem:[%s21977_s7 + $0x198] sm:$0xff]   ;;  %v18234_v50 = vld [vmem:[%s21977_s7 + $0x228] sm:$0xff]   ;;  %v15603_v5 = vunpack.c.l.b16 %v16919_v60 }
 0x611   : > { %17822 = vmatpush3.bf16.msra.mxu1 %v18182_v62  ;;  %17837 = vmatprep.mubr.msk.bf16.mxu1 %vm18304_vm0, %v22119_v37  ;;  %v15215_v47 = vpack.c.b16 %v15214_v7, %v15214_v7  ;;  %v18218_v62 = vld [vmem:[%s21977_s7 + $0x1d0] sm:$0xff]  }
 0x612   : > { %17823 = vmatprep.subr.bf16.mxu1 %v22119_v37 }
 0x613   : > { %17804 = vmatpush3.bf16.msra.mxu0 %v18183_v3  ;;  %v18220_v3 = vld [vmem:[%s21977_s7 + $0x1d8] sm:$0xff]  }
 0x614   : > { %17805 = vmatprep.subr.bf16.mxu0 %v22119_v37 }
 0x615   : > { %17824 = vmatpush3.bf16.msra.mxu1 %v18184_v9  ;;  %v18221_v9 = vld [vmem:[%s21977_s7 + $0x1a0] sm:$0xff]  }
 0x616   : > { %17825 = vmatprep.subr.bf16.mxu1 %v22119_v37 }
 0x617   : > { %17806 = vmatpush3.bf16.msra.mxu0 %v18185_v27  ;;  %v18222_v27 = vld [vmem:[%s21977_s7 + $0x1e0] sm:$0xff]  }
 0x618   : > { %17807 = vmatprep.subr.bf16.mxu0 %v22119_v37 }
 0x619   : > { %17826 = vmatpush3.bf16.msra.mxu1 %v18186_v48  ;;  %v16867_v48 = vld.sshfl [vmem:[#allocation4 + $0xa] sm:$0x1 pattern:$0x76325410] }
 0x61a   : > { %17827 = vmatprep.subr.bf16.mxu1 %v22119_v37 }
 0x61b   : > { %17808 = vmatpush3.bf16.msra.mxu0 %v18187_v34  ;;  %v18223_v34 = vld [vmem:[%s21977_s7 + $0x1a8] sm:$0xff]  }
 0x61c   : > { %17809 = vmatprep.subr.bf16.mxu0 %v22119_v37 }
 0x61d   : > { %17828 = vmatpush3.bf16.msra.mxu1 %v18188_v46  ;;  %v18224_v46 = vld [vmem:[%s21977_s7 + $0x1e8] sm:$0xff]  }
 0x61e   : > { %17829 = vmatprep.subr.bf16.mxu1 %v22119_v37 }
 0x61f   : > { %17810 = vmatpush3.bf16.msra.mxu0 %v18189_v0  ;;  %v15343_v0 = vunpack.c.l.b16 %v16867_v48 }
 0x620   : > { %17811 = vmatprep.subr.bf16.mxu0 %v22119_v37 }
 0x621   : > { %17830 = vmatpush3.bf16.msra.mxu1 %v18190_v30  ;;  %v16866_v30 = vld.sshfl [vmem:[#allocation4 + $0x4] sm:$0x1 pattern:$0x76325410]  ;;  %v15344_v28 = vrot.slane %v15343_v0, 7 }
 0x622   : > { %17831 = vmatprep.subr.bf16.mxu1 %v22119_v37  ;;  %v15342_v44 = vunpack.c.l.b16 %v16866_v30 }
 0x623   : > { %17812 = vmatpush3.bf16.msra.mxu0 %v18191_v23  ;;  %v18226_v23 = vld [vmem:[%s21977_s7 + $0x1f0] sm:$0xff]  }
 0x624   : > { %17813 = vmatprep.subr.bf16.mxu0 %v22119_v37  ;;  %v15474_v1 = vrot.slane %v15342_v44, 1 }
 0x625   : > { %17832 = vmatpush3.bf16.msra.mxu1 %v18192_v49  ;;  %v18227_v49 = vld [vmem:[%s21977_s7 + $0x1b8] sm:$0xff]  }
 0x626   : > { %17833 = vmatprep.subr.bf16.mxu1 %v22119_v37 }
 0x627   : > { %17814 = vmatpush3.bf16.msra.mxu0 %v18193_v21  ;;  %v15345_v21 = vsel %vm14599_vm11, %v15344_v28, %v15342_v44  ;;  %v16928_v28 = vld [vmem:[%s21978_s8] ss:$0 sm:$0xff] }
 0x628   : > { %17815 = vmatprep.subr.bf16.mxu0 %v22119_v37  ;;  %v15346_v38 = vpack.c.b16 %v15345_v21, %v15345_v21 }
 0x629   : > { %17834 = vmatpush3.bf16.msra.mxu1 %v18194_v25  ;;  %v15475_v25 = vsel %vm14599_vm11, %v15343_v0, %v15474_v1 }
 0x62a   : > { %17835 = vmatprep.subr.bf16.mxu1 %v22119_v37  ;;  %v15476_v11 = vpack.c.b16 %v15475_v25, %v15475_v25 }
 0x62b   : > { %17816 = vmatpush3.bf16.msra.mxu0 %v18195_v14  ;;  %v18230_v14 = vld [vmem:[%s21977_s7 + $0x208] sm:$0xff]  }
 0x62c   : > { %17841 = vmatprep.subr.bf16.mxu0 %v22119_v37 }
 0x62d   : > { %17836 = vmatpush3.bf16.msra.mxu1 %v18196_v6  ;;  %v18233_v6 = vld [vmem:[%s21977_s7 + $0x220] sm:$0xff]  }
 0x62e   : > { %17818 = vmatmul.mubr.bf16.vlgmr.msra.gmra.mrb[92].mxu0 %v14823_v53  ;;  %17861 = vmatprep.subr.bf16.mxu1 %v22119_v37  ;;  %v18235_v53 = vld [vmem:[%s21977_s7 + $0x230] sm:$0xff]  }
 0x62f   : > { %17842 = vmatpush3.bf16.msra.mxu0 %v18197_v42  ;;  %17857 = vmatprep.mubr.msk.bf16.mxu0 %vm18304_vm0, %v22119_v37  ;;  %v16918_v42 = vld.sshfl [vmem:[#allocation4 + $0x4] sm:$0x2 pattern:$0x76325410] }
 0x630   : > { %17838 = vmatmul.mubr.bf16.vlgmr.msra.gmra.mrb[104].mxu1 %v14954_v39  ;;  %17843 = vmatprep.subr.bf16.mxu0 %v22119_v37  ;;  %v15605_v39 = vrot.slane %v15603_v5, 1 }
 0x631   : > { %17862 = vmatpush3.bf16.msra.mxu1 %v18198_v52  ;;  %17877 = vmatprep.mubr.msk.bf16.mxu1 %vm18304_vm0, %v22119_v37  ;;  %v15602_v52 = vunpack.c.l.b16 %v16918_v42 }
 0x632   : > { %17863 = vmatprep.subr.bf16.mxu1 %v22119_v37 }
 0x633   : > { %17844 = vmatpush3.bf16.msra.mxu0 %v18199_v19  ;;  %v18236_v19 = vld [vmem:[%s21977_s7 + $0x238] sm:$0xff]  }
 0x634   : > { %17845 = vmatprep.subr.bf16.mxu0 %v22119_v37 }
 0x635   : > { %17864 = vmatpush3.bf16.msra.mxu1 %v18200_v45  ;;  %v15604_v45 = vrot.slane %v15602_v52, 2 }
 0x636   : > { %17865 = vmatprep.subr.bf16.mxu1 %v22119_v37 }
 0x637   : > { %17846 = vmatpush3.bf16.msra.mxu0 %v18201_v56  ;;  %v15606_v56 = vsel %vm14599_vm11, %v15605_v39, %v15604_v45 }
 0x638   : > { %17847 = vmatprep.subr.bf16.mxu0 %v22119_v37 }
 0x639   : > { %17866 = vmatpush3.bf16.msra.mxu1 %v18202_v43  ;;  %v15607_v43 = vpack.c.b16 %v15606_v56, %v15606_v56 }
 0x63a   : > { %17867 = vmatprep.subr.bf16.mxu1 %v22119_v37 }
 0x63b   : > { %17848 = vmatpush3.bf16.msra.mxu0 %v18203_v54 }
 0x63c   : > { %17849 = vmatprep.subr.bf16.mxu0 %v22119_v37 }
 0x63d   : > { %17868 = vmatpush3.bf16.msra.mxu1 %v18204_v36 }
 0x63e   : > { %17869 = vmatprep.subr.bf16.mxu1 %v22119_v37 }
 0x63f   : > { %17850 = vmatpush3.bf16.msra.mxu0 %v18205_v8 }
 0x640   : > { %17851 = vmatprep.subr.bf16.mxu0 %v22119_v37 }
 0x641   : > { %17870 = vmatpush3.bf16.msra.mxu1 %v18206_v51 }
 0x642   : > { %17871 = vmatprep.subr.bf16.mxu1 %v22119_v37 }
 0x643   : > { %17852 = vmatpush3.bf16.msra.mxu0 %v18207_v59 }
 0x644   : > { %17853 = vmatprep.subr.bf16.mxu0 %v22119_v37 }
 0x645   : > { %17872 = vmatpush3.bf16.msra.mxu1 %v18208_v22 }
 0x646   : > { %17873 = vmatprep.subr.bf16.mxu1 %v22119_v37 }
 0x647   : > { %17854 = vmatpush3.bf16.msra.mxu0 %v18209_v17 }
 0x648   : > { %17855 = vmatprep.subr.bf16.mxu0 %v22119_v37 }
 0x649   : > { %17874 = vmatpush3.bf16.msra.mxu1 %v18210_v4 }
 0x64a   : > { %17875 = vmatprep.subr.bf16.mxu1 %v22119_v37 }
 0x64b   : > { %17856 = vmatpush3.bf16.msra.mxu0 %v18211_v63 }
 0x64c   : > { %17881 = vmatprep.subr.bf16.mxu0 %v22119_v37 }
 0x64d   : > { %17876 = vmatpush3.bf16.msra.mxu1 %v18212_v24 }
 0x64e   : > { %17858 = vmatmul.mubr.bf16.vlgmr.msra.gmra.mrb[96].mxu0 %v15084_v13  ;;  %17901 = vmatprep.subr.bf16.mxu1 %v22119_v37 }
 0x64f   : > { %17882 = vmatpush3.bf16.msra.mxu0 %v18213_v15  ;;  %17897 = vmatprep.mubr.msk.bf16.mxu0 %vm18304_vm0, %v22119_v37 }
 0x650   : > { %17878 = vmatmul.mubr.bf16.vlgmr.msra.gmra.mrb[108].mxu1 %v15215_v47  ;;  %17883 = vmatprep.subr.bf16.mxu0 %v22119_v37 }
 0x651   : > { %17902 = vmatpush3.bf16.msra.mxu1 %v18214_v20  ;;  %17917 = vmatprep.mubr.msk.bf16.mxu1 %vm18304_vm0, %v22119_v37 }
 0x652   : > { %17903 = vmatprep.subr.bf16.mxu1 %v22119_v37 }
 0x653   : > { %17884 = vmatpush3.bf16.msra.mxu0 %v18215_v41 }
 0x654   : > { %17885 = vmatprep.subr.bf16.mxu0 %v22119_v37 }
 0x655   : > { %17904 = vmatpush3.bf16.msra.mxu1 %v18216_v57 }
 0x656   : > { %17905 = vmatprep.subr.bf16.mxu1 %v22119_v37 }
 0x657   : > { %17886 = vmatpush3.bf16.msra.mxu0 %v18217_v16 }
 0x658   : > { %17887 = vmatprep.subr.bf16.mxu0 %v22119_v37 }
 0x659   : > { %17906 = vmatpush3.bf16.msra.mxu1 %v18218_v62 }
 0x65a   : > { %17907 = vmatprep.subr.bf16.mxu1 %v22119_v37 }
 0x65b   : > { %17888 = vmatpush3.bf16.msra.mxu0 %v18219_v55 }
 0x65c   : > { %17889 = vmatprep.subr.bf16.mxu0 %v22119_v37 }
 0x65d   : > { %17908 = vmatpush3.bf16.msra.mxu1 %v18220_v3 }
 0x65e   : > { %17909 = vmatprep.subr.bf16.mxu1 %v22119_v37 }
 0x65f   : > { %17890 = vmatpush3.bf16.msra.mxu0 %v18221_v9 }
 0x660   : > { %17891 = vmatprep.subr.bf16.mxu0 %v22119_v37 }
 0x661   : > { %17910 = vmatpush3.bf16.msra.mxu1 %v18222_v27 }
 0x662   : > { %17911 = vmatprep.subr.bf16.mxu1 %v22119_v37 }
 0x663   : > { %17892 = vmatpush3.bf16.msra.mxu0 %v18223_v34 }
 0x664   : > { %17893 = vmatprep.subr.bf16.mxu0 %v22119_v37 }
 0x665   : > { %17912 = vmatpush3.bf16.msra.mxu1 %v18224_v46 }
 0x666   : > { %17913 = vmatprep.subr.bf16.mxu1 %v22119_v37 }
 0x667   : > { %17894 = vmatpush3.bf16.msra.mxu0 %v18225_v32 }
 0x668   : > { %17895 = vmatprep.subr.bf16.mxu0 %v22119_v37 }
 0x669   : > { %17914 = vmatpush3.bf16.msra.mxu1 %v18226_v23 }
 0x66a   : > { %17915 = vmatprep.subr.bf16.mxu1 %v22119_v37 }
 0x66b   : > { %17896 = vmatpush3.bf16.msra.mxu0 %v18227_v49 }
 0x66c   : > { %17921 = vmatprep.subr.bf16.mxu0 %v22119_v37 }
 0x66d   : > { %17916 = vmatpush3.bf16.msra.mxu1 %v18228_v58 }
 0x66e   : > { %17898 = vmatmul.mubr.bf16.vlgmr.msra.gmra.mrb[100].mxu0 %v15346_v38 }
 0x66f   : > { %17922 = vmatpush3.bf16.msra.mxu0 %v18229_v10  ;;  %17937 = vmatprep.mubr.msk.bf16.mxu0 %vm18304_vm0, %v22119_v37 }
 0x670   : > { %17918 = vmatmul.mubr.bf16.vlgmr.msra.gmra.mrb[112].mxu1 %v15476_v11  ;;  %17923 = vmatprep.subr.bf16.mxu0 %v22119_v37 }
 0x673   : > { %17924 = vmatpush3.bf16.msra.mxu0 %v18230_v14 }
 0x674   : > { %17925 = vmatprep.subr.bf16.mxu0 %v22119_v37 }
 0x677   : > { %17926 = vmatpush3.bf16.msra.mxu0 %v18231_v61 }
 0x678   : > { %17927 = vmatprep.subr.bf16.mxu0 %v22119_v37 }
 0x67b   : > { %17928 = vmatpush3.bf16.msra.mxu0 %v18232_v18 }
 0x67c   : > { %17929 = vmatprep.subr.bf16.mxu0 %v22119_v37 }
 0x67f   : > { %17930 = vmatpush3.bf16.msra.mxu0 %v18233_v6 }
 0x680   : > { %17931 = vmatprep.subr.bf16.mxu0 %v22119_v37 }
 0x683   : > { %17932 = vmatpush3.bf16.msra.mxu0 %v18234_v50 }
 0x684   : > { %17933 = vmatprep.subr.bf16.mxu0 %v22119_v37 }
 0x687   : > { %17934 = vmatpush3.bf16.msra.mxu0 %v18235_v53 }
 0x688   : > { %17935 = vmatprep.subr.bf16.mxu0 %v22119_v37 }
 0x68b   : > { %17936 = vmatpush3.bf16.msra.mxu0 %v18236_v19 }
 0x68e   : > { %17938 = vmatmul.mubr.bf16.vlgmr.msra.gmra.mrb[104].mxu0 %v15607_v43 }
 0x6e1   : > { %v14685_v54 = vpop.f32.mrb[88].mxu0 }
 0x6e2   : > { %v17779_v36 = vpop.f32.mrb[89].mxu0 }
 0x6e3   : > { %v14688_v8 = vpop.f32.mrb[90].mxu0  ;;  %v14777_v51 = vpop.f32.mrb[100].mxu1 }
 0x6e4   : > { %v14778_v59 = vadd.f32 %v14777_v51, %v14685_v54  ;;  %v17780_v26 = vpop.f32.mrb[91].mxu0  ;;  %v17799_v22 = vpop.f32.mrb[101].mxu1 }
 0x6e5   : > { %v14780_v12 = vpop.f32.mrb[102].mxu1 }
 0x6e6   : > { %v17800_v17 = vpop.f32.mrb[103].mxu1 }
 0x701   : > { %v14907_v2 = vpop.f32.mrb[92].mxu0 }
 0x702   : > { %v14913_v4 = vadd.f32 %v14907_v2, %v14778_v59  ;;  %v17819_v40 = vpop.f32.mrb[93].mxu0 }
 0x703   : > { %v14910_v29 = vpop.f32.mrb[94].mxu0  ;;  %v15038_v63 = vpop.f32.mrb[104].mxu1 }
 0x704   : > { %v15044_v37 = vadd.f32 %v15038_v63, %v14913_v4  ;;  %v17820_v35 = vpop.f32.mrb[95].mxu0  ;;  %v17839_v24 = vpop.f32.mrb[105].mxu1 }
 0x705   : > { %v15041_v33 = vpop.f32.mrb[106].mxu1 }
 0x706   : > { %v17840_v31 = vpop.f32.mrb[107].mxu1 }
 0x721   : > { %v15168_v15 = vpop.f32.mrb[96].mxu0 }
 0x722   : > { %v15174_v7 = vadd.f32 %v15168_v15, %v15044_v37  ;;  %v17859_v13 = vpop.f32.mrb[97].mxu0 }
 0x723   : > { %v15171_v20 = vpop.f32.mrb[98].mxu0  ;;  %v15299_v47 = vpop.f32.mrb[108].mxu1 }
 0x724   : > { %v15305_v41 = vadd.f32 %v15299_v47, %v15174_v7  ;;  %v17860_v57 = vpop.f32.mrb[99].mxu0  ;;  %v17879_v16 = vpop.f32.mrb[109].mxu1 }
 0x725   : > { %v15302_v62 = vpop.f32.mrb[110].mxu1 }
 0x726   : > { %v17880_v55 = vpop.f32.mrb[111].mxu1 }
 0x741   : > { %v15430_v3 = vpop.f32.mrb[100].mxu0 }
 0x742   : > { %v15436_v9 = vadd.f32 %v15430_v3, %v15305_v41  ;;  %v17899_v27 = vpop.f32.mrb[101].mxu0 }
 0x743   : > { %v15433_v48 = vpop.f32.mrb[102].mxu0  ;;  %v15560_v34 = vpop.f32.mrb[112].mxu1 }
 0x744   : > { %v15566_v46 = vadd.f32 %v15560_v34, %v15436_v9  ;;  %v17900_v0 = vpop.f32.mrb[103].mxu0  ;;  %v17919_v30 = vpop.f32.mrb[113].mxu1 }
 0x745   : > { %v15563_v32 = vpop.f32.mrb[114].mxu1 }
 0x746   : > { %v17920_v23 = vpop.f32.mrb[115].mxu1 }
 0x761   : > { %v15691_v44 = vpop.f32.mrb[104].mxu0 }
 0x762   : > { %v15697_v49 = vadd.f32 %v15691_v44, %v15566_v46  ;;  %v17939_v58 = vpop.f32.mrb[105].mxu0 }
 0x763   : > { %v15694_v21 = vpop.f32.mrb[106].mxu0 }
 0x764   : > { %v15705_v1 = vadd.f32 %v16928_v28, %v15697_v49  ;;  %v17940_v10 = vpop.f32.mrb[107].mxu0 }
 0x766   : > { %15706 = vst [vmem:[%s328_s23] sm:$0x3] %v15705_v1 }
 0x767   : > { %18251 = shalt.err (!%p18248_p3)
}
 0x768   : > { %s18252_s14 = scalar_lea.hbm %s21928_s27, 32  ;;  %s18256_s23 = scalar_lea.hbm %s21979_s9, 64 }
 0x769   : > { %p18253_p4 = scmp.ne.s32.totalorder %s21928_s27, %s18252_s14  ;;  %p18257_p9 = scmp.lt.u32.totalorder %s21928_s27, %s21979_s9 }
 0x76a   : > { %p18258_p10 = scmp.lt.u32.totalorder %s18256_s23, %s18252_s14  ;;  %p18260_p12 = scmp.lt.u32.totalorder %s18252_s14, %s21928_s27 }
 0x76b   : > { %p18254_p7 = pnand %p18253_p4, %p18394_p5 }
 0x76c   : > { %p18259_p11 = por %p18258_p10, %p18257_p9 }
 0x76d   : > { %p18255_p8 = pneg %p18254_p7 }
 0x76e   : > { %p18261_p13 = por %p18260_p12, %p18259_p11 }
 0x770   : > { %p18262_p0 = pnand %p18261_p13, %p18255_p8 }
 0x772   : > { %18265 = shalt.err (!%p18262_p0)
}
 0x773   : > { %17975 = dma.vmem_to_hbm [thread:$0]  (%p18394_p5), %s21930_s24, 32, %s21928_s27, %s15708_s28  }
 0x774 PF: > { %p17981_p1 = scmp.ge.s32.totalorder %s18300_s12, 2  ;;  %s15733_s13 = sand.u32 1, %s18288_s30  }
 0x775   : > { %s15734_s29 = scalar_lea.sflag [#allocation6], %s15733_s13 }
 0x776   : > { %p17978_p2 = pnand %p17981_p1, %p18398_p6 }
 0x778   : > { %18283 = dma.done.wait (!%p17978_p2), %s15734_s29, 32  }
 0x779   : > { %18285 = vsyncadd (!%p17978_p2), %s15734_s29, 4294967264  ;;  %p19_p3 = scmp.ge.s32.totalorder %s18381_s15, 4   ;;  %s22124_s30 = smov %s18292_s10 }
 0x77a   : > { %s22125_s10 = smov %s18296_s11  ;;  %s22126_s11 = smov %s18392_s18 }
 0x77b   : > { %s22127_s12 = smov %s18381_s15  ;;  %21 = sbr.rel (!%p19_p3) target bundleno = 3 (0x3), region = 125 }
 0x782   :  { %15739 = vsyncpa [#allocation6], 1 }
 0x783   :  { %15741 = vsyncpa [#allocation6 + $0x1], 1 }

</bundles_post_ra>
